<compile_context>
chip_gen: v7x
topology: tpu7x:2x2x1
jax: 0.10.0
libtpu: 0.0.40
codegen_flags: <defaults>
</compile_context>

<pallas_src>
import math
import functools

import jax
import jax.numpy as jnp
from jax.experimental import pallas as pl
from jax.experimental.pallas import tpu as pltpu


# ----------------------------------------------------------------------------
# Kernel: one (T, W) output tile per grid step, W = pack * out_dim (<=128).
#   ang = sum_g x[:, g] * A[g, :]     (block-diagonal frequency scales)
#   lin = sum_g x[:, g] * L[g, :]     (raw-coordinate pass-through columns)
#   out = lin + sin(ang + phase)      (phase = pi/2 on cos columns, else 0)
# For raw columns A and phase are 0, so sin() contributes exactly 0 there; for
# trig columns L is 0. Every column matches the per-column reference exactly.
# ----------------------------------------------------------------------------
def _pos_enc_kernel(x_ref, a_ref, l_ref, phase_ref, o_ref, *, n_in):
    x = x_ref[...]                       # (T, n_in)   packed coords
    A = a_ref[...]                       # (n_in, W)   2^i * pi scales
    L = l_ref[...]                       # (n_in, W)   pass-through selectors
    phase = phase_ref[...]               # (1, W)      0 or pi/2

    T = x.shape[0]
    W = A.shape[-1]

    # Explicitly materialize each lane-broadcast once and reuse it for both
    # accumulators (JAX does not CSE broadcast_in_dim).
    xg = jnp.broadcast_to(x[:, 0:1], (T, W))
    ang = xg * A[0:1, :]
    lin = xg * L[0:1, :]
    for g in range(1, n_in):             # n_in <= 6: static, fully unrolled
        xg = jnp.broadcast_to(x[:, g:g + 1], (T, W))
        ang = ang + xg * A[g:g + 1, :]
        lin = lin + xg * L[g:g + 1, :]

    # Single EUP pass: cos columns are sin(angle + pi/2) via the phase table.
    o_ref[...] = (lin + jnp.sin(ang + phase)).astype(o_ref.dtype)


# ----------------------------------------------------------------------------
# Wrapper mirroring the PyTorch module
# ----------------------------------------------------------------------------
class PosEncodingPallas:
    def __init__(self, in_features, sidelength=None, fn_samples=None,
                 use_nyquist=True, tile_rows=1024):
        self.in_features = in_features
        if in_features == 3:
            self.num_frequencies = 10
        elif in_features == 2:
            assert sidelength is not None
            if isinstance(sidelength, int):
                sidelength = (sidelength, sidelength)
            self.num_frequencies = 4
            if use_nyquist:
                self.num_frequencies = self._nyquist(min(sidelength[0], sidelength[1]))
        elif in_features == 1:
            assert fn_samples is not None
            self.num_frequencies = 4
            if use_nyquist:
                self.num_frequencies = self._nyquist(fn_samples)
        else:
            raise ValueError("in_features must be 1, 2 or 3")

        self.out_dim = in_features + 2 * in_features * self.num_frequencies
        # Pack P points per vreg row so P*out_dim fills (nearly) all 128 lanes.
        self.pack = max(1, 128 // self.out_dim)
        # Rows (of packed points) per grid step; multiple of 8 for clean tiles.
        self.tile_rows = max(8, (int(tile_rows) // 8) * 8)

        # ---- constant tables for the packed layout (column order == torch) --
        F, nf, od, P = self.in_features, self.num_frequencies, self.out_dim, self.pack
        n_in, W = P * F, P * od
        A = [[0.0] * W for _ in range(n_in)]
        L = [[0.0] * W for _ in range(n_in)]
        phase = [0.0] * W
        for p in range(P):                         # block-diagonal over points
            in0, out0 = p * F, p * od
            for j in range(F):                     # raw coordinate columns
                L[in0 + j][out0 + j] = 1.0
            col = out0 + F
            for i in range(nf):
                for j in range(F):
                    A[in0 + j][col] = (2.0 ** i) * math.pi      # sin column
                    phase[col] = 0.0
                    col += 1
                    A[in0 + j][col] = (2.0 ** i) * math.pi      # cos column
                    phase[col] = math.pi / 2.0
                    col += 1
        self._A = jnp.asarray(A, jnp.float32)
        self._L = jnp.asarray(L, jnp.float32)
        self._phase = jnp.asarray([phase], jnp.float32)

    @staticmethod
    def _nyquist(samples):
        nyquist_rate = 1 / (2 * (2 * 1 / samples))
        return int(math.floor(math.log(nyquist_rate, 2)))

    def __call__(self, coords):
        F, od, P = self.in_features, self.out_dim, self.pack
        n_in, W = P * F, P * od
        B = coords.shape[0]
        x = coords.reshape(B, -1, F).astype(jnp.float32)
        N = x.shape[1]

        # Pad the (cheap) input so N is a multiple of the pack factor.
        Np = ((N + P - 1) // P) * P
        if Np != N:
            x = jnp.pad(x, ((0, 0), (0, Np - N), (0, 0)))
        R = Np // P
        rows = B * R

        # Free contiguous reshape: P consecutive points per row, flat batch.
        x_flat = x.reshape(rows, n_in)

        T = self.tile_rows if rows >= self.tile_rows else rows
        grid = (pl.cdiv(rows, T),)

        cost = pl.CostEstimate(
            flops=int(rows * W * (4 * n_in + 3)),
            transcendentals=int(rows * W),
            bytes_accessed=int(4 * (rows * n_in + rows * W + 2 * n_in * W + W)),
        )

        out = pl.pallas_call(
            functools.partial(_pos_enc_kernel, n_in=n_in),
            out_shape=jax.ShapeDtypeStruct((rows, W), jnp.float32),
            grid_spec=pltpu.PrefetchScalarGridSpec(
                num_scalar_prefetch=0,
                grid=grid,
                in_specs=[
                    pl.BlockSpec((T, n_in), lambda n: (n, 0)),
                    pl.BlockSpec((n_in, W), lambda n: (0, 0)),
                    pl.BlockSpec((n_in, W), lambda n: (0, 0)),
                    pl.BlockSpec((1, W), lambda n: (0, 0)),
                ],
                out_specs=pl.BlockSpec((T, W), lambda n: (n, 0)),
            ),
            compiler_params=pltpu.CompilerParams(
                dimension_semantics=("parallel",)),
            cost_estimate=cost,
        )(x_flat, self._A, self._L, self._phase)

        # Free contiguous reshape back to (B, Np, out_dim).
        out = out.reshape(B, Np, od)
        if Np != N:                       # only when N % pack != 0 (rare path)
            out = out[:, :N, :]
        return out


# ----------------------------------------------------------------------------
# Pure-JAX reference (mirrors the torch forward loop exactly)
# ----------------------------------------------------------------------------
def pos_encoding_reference(coords, in_features, num_frequencies):
    B = coords.shape[0]
    x = coords.reshape(B, -1, in_features)
    parts = [x]
    for i in range(num_frequencies):
        for j in range(in_features):
            c = x[..., j]
            parts.append(jnp.sin(2 ** i * math.pi * c)[..., None])
            parts.append(jnp.cos(2 ** i * math.pi * c)[..., None])
    return jnp.concatenate(parts, axis=-1)


# ----------------------------------------------------------------------------
# Demo
# ----------------------------------------------------------------------------
if __name__ == "__main__":
    key = jax.random.PRNGKey(0)
    B, Hs, Ws, F = 2, 16, 16, 3           # (batch, spatial, spatial, xyz)

    coords = jax.random.uniform(key, (B, Hs, Ws, F), jnp.float32,
                                minval=-1.0, maxval=1.0)

    enc = PosEncodingPallas(in_features=F)      # F=3 -> 10 freqs, out_dim=63
    out = jax.block_until_ready(enc(coords))

    assert out.shape == (B, Hs * Ws, enc.out_dim)
    ref = pos_encoding_reference(coords, F, enc.num_frequencies)
    # Highest-frequency args reach |arg| ~ 2^9*pi ~ 1.6e3: Mosaic-vs-XLA sin
    # range reduction plus the f32 "+pi/2" phase add differ by up to ~1e-4
    # absolute there, hence the tolerance.
    err = float(jnp.max(jnp.abs(out - ref)))
    assert jnp.allclose(out, ref, atol=3e-3, rtol=3e-3), err

    print("KERNEL_OK")
</pallas_src>

<mosaic_0001>
module attributes {stable_mosaic.version = 11 : i64} {
  func.func @_pos_enc_kernel(%arg0: i32, %arg1: memref<256x6xf32, #tpu.memory_space<vmem>>, %arg2: memref<6x126xf32, #tpu.memory_space<vmem>>, %arg3: memref<6x126xf32, #tpu.memory_space<vmem>>, %arg4: memref<1x126xf32, #tpu.memory_space<vmem>>, %arg5: memref<256x126xf32, #tpu.memory_space<vmem>>) attributes {dimension_semantics = [#tpu.dimension_semantics<parallel>], iteration_bounds = array<i64: 1>, scalar_prefetch = 0 : i64, scratch_operands = 0 : i64, tpu.core_type = #tpu.core_type<tc>, window_params = [{transform_indices = @transform_0, window_bounds = array<i64: 256, 6>}, {pipeline_mode = #tpu.pipeline_mode<synchronous>, transform_indices = @transform_1, window_bounds = array<i64: 6, 126>}, {pipeline_mode = #tpu.pipeline_mode<synchronous>, transform_indices = @transform_2, window_bounds = array<i64: 6, 126>}, {pipeline_mode = #tpu.pipeline_mode<synchronous>, transform_indices = @transform_3, window_bounds = array<i64: 1, 126>}, {transform_indices = @transform_4, window_bounds = array<i64: 256, 126>}]} {
    %c0 = arith.constant 0 : index
    %c0_0 = arith.constant 0 : index
    %0 = vector.load %arg1[%c0, %c0_0] : memref<256x6xf32, #tpu.memory_space<vmem>>, vector<256x6xf32>
    %c0_1 = arith.constant 0 : index
    %c0_2 = arith.constant 0 : index
    %1 = vector.load %arg2[%c0_1, %c0_2] : memref<6x126xf32, #tpu.memory_space<vmem>>, vector<6x126xf32>
    %c0_3 = arith.constant 0 : index
    %c0_4 = arith.constant 0 : index
    %2 = vector.load %arg3[%c0_3, %c0_4] : memref<6x126xf32, #tpu.memory_space<vmem>>, vector<6x126xf32>
    %c0_5 = arith.constant 0 : index
    %c0_6 = arith.constant 0 : index
    %3 = vector.load %arg4[%c0_5, %c0_6] : memref<1x126xf32, #tpu.memory_space<vmem>>, vector<1x126xf32>
    %4 = vector.extract_strided_slice %0 {offsets = [0, 0], sizes = [256, 1], strides = [1, 1]} : vector<256x6xf32> to vector<256x1xf32>
    %5 = vector.shape_cast %4 : vector<256x1xf32> to vector<256x1xf32>
    %6 = vector.broadcast %5 : vector<256x1xf32> to vector<256x126xf32>
    %7 = vector.extract_strided_slice %1 {offsets = [0, 0], sizes = [1, 126], strides = [1, 1]} : vector<6x126xf32> to vector<1x126xf32>
    %8 = vector.broadcast %7 : vector<1x126xf32> to vector<256x126xf32>
    %9 = arith.mulf %6, %8 : vector<256x126xf32>
    %10 = vector.extract_strided_slice %2 {offsets = [0, 0], sizes = [1, 126], strides = [1, 1]} : vector<6x126xf32> to vector<1x126xf32>
    %11 = vector.broadcast %10 : vector<1x126xf32> to vector<256x126xf32>
    %12 = arith.mulf %6, %11 : vector<256x126xf32>
    %13 = vector.extract_strided_slice %0 {offsets = [0, 1], sizes = [256, 1], strides = [1, 1]} : vector<256x6xf32> to vector<256x1xf32>
    %14 = vector.shape_cast %13 : vector<256x1xf32> to vector<256x1xf32>
    %15 = vector.broadcast %14 : vector<256x1xf32> to vector<256x126xf32>
    %16 = vector.extract_strided_slice %1 {offsets = [1, 0], sizes = [1, 126], strides = [1, 1]} : vector<6x126xf32> to vector<1x126xf32>
    %17 = vector.broadcast %16 : vector<1x126xf32> to vector<256x126xf32>
    %18 = arith.mulf %15, %17 : vector<256x126xf32>
    %19 = arith.addf %9, %18 : vector<256x126xf32>
    %20 = vector.extract_strided_slice %2 {offsets = [1, 0], sizes = [1, 126], strides = [1, 1]} : vector<6x126xf32> to vector<1x126xf32>
    %21 = vector.broadcast %20 : vector<1x126xf32> to vector<256x126xf32>
    %22 = arith.mulf %15, %21 : vector<256x126xf32>
    %23 = arith.addf %12, %22 : vector<256x126xf32>
    %24 = vector.extract_strided_slice %0 {offsets = [0, 2], sizes = [256, 1], strides = [1, 1]} : vector<256x6xf32> to vector<256x1xf32>
    %25 = vector.shape_cast %24 : vector<256x1xf32> to vector<256x1xf32>
    %26 = vector.broadcast %25 : vector<256x1xf32> to vector<256x126xf32>
    %27 = vector.extract_strided_slice %1 {offsets = [2, 0], sizes = [1, 126], strides = [1, 1]} : vector<6x126xf32> to vector<1x126xf32>
    %28 = vector.broadcast %27 : vector<1x126xf32> to vector<256x126xf32>
    %29 = arith.mulf %26, %28 : vector<256x126xf32>
    %30 = arith.addf %19, %29 : vector<256x126xf32>
    %31 = vector.extract_strided_slice %2 {offsets = [2, 0], sizes = [1, 126], strides = [1, 1]} : vector<6x126xf32> to vector<1x126xf32>
    %32 = vector.broadcast %31 : vector<1x126xf32> to vector<256x126xf32>
    %33 = arith.mulf %26, %32 : vector<256x126xf32>
    %34 = arith.addf %23, %33 : vector<256x126xf32>
    %35 = vector.extract_strided_slice %0 {offsets = [0, 3], sizes = [256, 1], strides = [1, 1]} : vector<256x6xf32> to vector<256x1xf32>
    %36 = vector.shape_cast %35 : vector<256x1xf32> to vector<256x1xf32>
    %37 = vector.broadcast %36 : vector<256x1xf32> to vector<256x126xf32>
    %38 = vector.extract_strided_slice %1 {offsets = [3, 0], sizes = [1, 126], strides = [1, 1]} : vector<6x126xf32> to vector<1x126xf32>
    %39 = vector.broadcast %38 : vector<1x126xf32> to vector<256x126xf32>
    %40 = arith.mulf %37, %39 : vector<256x126xf32>
    %41 = arith.addf %30, %40 : vector<256x126xf32>
    %42 = vector.extract_strided_slice %2 {offsets = [3, 0], sizes = [1, 126], strides = [1, 1]} : vector<6x126xf32> to vector<1x126xf32>
    %43 = vector.broadcast %42 : vector<1x126xf32> to vector<256x126xf32>
    %44 = arith.mulf %37, %43 : vector<256x126xf32>
    %45 = arith.addf %34, %44 : vector<256x126xf32>
    %46 = vector.extract_strided_slice %0 {offsets = [0, 4], sizes = [256, 1], strides = [1, 1]} : vector<256x6xf32> to vector<256x1xf32>
    %47 = vector.shape_cast %46 : vector<256x1xf32> to vector<256x1xf32>
    %48 = vector.broadcast %47 : vector<256x1xf32> to vector<256x126xf32>
    %49 = vector.extract_strided_slice %1 {offsets = [4, 0], sizes = [1, 126], strides = [1, 1]} : vector<6x126xf32> to vector<1x126xf32>
    %50 = vector.broadcast %49 : vector<1x126xf32> to vector<256x126xf32>
    %51 = arith.mulf %48, %50 : vector<256x126xf32>
    %52 = arith.addf %41, %51 : vector<256x126xf32>
    %53 = vector.extract_strided_slice %2 {offsets = [4, 0], sizes = [1, 126], strides = [1, 1]} : vector<6x126xf32> to vector<1x126xf32>
    %54 = vector.broadcast %53 : vector<1x126xf32> to vector<256x126xf32>
    %55 = arith.mulf %48, %54 : vector<256x126xf32>
    %56 = arith.addf %45, %55 : vector<256x126xf32>
    %57 = vector.extract_strided_slice %0 {offsets = [0, 5], sizes = [256, 1], strides = [1, 1]} : vector<256x6xf32> to vector<256x1xf32>
    %58 = vector.shape_cast %57 : vector<256x1xf32> to vector<256x1xf32>
    %59 = vector.broadcast %58 : vector<256x1xf32> to vector<256x126xf32>
    %60 = vector.extract_strided_slice %1 {offsets = [5, 0], sizes = [1, 126], strides = [1, 1]} : vector<6x126xf32> to vector<1x126xf32>
    %61 = vector.broadcast %60 : vector<1x126xf32> to vector<256x126xf32>
    %62 = arith.mulf %59, %61 : vector<256x126xf32>
    %63 = arith.addf %52, %62 : vector<256x126xf32>
    %64 = vector.extract_strided_slice %2 {offsets = [5, 0], sizes = [1, 126], strides = [1, 1]} : vector<6x126xf32> to vector<1x126xf32>
    %65 = vector.broadcast %64 : vector<1x126xf32> to vector<256x126xf32>
    %66 = arith.mulf %59, %65 : vector<256x126xf32>
    %67 = arith.addf %56, %66 : vector<256x126xf32>
    %68 = vector.broadcast %3 : vector<1x126xf32> to vector<256x126xf32>
    %69 = arith.addf %63, %68 : vector<256x126xf32>
    %70 = math.sin %69 : vector<256x126xf32>
    %71 = arith.addf %67, %70 : vector<256x126xf32>
    %c0_7 = arith.constant 0 : index
    %c0_8 = arith.constant 0 : index
    %72 = vector.load %arg5[%c0_7, %c0_8] : memref<256x126xf32, #tpu.memory_space<vmem>>, vector<256x126xf32>
    tpu.vector_store %arg5[%c0_7, %c0_8], %71 {strides = array<i32>} : memref<256x126xf32, #tpu.memory_space<vmem>>, vector<256x126xf32>,
    return
  }
  func.func @transform_0(%arg0: i32) -> (i32, i32) {
    %c0_i32 = arith.constant 0 : i32
    %c0_i32_0 = arith.constant 0 : i32
    return %arg0, %c0_i32 : i32, i32
  }
  func.func @transform_1(%arg0: i32) -> (i32, i32) {
    %c0_i32 = arith.constant 0 : i32
    %c0_i32_0 = arith.constant 0 : i32
    %c0_i32_1 = arith.constant 0 : i32
    return %c0_i32, %c0_i32_0 : i32, i32
  }
  func.func @transform_2(%arg0: i32) -> (i32, i32) {
    %c0_i32 = arith.constant 0 : i32
    %c0_i32_0 = arith.constant 0 : i32
    %c0_i32_1 = arith.constant 0 : i32
    return %c0_i32, %c0_i32_0 : i32, i32
  }
  func.func @transform_3(%arg0: i32) -> (i32, i32) {
    %c0_i32 = arith.constant 0 : i32
    %c0_i32_0 = arith.constant 0 : i32
    %c0_i32_1 = arith.constant 0 : i32
    return %c0_i32, %c0_i32_0 : i32, i32
  }
  func.func @transform_4(%arg0: i32) -> (i32, i32) {
    %c0_i32 = arith.constant 0 : i32
    %c0_i32_0 = arith.constant 0 : i32
    return %arg0, %c0_i32 : i32, i32
  }
}

</mosaic_0001>

<bundles_post_ra>
// kernel: tpu_custom_call.1
= control target key start
LH: loop header
LB: loop body
LE: loop exit
PB: predicated region body
PF: predicated region fallthrough
CT: control target
= control target key end

     0   :  { %v5528_v2 = vmov 0   ;;  %s10271_s0 = inlined_call_operand.vmem [shape: f32[256,6], index: 0, kind: input, shape index: {}]   ;;  %s10272_s1 = inlined_call_operand.vmem [shape: f32[6,126], index: 1, kind: input, shape index: {}]   ;;  %s10273_s2 = inlined_call_operand.vmem [shape: f32[6,126], index: 2, kind: input, shape index: {}]   ;;  %s10274_s3 = inlined_call_operand.vmem [shape: f32[1,126], index: 3, kind: input, shape index: {}]   ;;  %s10275_s4 = inlined_call_operand.hbm [shape: f32[256,126], index: 4, kind: output, shape index: {}]  }
   0x1   :  { %v5571_v0 = vld [vmem:[%s10271_s0 + $0x10] sm:$0xff]  ;;  %v5576_v1 = vld [vmem:[%s10271_s0] sm:$0xff]  ;;  %5325 = vset.pattern.permute.xlu1 %v5528_v2  ;;  %5324 = vset.pattern.permute.xlu0 %v5528_v2  ;;  %v5583_v3 = vld [vmem:[%s10271_s0 + $0x18] sm:$0xff] }
   0x2   :  { %10345 = vst [vmem:[#allocation5_spill] sm:$0xff] %v5576_v1  ;;  %65 = vperm.xlu1 %5325, %v5571_v0   ;;  %55 = vperm.xlu0 %5324, %v5576_v1   ;;  %10346 = vst [vmem:[#allocation6_spill] sm:$0xff] %v5583_v3  ;;  %v5588_v4 = vld [vmem:[%s10271_s0 + $0x8] sm:$0xff]  ;;  %v5600_v6 = vld [vmem:[%s10271_s0 + $0x20] sm:$0xff] }
   0x3   :  { %v5595_v5 = vld [vmem:[%s10271_s0 + $0x28] sm:$0xff]  ;;  %v5607_v7 = vld [vmem:[%s10271_s0 + $0x38] sm:$0xff]  ;;  %v5612_v8 = vld [vmem:[%s10271_s0 + $0x30] sm:$0xff] }
   0x4   :  { %10347 = vst [vmem:[#allocation7_spill] sm:$0xff] %v5595_v5  ;;  %10348 = vst [vmem:[#allocation8_spill] sm:$0xff] %v5607_v7 }
   0x6   :  { %70 = vperm.xlu1 %5325, %v5583_v3   ;;  %60 = vperm.xlu0 %5324, %v5588_v4  }
   0xa   :  { %80 = vperm.xlu1 %5325, %v5595_v5   ;;  %75 = vperm.xlu0 %5324, %v5600_v6  }
   0xb   :  { %9 = vsyncpa [#allocation3], 0  ;;  %v5619_v9 = vld [vmem:[%s10271_s0 + $0x48] sm:$0xff]  ;;  %v5624_v10 = vld [vmem:[%s10271_s0 + $0x40] sm:$0xff]  ;;  %v5529_v33 = vmov 1   ;;  %v5530_v36 = vmov 2   ;;  %v213_v61 = vlaneseq }
   0xc   :  { %10349 = vst [vmem:[#allocation9_spill] sm:$0xff] %v5619_v9  ;;  %v5631_v11 = vld [vmem:[%s10271_s0 + $0x58] sm:$0xff]  ;;  %v5636_v12 = vld [vmem:[%s10271_s0 + $0x50] sm:$0xff]  ;;  %v5643_v13 = vld [vmem:[%s10271_s0 + $0x68] sm:$0xff] }
   0xd   :  { %10350 = vst [vmem:[#allocation10_spill] sm:$0xff] %v5631_v11  ;;  %10351 = vst [vmem:[#allocation11_spill] sm:$0xff] %v5643_v13  ;;  %v5648_v14 = vld [vmem:[%s10271_s0 + $0x60] sm:$0xff]  ;;  %v5655_v15 = vld [vmem:[%s10271_s0 + $0x78] sm:$0xff]  ;;  %v5874_v2 = vshrl.u32 %v213_v61, 7 }
   0xe   :  { %90 = vperm.xlu1 %5325, %v5607_v7   ;;  %85 = vperm.xlu0 %5324, %v5612_v8   ;;  %v5660_v16 = vld [vmem:[%s10271_s0 + $0x70] sm:$0xff]  ;;  %v5667_v17 = vld [vmem:[%s10271_s0 + $0x88] sm:$0xff]  ;;  %v5672_v18 = vld [vmem:[%s10271_s0 + $0x80] sm:$0xff] }
   0xf   :  { %v5679_v19 = vld [vmem:[%s10271_s0 + $0x98] sm:$0xff]  ;;  %v5684_v20 = vld [vmem:[%s10271_s0 + $0x90] sm:$0xff]  ;;  %v5691_v21 = vld [vmem:[%s10271_s0 + $0xa8] sm:$0xff]  ;;  %10367 = vst [vmem:[#allocation27_spill] sm:$0xff] %v5874_v2 }
  0x10   :  { %v5696_v22 = vld [vmem:[%s10271_s0 + $0xa0] sm:$0xff]  ;;  %v5703_v23 = vld [vmem:[%s10271_s0 + $0xb8] sm:$0xff]  ;;  %v5708_v24 = vld [vmem:[%s10271_s0 + $0xb0] sm:$0xff] }
  0x11   :  { %10352 = vst [vmem:[#allocation12_spill] sm:$0xff] %v5708_v24  ;;  %v5715_v25 = vld [vmem:[%s10271_s0 + $0xc8] sm:$0xff]  ;;  %v5720_v26 = vld [vmem:[%s10271_s0 + $0xc0] sm:$0xff]  ;;  %v5727_v27 = vld [vmem:[%s10271_s0 + $0xd8] sm:$0xff] }
  0x12   :  { %100 = vperm.xlu1 %5325, %v5619_v9   ;;  %95 = vperm.xlu0 %5324, %v5624_v10   ;;  %10353 = vst [vmem:[#allocation13_spill] sm:$0xff] %v5715_v25  ;;  %10354 = vst [vmem:[#allocation14_spill] sm:$0xff] %v5720_v26  ;;  %v5732_v28 = vld [vmem:[%s10271_s0 + $0xd0] sm:$0xff]  ;;  %v5739_v29 = vld [vmem:[%s10271_s0 + $0xe8] sm:$0xff] }
  0x13   :  { %10355 = vst [vmem:[#allocation15_spill] sm:$0xff] %v5727_v27  ;;  %10356 = vst [vmem:[#allocation16_spill] sm:$0xff] %v5732_v28  ;;  %v5744_v30 = vld [vmem:[%s10271_s0 + $0xe0] sm:$0xff]  ;;  %v5751_v31 = vld [vmem:[%s10271_s0 + $0xf8] sm:$0xff] }
  0x14   :  { %10357 = vst [vmem:[#allocation17_spill] sm:$0xff] %v5739_v29  ;;  %10358 = vst [vmem:[#allocation18_spill] sm:$0xff] %v5744_v30  ;;  %v5756_v32 = vld [vmem:[%s10271_s0 + $0xf0] sm:$0xff]  ;;  %v5889_v61 = vld [vmem:[%s10272_s1] sm:$0x3f] }
  0x15   :  { %10359 = vst [vmem:[#allocation19_spill] sm:$0xff] %v5756_v32  ;;  %10370 = vst [vmem:[#allocation30_spill] sm:$0xff] %v5889_v61 }
  0x16   :  { %110 = vperm.xlu1 %5325, %v5631_v11   ;;  %105 = vperm.xlu0 %5324, %v5636_v12  }
  0x1a   :  { %120 = vperm.xlu1 %5325, %v5643_v13   ;;  %115 = vperm.xlu0 %5324, %v5648_v14  }
  0x1e   :  { %130 = vperm.xlu1 %5325, %v5655_v15   ;;  %125 = vperm.xlu0 %5324, %v5660_v16  }
  0x22   :  { %140 = vperm.xlu1 %5325, %v5667_v17   ;;  %135 = vperm.xlu0 %5324, %v5672_v18  }
  0x26   :  { %150 = vperm.xlu1 %5325, %v5679_v19   ;;  %145 = vperm.xlu0 %5324, %v5684_v20  }
  0x2a   :  { %160 = vperm.xlu1 %5325, %v5691_v21   ;;  %155 = vperm.xlu0 %5324, %v5696_v22  }
  0x2e   :  { %170 = vperm.xlu1 %5325, %v5703_v23   ;;  %165 = vperm.xlu0 %5324, %v5708_v24  }
  0x32   :  { %180 = vperm.xlu1 %5325, %v5715_v25   ;;  %175 = vperm.xlu0 %5324, %v5720_v26  }
  0x36   :  { %190 = vperm.xlu1 %5325, %v5727_v27   ;;  %185 = vperm.xlu0 %5324, %v5732_v28  }
  0x3a   :  { %200 = vperm.xlu1 %5325, %v5739_v29   ;;  %195 = vperm.xlu0 %5324, %v5744_v30  }
  0x3e   :  { %210 = vperm.xlu1 %5325, %v5751_v31   ;;  %205 = vperm.xlu0 %5324, %v5756_v32  }
  0x42   :  { %5327 = vset.pattern.permute.xlu1 %v5529_v33  ;;  %5326 = vset.pattern.permute.xlu0 %v5529_v33 }
  0x43   :  { %290 = vperm.xlu1 %5327, %v5588_v4   ;;  %286 = vperm.xlu0 %5326, %v5576_v1  }
  0x47   :  { %294 = vperm.xlu1 %5327, %v5571_v0   ;;  %298 = vperm.xlu0 %5326, %v5583_v3  }
  0x4b   :  { %302 = vperm.xlu1 %5327, %v5600_v6   ;;  %306 = vperm.xlu0 %5326, %v5595_v5  }
  0x4f   :  { %310 = vperm.xlu1 %5327, %v5612_v8   ;;  %314 = vperm.xlu0 %5326, %v5607_v7  }
  0x53   :  { %318 = vperm.xlu1 %5327, %v5624_v10   ;;  %322 = vperm.xlu0 %5326, %v5619_v9  }
  0x57   :  { %326 = vperm.xlu1 %5327, %v5636_v12   ;;  %330 = vperm.xlu0 %5326, %v5631_v11  }
  0x5b   :  { %334 = vperm.xlu1 %5327, %v5648_v14   ;;  %338 = vperm.xlu0 %5326, %v5643_v13  }
  0x5f   :  { %342 = vperm.xlu1 %5327, %v5660_v16   ;;  %346 = vperm.xlu0 %5326, %v5655_v15  }
  0x63   :  { %350 = vperm.xlu1 %5327, %v5672_v18   ;;  %354 = vperm.xlu0 %5326, %v5667_v17  }
  0x67   :  { %358 = vperm.xlu1 %5327, %v5684_v20   ;;  %362 = vperm.xlu0 %5326, %v5679_v19  }
  0x6b   :  { %366 = vperm.xlu1 %5327, %v5696_v22   ;;  %370 = vperm.xlu0 %5326, %v5691_v21  }
  0x6f   :  { %374 = vperm.xlu1 %5327, %v5708_v24   ;;  %378 = vperm.xlu0 %5326, %v5703_v23  }
  0x73   :  { %382 = vperm.xlu1 %5327, %v5720_v26   ;;  %386 = vperm.xlu0 %5326, %v5715_v25  }
  0x77   :  { %390 = vperm.xlu1 %5327, %v5732_v28   ;;  %394 = vperm.xlu0 %5326, %v5727_v27  }
  0x7b   :  { %398 = vperm.xlu1 %5327, %v5744_v30   ;;  %402 = vperm.xlu0 %5326, %v5739_v29  }
  0x7f   :  { %406 = vperm.xlu1 %5327, %v5756_v32   ;;  %410 = vperm.xlu0 %5326, %v5751_v31  }
  0x81   :  { %v5792_v34 = vpop.permute.xlu1 %65  ;;  %v5794_v35 = vpop.permute.xlu0 %55 }
  0x82   :  { %10360 = vst [vmem:[#allocation20_spill] sm:$0xff] %v5794_v35 }
  0x83   :  { %5328 = vset.pattern.permute.xlu1 %v5530_v36  ;;  %5329 = vset.pattern.permute.xlu0 %v5530_v36 }
  0x84   :  { %550 = vperm.xlu1 %5328, %v5576_v1   ;;  %554 = vperm.xlu0 %5329, %v5588_v4  }
  0x85   :  { %v5798_v37 = vpop.permute.xlu1 %70  ;;  %v5800_v38 = vpop.permute.xlu0 %60 }
  0x86   :  { %10361 = vst [vmem:[#allocation21_spill] sm:$0xff] %v5798_v37 }
  0x88   :  { %558 = vperm.xlu1 %5328, %v5571_v0   ;;  %566 = vperm.xlu0 %5329, %v5600_v6  }
  0x89   :  { %v5804_v39 = vpop.permute.xlu1 %80  ;;  %v5806_v40 = vpop.permute.xlu0 %75 }
  0x8a   :  { %10362 = vst [vmem:[#allocation22_spill] sm:$0xff] %v5804_v39 }
  0x8c   :  { %562 = vperm.xlu1 %5328, %v5583_v3   ;;  %574 = vperm.xlu0 %5329, %v5612_v8  }
  0x8d   :  { %v5810_v41 = vpop.permute.xlu1 %90  ;;  %v5812_v42 = vpop.permute.xlu0 %85 }
  0x90   :  { %570 = vperm.xlu1 %5328, %v5595_v5   ;;  %582 = vperm.xlu0 %5329, %v5624_v10  }
  0x91   :  { %v5816_v43 = vpop.permute.xlu1 %100  ;;  %v5818_v44 = vpop.permute.xlu0 %95 }
  0x94   :  { %578 = vperm.xlu1 %5328, %v5607_v7   ;;  %590 = vperm.xlu0 %5329, %v5636_v12  }
  0x95   :  { %v5822_v45 = vpop.permute.xlu1 %110  ;;  %v5824_v46 = vpop.permute.xlu0 %105 }
  0x98   :  { %586 = vperm.xlu1 %5328, %v5619_v9   ;;  %598 = vperm.xlu0 %5329, %v5648_v14  }
  0x99   :  { %v5828_v47 = vpop.permute.xlu1 %120  ;;  %v5830_v48 = vpop.permute.xlu0 %115 }
  0x9c   :  { %594 = vperm.xlu1 %5328, %v5631_v11   ;;  %606 = vperm.xlu0 %5329, %v5660_v16  }
  0x9d   :  { %v5834_v49 = vpop.permute.xlu1 %130  ;;  %v5836_v50 = vpop.permute.xlu0 %125 }
  0xa0   :  { %602 = vperm.xlu1 %5328, %v5643_v13   ;;  %614 = vperm.xlu0 %5329, %v5672_v18  }
  0xa1   :  { %v5840_v51 = vpop.permute.xlu1 %140  ;;  %v5842_v52 = vpop.permute.xlu0 %135 }
  0xa4   :  { %610 = vperm.xlu1 %5328, %v5655_v15   ;;  %622 = vperm.xlu0 %5329, %v5684_v20  }
  0xa5   :  { %v5846_v53 = vpop.permute.xlu1 %150  ;;  %v5848_v54 = vpop.permute.xlu0 %145 }
  0xa8   :  { %618 = vperm.xlu1 %5328, %v5667_v17   ;;  %630 = vperm.xlu0 %5329, %v5696_v22  }
  0xa9   :  { %v5852_v55 = vpop.permute.xlu1 %160  ;;  %v5854_v56 = vpop.permute.xlu0 %155 }
  0xac   :  { %626 = vperm.xlu1 %5328, %v5679_v19   ;;  %638 = vperm.xlu0 %5329, %v5708_v24   ;;  %v215_v24 = vsub.s32 0, %v5874_v2 }
  0xad   :  { %v5858_v57 = vpop.permute.xlu1 %170  ;;  %v5860_v58 = vpop.permute.xlu0 %165 }
  0xb0   :  { %634 = vperm.xlu1 %5328, %v5691_v21   ;;  %646 = vperm.xlu0 %5329, %v5720_v26   ;;  %v415_v26 = vsub.s32 1, %v5874_v2 }
  0xb1   :  { %v5864_v59 = vpop.permute.xlu1 %180  ;;  %v5866_v60 = vpop.permute.xlu0 %175 }
  0xb2   :  { %10363 = vst [vmem:[#allocation23_spill] sm:$0xff] %v5864_v59  ;;  %10364 = vst [vmem:[#allocation24_spill] sm:$0xff] %v5866_v60  ;;  %v5901_v2 = vrot.slane %v5889_v61, %v415_v26 }
  0xb4   :  { %642 = vperm.xlu1 %5328, %v5703_v23   ;;  %654 = vperm.xlu0 %5329, %v5732_v28   ;;  %10374 = vst [vmem:[#allocation34_spill] sm:$0xff] %v5901_v2 }
  0xb5   :  { %v5870_v62 = vpop.permute.xlu1 %190  ;;  %v5872_v63 = vpop.permute.xlu0 %185 }
  0xb6   :  { %10365 = vst [vmem:[#allocation25_spill] sm:$0xff] %v5870_v62  ;;  %10366 = vst [vmem:[#allocation26_spill] sm:$0xff] %v5872_v63  ;;  %v5531_v63 = vmov 3  }
  0xb8   :  { %650 = vperm.xlu1 %5328, %v5715_v25   ;;  %662 = vperm.xlu0 %5329, %v5744_v30   ;;  %v5894_v30 = vld [vmem:[%s10273_s2] sm:$0x3f] }
  0xb9   :  { %v5878_v33 = vpop.permute.xlu1 %200  ;;  %v5880_v36 = vpop.permute.xlu0 %195  ;;  %10371 = vst [vmem:[#allocation31_spill] sm:$0xff] %v5894_v30 }
  0xba   :  { %10368 = vst [vmem:[#allocation28_spill] sm:$0xff] %v5878_v33  ;;  %10369 = vst [vmem:[#allocation29_spill] sm:$0xff] %v5880_v36  ;;  %v5904_v33 = vrot.slane %v5894_v30, %v415_v26 }
  0xbc   :  { %658 = vperm.xlu1 %5328, %v5727_v27   ;;  %670 = vperm.xlu0 %5329, %v5756_v32   ;;  %v5907_v32 = vrot.slane %v5889_v61, %v215_v24  ;;  %v5910_v27 = vrot.slane %v5894_v30, %v215_v24 }
  0xbd   :  { %v5896_v28 = vpop.permute.xlu1 %210  ;;  %v5898_v36 = vpop.permute.xlu0 %205 }
  0xbe   :  { %10372 = vst [vmem:[#allocation32_spill] sm:$0xff] %v5896_v28  ;;  %10373 = vst [vmem:[#allocation33_spill] sm:$0xff] %v5898_v36  ;;  %v253_v36 = vmul.f32 %v5910_v27, %v5794_v35  ;;  %v218_v28 = vmul.f32 %v5907_v32, %v5800_v38  ;;  %v254_v61 = vmul.f32 %v5910_v27, %v5800_v38 }
  0xbf   :  { %10375 = vst [vmem:[#allocation35_spill] sm:$0xff] %v5907_v32  ;;  %v219_v38 = vmul.f32 %v5907_v32, %v5792_v34  ;;  %v255_v60 = vmul.f32 %v5910_v27, %v5792_v34  ;;  %v258_v34 = vmul.f32 %v5910_v27, %v5804_v39  ;;  %v224_v39 = vmul.f32 %v5907_v32, %v5810_v41 }
  0xc0   :  { %666 = vperm.xlu1 %5328, %v5739_v29   ;;  %5330 = vset.pattern.permute.xlu0 %v5531_v63 }
  0xc1   :  { %814 = vperm.xlu0 %5330, %v5576_v1  }
  0xc2   :  { %v291_v26 = vpop.permute.xlu1 %290  ;;  %v5918_v62 = vpop.permute.xlu0 %286 }
  0xc3   :  { %10376 = vst [vmem:[#allocation36_spill] sm:$0xff] %v5918_v62  ;;  %v418_v24 = vmul.f32 %v5901_v2, %v291_v26  ;;  %v486_v30 = vmul.f32 %v5904_v33, %v291_v26  ;;  %v485_v29 = vmul.f32 %v5904_v33, %v5918_v62  ;;  %v256_v62 = vmul.f32 %v5910_v27, %v5798_v37 }
  0xc4   :  { %674 = vperm.xlu1 %5328, %v5751_v31   ;;  %v221_v37 = vmul.f32 %v5907_v32, %v5806_v40 }
  0xc5   :  { %v5927_v1 = vadd.f32 %v418_v24, %v218_v28  ;;  %v5929_v35 = vadd.f32 %v486_v30, %v254_v61  ;;  %v5931_v25 = vadd.f32 %v485_v29, %v253_v36  ;;  %826 = vperm.xlu0 %5330, %v5583_v3  }
  0xc6   :  { %v295_v26 = vpop.permute.xlu1 %294  ;;  %v5938_v59 = vpop.permute.xlu0 %298 }
  0xc7   :  { %10377 = vst [vmem:[#allocation37_spill] sm:$0xff] %v5938_v59  ;;  %v419_v28 = vmul.f32 %v5901_v2, %v295_v26  ;;  %v487_v30 = vmul.f32 %v5904_v33, %v295_v26  ;;  %v488_v29 = vmul.f32 %v5904_v33, %v5938_v59 }
  0xc8   :  { %5331 = vset.pattern.permute.xlu1 %v5531_v63  ;;  %v257_v63 = vmul.f32 %v5910_v27, %v5806_v40  ;;  %v260_v40 = vmul.f32 %v5910_v27, %v5810_v41 }
  0xc9   :  { %v5946_v36 = vadd.f32 %v419_v28, %v219_v38  ;;  %v5948_v61 = vadd.f32 %v487_v30, %v255_v60  ;;  %v5950_v24 = vadd.f32 %v488_v29, %v256_v62  ;;  %818 = vperm.xlu1 %5331, %v5588_v4   ;;  %834 = vperm.xlu0 %5330, %v5595_v5  }
  0xca   :  { %v303_v26 = vpop.permute.xlu1 %302  ;;  %v5958_v3 = vpop.permute.xlu0 %306 }
  0xcb   :  { %10378 = vst [vmem:[#allocation38_spill] sm:$0xff] %v5958_v3  ;;  %v421_v60 = vmul.f32 %v5901_v2, %v303_v26  ;;  %v489_v62 = vmul.f32 %v5904_v33, %v303_v26  ;;  %v490_v38 = vmul.f32 %v5904_v33, %v5958_v3  ;;  %v223_v26 = vmul.f32 %v5907_v32, %v5812_v42 }
  0xcc   :  { %v259_v3 = vmul.f32 %v5910_v27, %v5812_v42  ;;  %v226_v42 = vmul.f32 %v5907_v32, %v5816_v43 }
  0xcd   :  { %v5966_v28 = vadd.f32 %v421_v60, %v221_v37  ;;  %v5968_v30 = vadd.f32 %v489_v62, %v257_v63  ;;  %v5970_v29 = vadd.f32 %v490_v38, %v258_v34  ;;  %822 = vperm.xlu1 %5331, %v5571_v0   ;;  %842 = vperm.xlu0 %5330, %v5607_v7  }
  0xce   :  { %v311_v37 = vpop.permute.xlu1 %310  ;;  %v315_v63 = vpop.permute.xlu0 %314  ;;  %v225_v7 = vmul.f32 %v5907_v32, %v5818_v44 }
  0xcf   :  { %10379 = vst [vmem:[#allocation39_spill] sm:$0xff] %v5970_v29  ;;  %v423_v34 = vmul.f32 %v5901_v2, %v311_v37  ;;  %v491_v60 = vmul.f32 %v5904_v33, %v311_v37  ;;  %v424_v62 = vmul.f32 %v5901_v2, %v315_v63  ;;  %v492_v38 = vmul.f32 %v5904_v33, %v315_v63 }
  0xd0   :  { %v262_v37 = vmul.f32 %v5910_v27, %v5816_v43 }
  0xd1   :  { %v5986_v59 = vadd.f32 %v423_v34, %v223_v26  ;;  %v5988_v41 = vadd.f32 %v491_v60, %v259_v3  ;;  %v5990_v5 = vadd.f32 %v424_v62, %v224_v39  ;;  %v5992_v29 = vadd.f32 %v492_v38, %v260_v40  ;;  %830 = vperm.xlu1 %5331, %v5600_v6  }
  0xd2   :  { %v261_v26 = vmul.f32 %v5910_v27, %v5818_v44  ;;  %850 = vperm.xlu0 %5330, %v5619_v9   ;;  %v319_v3 = vpop.permute.xlu1 %318  ;;  %v323_v39 = vpop.permute.xlu0 %322  ;;  %v228_v44 = vmul.f32 %v5907_v32, %v5822_v45  ;;  %v227_v9 = vmul.f32 %v5907_v32, %v5824_v46 }
  0xd3   :  { %10380 = vst [vmem:[#allocation40_spill] sm:$0xff] %v5992_v29  ;;  %v425_v40 = vmul.f32 %v5901_v2, %v319_v3  ;;  %v493_v63 = vmul.f32 %v5904_v33, %v319_v3  ;;  %v426_v34 = vmul.f32 %v5901_v2, %v323_v39  ;;  %v494_v60 = vmul.f32 %v5904_v33, %v323_v39 }
  0xd4   :  { %v264_v3 = vmul.f32 %v5910_v27, %v5822_v45 }
  0xd5   :  { %v6008_v62 = vadd.f32 %v425_v40, %v225_v7  ;;  %v6010_v43 = vadd.f32 %v493_v63, %v261_v26  ;;  %v6012_v38 = vadd.f32 %v426_v34, %v226_v42  ;;  %v6014_v29 = vadd.f32 %v494_v60, %v262_v37  ;;  %838 = vperm.xlu1 %5331, %v5612_v8  }
  0xd6   :  { %v263_v7 = vmul.f32 %v5910_v27, %v5824_v46  ;;  %858 = vperm.xlu0 %5330, %v5631_v11   ;;  %v327_v42 = vpop.permute.xlu1 %326  ;;  %v331_v26 = vpop.permute.xlu0 %330  ;;  %v230_v46 = vmul.f32 %v5907_v32, %v5828_v47  ;;  %v229_v11 = vmul.f32 %v5907_v32, %v5830_v48 }
  0xd7   :  { %10381 = vst [vmem:[#allocation41_spill] sm:$0xff] %v6014_v29  ;;  %v427_v37 = vmul.f32 %v5901_v2, %v327_v42  ;;  %v495_v39 = vmul.f32 %v5904_v33, %v327_v42  ;;  %v428_v40 = vmul.f32 %v5901_v2, %v331_v26  ;;  %v496_v63 = vmul.f32 %v5904_v33, %v331_v26 }
  0xd8   :  { %v266_v42 = vmul.f32 %v5910_v27, %v5828_v47 }
  0xd9   :  { %v6030_v34 = vadd.f32 %v427_v37, %v227_v9  ;;  %v6032_v45 = vadd.f32 %v495_v39, %v263_v7  ;;  %v6034_v60 = vadd.f32 %v428_v40, %v228_v44  ;;  %v6036_v29 = vadd.f32 %v496_v63, %v264_v3  ;;  %846 = vperm.xlu1 %5331, %v5624_v10  }
  0xda   :  { %v265_v9 = vmul.f32 %v5910_v27, %v5830_v48  ;;  %866 = vperm.xlu0 %5330, %v5643_v13   ;;  %v335_v44 = vpop.permute.xlu1 %334  ;;  %v339_v7 = vpop.permute.xlu0 %338  ;;  %v232_v48 = vmul.f32 %v5907_v32, %v5834_v49  ;;  %v231_v13 = vmul.f32 %v5907_v32, %v5836_v50 }
  0xdb   :  { %10382 = vst [vmem:[#allocation42_spill] sm:$0xff] %v6036_v29  ;;  %v429_v3 = vmul.f32 %v5901_v2, %v335_v44  ;;  %v497_v26 = vmul.f32 %v5904_v33, %v335_v44  ;;  %v430_v37 = vmul.f32 %v5901_v2, %v339_v7  ;;  %v498_v39 = vmul.f32 %v5904_v33, %v339_v7 }
  0xdc   :  { %v268_v44 = vmul.f32 %v5910_v27, %v5834_v49 }
  0xdd   :  { %v6052_v40 = vadd.f32 %v429_v3, %v229_v11  ;;  %v6054_v47 = vadd.f32 %v497_v26, %v265_v9  ;;  %v6056_v63 = vadd.f32 %v430_v37, %v230_v46  ;;  %v6058_v29 = vadd.f32 %v498_v39, %v266_v42  ;;  %854 = vperm.xlu1 %5331, %v5636_v12  }
  0xde   :  { %v267_v11 = vmul.f32 %v5910_v27, %v5836_v50  ;;  %874 = vperm.xlu0 %5330, %v5655_v15   ;;  %v343_v46 = vpop.permute.xlu1 %342  ;;  %v347_v9 = vpop.permute.xlu0 %346  ;;  %v234_v15 = vmul.f32 %v5907_v32, %v5840_v51  ;;  %v270_v50 = vmul.f32 %v5910_v27, %v5840_v51 }
  0xdf   :  { %10383 = vst [vmem:[#allocation43_spill] sm:$0xff] %v6058_v29  ;;  %v431_v42 = vmul.f32 %v5901_v2, %v343_v46  ;;  %v499_v7 = vmul.f32 %v5904_v33, %v343_v46  ;;  %v432_v3 = vmul.f32 %v5901_v2, %v347_v9  ;;  %v500_v26 = vmul.f32 %v5904_v33, %v347_v9 }
  0xe0   :  { %v233_v46 = vmul.f32 %v5907_v32, %v5842_v52 }
  0xe1   :  { %v6074_v37 = vadd.f32 %v431_v42, %v231_v13  ;;  %v6076_v49 = vadd.f32 %v499_v7, %v267_v11  ;;  %v6078_v39 = vadd.f32 %v432_v3, %v232_v48  ;;  %v6080_v29 = vadd.f32 %v500_v26, %v268_v44  ;;  %862 = vperm.xlu1 %5331, %v5648_v14  }
  0xe2   :  { %v269_v13 = vmul.f32 %v5910_v27, %v5842_v52  ;;  %882 = vperm.xlu0 %5330, %v5667_v17   ;;  %v351_v48 = vpop.permute.xlu1 %350  ;;  %v355_v11 = vpop.permute.xlu0 %354  ;;  %v236_v17 = vmul.f32 %v5907_v32, %v5846_v53  ;;  %v272_v52 = vmul.f32 %v5910_v27, %v5846_v53 }
  0xe3   :  { %10384 = vst [vmem:[#allocation44_spill] sm:$0xff] %v6080_v29  ;;  %v433_v44 = vmul.f32 %v5901_v2, %v351_v48  ;;  %v501_v9 = vmul.f32 %v5904_v33, %v351_v48  ;;  %v434_v42 = vmul.f32 %v5901_v2, %v355_v11  ;;  %v502_v7 = vmul.f32 %v5904_v33, %v355_v11 }
  0xe4   :  { %v235_v48 = vmul.f32 %v5907_v32, %v5848_v54 }
  0xe5   :  { %v6096_v3 = vadd.f32 %v433_v44, %v233_v46  ;;  %v6098_v51 = vadd.f32 %v501_v9, %v269_v13  ;;  %v6100_v26 = vadd.f32 %v434_v42, %v234_v15  ;;  %v6102_v29 = vadd.f32 %v502_v7, %v270_v50  ;;  %870 = vperm.xlu1 %5331, %v5660_v16  }
  0xe6   :  { %v271_v46 = vmul.f32 %v5910_v27, %v5848_v54  ;;  %890 = vperm.xlu0 %5330, %v5679_v19   ;;  %v359_v15 = vpop.permute.xlu1 %358  ;;  %v363_v13 = vpop.permute.xlu0 %362  ;;  %v238_v19 = vmul.f32 %v5907_v32, %v5852_v55  ;;  %v274_v54 = vmul.f32 %v5910_v27, %v5852_v55 }
  0xe7   :  { %10385 = vst [vmem:[#allocation45_spill] sm:$0xff] %v6102_v29  ;;  %v435_v50 = vmul.f32 %v5901_v2, %v359_v15  ;;  %v503_v11 = vmul.f32 %v5904_v33, %v359_v15  ;;  %v436_v44 = vmul.f32 %v5901_v2, %v363_v13  ;;  %v504_v9 = vmul.f32 %v5904_v33, %v363_v13 }
  0xe8   :  { %v237_v15 = vmul.f32 %v5907_v32, %v5854_v56 }
  0xe9   :  { %v6118_v42 = vadd.f32 %v435_v50, %v235_v48  ;;  %v6120_v53 = vadd.f32 %v503_v11, %v271_v46  ;;  %v6122_v7 = vadd.f32 %v436_v44, %v236_v17  ;;  %v6124_v29 = vadd.f32 %v504_v9, %v272_v52  ;;  %878 = vperm.xlu1 %5331, %v5672_v18  }
  0xea   :  { %v273_v48 = vmul.f32 %v5910_v27, %v5854_v56  ;;  %898 = vperm.xlu0 %5330, %v5691_v21   ;;  %v367_v17 = vpop.permute.xlu1 %366  ;;  %v371_v46 = vpop.permute.xlu0 %370  ;;  %v240_v21 = vmul.f32 %v5907_v32, %v5858_v57  ;;  %v276_v56 = vmul.f32 %v5910_v27, %v5858_v57 }
  0xeb   :  { %10386 = vst [vmem:[#allocation46_spill] sm:$0xff] %v6122_v7  ;;  %10387 = vst [vmem:[#allocation47_spill] sm:$0xff] %v6124_v29  ;;  %v437_v52 = vmul.f32 %v5901_v2, %v367_v17  ;;  %v505_v13 = vmul.f32 %v5904_v33, %v367_v17  ;;  %v438_v50 = vmul.f32 %v5901_v2, %v371_v46 }
  0xec   :  { %v506_v11 = vmul.f32 %v5904_v33, %v371_v46  ;;  %v239_v17 = vmul.f32 %v5907_v32, %v5860_v58 }
  0xed   :  { %v6140_v44 = vadd.f32 %v437_v52, %v237_v15  ;;  %v6142_v55 = vadd.f32 %v505_v13, %v273_v48  ;;  %v6144_v9 = vadd.f32 %v438_v50, %v238_v19  ;;  %886 = vperm.xlu1 %5331, %v5684_v20   ;;  %v275_v15 = vmul.f32 %v5910_v27, %v5860_v58 }
  0xee   :  { %v6146_v29 = vadd.f32 %v506_v11, %v274_v54  ;;  %906 = vperm.xlu0 %5330, %v5703_v23   ;;  %v375_v19 = vpop.permute.xlu1 %374  ;;  %v379_v48 = vpop.permute.xlu0 %378  ;;  %v10396_v23 = vld [vmem:[#allocation23_spill] sm:$0xff] }
  0xef   :  { %10388 = vst [vmem:[#allocation48_spill] sm:$0xff] %v6140_v44  ;;  %10389 = vst [vmem:[#allocation49_spill] sm:$0xff] %v6142_v55  ;;  %v439_v54 = vmul.f32 %v5901_v2, %v375_v19  ;;  %v507_v46 = vmul.f32 %v5904_v33, %v375_v19  ;;  %v440_v52 = vmul.f32 %v5901_v2, %v379_v48  ;;  %v10420_v44 = vld [vmem:[#allocation33_spill] sm:$0xff] }
  0xf0   :  { %10390 = vst [vmem:[#allocation50_spill] sm:$0xff] %v6144_v9  ;;  %10391 = vst [vmem:[#allocation51_spill] sm:$0xff] %v6146_v29  ;;  %v508_v13 = vmul.f32 %v5904_v33, %v379_v48  ;;  %v242_v58 = vmul.f32 %v5907_v32, %v10396_v23  ;;  %v278_v19 = vmul.f32 %v5910_v27, %v10396_v23  ;;  %v10397_v9 = vld [vmem:[#allocation24_spill] sm:$0xff] }
  0xf1   :  { %v6162_v50 = vadd.f32 %v439_v54, %v239_v17  ;;  %v6164_v57 = vadd.f32 %v507_v46, %v275_v15  ;;  %v6166_v11 = vadd.f32 %v440_v52, %v240_v21  ;;  %894 = vperm.xlu1 %5331, %v5696_v22   ;;  %v241_v7 = vmul.f32 %v5907_v32, %v10397_v9  ;;  %v10398_v15 = vld [vmem:[#allocation13_spill] sm:$0xff] }
  0xf2   :  { %v6168_v29 = vadd.f32 %v508_v13, %v276_v56  ;;  %v277_v17 = vmul.f32 %v5910_v27, %v10397_v9  ;;  %914 = vperm.xlu0 %5330, %v10398_v15   ;;  %v383_v21 = vpop.permute.xlu1 %382  ;;  %v387_v48 = vpop.permute.xlu0 %386  ;;  %v10403_v9 = vld [vmem:[#allocation12_spill] sm:$0xff]  ;;  %v10404_v15 = vld [vmem:[#allocation25_spill] sm:$0xff] }
  0xf3   :  { %10392 = vst [vmem:[#allocation52_spill] sm:$0xff] %v6162_v50  ;;  %10393 = vst [vmem:[#allocation53_spill] sm:$0xff] %v6164_v57  ;;  %v441_v56 = vmul.f32 %v5901_v2, %v383_v21  ;;  %v509_v54 = vmul.f32 %v5904_v33, %v383_v21  ;;  %v442_v46 = vmul.f32 %v5901_v2, %v387_v48  ;;  %v10405_v50 = vld [vmem:[#allocation26_spill] sm:$0xff] }
  0xf4   :  { %10394 = vst [vmem:[#allocation54_spill] sm:$0xff] %v6166_v11  ;;  %10395 = vst [vmem:[#allocation55_spill] sm:$0xff] %v6168_v29  ;;  %v510_v52 = vmul.f32 %v5904_v33, %v387_v48  ;;  %v244_v57 = vmul.f32 %v5907_v32, %v10404_v15  ;;  %v280_v21 = vmul.f32 %v5910_v27, %v10404_v15 }
  0xf5   :  { %v6184_v13 = vadd.f32 %v441_v56, %v241_v7  ;;  %v6186_v23 = vadd.f32 %v509_v54, %v277_v17  ;;  %v6188_v29 = vadd.f32 %v442_v46, %v242_v58  ;;  %902 = vperm.xlu1 %5331, %v10403_v9   ;;  %v243_v55 = vmul.f32 %v5907_v32, %v10405_v50  ;;  %v10406_v17 = vld [vmem:[#allocation15_spill] sm:$0xff] }
  0xf6   :  { %v6190_v11 = vadd.f32 %v510_v52, %v278_v19  ;;  %v279_v7 = vmul.f32 %v5910_v27, %v10405_v50  ;;  %922 = vperm.xlu0 %5330, %v10406_v17   ;;  %v391_v58 = vpop.permute.xlu1 %390  ;;  %v395_v48 = vpop.permute.xlu0 %394  ;;  %v10411_v50 = vld [vmem:[#allocation14_spill] sm:$0xff]  ;;  %v10412_v17 = vld [vmem:[#allocation28_spill] sm:$0xff] }
  0xf7   :  { %10399 = vst [vmem:[#allocation23_spill] sm:$0xff] %v6184_v13  ;;  %10400 = vst [vmem:[#allocation24_spill] sm:$0xff] %v6186_v23  ;;  %v443_v19 = vmul.f32 %v5901_v2, %v391_v58  ;;  %v511_v56 = vmul.f32 %v5904_v33, %v391_v58  ;;  %v444_v54 = vmul.f32 %v5901_v2, %v395_v48  ;;  %v10413_v13 = vld [vmem:[#allocation29_spill] sm:$0xff] }
  0xf8   :  { %10401 = vst [vmem:[#allocation13_spill] sm:$0xff] %v6188_v29  ;;  %10402 = vst [vmem:[#allocation56_spill] sm:$0xff] %v6190_v11  ;;  %v512_v46 = vmul.f32 %v5904_v33, %v395_v48  ;;  %v246_v23 = vmul.f32 %v5907_v32, %v10412_v17  ;;  %v282_v58 = vmul.f32 %v5910_v27, %v10412_v17 }
  0xf9   :  { %v6206_v52 = vadd.f32 %v443_v19, %v243_v55  ;;  %v6208_v15 = vadd.f32 %v511_v56, %v279_v7  ;;  %v6210_v11 = vadd.f32 %v444_v54, %v244_v57  ;;  %910 = vperm.xlu1 %5331, %v10411_v50   ;;  %v245_v9 = vmul.f32 %v5907_v32, %v10413_v13  ;;  %v10414_v7 = vld [vmem:[#allocation17_spill] sm:$0xff] }
  0xfa   :  { %v6212_v29 = vadd.f32 %v512_v46, %v280_v21  ;;  %v281_v55 = vmul.f32 %v5910_v27, %v10413_v13  ;;  %930 = vperm.xlu0 %5330, %v10414_v7   ;;  %v399_v57 = vpop.permute.xlu1 %398  ;;  %v403_v48 = vpop.permute.xlu0 %402  ;;  %v10415_v46 = vld [vmem:[#allocation27_spill] sm:$0xff]  ;;  %v10418_v7 = vld [vmem:[#allocation16_spill] sm:$0xff] }
  0xfb   :  { %10407 = vst [vmem:[#allocation25_spill] sm:$0xff] %v6206_v52  ;;  %10408 = vst [vmem:[#allocation26_spill] sm:$0xff] %v6208_v15  ;;  %v445_v21 = vmul.f32 %v5901_v2, %v399_v57  ;;  %v513_v19 = vmul.f32 %v5904_v33, %v399_v57  ;;  %v446_v56 = vmul.f32 %v5901_v2, %v403_v48  ;;  %v679_v17 = vsub.s32 2, %v10415_v46  ;;  %v10419_v52 = vld [vmem:[#allocation32_spill] sm:$0xff] }
  0xfc   :  { %10409 = vst [vmem:[#allocation15_spill] sm:$0xff] %v6210_v11  ;;  %10410 = vst [vmem:[#allocation57_spill] sm:$0xff] %v6212_v29  ;;  %v514_v54 = vmul.f32 %v5904_v33, %v403_v48  ;;  %v248_v50 = vmul.f32 %v5907_v32, %v10419_v52  ;;  %v284_v57 = vmul.f32 %v5910_v27, %v10419_v52 }
  0xfd   :  { %v6229_v29 = vadd.f32 %v445_v21, %v245_v9  ;;  %v6231_v11 = vadd.f32 %v513_v19, %v281_v55  ;;  %v6233_v15 = vadd.f32 %v446_v56, %v246_v23  ;;  %918 = vperm.xlu1 %5331, %v10418_v7   ;;  %v247_v48 = vmul.f32 %v5907_v32, %v10420_v44  ;;  %v10423_v7 = vld [vmem:[#allocation31_spill] sm:$0xff] }
  0xfe   :  { %v6235_v13 = vadd.f32 %v514_v54, %v282_v58  ;;  %v283_v9 = vmul.f32 %v5910_v27, %v10420_v44  ;;  %938 = vperm.xlu0 %5330, %v5751_v31   ;;  %v407_v23 = vpop.permute.xlu1 %406  ;;  %v411_v55 = vpop.permute.xlu0 %410  ;;  %v10421_v54 = vld [vmem:[#allocation30_spill] sm:$0xff]  ;;  %v6255_v32 = vrot.slane %v10423_v7, %v679_v17 }
  0xff   :  { %10416 = vst [vmem:[#allocation28_spill] sm:$0xff] %v6233_v15  ;;  %v447_v58 = vmul.f32 %v5901_v2, %v407_v23  ;;  %v515_v21 = vmul.f32 %v5904_v33, %v407_v23  ;;  %v448_v19 = vmul.f32 %v5901_v2, %v411_v55  ;;  %v516_v56 = vmul.f32 %v5904_v33, %v411_v55  ;;  %v10424_v15 = vld [vmem:[#allocation18_spill] sm:$0xff]  ;;  %v10458_v2 = vld [vmem:[#allocation51_spill] sm:$0xff] }
 0x100   :  { %10417 = vst [vmem:[#allocation29_spill] sm:$0xff] %v6235_v13  ;;  %v6252_v52 = vrot.slane %v10421_v54, %v679_v17  ;;  %v5532_v23 = vmov 4  }
 0x101   :  { %v6257_v13 = vadd.f32 %v447_v58, %v247_v48  ;;  %v6259_v27 = vadd.f32 %v515_v21, %v283_v9  ;;  %v6261_v31 = vadd.f32 %v448_v19, %v248_v50  ;;  %v6263_v44 = vadd.f32 %v516_v56, %v284_v57  ;;  %926 = vperm.xlu1 %5331, %v10424_v15   ;;  %v10426_v50 = vld [vmem:[#allocation19_spill] sm:$0xff] }
 0x102   :  { %10422 = vst [vmem:[#allocation17_spill] sm:$0xff] %v6252_v52  ;;  %5333 = vset.pattern.permute.xlu0 %v5532_v23 }
 0x103   :  { %1082 = vperm.xlu0 %5333, %v5588_v4   ;;  %v6267_v33 = vpop.permute.xlu1 %550  ;;  %v555_v55 = vpop.permute.xlu0 %554 }
 0x104   :  { %10425 = vst [vmem:[#allocation16_spill] sm:$0xff] %v6267_v33  ;;  %v749_v17 = vmul.f32 %v6255_v32, %v6267_v33  ;;  %v682_v48 = vmul.f32 %v6252_v52, %v555_v55  ;;  %v750_v9 = vmul.f32 %v6255_v32, %v555_v55 }
 0x105   :  { %934 = vperm.xlu1 %5331, %v10426_v50  }
 0x106   :  { %v6275_v57 = vadd.f32 %v749_v17, %v5931_v25  ;;  %v6278_v15 = vadd.f32 %v682_v48, %v5927_v1  ;;  %v6281_v4 = vadd.f32 %v750_v9, %v5929_v35  ;;  %v10427_v17 = vld [vmem:[#allocation5_spill] sm:$0xff] }
 0x107   :  { %1094 = vperm.xlu0 %5333, %v5600_v6   ;;  %v559_v58 = vpop.permute.xlu1 %558  ;;  %v567_v21 = vpop.permute.xlu0 %566 }
 0x108   :  { %v683_v19 = vmul.f32 %v6252_v52, %v559_v58  ;;  %v751_v56 = vmul.f32 %v6255_v32, %v559_v58  ;;  %v685_v55 = vmul.f32 %v6252_v52, %v567_v21  ;;  %v753_v50 = vmul.f32 %v6255_v32, %v567_v21 }
 0x109   :  { %5332 = vset.pattern.permute.xlu1 %v5532_v23 }
 0x10a   :  { %v6289_v25 = vadd.f32 %v683_v19, %v5946_v36  ;;  %v6292_v1 = vadd.f32 %v751_v56, %v5948_v61  ;;  %v6295_v35 = vadd.f32 %v685_v55, %v5966_v28  ;;  %v6298_v6 = vadd.f32 %v753_v50, %v5968_v30  ;;  %1078 = vperm.xlu1 %5332, %v10427_v17   ;;  %v10430_v55 = vld [vmem:[#allocation39_spill] sm:$0xff] }
 0x10b   :  { %1102 = vperm.xlu0 %5333, %v5612_v8   ;;  %v6302_v48 = vpop.permute.xlu1 %562  ;;  %v575_v9 = vpop.permute.xlu0 %574 }
 0x10c   :  { %10428 = vst [vmem:[#allocation32_spill] sm:$0xff] %v6302_v48  ;;  %v752_v36 = vmul.f32 %v6255_v32, %v6302_v48  ;;  %v687_v23 = vmul.f32 %v6252_v52, %v575_v9  ;;  %v755_v61 = vmul.f32 %v6255_v32, %v575_v9 }
 0x10e   :  { %v6309_v28 = vadd.f32 %v752_v36, %v5950_v24  ;;  %v6312_v30 = vadd.f32 %v687_v23, %v5986_v59  ;;  %v6315_v58 = vadd.f32 %v755_v61, %v5988_v41  ;;  %1086 = vperm.xlu1 %5332, %v5571_v0  }
 0x10f   :  { %1110 = vperm.xlu0 %5333, %v5624_v10   ;;  %v6319_v8 = vpop.permute.xlu1 %570  ;;  %v583_v21 = vpop.permute.xlu0 %582  ;;  %v10431_v10 = vld [vmem:[#allocation6_spill] sm:$0xff] }
 0x110   :  { %10429 = vst [vmem:[#allocation33_spill] sm:$0xff] %v6319_v8  ;;  %v754_v19 = vmul.f32 %v6255_v32, %v6319_v8  ;;  %v689_v56 = vmul.f32 %v6252_v52, %v583_v21  ;;  %v757_v24 = vmul.f32 %v6255_v32, %v583_v21  ;;  %v10432_v21 = vld [vmem:[#allocation40_spill] sm:$0xff] }
 0x111   :  { %v10452_v8 = vld [vmem:[#allocation52_spill] sm:$0xff] }
 0x112   :  { %v6326_v59 = vadd.f32 %v754_v19, %v10430_v55  ;;  %v6329_v41 = vadd.f32 %v689_v56, %v6008_v62  ;;  %v6332_v0 = vadd.f32 %v757_v24, %v6010_v43  ;;  %1090 = vperm.xlu1 %5332, %v10431_v10   ;;  %v10433_v56 = vld [vmem:[#allocation7_spill] sm:$0xff] }
 0x113   :  { %1118 = vperm.xlu0 %5333, %v5636_v12   ;;  %v579_v50 = vpop.permute.xlu1 %578  ;;  %v591_v17 = vpop.permute.xlu0 %590 }
 0x114   :  { %v688_v9 = vmul.f32 %v6252_v52, %v579_v50  ;;  %v756_v36 = vmul.f32 %v6255_v32, %v579_v50  ;;  %v691_v23 = vmul.f32 %v6252_v52, %v591_v17  ;;  %v759_v61 = vmul.f32 %v6255_v32, %v591_v17 }
 0x116   :  { %v6341_v62 = vadd.f32 %v688_v9, %v5990_v5  ;;  %v6344_v43 = vadd.f32 %v756_v36, %v10432_v21  ;;  %v6347_v19 = vadd.f32 %v691_v23, %v6030_v34  ;;  %v6350_v12 = vadd.f32 %v759_v61, %v6032_v45  ;;  %1098 = vperm.xlu1 %5332, %v10433_v56   ;;  %v10434_v9 = vld [vmem:[#allocation41_spill] sm:$0xff]  ;;  %v10435_v23 = vld [vmem:[#allocation8_spill] sm:$0xff] }
 0x117   :  { %1126 = vperm.xlu0 %5333, %v5648_v14   ;;  %v587_v24 = vpop.permute.xlu1 %586  ;;  %v599_v55 = vpop.permute.xlu0 %598 }
 0x118   :  { %v690_v10 = vmul.f32 %v6252_v52, %v587_v24  ;;  %v758_v5 = vmul.f32 %v6255_v32, %v587_v24  ;;  %v693_v50 = vmul.f32 %v6252_v52, %v599_v55  ;;  %v761_v17 = vmul.f32 %v6255_v32, %v599_v55 }
 0x11a   :  { %v6359_v34 = vadd.f32 %v690_v10, %v6012_v38  ;;  %v6362_v45 = vadd.f32 %v758_v5, %v10434_v9  ;;  %v6365_v36 = vadd.f32 %v693_v50, %v6052_v40  ;;  %v6368_v14 = vadd.f32 %v761_v17, %v6054_v47  ;;  %1106 = vperm.xlu1 %5332, %v10435_v23   ;;  %v10436_v10 = vld [vmem:[#allocation42_spill] sm:$0xff]  ;;  %v10437_v50 = vld [vmem:[#allocation9_spill] sm:$0xff] }
 0x11b   :  { %1134 = vperm.xlu0 %5333, %v5660_v16   ;;  %v595_v61 = vpop.permute.xlu1 %594  ;;  %v607_v21 = vpop.permute.xlu0 %606 }
 0x11c   :  { %v692_v56 = vmul.f32 %v6252_v52, %v595_v61  ;;  %v760_v38 = vmul.f32 %v6255_v32, %v595_v61  ;;  %v695_v24 = vmul.f32 %v6252_v52, %v607_v21  ;;  %v763_v55 = vmul.f32 %v6255_v32, %v607_v21 }
 0x11e   :  { %v6377_v40 = vadd.f32 %v692_v56, %v6034_v60  ;;  %v6380_v47 = vadd.f32 %v760_v38, %v10436_v10  ;;  %v6383_v5 = vadd.f32 %v695_v24, %v6074_v37  ;;  %v6386_v16 = vadd.f32 %v763_v55, %v6076_v49  ;;  %1114 = vperm.xlu1 %5332, %v10437_v50   ;;  %v10438_v56 = vld [vmem:[#allocation43_spill] sm:$0xff]  ;;  %v10439_v24 = vld [vmem:[#allocation10_spill] sm:$0xff] }
 0x11f   :  { %1142 = vperm.xlu0 %5333, %v5672_v18   ;;  %v603_v17 = vpop.permute.xlu1 %602  ;;  %v615_v9 = vpop.permute.xlu0 %614 }
 0x120   :  { %v694_v23 = vmul.f32 %v6252_v52, %v603_v17  ;;  %v762_v60 = vmul.f32 %v6255_v32, %v603_v17  ;;  %v697_v61 = vmul.f32 %v6252_v52, %v615_v9  ;;  %v765_v21 = vmul.f32 %v6255_v32, %v615_v9 }
 0x122   :  { %v6395_v37 = vadd.f32 %v694_v23, %v6056_v63  ;;  %v6398_v49 = vadd.f32 %v762_v60, %v10438_v56  ;;  %v6401_v38 = vadd.f32 %v697_v61, %v6096_v3  ;;  %v6404_v18 = vadd.f32 %v765_v21, %v6098_v51  ;;  %1122 = vperm.xlu1 %5332, %v10439_v24   ;;  %v10440_v23 = vld [vmem:[#allocation44_spill] sm:$0xff]  ;;  %v10443_v61 = vld [vmem:[#allocation11_spill] sm:$0xff] }
 0x123   :  { %1150 = vperm.xlu0 %5333, %v5684_v20   ;;  %v611_v55 = vpop.permute.xlu1 %610  ;;  %v623_v10 = vpop.permute.xlu0 %622 }
 0x124   :  { %v696_v50 = vmul.f32 %v6252_v52, %v611_v55  ;;  %v764_v63 = vmul.f32 %v6255_v32, %v611_v55  ;;  %v699_v17 = vmul.f32 %v6252_v52, %v623_v10  ;;  %v767_v9 = vmul.f32 %v6255_v32, %v623_v10 }
 0x126   :  { %v6413_v3 = vadd.f32 %v696_v50, %v6078_v39  ;;  %v6416_v51 = vadd.f32 %v764_v63, %v10440_v23  ;;  %v6419_v60 = vadd.f32 %v699_v17, %v6118_v42  ;;  %v6422_v20 = vadd.f32 %v767_v9, %v6120_v53  ;;  %1130 = vperm.xlu1 %5332, %v10443_v61   ;;  %v10444_v50 = vld [vmem:[#allocation45_spill] sm:$0xff]  ;;  %v10445_v63 = vld [vmem:[#allocation48_spill] sm:$0xff] }
 0x127   :  { %1158 = vperm.xlu0 %5333, %v5696_v22   ;;  %v619_v21 = vpop.permute.xlu1 %618  ;;  %v631_v56 = vpop.permute.xlu0 %630  ;;  %v10447_v22 = vld [vmem:[#allocation49_spill] sm:$0xff]  ;;  %v6445_v23 = vld [vmem:[%s10271_s0 + $0x78] sm:$0xff] }
 0x128   :  { %10441 = vst [vmem:[#allocation30_spill] sm:$0xff] %v6419_v60  ;;  %10442 = vst [vmem:[#allocation31_spill] sm:$0xff] %v6422_v20  ;;  %v698_v24 = vmul.f32 %v6252_v52, %v619_v21  ;;  %v766_v39 = vmul.f32 %v6255_v32, %v619_v21  ;;  %v701_v55 = vmul.f32 %v6252_v52, %v631_v56  ;;  %v10449_v61 = vld [vmem:[#allocation12_spill] sm:$0xff]  ;;  %v10469_v20 = vld [vmem:[#allocation25_spill] sm:$0xff] }
 0x129   :  { %v769_v10 = vmul.f32 %v6255_v32, %v631_v56 }
 0x12a   :  { %v6431_v42 = vadd.f32 %v698_v24, %v6100_v26  ;;  %v6434_v53 = vadd.f32 %v766_v39, %v10444_v50  ;;  %v6437_v17 = vadd.f32 %v701_v55, %v10445_v63  ;;  %1138 = vperm.xlu1 %5332, %v6445_v23   ;;  %v10451_v63 = vld [vmem:[#allocation47_spill] sm:$0xff] }
 0x12b   :  { %v6440_v9 = vadd.f32 %v769_v10, %v10447_v22  ;;  %1166 = vperm.xlu0 %5333, %v10449_v61   ;;  %v627_v26 = vpop.permute.xlu1 %626  ;;  %v639_v21 = vpop.permute.xlu0 %638  ;;  %v10450_v10 = vld [vmem:[#allocation46_spill] sm:$0xff]  ;;  %v10454_v61 = vld [vmem:[#allocation53_spill] sm:$0xff] }
 0x12c   :  { %10446 = vst [vmem:[#allocation18_spill] sm:$0xff] %v6437_v17  ;;  %v700_v56 = vmul.f32 %v6252_v52, %v627_v26  ;;  %v768_v24 = vmul.f32 %v6255_v32, %v627_v26  ;;  %v703_v39 = vmul.f32 %v6252_v52, %v639_v21  ;;  %v771_v55 = vmul.f32 %v6255_v32, %v639_v21  ;;  %v6468_v26 = vld [vmem:[%s10271_s0 + $0x88] sm:$0xff] }
 0x12d   :  { %10448 = vst [vmem:[#allocation19_spill] sm:$0xff] %v6440_v9  ;;  %v10456_v21 = vld [vmem:[#allocation14_spill] sm:$0xff] }
 0x12e   :  { %v6454_v50 = vadd.f32 %v700_v56, %v10450_v10  ;;  %v6457_v22 = vadd.f32 %v768_v24, %v10451_v63  ;;  %v6460_v48 = vadd.f32 %v703_v39, %v10452_v8  ;;  %v6463_v33 = vadd.f32 %v771_v55, %v10454_v61  ;;  %1146 = vperm.xlu1 %5332, %v6468_v26   ;;  %v10457_v55 = vld [vmem:[#allocation50_spill] sm:$0xff] }
 0x12f   :  { %1174 = vperm.xlu0 %5333, %v10456_v21   ;;  %v635_v56 = vpop.permute.xlu1 %634  ;;  %v647_v10 = vpop.permute.xlu0 %646  ;;  %v10462_v21 = vld [vmem:[#allocation24_spill] sm:$0xff] }
 0x130   :  { %10453 = vst [vmem:[#allocation5_spill] sm:$0xff] %v6460_v48  ;;  %10455 = vst [vmem:[#allocation39_spill] sm:$0xff] %v6463_v33  ;;  %v702_v24 = vmul.f32 %v6252_v52, %v635_v56  ;;  %v770_v63 = vmul.f32 %v6255_v32, %v635_v56  ;;  %v705_v8 = vmul.f32 %v6252_v52, %v647_v10  ;;  %v10460_v48 = vld [vmem:[#allocation23_spill] sm:$0xff]  ;;  %v6491_v56 = vld [vmem:[%s10271_s0 + $0x98] sm:$0xff] }
 0x131   :  { %v773_v39 = vmul.f32 %v6255_v32, %v647_v10  ;;  %v6497_v10 = vld [vmem:[%s10271_s0 + $0xd0] sm:$0xff] }
 0x132   :  { %v6477_v61 = vadd.f32 %v702_v24, %v10457_v55  ;;  %v6480_v33 = vadd.f32 %v770_v63, %v10458_v2  ;;  %v6483_v9 = vadd.f32 %v705_v8, %v10460_v48  ;;  %1154 = vperm.xlu1 %5332, %v6491_v56   ;;  %10464 = vst [vmem:[#allocation41_spill] sm:$0xff] %v6497_v10  ;;  %v10465_v55 = vld [vmem:[#allocation54_spill] sm:$0xff] }
 0x133   :  { %v6486_v17 = vadd.f32 %v773_v39, %v10462_v21  ;;  %1182 = vperm.xlu0 %5333, %v6497_v10   ;;  %v643_v2 = vpop.permute.xlu1 %642  ;;  %v655_v48 = vpop.permute.xlu0 %654  ;;  %v10471_v10 = vld [vmem:[#allocation26_spill] sm:$0xff] }
 0x134   :  { %10459 = vst [vmem:[#allocation6_spill] sm:$0xff] %v6480_v33  ;;  %10461 = vst [vmem:[#allocation40_spill] sm:$0xff] %v6483_v9  ;;  %v704_v24 = vmul.f32 %v6252_v52, %v643_v2  ;;  %v772_v63 = vmul.f32 %v6255_v32, %v643_v2  ;;  %v707_v8 = vmul.f32 %v6252_v52, %v655_v48  ;;  %v6519_v2 = vld [vmem:[%s10271_s0 + $0xa8] sm:$0xff] }
 0x135   :  { %10463 = vst [vmem:[#allocation7_spill] sm:$0xff] %v6486_v17  ;;  %v775_v39 = vmul.f32 %v6255_v32, %v655_v48  ;;  %v10467_v17 = vld [vmem:[#allocation55_spill] sm:$0xff]  ;;  %v6525_v48 = vld [vmem:[%s10271_s0 + $0xe0] sm:$0xff] }
 0x136   :  { %v6505_v21 = vadd.f32 %v704_v24, %v10465_v55  ;;  %v6508_v9 = vadd.f32 %v772_v63, %v10467_v17  ;;  %v6511_v60 = vadd.f32 %v707_v8, %v10469_v20  ;;  %1162 = vperm.xlu1 %5332, %v6519_v2   ;;  %10473 = vst [vmem:[#allocation10_spill] sm:$0xff] %v6525_v48  ;;  %v10474_v55 = vld [vmem:[#allocation13_spill] sm:$0xff] }
 0x137   :  { %v6514_v33 = vadd.f32 %v775_v39, %v10471_v10  ;;  %1190 = vperm.xlu0 %5333, %v6525_v48   ;;  %v651_v17 = vpop.permute.xlu1 %650  ;;  %v663_v20 = vpop.permute.xlu0 %662  ;;  %v943_v39 = vsub.s32 3, %v10415_v46 }
 0x138   :  { %10466 = vst [vmem:[#allocation8_spill] sm:$0xff] %v6505_v21  ;;  %10468 = vst [vmem:[#allocation42_spill] sm:$0xff] %v6508_v9  ;;  %v706_v24 = vmul.f32 %v6252_v52, %v651_v17  ;;  %v774_v10 = vmul.f32 %v6255_v32, %v651_v17  ;;  %v709_v63 = vmul.f32 %v6252_v52, %v663_v20  ;;  %v6548_v17 = vld [vmem:[%s10271_s0 + $0xb8] sm:$0xff] }
 0x139   :  { %10470 = vst [vmem:[#allocation9_spill] sm:$0xff] %v6511_v60  ;;  %10472 = vst [vmem:[#allocation43_spill] sm:$0xff] %v6514_v33  ;;  %v777_v8 = vmul.f32 %v6255_v32, %v663_v20  ;;  %v10475_v60 = vld [vmem:[#allocation56_spill] sm:$0xff]  ;;  %v6554_v20 = vld [vmem:[%s10271_s0 + $0xf0] sm:$0xff] }
 0x13a   :  { %v6534_v33 = vadd.f32 %v706_v24, %v10474_v55  ;;  %v6537_v9 = vadd.f32 %v774_v10, %v10475_v60  ;;  %v6540_v48 = vadd.f32 %v709_v63, %v6229_v29  ;;  %1170 = vperm.xlu1 %5332, %v6548_v17   ;;  %10479 = vst [vmem:[#allocation48_spill] sm:$0xff] %v6554_v20  ;;  %v10480_v55 = vld [vmem:[#allocation15_spill] sm:$0xff] }
 0x13b   :  { %v6543_v21 = vadd.f32 %v777_v8, %v6231_v11  ;;  %1198 = vperm.xlu0 %5333, %v6554_v20   ;;  %v659_v60 = vpop.permute.xlu1 %658  ;;  %v671_v29 = vpop.permute.xlu0 %670  ;;  %v6562_v8 = vrot.slane %v10423_v7, %v943_v39  ;;  %v5533_v7 = vmov 5  }
 0x13c   :  { %10476 = vst [vmem:[#allocation44_spill] sm:$0xff] %v6537_v9  ;;  %10477 = vst [vmem:[#allocation11_spill] sm:$0xff] %v6540_v48  ;;  %v708_v24 = vmul.f32 %v6252_v52, %v659_v60  ;;  %v776_v11 = vmul.f32 %v6255_v32, %v659_v60  ;;  %v711_v10 = vmul.f32 %v6252_v52, %v671_v29  ;;  %v10481_v48 = vld [vmem:[#allocation57_spill] sm:$0xff]  ;;  %v6579_v60 = vld [vmem:[%s10271_s0 + $0xc8] sm:$0xff] }
 0x13d   :  { %10478 = vst [vmem:[#allocation45_spill] sm:$0xff] %v6543_v21  ;;  %v779_v63 = vmul.f32 %v6255_v32, %v671_v29 }
 0x13e   :  { %v6565_v21 = vadd.f32 %v708_v24, %v10480_v55  ;;  %v6568_v46 = vadd.f32 %v776_v11, %v10481_v48  ;;  %v6571_v20 = vadd.f32 %v711_v10, %v6257_v13  ;;  %1178 = vperm.xlu1 %5332, %v6579_v60   ;;  %v5473_v13 = vld [vmem:[%s10271_s0] sm:$0xff]  ;;  %v10486_v10 = vld [vmem:[#allocation28_spill] sm:$0xff] }
 0x13f   :  { %v6574_v9 = vadd.f32 %v779_v63, %v6259_v27  ;;  %5334 = vset.pattern.permute.xlu0 %v5533_v7  ;;  %v667_v29 = vpop.permute.xlu1 %666  ;;  %v10487_v55 = vld [vmem:[#allocation29_spill] sm:$0xff] }
 0x140   :  { %10482 = vst [vmem:[#allocation49_spill] sm:$0xff] %v6568_v46  ;;  %10483 = vst [vmem:[#allocation12_spill] sm:$0xff] %v6571_v20  ;;  %v710_v24 = vmul.f32 %v6252_v52, %v667_v29  ;;  %v778_v48 = vmul.f32 %v6255_v32, %v667_v29  ;;  %1342 = vperm.xlu0 %5334, %v5473_v13   ;;  %v6587_v27 = vpop.permute.xlu0 %814  ;;  %v6600_v29 = vld [vmem:[%s10271_s0 + $0xd8] sm:$0xff] }
 0x141   :  { %10484 = vst [vmem:[#allocation46_spill] sm:$0xff] %v6574_v9  ;;  %10485 = vst [vmem:[#allocation47_spill] sm:$0xff] %v6587_v27  ;;  %v1013_v11 = vmul.f32 %v6562_v8, %v6587_v27 }
 0x142   :  { %v6592_v63 = vadd.f32 %v710_v24, %v10486_v10  ;;  %v6595_v9 = vadd.f32 %v778_v48, %v10487_v55  ;;  %1186 = vperm.xlu1 %5332, %v6600_v29   ;;  %v5475_v24 = vld [vmem:[%s10271_s0 + $0x18] sm:$0xff] }
 0x143   :  { %v6604_v13 = vadd.f32 %v1013_v11, %v6275_v57  ;;  %v675_v20 = vpop.permute.xlu1 %674 }
 0x144   :  { %v712_v46 = vmul.f32 %v6252_v52, %v675_v20  ;;  %v780_v27 = vmul.f32 %v6255_v32, %v675_v20  ;;  %1354 = vperm.xlu0 %5334, %v5475_v24   ;;  %v6611_v48 = vpop.permute.xlu0 %826  ;;  %v6624_v32 = vld [vmem:[%s10271_s0 + $0xe8] sm:$0xff]  ;;  %v6628_v20 = vrot.slane %v10421_v54, %v943_v39  ;;  %v6645_v54 = vld [vmem:[%s10271_s0 + $0xf8] sm:$0xff] }
 0x145   :  { %10488 = vst [vmem:[#allocation52_spill] sm:$0xff] %v6611_v48  ;;  %v1016_v10 = vmul.f32 %v6562_v8, %v6611_v48 }
 0x146   :  { %v6616_v55 = vadd.f32 %v712_v46, %v6261_v31  ;;  %v6619_v57 = vadd.f32 %v780_v27, %v6263_v44  ;;  %1194 = vperm.xlu1 %5332, %v6624_v32   ;;  %v5477_v46 = vld [vmem:[%s10271_s0 + $0x28] sm:$0xff] }
 0x147   :  { %v6631_v11 = vadd.f32 %v1016_v10, %v6309_v28 }
 0x148   :  { %1362 = vperm.xlu0 %5334, %v5477_v46   ;;  %v819_v31 = vpop.permute.xlu1 %818  ;;  %v6638_v24 = vpop.permute.xlu0 %834  ;;  %v5479_v46 = vld [vmem:[%s10271_s0 + $0x38] sm:$0xff] }
 0x149   :  { %10489 = vst [vmem:[#allocation53_spill] sm:$0xff] %v6631_v11  ;;  %v946_v44 = vmul.f32 %v6628_v20, %v819_v31  ;;  %v1014_v27 = vmul.f32 %v6562_v8, %v819_v31  ;;  %10490 = vst [vmem:[#allocation14_spill] sm:$0xff] %v6638_v24  ;;  %v1018_v48 = vmul.f32 %v6562_v8, %v6638_v24 }
 0x14a   :  { %1202 = vperm.xlu1 %5332, %v6645_v54  }
 0x14b   :  { %v6649_v28 = vadd.f32 %v946_v44, %v6278_v15  ;;  %v6652_v39 = vadd.f32 %v1014_v27, %v6281_v4  ;;  %v6655_v10 = vadd.f32 %v1018_v48, %v6326_v59  ;;  %v5480_v48 = vld [vmem:[%s10271_s0 + $0x8] sm:$0xff] }
 0x14c   :  { %1370 = vperm.xlu0 %5334, %v5479_v46   ;;  %v823_v31 = vpop.permute.xlu1 %822  ;;  %v843_v11 = vpop.permute.xlu0 %842 }
 0x14d   :  { %v947_v24 = vmul.f32 %v6628_v20, %v823_v31  ;;  %v1015_v52 = vmul.f32 %v6562_v8, %v823_v31  ;;  %v952_v15 = vmul.f32 %v6628_v20, %v843_v11  ;;  %v1020_v44 = vmul.f32 %v6562_v8, %v843_v11 }
 0x14e   :  { %5335 = vset.pattern.permute.xlu1 %v5533_v7  ;;  %v5481_v7 = vld [vmem:[%s10271_s0 + $0x48] sm:$0xff] }
 0x14f   :  { %v6665_v4 = vadd.f32 %v947_v24, %v6289_v25  ;;  %v6668_v59 = vadd.f32 %v1015_v52, %v6292_v1  ;;  %1346 = vperm.xlu1 %5335, %v5480_v48   ;;  %v6674_v27 = vadd.f32 %v952_v15, %v6341_v62  ;;  %v6677_v46 = vadd.f32 %v1020_v44, %v6344_v43  ;;  %v5482_v15 = vld [vmem:[%s10271_s0 + $0x10] sm:$0xff] }
 0x150   :  { %1378 = vperm.xlu0 %5334, %v5481_v7   ;;  %v831_v25 = vpop.permute.xlu1 %830  ;;  %v5483_v7 = vld [vmem:[%s10271_s0 + $0x58] sm:$0xff] }
 0x151   :  { %10491 = vst [vmem:[#allocation50_spill] sm:$0xff] %v6674_v27  ;;  %v949_v52 = vmul.f32 %v6628_v20, %v831_v25  ;;  %v1017_v1 = vmul.f32 %v6562_v8, %v831_v25  ;;  %v851_v11 = vpop.permute.xlu0 %850 }
 0x152   :  { %v954_v24 = vmul.f32 %v6628_v20, %v851_v11  ;;  %v1022_v31 = vmul.f32 %v6562_v8, %v851_v11 }
 0x153   :  { %v6687_v62 = vadd.f32 %v949_v52, %v6295_v35  ;;  %v6690_v43 = vadd.f32 %v1017_v1, %v6298_v6  ;;  %1350 = vperm.xlu1 %5335, %v5482_v15  }
 0x154   :  { %v6696_v44 = vadd.f32 %v954_v24, %v6359_v34  ;;  %v6699_v48 = vadd.f32 %v1022_v31, %v6362_v45  ;;  %1386 = vperm.xlu0 %5334, %v5483_v7   ;;  %v839_v35 = vpop.permute.xlu1 %838  ;;  %v5484_v24 = vld [vmem:[%s10271_s0 + $0x20] sm:$0xff]  ;;  %v5485_v7 = vld [vmem:[%s10271_s0 + $0x68] sm:$0xff] }
 0x155   :  { %v951_v6 = vmul.f32 %v6628_v20, %v839_v35  ;;  %v1019_v25 = vmul.f32 %v6562_v8, %v839_v35  ;;  %v859_v52 = vpop.permute.xlu0 %858 }
 0x156   :  { %v956_v1 = vmul.f32 %v6628_v20, %v859_v52  ;;  %v1024_v11 = vmul.f32 %v6562_v8, %v859_v52 }
 0x157   :  { %v6709_v34 = vadd.f32 %v951_v6, %v6312_v30  ;;  %v6712_v45 = vadd.f32 %v1019_v25, %v6315_v58  ;;  %1358 = vperm.xlu1 %5335, %v5484_v24  }
 0x158   :  { %v6718_v31 = vadd.f32 %v956_v1, %v6377_v40  ;;  %v6721_v15 = vadd.f32 %v1024_v11, %v6380_v47  ;;  %1394 = vperm.xlu0 %5334, %v5485_v7   ;;  %v847_v30 = vpop.permute.xlu1 %846  ;;  %v5486_v1 = vld [vmem:[%s10271_s0 + $0x30] sm:$0xff] }
 0x159   :  { %v953_v58 = vmul.f32 %v6628_v20, %v847_v30  ;;  %v1021_v35 = vmul.f32 %v6562_v8, %v847_v30  ;;  %v867_v6 = vpop.permute.xlu0 %866 }
 0x15a   :  { %v958_v25 = vmul.f32 %v6628_v20, %v867_v6  ;;  %v1026_v52 = vmul.f32 %v6562_v8, %v867_v6 }
 0x15b   :  { %v6731_v40 = vadd.f32 %v953_v58, %v6329_v41  ;;  %v6734_v47 = vadd.f32 %v1021_v35, %v6332_v0  ;;  %1366 = vperm.xlu1 %5335, %v5486_v1  }
 0x15c   :  { %v6740_v11 = vadd.f32 %v958_v25, %v6395_v37  ;;  %v6743_v24 = vadd.f32 %v1026_v52, %v6398_v49  ;;  %1402 = vperm.xlu0 %5334, %v6445_v23   ;;  %v855_v7 = vpop.permute.xlu1 %854  ;;  %v5487_v49 = vld [vmem:[%s10271_s0 + $0x40] sm:$0xff] }
 0x15d   :  { %v955_v41 = vmul.f32 %v6628_v20, %v855_v7  ;;  %v1023_v30 = vmul.f32 %v6562_v8, %v855_v7  ;;  %v875_v0 = vpop.permute.xlu0 %874 }
 0x15e   :  { %v960_v58 = vmul.f32 %v6628_v20, %v875_v0  ;;  %v1028_v35 = vmul.f32 %v6562_v8, %v875_v0 }
 0x15f   :  { %v6751_v6 = vadd.f32 %v955_v41, %v6347_v19  ;;  %v6754_v37 = vadd.f32 %v1023_v30, %v6350_v12  ;;  %1374 = vperm.xlu1 %5335, %v5487_v49  }
 0x160   :  { %v6760_v23 = vadd.f32 %v960_v58, %v6413_v3  ;;  %v6763_v25 = vadd.f32 %v1028_v35, %v6416_v51  ;;  %1410 = vperm.xlu0 %5334, %v6468_v26   ;;  %v863_v52 = vpop.permute.xlu1 %862  ;;  %v5488_v51 = vld [vmem:[%s10271_s0 + $0x50] sm:$0xff] }
 0x161   :  { %v957_v19 = vmul.f32 %v6628_v20, %v863_v52  ;;  %v1025_v1 = vmul.f32 %v6562_v8, %v863_v52  ;;  %v883_v12 = vpop.permute.xlu0 %882 }
 0x162   :  { %v962_v7 = vmul.f32 %v6628_v20, %v883_v12  ;;  %v1030_v41 = vmul.f32 %v6562_v8, %v883_v12 }
 0x163   :  { %v6771_v30 = vadd.f32 %v957_v19, %v6365_v36  ;;  %v6774_v3 = vadd.f32 %v1025_v1, %v6368_v14  ;;  %1382 = vperm.xlu1 %5335, %v5488_v51  }
 0x164   :  { %v6780_v26 = vadd.f32 %v962_v7, %v6431_v42  ;;  %v6783_v0 = vadd.f32 %v1030_v41, %v6434_v53  ;;  %1418 = vperm.xlu0 %5334, %v6491_v56   ;;  %v871_v58 = vpop.permute.xlu1 %870  ;;  %v5489_v53 = vld [vmem:[%s10271_s0 + $0x60] sm:$0xff] }
 0x165   :  { %v959_v36 = vmul.f32 %v6628_v20, %v871_v58  ;;  %v1027_v35 = vmul.f32 %v6562_v8, %v871_v58  ;;  %v891_v14 = vpop.permute.xlu0 %890 }
 0x166   :  { %v964_v49 = vmul.f32 %v6628_v20, %v891_v14  ;;  %v1032_v52 = vmul.f32 %v6562_v8, %v891_v14 }
 0x167   :  { %v6791_v19 = vadd.f32 %v959_v36, %v6383_v5  ;;  %v6794_v42 = vadd.f32 %v1027_v35, %v6386_v16  ;;  %1390 = vperm.xlu1 %5335, %v5489_v53   ;;  %v10492_v36 = vld [vmem:[#allocation6_spill] sm:$0xff] }
 0x168   :  { %v6800_v56 = vadd.f32 %v964_v49, %v6454_v50  ;;  %v6803_v1 = vadd.f32 %v1032_v52, %v6457_v22  ;;  %1426 = vperm.xlu0 %5334, %v6519_v2   ;;  %v879_v12 = vpop.permute.xlu1 %878  ;;  %v5490_v22 = vld [vmem:[%s10271_s0 + $0x70] sm:$0xff] }
 0x169   :  { %v961_v5 = vmul.f32 %v6628_v20, %v879_v12  ;;  %v1029_v7 = vmul.f32 %v6562_v8, %v879_v12  ;;  %v899_v16 = vpop.permute.xlu0 %898  ;;  %v10494_v12 = vld [vmem:[#allocation30_spill] sm:$0xff] }
 0x16a   :  { %v966_v41 = vmul.f32 %v6628_v20, %v899_v16  ;;  %v1034_v51 = vmul.f32 %v6562_v8, %v899_v16  ;;  %v10496_v16 = vld [vmem:[#allocation8_spill] sm:$0xff] }
 0x16b   :  { %v6811_v58 = vadd.f32 %v961_v5, %v6401_v38  ;;  %v6814_v50 = vadd.f32 %v1029_v7, %v6404_v18  ;;  %1398 = vperm.xlu1 %5335, %v5490_v22  }
 0x16c   :  { %v6820_v2 = vadd.f32 %v966_v41, %v6477_v61  ;;  %v6823_v35 = vadd.f32 %v1034_v51, %v10492_v36  ;;  %1434 = vperm.xlu0 %5334, %v6548_v17   ;;  %v887_v14 = vpop.permute.xlu1 %886  ;;  %v10495_v61 = vld [vmem:[#allocation31_spill] sm:$0xff]  ;;  %v5491_v17 = vld [vmem:[%s10271_s0 + $0x80] sm:$0xff]  ;;  %v10498_v51 = vld [vmem:[#allocation42_spill] sm:$0xff] }
 0x16d   :  { %v963_v38 = vmul.f32 %v6628_v20, %v887_v14  ;;  %v1031_v49 = vmul.f32 %v6562_v8, %v887_v14  ;;  %v907_v18 = vpop.permute.xlu0 %906 }
 0x16e   :  { %10493 = vst [vmem:[#allocation51_spill] sm:$0xff] %v6823_v35  ;;  %v968_v52 = vmul.f32 %v6628_v20, %v907_v18  ;;  %v1036_v53 = vmul.f32 %v6562_v8, %v907_v18 }
 0x16f   :  { %v6831_v5 = vadd.f32 %v963_v38, %v10494_v12  ;;  %v6834_v7 = vadd.f32 %v1031_v49, %v10495_v61  ;;  %1406 = vperm.xlu1 %5335, %v5491_v17   ;;  %v10500_v61 = vld [vmem:[#allocation18_spill] sm:$0xff] }
 0x170   :  { %v6840_v41 = vadd.f32 %v968_v52, %v10496_v16  ;;  %v6843_v22 = vadd.f32 %v1036_v53, %v10498_v51  ;;  %1442 = vperm.xlu0 %5334, %v6579_v60   ;;  %v895_v36 = vpop.permute.xlu1 %894  ;;  %v10501_v52 = vld [vmem:[#allocation19_spill] sm:$0xff]  ;;  %v10503_v51 = vld [vmem:[#allocation44_spill] sm:$0xff] }
 0x171   :  { %v965_v14 = vmul.f32 %v6628_v20, %v895_v36  ;;  %v1033_v38 = vmul.f32 %v6562_v8, %v895_v36  ;;  %v915_v49 = vpop.permute.xlu0 %914  ;;  %v5492_v60 = vld [vmem:[%s10271_s0 + $0x90] sm:$0xff] }
 0x172   :  { %10497 = vst [vmem:[#allocation23_spill] sm:$0xff] %v6840_v41  ;;  %10499 = vst [vmem:[#allocation24_spill] sm:$0xff] %v6843_v22  ;;  %v970_v18 = vmul.f32 %v6628_v20, %v915_v49  ;;  %v1038_v12 = vmul.f32 %v6562_v8, %v915_v49  ;;  %v10505_v22 = vld [vmem:[#allocation5_spill] sm:$0xff] }
 0x173   :  { %v6851_v17 = vadd.f32 %v965_v14, %v10500_v61  ;;  %v6854_v16 = vadd.f32 %v1033_v38, %v10501_v52  ;;  %1414 = vperm.xlu1 %5335, %v5492_v60  }
 0x174   :  { %v6860_v53 = vadd.f32 %v970_v18, %v6534_v33  ;;  %v6863_v36 = vadd.f32 %v1038_v12, %v10503_v51  ;;  %1450 = vperm.xlu0 %5334, %v6600_v29   ;;  %v903_v49 = vpop.permute.xlu1 %902  ;;  %v10506_v33 = vld [vmem:[#allocation39_spill] sm:$0xff]  ;;  %v5493_v29 = vld [vmem:[%s10271_s0 + $0xa0] sm:$0xff] }
 0x175   :  { %v967_v14 = vmul.f32 %v6628_v20, %v903_v49  ;;  %v1035_v61 = vmul.f32 %v6562_v8, %v903_v49  ;;  %v923_v38 = vpop.permute.xlu0 %922  ;;  %v10508_v51 = vld [vmem:[#allocation49_spill] sm:$0xff] }
 0x176   :  { %10502 = vst [vmem:[#allocation54_spill] sm:$0xff] %v6860_v53  ;;  %10504 = vst [vmem:[#allocation55_spill] sm:$0xff] %v6863_v36  ;;  %v972_v52 = vmul.f32 %v6628_v20, %v923_v38  ;;  %v1040_v27 = vmul.f32 %v6562_v8, %v923_v38  ;;  %v10510_v53 = vld [vmem:[#allocation40_spill] sm:$0xff] }
 0x177   :  { %v6871_v60 = vadd.f32 %v967_v14, %v10505_v22  ;;  %v6874_v18 = vadd.f32 %v1035_v61, %v10506_v33  ;;  %1422 = vperm.xlu1 %5335, %v5493_v29  }
 0x178   :  { %v6880_v12 = vadd.f32 %v972_v52, %v6565_v21  ;;  %v6883_v49 = vadd.f32 %v1040_v27, %v10508_v51  ;;  %1458 = vperm.xlu0 %5334, %v6624_v32   ;;  %v911_v38 = vpop.permute.xlu1 %910  ;;  %v10511_v21 = vld [vmem:[#allocation7_spill] sm:$0xff] }
 0x179   :  { %v969_v22 = vmul.f32 %v6628_v20, %v911_v38  ;;  %v1037_v14 = vmul.f32 %v6562_v8, %v911_v38  ;;  %v931_v61 = vpop.permute.xlu0 %930  ;;  %v5494_v32 = vld [vmem:[%s10271_s0 + $0xb0] sm:$0xff] }
 0x17a   :  { %10507 = vst [vmem:[#allocation25_spill] sm:$0xff] %v6880_v12  ;;  %10509 = vst [vmem:[#allocation26_spill] sm:$0xff] %v6883_v49  ;;  %v974_v33 = vmul.f32 %v6628_v20, %v931_v61  ;;  %v1042_v36 = vmul.f32 %v6562_v8, %v931_v61  ;;  %v10512_v27 = vld [vmem:[#allocation27_spill] sm:$0xff]  ;;  %v10515_v12 = vld [vmem:[#allocation9_spill] sm:$0xff] }
 0x17b   :  { %v6891_v29 = vadd.f32 %v969_v22, %v10510_v53  ;;  %v6894_v52 = vadd.f32 %v1037_v14, %v10511_v21  ;;  %1430 = vperm.xlu1 %5335, %v5494_v32   ;;  %v1207_v51 = vsub.s32 4, %v10512_v27  ;;  %v10522_v27 = vld [vmem:[#allocation45_spill] sm:$0xff] }
 0x17c   :  { %v6901_v38 = vadd.f32 %v974_v33, %v6592_v63  ;;  %v6904_v49 = vadd.f32 %v1042_v36, %v6595_v9  ;;  %1466 = vperm.xlu0 %5334, %v6645_v54   ;;  %v919_v53 = vpop.permute.xlu1 %918  ;;  %v10516_v63 = vld [vmem:[#allocation43_spill] sm:$0xff]  ;;  %v5495_v9 = vld [vmem:[%s10271_s0 + $0xc0] sm:$0xff] }
 0x17d   :  { %v971_v22 = vmul.f32 %v6628_v20, %v919_v53  ;;  %v1039_v14 = vmul.f32 %v6562_v8, %v919_v53  ;;  %v939_v61 = vpop.permute.xlu0 %938  ;;  %v6923_v54 = vld [vmem:[%s10272_s1] sm:$0x3f] }
 0x17e   :  { %10513 = vst [vmem:[#allocation13_spill] sm:$0xff] %v6901_v38  ;;  %10514 = vst [vmem:[#allocation56_spill] sm:$0xff] %v6904_v49  ;;  %v976_v21 = vmul.f32 %v6628_v20, %v939_v61  ;;  %v1044_v32 = vmul.f32 %v6562_v8, %v939_v61  ;;  %v6926_v36 = vrot.slane %v6923_v54, %v1207_v51  ;;  %v10521_v38 = vld [vmem:[#allocation11_spill] sm:$0xff] }
 0x17f   :  { %v6912_v41 = vadd.f32 %v971_v22, %v10515_v12  ;;  %v6915_v33 = vadd.f32 %v1039_v14, %v10516_v63  ;;  %1438 = vperm.xlu1 %5335, %v5495_v9   ;;  %10517 = vst [vmem:[#allocation15_spill] sm:$0xff] %v6923_v54  ;;  %v6931_v12 = vld [vmem:[%s10273_s2] sm:$0x3f] }
 0x180   :  { %10518 = vst [vmem:[#allocation57_spill] sm:$0xff] %v6931_v12  ;;  %v6934_v53 = vrot.slane %v6931_v12, %v1207_v51  ;;  %v6937_v22 = vadd.f32 %v976_v21, %v6616_v55  ;;  %v6940_v14 = vadd.f32 %v1044_v32, %v6619_v57  ;;  %v927_v61 = vpop.permute.xlu1 %926  ;;  %v10523_v21 = vld [vmem:[#allocation41_spill] sm:$0xff] }
 0x181   :  { %v973_v63 = vmul.f32 %v6628_v20, %v927_v61  ;;  %v1041_v9 = vmul.f32 %v6562_v8, %v927_v61 }
 0x182   :  { %10519 = vst [vmem:[#allocation28_spill] sm:$0xff] %v6937_v22  ;;  %10520 = vst [vmem:[#allocation29_spill] sm:$0xff] %v6940_v14  ;;  %v1083_v49 = vpop.permute.xlu0 %1082  ;;  %v10525_v22 = vld [vmem:[#allocation46_spill] sm:$0xff] }
 0x183   :  { %v6945_v54 = vadd.f32 %v973_v63, %v10521_v38  ;;  %v6948_v35 = vadd.f32 %v1041_v9, %v10522_v27  ;;  %v1210_v51 = vmul.f32 %v6926_v36, %v1083_v49  ;;  %v1278_v55 = vmul.f32 %v6934_v53, %v1083_v49  ;;  %1446 = vperm.xlu1 %5335, %v10523_v21   ;;  %v10524_v27 = vld [vmem:[#allocation12_spill] sm:$0xff] }
 0x184   :  { %v935_v57 = vpop.permute.xlu1 %934 }
 0x185   :  { %v6954_v32 = vadd.f32 %v1210_v51, %v6649_v28  ;;  %v6957_v14 = vadd.f32 %v1278_v55, %v6652_v39  ;;  %v975_v61 = vmul.f32 %v6628_v20, %v935_v57  ;;  %v1043_v38 = vmul.f32 %v6562_v8, %v935_v57  ;;  %v10526_v28 = vld [vmem:[#allocation10_spill] sm:$0xff] }
 0x186   :  { %v1095_v63 = vpop.permute.xlu0 %1094 }
 0x187   :  { %v6962_v9 = vadd.f32 %v975_v61, %v10524_v27  ;;  %v6965_v12 = vadd.f32 %v1043_v38, %v10525_v22  ;;  %v1213_v49 = vmul.f32 %v6926_v36, %v1095_v63  ;;  %v1281_v21 = vmul.f32 %v6934_v53, %v1095_v63  ;;  %1454 = vperm.xlu1 %5335, %v10526_v28   ;;  %v10528_v38 = vld [vmem:[#allocation48_spill] sm:$0xff] }
 0x189   :  { %v6971_v39 = vadd.f32 %v1213_v49, %v6687_v62  ;;  %v6974_v51 = vadd.f32 %v1281_v21, %v6690_v43  ;;  %v6976_v8 = vpop.permute.xlu1 %1078 }
 0x18a   :  { %v1277_v55 = vmul.f32 %v6934_v53, %v6976_v8  ;;  %v1103_v57 = vpop.permute.xlu0 %1102 }
 0x18b   :  { %10527 = vst [vmem:[#allocation6_spill] sm:$0xff] %v6974_v51  ;;  %v1215_v22 = vmul.f32 %v6926_v36, %v1103_v57  ;;  %v1283_v61 = vmul.f32 %v6934_v53, %v1103_v57  ;;  %1462 = vperm.xlu1 %5335, %v10528_v38  }
 0x18c   :  { %v6984_v63 = vadd.f32 %v1277_v55, %v6604_v13 }
 0x18d   :  { %v6987_v62 = vadd.f32 %v1215_v22, %v6709_v34  ;;  %v6990_v43 = vadd.f32 %v1283_v61, %v6712_v45  ;;  %v1087_v27 = vpop.permute.xlu1 %1086 }
 0x18e   :  { %v1211_v49 = vmul.f32 %v6926_v36, %v1087_v27  ;;  %v1279_v21 = vmul.f32 %v6934_v53, %v1087_v27  ;;  %v1111_v28 = vpop.permute.xlu0 %1110 }
 0x18f   :  { %10529 = vst [vmem:[#allocation30_spill] sm:$0xff] %v6987_v62  ;;  %v1217_v51 = vmul.f32 %v6926_v36, %v1111_v28  ;;  %v1285_v57 = vmul.f32 %v6934_v53, %v1111_v28 }
 0x190   :  { %v6997_v38 = vadd.f32 %v1211_v49, %v6665_v4  ;;  %v7000_v13 = vadd.f32 %v1279_v21, %v6668_v59  ;;  %v10532_v49 = vld [vmem:[#allocation53_spill] sm:$0xff] }
 0x191   :  { %v7003_v34 = vadd.f32 %v1217_v51, %v6731_v40  ;;  %v7006_v45 = vadd.f32 %v1285_v57, %v6734_v47  ;;  %v7008_v55 = vpop.permute.xlu1 %1090 }
 0x192   :  { %v1280_v22 = vmul.f32 %v6934_v53, %v7008_v55  ;;  %v1119_v61 = vpop.permute.xlu0 %1118 }
 0x193   :  { %10530 = vst [vmem:[#allocation31_spill] sm:$0xff] %v7003_v34  ;;  %10531 = vst [vmem:[#allocation8_spill] sm:$0xff] %v7006_v45  ;;  %v1219_v27 = vmul.f32 %v6926_v36, %v1119_v61  ;;  %v1287_v4 = vmul.f32 %v6934_v53, %v1119_v61 }
 0x194   :  { %v7015_v28 = vadd.f32 %v1280_v22, %v10532_v49 }
 0x195   :  { %v7018_v59 = vadd.f32 %v1219_v27, %v6751_v6  ;;  %v7021_v40 = vadd.f32 %v1287_v4, %v6754_v37  ;;  %v7023_v47 = vpop.permute.xlu1 %1098 }
 0x196   :  { %v1282_v51 = vmul.f32 %v6934_v53, %v7023_v47  ;;  %v1127_v21 = vpop.permute.xlu0 %1126 }
 0x197   :  { %10533 = vst [vmem:[#allocation42_spill] sm:$0xff] %v7018_v59  ;;  %10534 = vst [vmem:[#allocation18_spill] sm:$0xff] %v7021_v40  ;;  %v1221_v57 = vmul.f32 %v6926_v36, %v1127_v21  ;;  %v1289_v45 = vmul.f32 %v6934_v53, %v1127_v21 }
 0x198   :  { %v7030_v61 = vadd.f32 %v1282_v51, %v6655_v10 }
 0x199   :  { %v7033_v22 = vadd.f32 %v1221_v57, %v6771_v30  ;;  %v7036_v6 = vadd.f32 %v1289_v45, %v6774_v3  ;;  %v7038_v37 = vpop.permute.xlu1 %1106 }
 0x19a   :  { %v1284_v27 = vmul.f32 %v6934_v53, %v7038_v37  ;;  %v1135_v4 = vpop.permute.xlu0 %1134 }
 0x19b   :  { %10535 = vst [vmem:[#allocation19_spill] sm:$0xff] %v7033_v22  ;;  %10536 = vst [vmem:[#allocation44_spill] sm:$0xff] %v7036_v6  ;;  %v1223_v49 = vmul.f32 %v6926_v36, %v1135_v4  ;;  %v1291_v40 = vmul.f32 %v6934_v53, %v1135_v4 }
 0x19c   :  { %v7045_v21 = vadd.f32 %v1284_v27, %v6677_v46 }
 0x19d   :  { %v7048_v10 = vadd.f32 %v1223_v49, %v6791_v19  ;;  %v7051_v30 = vadd.f32 %v1291_v40, %v6794_v42  ;;  %v1115_v3 = vpop.permute.xlu1 %1114 }
 0x19e   :  { %v1218_v45 = vmul.f32 %v6926_v36, %v1115_v3  ;;  %v1286_v51 = vmul.f32 %v6934_v53, %v1115_v3  ;;  %v1143_v57 = vpop.permute.xlu0 %1142 }
 0x19f   :  { %10537 = vst [vmem:[#allocation5_spill] sm:$0xff] %v7048_v10  ;;  %10538 = vst [vmem:[#allocation39_spill] sm:$0xff] %v7051_v30  ;;  %v1225_v22 = vmul.f32 %v6926_v36, %v1143_v57  ;;  %v1293_v6 = vmul.f32 %v6934_v53, %v1143_v57 }
 0x1a0   :  { %v7058_v4 = vadd.f32 %v1218_v45, %v6696_v44  ;;  %v7061_v46 = vadd.f32 %v1286_v51, %v6699_v48 }
 0x1a1   :  { %v7064_v19 = vadd.f32 %v1225_v22, %v6811_v58  ;;  %v7067_v42 = vadd.f32 %v1293_v6, %v6814_v50  ;;  %v1123_v40 = vpop.permute.xlu1 %1122 }
 0x1a2   :  { %v1220_v27 = vmul.f32 %v6926_v36, %v1123_v40  ;;  %v1288_v49 = vmul.f32 %v6934_v53, %v1123_v40  ;;  %v1151_v3 = vpop.permute.xlu0 %1150 }
 0x1a3   :  { %10539 = vst [vmem:[#allocation49_spill] sm:$0xff] %v7064_v19  ;;  %10540 = vst [vmem:[#allocation40_spill] sm:$0xff] %v7067_v42  ;;  %v1227_v57 = vmul.f32 %v6926_v36, %v1151_v3  ;;  %v1295_v44 = vmul.f32 %v6934_v53, %v1151_v3 }
 0x1a4   :  { %v7074_v45 = vadd.f32 %v1220_v27, %v6718_v31  ;;  %v7077_v48 = vadd.f32 %v1288_v49, %v6721_v15 }
 0x1a5   :  { %v7080_v58 = vadd.f32 %v1227_v57, %v6831_v5  ;;  %v7083_v50 = vadd.f32 %v1295_v44, %v6834_v7  ;;  %v1131_v22 = vpop.permute.xlu1 %1130 }
 0x1a6   :  { %10541 = vst [vmem:[#allocation7_spill] sm:$0xff] %v7077_v48  ;;  %v1222_v6 = vmul.f32 %v6926_v36, %v1131_v22  ;;  %v1290_v51 = vmul.f32 %v6934_v53, %v1131_v22  ;;  %v1159_v40 = vpop.permute.xlu0 %1158 }
 0x1a7   :  { %10542 = vst [vmem:[#allocation9_spill] sm:$0xff] %v7080_v58  ;;  %10543 = vst [vmem:[#allocation43_spill] sm:$0xff] %v7083_v50  ;;  %v1229_v3 = vmul.f32 %v6926_v36, %v1159_v40  ;;  %v1297_v31 = vmul.f32 %v6934_v53, %v1159_v40 }
 0x1a8   :  { %v7090_v27 = vadd.f32 %v1222_v6, %v6740_v11  ;;  %v7093_v15 = vadd.f32 %v1290_v51, %v6743_v24 }
 0x1a9   :  { %v7096_v5 = vadd.f32 %v1229_v3, %v6851_v17  ;;  %v7099_v7 = vadd.f32 %v1297_v31, %v6854_v16  ;;  %v1139_v49 = vpop.permute.xlu1 %1138 }
 0x1aa   :  { %10544 = vst [vmem:[#allocation11_spill] sm:$0xff] %v7090_v27  ;;  %10545 = vst [vmem:[#allocation45_spill] sm:$0xff] %v7093_v15  ;;  %v1224_v57 = vmul.f32 %v6926_v36, %v1139_v49  ;;  %v1292_v44 = vmul.f32 %v6934_v53, %v1139_v49  ;;  %v1167_v22 = vpop.permute.xlu0 %1166 }
 0x1ab   :  { %10546 = vst [vmem:[#allocation41_spill] sm:$0xff] %v7096_v5  ;;  %10547 = vst [vmem:[#allocation12_spill] sm:$0xff] %v7099_v7  ;;  %v1231_v40 = vmul.f32 %v6926_v36, %v1167_v22  ;;  %v1299_v11 = vmul.f32 %v6934_v53, %v1167_v22 }
 0x1ac   :  { %v7106_v6 = vadd.f32 %v1224_v57, %v6760_v23  ;;  %v7109_v24 = vadd.f32 %v1292_v44, %v6763_v25 }
 0x1ad   :  { %v7112_v17 = vadd.f32 %v1231_v40, %v6871_v60  ;;  %v7115_v16 = vadd.f32 %v1299_v11, %v6874_v18  ;;  %v1147_v51 = vpop.permute.xlu1 %1146 }
 0x1ae   :  { %10548 = vst [vmem:[#allocation46_spill] sm:$0xff] %v7106_v6  ;;  %10549 = vst [vmem:[#allocation10_spill] sm:$0xff] %v7109_v24  ;;  %v1226_v3 = vmul.f32 %v6926_v36, %v1147_v51  ;;  %v1294_v31 = vmul.f32 %v6934_v53, %v1147_v51  ;;  %v1175_v49 = vpop.permute.xlu0 %1174 }
 0x1af   :  { %10550 = vst [vmem:[#allocation48_spill] sm:$0xff] %v7112_v17  ;;  %10551 = vst [vmem:[#allocation53_spill] sm:$0xff] %v7115_v16  ;;  %v1233_v22 = vmul.f32 %v6926_v36, %v1175_v49  ;;  %v1301_v23 = vmul.f32 %v6934_v53, %v1175_v49 }
 0x1b0   :  { %v7122_v57 = vadd.f32 %v1226_v3, %v6780_v26  ;;  %v7125_v25 = vadd.f32 %v1294_v31, %v6783_v0  ;;  %v10559_v31 = vld [vmem:[#allocation34_spill] sm:$0xff] }
 0x1b1   :  { %v7128_v60 = vadd.f32 %v1233_v22, %v6891_v29  ;;  %v7131_v18 = vadd.f32 %v1301_v23, %v6894_v52  ;;  %v1155_v44 = vpop.permute.xlu1 %1154  ;;  %v10558_v29 = vld [vmem:[#allocation36_spill] sm:$0xff] }
 0x1b2   :  { %10552 = vst [vmem:[#allocation58_spill] sm:$0xff] %v7122_v57  ;;  %10553 = vst [vmem:[#allocation59_spill] sm:$0xff] %v7125_v25  ;;  %v1228_v40 = vmul.f32 %v6926_v36, %v1155_v44  ;;  %v1296_v11 = vmul.f32 %v6934_v53, %v1155_v44  ;;  %v1183_v51 = vpop.permute.xlu0 %1182  ;;  %v417_v52 = vmul.f32 %v10559_v31, %v10558_v29 }
 0x1b3   :  { %10554 = vst [vmem:[#allocation60_spill] sm:$0xff] %v7128_v60  ;;  %10555 = vst [vmem:[#allocation61_spill] sm:$0xff] %v7131_v18  ;;  %v1235_v49 = vmul.f32 %v6926_v36, %v1183_v51  ;;  %v1303_v26 = vmul.f32 %v6934_v53, %v1183_v51 }
 0x1b4   :  { %v7138_v3 = vadd.f32 %v1228_v40, %v6800_v56  ;;  %v7141_v0 = vadd.f32 %v1296_v11, %v6803_v1  ;;  %v10562_v56 = vld [vmem:[#allocation20_spill] sm:$0xff]  ;;  %v10563_v40 = vld [vmem:[#allocation35_spill] sm:$0xff]  ;;  %v10565_v11 = vld [vmem:[#allocation17_spill] sm:$0xff] }
 0x1b5   :  { %v7146_v22 = vadd.f32 %v1235_v49, %v6912_v41  ;;  %v7149_v23 = vadd.f32 %v1303_v26, %v6915_v33  ;;  %v1163_v44 = vpop.permute.xlu1 %1162  ;;  %v217_v60 = vmul.f32 %v10563_v40, %v10562_v56  ;;  %v10564_v1 = vld [vmem:[#allocation16_spill] sm:$0xff]  ;;  %v10566_v49 = vld [vmem:[#allocation21_spill] sm:$0xff]  ;;  %v10571_v56 = vld [vmem:[#allocation47_spill] sm:$0xff] }
 0x1b6   :  { %10556 = vst [vmem:[#allocation62_spill] sm:$0xff] %v7138_v3  ;;  %10557 = vst [vmem:[#allocation63_spill] sm:$0xff] %v7141_v0  ;;  %v1230_v18 = vmul.f32 %v6926_v36, %v1163_v44  ;;  %v1298_v51 = vmul.f32 %v6934_v53, %v1163_v44  ;;  %v1191_v16 = vpop.permute.xlu0 %1190  ;;  %v681_v17 = vmul.f32 %v10565_v11, %v10564_v1  ;;  %v10570_v44 = vld [vmem:[#allocation27_spill] sm:$0xff] }
 0x1b7   :  { %10560 = vst [vmem:[#allocation36_spill] sm:$0xff] %v7146_v22  ;;  %10561 = vst [vmem:[#allocation34_spill] sm:$0xff] %v7149_v23  ;;  %v1237_v29 = vmul.f32 %v6926_v36, %v1191_v16  ;;  %v1305_v41 = vmul.f32 %v6934_v53, %v1191_v16  ;;  %v220_v33 = vmul.f32 %v10563_v40, %v10566_v49  ;;  %v10568_v23 = vld [vmem:[#allocation51_spill] sm:$0xff]  ;;  %v1471_v7 = vsub.s32 5, %v10570_v44  ;;  %v10574_v49 = vld [vmem:[#allocation37_spill] sm:$0xff] }
 0x1b8   :  { %v7162_v26 = vadd.f32 %v1230_v18, %v6820_v2  ;;  %v7165_v22 = vadd.f32 %v1298_v51, %v10568_v23  ;;  %v449_v5 = vadd.f32 %v417_v52, %v217_v60  ;;  %v945_v42 = vmul.f32 %v6628_v20, %v10571_v56  ;;  %v10575_v18 = vld [vmem:[#allocation38_spill] sm:$0xff] }
 0x1b9   :  { %v7171_v1 = vadd.f32 %v1237_v29, %v6945_v54  ;;  %v7174_v16 = vadd.f32 %v1305_v41, %v6948_v35  ;;  %v1171_v58 = vpop.permute.xlu1 %1170  ;;  %v420_v2 = vmul.f32 %v10559_v31, %v10574_v49  ;;  %v422_v23 = vmul.f32 %v10559_v31, %v10575_v18  ;;  %v10576_v41 = vld [vmem:[#allocation23_spill] sm:$0xff]  ;;  %v10578_v49 = vld [vmem:[#allocation24_spill] sm:$0xff] }
 0x1ba   :  { %10567 = vst [vmem:[#allocation20_spill] sm:$0xff] %v7162_v26  ;;  %10569 = vst [vmem:[#allocation35_spill] sm:$0xff] %v7165_v22  ;;  %v1232_v51 = vmul.f32 %v6926_v36, %v1171_v58  ;;  %v1300_v60 = vmul.f32 %v6934_v53, %v1171_v58  ;;  %v1199_v52 = vpop.permute.xlu0 %1198  ;;  %v713_v44 = vadd.f32 %v681_v17, %v449_v5  ;;  %v10580_v31 = vld [vmem:[#allocation15_spill] sm:$0xff]  ;;  %v10582_v5 = vld [vmem:[#allocation32_spill] sm:$0xff] }
 0x1bb   :  { %10572 = vst [vmem:[#allocation16_spill] sm:$0xff] %v7171_v1  ;;  %10573 = vst [vmem:[#allocation17_spill] sm:$0xff] %v7174_v16  ;;  %v1209_v54 = vmul.f32 %v6926_v36, %v6976_v8  ;;  %v1239_v29 = vmul.f32 %v6926_v36, %v1199_v52  ;;  %v1307_v35 = vmul.f32 %v6934_v53, %v1199_v52  ;;  %v10581_v1 = vld [vmem:[#allocation57_spill] sm:$0xff] }
 0x1bc   :  { %v7187_v56 = vadd.f32 %v1232_v51, %v10576_v41  ;;  %v7190_v16 = vadd.f32 %v1300_v60, %v10578_v49  ;;  %v7193_v18 = vrot.slane %v10580_v31, %v1471_v7  ;;  %v7196_v58 = vrot.slane %v10581_v1, %v1471_v7  ;;  %v10585_v41 = vld [vmem:[#allocation22_spill] sm:$0xff]  ;;  %v10586_v1 = vld [vmem:[#allocation33_spill] sm:$0xff] }
 0x1bd   :  { %v684_v17 = vmul.f32 %v10565_v11, %v10582_v5  ;;  %v977_v8 = vadd.f32 %v945_v42, %v713_v44  ;;  %v7201_v50 = vadd.f32 %v1239_v29, %v6962_v9  ;;  %v7204_v52 = vadd.f32 %v1307_v35, %v6965_v12  ;;  %v1179_v51 = vpop.permute.xlu1 %1178  ;;  %v10587_v5 = vld [vmem:[#allocation52_spill] sm:$0xff]  ;;  %v10588_v29 = vld [vmem:[#allocation54_spill] sm:$0xff]  ;;  %v10590_v35 = vld [vmem:[#allocation55_spill] sm:$0xff] }
 0x1be   :  { %10577 = vst [vmem:[#allocation21_spill] sm:$0xff] %v7187_v56  ;;  %10579 = vst [vmem:[#allocation51_spill] sm:$0xff] %v7190_v16  ;;  %v222_v60 = vmul.f32 %v10563_v40, %v10585_v41  ;;  %v1234_v49 = vmul.f32 %v6926_v36, %v1179_v51  ;;  %v1302_v31 = vmul.f32 %v6934_v53, %v1179_v51 }
 0x1bf   :  { %10583 = vst [vmem:[#allocation27_spill] sm:$0xff] %v7201_v50  ;;  %10584 = vst [vmem:[#allocation47_spill] sm:$0xff] %v7204_v52  ;;  %v452_v7 = vadd.f32 %v420_v2, %v220_v33  ;;  %v686_v16 = vmul.f32 %v10565_v11, %v10586_v1  ;;  %v948_v42 = vmul.f32 %v6628_v20, %v10587_v5  ;;  %v1343_v44 = vpop.permute.xlu0 %1342  ;;  %v10592_v2 = vld [vmem:[#allocation14_spill] sm:$0xff] }
 0x1c0   :  { %v1241_v9 = vadd.f32 %v1209_v54, %v977_v8  ;;  %v7215_v12 = vadd.f32 %v1234_v49, %v10588_v29  ;;  %v7218_v50 = vadd.f32 %v1302_v31, %v10590_v35  ;;  %v1473_v40 = vmul.f32 %v7193_v18, %v1343_v44  ;;  %v7229_v54 = vld [vmem:[%s10274_s3] ss:$0 sm:$0xff] }
 0x1c1   :  { %v1541_v41 = vmul.f32 %v7196_v58, %v1343_v44  ;;  %v454_v51 = vadd.f32 %v422_v23, %v222_v60  ;;  %v716_v33 = vadd.f32 %v684_v17, %v452_v7  ;;  %v950_v11 = vmul.f32 %v6628_v20, %v10592_v2  ;;  %v1187_v8 = vpop.permute.xlu1 %1186  ;;  %v10593_v44 = vld [vmem:[#allocation25_spill] sm:$0xff] }
 0x1c2   :  { %10589 = vst [vmem:[#allocation37_spill] sm:$0xff] %v7215_v12  ;;  %10591 = vst [vmem:[#allocation38_spill] sm:$0xff] %v7218_v50  ;;  %v1212_v1 = vmul.f32 %v6926_v36, %v7008_v55  ;;  %v1505_v49 = vadd.f32 %v1473_v40, %v1241_v9  ;;  %v1236_v5 = vmul.f32 %v6926_v36, %v1187_v8  ;;  %v10595_v9 = vld [vmem:[#allocation26_spill] sm:$0xff]  ;;  %v10603_v50 = vmov 683565275  }
 0x1c3   :  { %v7232_v31 = vadd.f32 %v1541_v41, %v6984_v63  ;;  %v1304_v23 = vmul.f32 %v6934_v53, %v1187_v8  ;;  %v718_v17 = vadd.f32 %v686_v16, %v454_v51  ;;  %v980_v60 = vadd.f32 %v948_v42, %v716_v33  ;;  %v1355_v55 = vpop.permute.xlu0 %1354 }
 0x1c4   :  { %v1214_v20 = vmul.f32 %v6926_v36, %v7023_v47  ;;  %v7239_v7 = vadd.f32 %v7229_v54, %v1505_v49  ;;  %v7242_v29 = vadd.f32 %v1236_v5, %v10593_v44  ;;  %v1476_v63 = vmul.f32 %v7193_v18, %v1355_v55 }
 0x1c5   :  { %v7245_v35 = vadd.f32 %v1304_v23, %v10595_v9  ;;  %v1244_v40 = vadd.f32 %v1212_v1, %v980_v60  ;;  %v1544_v41 = vmul.f32 %v7196_v58, %v1355_v55  ;;  %v1195_v16 = vpop.permute.xlu1 %1194  ;;  %v982_v42 = vadd.f32 %v950_v11, %v718_v17  ;;  %v10597_v60 = vld [vmem:[#allocation13_spill] sm:$0xff] }
 0x1c6   :  { %10594 = vst [vmem:[#allocation23_spill] sm:$0xff] %v7242_v29  ;;  %v10331_v51 = vand.u32 2147483647, %v7239_v7  ;;  %v1646_v47 = vand.u32 2139095040, %v7239_v7  ;;  %v1238_v8 = vmul.f32 %v6926_v36, %v1195_v16  ;;  %v1306_v49 = vmul.f32 %v6934_v53, %v1195_v16 }
 0x1c7   :  { %10596 = vst [vmem:[#allocation24_spill] sm:$0xff] %v7245_v35  ;;  %v1508_v33 = vadd.f32 %v1476_v63, %v1244_v40  ;;  %v7252_v2 = vadd.f32 %v1544_v41, %v7015_v28  ;;  %v1363_v5 = vpop.permute.xlu0 %1362  ;;  %v1246_v23 = vadd.f32 %v1214_v20, %v982_v42  ;;  %v10599_v28 = vld [vmem:[#allocation56_spill] sm:$0xff]  ;;  %v10343_v12 = vmov 1326507024  }
 0x1c8   :  { %v1647_v44 = vshrl.u32 %v1646_v47, 23  ;;  %v1650_v1 = vand.u32 8388607, %v10331_v51  ;;  %v1478_v11 = vmul.f32 %v7193_v18, %v1363_v5  ;;  %v7263_v55 = vadd.f32 %v1238_v8, %v10597_v60 }
 0x1c9   :  { %v7260_v17 = vadd.f32 %v7229_v54, %v1508_v33  ;;  %v7266_v9 = vadd.f32 %v1306_v49, %v10599_v28  ;;  %v1546_v63 = vmul.f32 %v7196_v58, %v1363_v5  ;;  %v7269_v40 = vpop.permute.xlu1 %1202  ;;  %vm1645_vm14 = vcmp.lt.s32.totalorder %v7239_v7, 0 }
 0x1ca   :  { %10598 = vst [vmem:[#allocation15_spill] sm:$0xff] %v7263_v55  ;;  %v5053_v20 = vadd.s32 4294967169, %v1647_v44  ;;  %v1510_v41 = vadd.f32 %v1478_v11, %v1246_v23  ;;  %v1240_v16 = vmul.f32 %v6926_v36, %v7269_v40  ;;  %v1651_v60 = vor.u32 8388608, %v1650_v1  ;;  %v10601_v23 = vld [vmem:[#allocation28_spill] sm:$0xff] }
 0x1cb   :  { %10600 = vst [vmem:[#allocation57_spill] sm:$0xff] %v7266_v9  ;;  %v10332_v42 = vand.u32 2147483647, %v7260_v17  ;;  %v1958_v47 = vand.u32 2139095040, %v7260_v17  ;;  %v7276_v8 = vadd.f32 %v1546_v63, %v7030_v61  ;;  %v10333_v9 = vmov 683565275  }
 0x1cc   :  { %v1653_v33 = vadd.s32 1, %v5053_v20  ;;  %v7279_v49 = vadd.f32 %v7229_v54, %v1510_v41  ;;  %v7284_v11 = vadd.f32 %v1240_v16, %v10601_v23  ;;  %v7287_v61 = vshll.u32 %v1651_v60, 8 }
 0x1cd   :  { %v1959_v5 = vshrl.u32 %v1958_v47, 23  ;;  %v1962_v44 = vand.u32 8388607, %v10332_v42  ;;  %v10335_v55 = vmov 2475754826  }
 0x1ce   :  { %10602 = vst [vmem:[#allocation32_spill] sm:$0xff] %v7284_v11  ;;  %vm1654_vm0 = vcmp.gt.s32.totalorder %v1653_v33, 0  ;;  %v2166_v28 = vand.u32 2139095040, %v7279_v49  ;;  %v10337_v11 = vmov 2131351028  }
 0x1cf   :  { %v1655_v51 = vsel %vm1654_vm0, %v1653_v33, 0  ;;  %v5065_v52 = vadd.s32 4294967169, %v1959_v5  ;;  %v1963_v63 = vor.u32 8388608, %v1962_v44  ;;  %v10339_v5 = vmov 2102212464  }
 0x1d0   :  { %v1656_v20 = vshrl.u32 %v1655_v51, 5  ;;  %v1657_v35 = vand.u32 31, %v1655_v51  ;;  %v2167_v1 = vshrl.u32 %v2166_v28, 23  ;;  %v10341_v60 = vmov 920167782  }
 0x1d1   :  { %v1965_v23 = vadd.s32 1, %v5065_v52 }
 0x1d2   :  { %v1658_v47 = vsub.s32 32, %v1657_v35  ;;  %v1660_v42 = vshll.u32 %v10333_v9, %v1657_v35  ;;  %v1663_v16 = vshll.u32 %v10335_v55, %v1657_v35  ;;  %v1666_v33 = vshll.u32 %v10337_v11, %v1657_v35 }
 0x1d3   :  { %v1669_v51 = vshll.u32 %v10339_v5, %v1657_v35  ;;  %v1672_v44 = vshll.u32 %v10341_v60, %v1657_v35  ;;  %vm1675_vm1 = vcmp.lt.s32.totalorder %v1656_v20, 1  ;;  %vm1676_vm2 = vcmp.lt.s32.totalorder %v1656_v20, 2 }
 0x1d4   :  { %v1661_v28 = vshrl.u32 %v10335_v55, %v1658_v47  ;;  %v1664_v41 = vshrl.u32 %v10337_v11, %v1658_v47  ;;  %v1667_v9 = vshrl.u32 %v10339_v5, %v1658_v47  ;;  %v1659_v29 = vshrl.u32 %v10603_v50, %v1658_v47 }
 0x1d5   :  { %v1670_v52 = vshrl.u32 %v10341_v60, %v1658_v47  ;;  %v1673_v30 = vshrl.u32 %v10343_v12, %v1658_v47  ;;  %vm1677_vm3 = vcmp.lt.s32.totalorder %v1656_v20, 3  ;;  %vm1966_vm4 = vcmp.gt.s32.totalorder %v1965_v23, 0 }
 0x1d6   :  { %v1662_v19 = vor.u32 %v1661_v28, %v1660_v42  ;;  %v1665_v56 = vor.u32 %v1664_v41, %v1663_v16  ;;  %v1668_v10 = vor.u32 %v1667_v9, %v1666_v33  ;;  %vm1678_vm5 = vcmp.lt.s32.totalorder %v1656_v20, 4 }
 0x1d7   :  { %v1671_v35 = vor.u32 %v1670_v52, %v1669_v51  ;;  %v1674_v26 = vor.u32 %v1673_v30, %v1672_v44  ;;  %v1967_v55 = vsel %vm1966_vm4, %v1965_v23, 0  ;;  %v7310_v23 = vshll.u32 %v1963_v63, 8 }
 0x1d8   :  { %v1679_v11 = vsel %vm1675_vm1, %v1659_v29, %v1662_v19  ;;  %v1680_v5 = vsel %vm1678_vm5, %v1668_v10, 2102212464  ;;  %v1683_v22 = vsel %vm1675_vm1, %v1662_v19, %v1665_v56  ;;  %v1687_v25 = vsel %vm1675_vm1, %v1665_v56, %v1668_v10 }
 0x1d9   :  { %v1681_v60 = vsel %vm1677_vm3, %v1665_v56, %v1680_v5  ;;  %v1684_v3 = vsel %vm1678_vm5, %v1671_v35, 920167782  ;;  %v1688_v47 = vsel %vm1678_vm5, %v1674_v26, 1326507024  ;;  %v1968_v12 = vshrl.u32 %v1967_v55, 5 }
 0x1da   :  { %v1682_v42 = vsel %vm1676_vm2, %v1679_v11, %v1681_v60  ;;  %v1685_v9 = vsel %vm1677_vm3, %v1668_v10, %v1684_v3  ;;  %v1689_v30 = vsel %vm1677_vm3, %v1671_v35, %v1688_v47  ;;  %v1969_v41 = vand.u32 31, %v1967_v55 }
 0x1db   :  { %v1686_v16 = vsel %vm1676_vm2, %v1683_v22, %v1685_v9  ;;  %v1690_v29 = vsel %vm1676_vm2, %v1687_v25, %v1689_v30  ;;  %v10604_v19 = vand.u32 2147483647, %v7279_v49  ;;  %v1698_v3 = vmul.u32 %v7287_v61, %v1682_v42 }
 0x1dc   :  { %v7317_v26 = vmul.u32.u64.low %v7287_v61, %v1690_v29  ;;  %v7318_v56 = vmul.u32.u64.high %v7287_v61, %v1690_v29, %v7317_v26  ;;  %v7321_v11 = vmul.u32.u64.low %v7287_v61, %v1686_v16  ;;  %v7322_v10 = vmul.u32.u64.high %v7287_v61, %v1686_v16, %v7321_v11 }
 0x1dd   :  { %v7314_v33 = vand.u32 8388607, %v10604_v19  ;;  %v1970_v22 = vsub.s32 32, %v1969_v41  ;;  %v5073_v55 = vadd.s32 4294967169, %v2167_v1  ;;  %v1308_v25 = vmul.f32 %v6934_v53, %v7269_v40 }
 0x1de   :  { %v1972_v20 = vshll.u32 %v10603_v50, %v1969_v41  ;;  %v10605_v63 = vmov 2475754826   ;;  %v10606_v51 = vmov 2131351028   ;;  %vm1987_vm6 = vcmp.lt.s32.totalorder %v1968_v12, 1 }
 0x1df   :  { %v1975_v5 = vshll.u32 %v10605_v63, %v1969_v41  ;;  %v1978_v60 = vshll.u32 %v10606_v51, %v1969_v41  ;;  %v1973_v44 = vshrl.u32 %v10605_v63, %v1970_v22  ;;  %v1976_v28 = vshrl.u32 %v10606_v51, %v1970_v22 }
 0x1e0   :  { %v10607_v52 = vmov 2102212464   ;;  %vm1700_vm7 = vc.u32 %v7318_v56, %v7321_v11  ;;  %v1701_v53 = vadd.s32 1, %v7322_v10  ;;  %v10608_v40 = vmov 920167782  }
 0x1e1   :  { %v1979_v35 = vshrl.u32 %v10607_v52, %v1970_v22  ;;  %v1981_v61 = vshll.u32 %v10607_v52, %v1969_v41  ;;  %v1982_v1 = vshrl.u32 %v10608_v40, %v1970_v22  ;;  %v1984_v47 = vshll.u32 %v10608_v40, %v1969_v41 }
 0x1e2   :  { %v1974_v42 = vor.u32 %v1973_v44, %v1972_v20  ;;  %v1977_v9 = vor.u32 %v1976_v28, %v1975_v5  ;;  %v10609_v16 = vmov 1326507024   ;;  %v1702_v19 = vsel %vm1700_vm7, %v1701_v53, %v7322_v10 }
 0x1e3   :  { %v1980_v30 = vor.u32 %v1979_v35, %v1978_v60  ;;  %v1985_v29 = vshrl.u32 %v10609_v16, %v1970_v22  ;;  %v1983_v26 = vor.u32 %v1982_v1, %v1981_v61  ;;  %vm1988_vm8 = vcmp.lt.s32.totalorder %v1968_v12, 2 }
 0x1e4   :  { %vm1990_vm9 = vcmp.lt.s32.totalorder %v1968_v12, 4  ;;  %v1703_v0 = vadd.s32 %v1702_v19, %v1698_v3  ;;  %v1971_v59 = vshrl.u32 %v10603_v50, %v1970_v22  ;;  %vm1989_vm10 = vcmp.lt.s32.totalorder %v1968_v12, 3 }
 0x1e5   :  { %v1986_v57 = vor.u32 %v1985_v29, %v1984_v47  ;;  %v1992_v34 = vsel %vm1990_vm9, %v1980_v30, 2102212464  ;;  %v1995_v15 = vsel %vm1987_vm6, %v1974_v42, %v1977_v9  ;;  %v1996_v6 = vsel %vm1990_vm9, %v1983_v26, 920167782 }
 0x1e6   :  { %v1999_v41 = vsel %vm1987_vm6, %v1977_v9, %v1980_v30  ;;  %v1704_v20 = vadd.s32 536870912, %v1703_v0  ;;  %v1991_v5 = vsel %vm1987_vm6, %v1971_v59, %v1974_v42  ;;  %v1997_v60 = vsel %vm1989_vm10, %v1980_v30, %v1996_v6 }
 0x1e7   :  { %v2000_v44 = vsel %vm1990_vm9, %v1986_v57, 1326507024  ;;  %v1993_v10 = vsel %vm1989_vm10, %v1977_v9, %v1992_v34  ;;  %v1998_v28 = vsel %vm1988_vm8, %v1995_v15, %v1997_v60  ;;  %v2173_v3 = vadd.s32 1, %v5073_v55  ;;  %v10610_v15 = vld [vmem:[#allocation29_spill] sm:$0xff] }
 0x1e8   :  { %v2001_v35 = vsel %vm1989_vm10, %v1983_v26, %v2000_v44  ;;  %v1705_v61 = vshrl.u32 %v1704_v20, 30  ;;  %v7349_v53 = vmul.u32.u64.low %v7310_v23, %v1998_v28  ;;  %v7350_v1 = vmul.u32.u64.high %v7310_v23, %v1998_v28, %v7349_v53 }
 0x1e9   :  { %v2002_v22 = vsel %vm1988_vm8, %v1999_v41, %v2001_v35  ;;  %vm2174_vm11 = vcmp.gt.s32.totalorder %v2173_v3, 0  ;;  %v1994_v34 = vsel %vm1988_vm8, %v1991_v5, %v1993_v10  ;;  %v7359_v57 = vadd.f32 %v1308_v25, %v10610_v15  ;;  %v1371_v5 = vpop.permute.xlu0 %1370 }
 0x1ea   :  { %v7354_v47 = vmul.u32.u64.low %v7310_v23, %v2002_v22  ;;  %v7355_v29 = vmul.u32.u64.high %v7310_v23, %v2002_v22, %v7354_v47  ;;  %v1706_v59 = vshll.u32 %v1705_v61, 30  ;;  %v2175_v6 = vsel %vm2174_vm11, %v2173_v3, 0 }
 0x1eb   :  { %10611 = vst [vmem:[#allocation22_spill] sm:$0xff] %v7359_v57  ;;  %v1216_v55 = vmul.f32 %v6926_v36, %v7038_v37  ;;  %v2177_v42 = vand.u32 31, %v2175_v6  ;;  %v2013_v30 = vadd.s32 1, %v7350_v1  ;;  %v2171_v19 = vor.u32 8388608, %v7314_v33  ;;  %v10612_v36 = vld [vmem:[#allocation50_spill] sm:$0xff]  ;;  %v7392_v47 = vpop.permute.xlu1 %1346 }
 0x1ec   :  { %v7363_v9 = vsub.s32 %v1703_v0, %v1706_v59  ;;  %v2010_v26 = vmul.u32 %v7310_v23, %v1994_v34  ;;  %vm2012_vm12 = vc.u32 %v7355_v29, %v7349_v53  ;;  %v1729_v25 = vsub.s32 4, %v1705_v61 }
 0x1ed   :  { %v2178_v12 = vsub.s32 32, %v2177_v42  ;;  %v2014_v20 = vsel %vm2012_vm12, %v2013_v30, %v7350_v1  ;;  %v7373_v37 = vadd.f32 %v1216_v55, %v10612_v36  ;;  %v10613_v0 = vand.u32 2147483647, %v7239_v7 }
 0x1ee   :  { %v1709_v41 = vsub.s32 0, %v7363_v9  ;;  %v2015_v23 = vadd.s32 %v2014_v20, %v2010_v26  ;;  %v1699_v33 = vadd.s32 %v7321_v11, %v7318_v56  ;;  %v7385_v10 = vshrl.u32 %v2175_v6, 5 }
 0x1ef   :  { %vm7377_vm13 = vcmp.le.f32.partialorder %v10613_v0, 0.7853982  ;;  %v7387_v28 = vshll.u32 %v2171_v19, 8  ;;  %v2181_v3 = vshrl.u32 %v10605_v63, %v2178_v12  ;;  %v2184_v22 = vshrl.u32 %v10606_v51, %v2178_v12 }
 0x1f0   :  { %v5054_v44 = vmin.u32 %v1709_v41, %v7363_v9  ;;  %v2016_v35 = vadd.s32 536870912, %v2015_v23  ;;  %v1480_v1 = vmul.f32 %v7193_v18, %v1371_v5  ;;  %v7396_v34 = vsel %vm1645_vm14, %v1729_v25, %v1705_v61 }
 0x1f1   :  { %v2180_v56 = vshll.u32 %v10603_v50, %v2177_v42  ;;  %v1548_v11 = vmul.f32 %v7196_v58, %v1371_v5  ;;  %v2183_v15 = vshll.u32 %v10605_v63, %v2177_v42  ;;  %v2187_v55 = vshrl.u32 %v10607_v52, %v2178_v12 }
 0x1f2   :  { %v1711_v59 = vclz %v5054_v44  ;;  %v7400_v6 = vshrl.u32 %v2016_v35, 30  ;;  %v2190_v30 = vshrl.u32 %v10608_v40, %v2178_v12  ;;  %v2189_v26 = vshll.u32 %v10607_v52, %v2177_v42 }
 0x1f3   :  { %v2193_v41 = vshrl.u32 %v10609_v16, %v2178_v12  ;;  %v7409_v61 = vmul.f32 %v7193_v18, %v7392_v47  ;;  %v2182_v20 = vor.u32 %v2181_v3, %v2180_v56  ;;  %v2185_v5 = vor.u32 %v2184_v22, %v2183_v15 }
 0x1f4   :  { %v5055_v19 = vadd.s32 4294967294, %v1711_v59  ;;  %v2018_v25 = vshll.u32 %v7400_v6, 30  ;;  %v2186_v36 = vshll.u32 %v10606_v51, %v2177_v42  ;;  %v1732_v0 = vsel %vm7377_vm13, 0, %v7396_v34 }
 0x1f5   :  { %v2191_v44 = vor.u32 %v2190_v30, %v2189_v26  ;;  %v2192_v35 = vshll.u32 %v10608_v40, %v2177_v42  ;;  %v2179_v48 = vshrl.u32 %v10603_v50, %v2178_v12  ;;  %vm2195_vm0 = vcmp.lt.s32.totalorder %v7385_v10, 1 }
 0x1f6   :  { %vm5056_vm15 = vcmp.lt.s32.totalorder %v5055_v19, 0  ;;  %v7417_v57 = vsub.s32 %v2015_v23, %v2018_v25  ;;  %v2188_v24 = vor.u32 %v2187_v55, %v2186_v36  ;;  %vm2197_vm1 = vcmp.lt.s32.totalorder %v7385_v10, 3 }
 0x1f7   :  { %v1714_v59 = vsel %vm5056_vm15, 0, %v5055_v19  ;;  %v2194_v3 = vor.u32 %v2193_v41, %v2192_v35  ;;  %vm2198_vm2 = vcmp.lt.s32.totalorder %v7385_v10, 4  ;;  %v2203_v42 = vsel %vm2195_vm0, %v2182_v20, %v2185_v5 }
 0x1f8   :  { %v1715_v62 = vsub.s32 32, %v1714_v59  ;;  %v1719_v27 = vsub.s32 4294967266, %v1714_v59  ;;  %v2021_v22 = vsub.s32 0, %v7417_v57  ;;  %v1716_v23 = vshll.u32 %v7363_v9, %v1714_v59 }
 0x1f9   :  { %vm1957_vm3 = vcmp.lt.s32.totalorder %v7260_v17, 0  ;;  %v2204_v12 = vsel %vm2198_vm2, %v2191_v44, 920167782  ;;  %vm2196_vm4 = vcmp.lt.s32.totalorder %v7385_v10, 2  ;;  %v2200_v55 = vsel %vm2198_vm2, %v2188_v24, 2102212464 }
 0x1fa   :  { %v1717_v34 = vshrl.u32 %v1699_v33, %v1715_v62  ;;  %v1720_v56 = vadd.s32 127, %v1719_v27  ;;  %v5066_v15 = vmin.u32 %v2021_v22, %v7417_v57  ;;  %v2205_v30 = vsel %vm2197_vm1, %v2188_v24, %v2204_v12 }
 0x1fb   :  { %v2011_v62 = vadd.s32 %v7349_v53, %v7355_v29  ;;  %v2206_v27 = vsel %vm2196_vm4, %v2203_v42, %v2205_v30  ;;  %v2041_v33 = vsub.s32 4, %v7400_v6  ;;  %v2199_v41 = vsel %vm2195_vm0, %v2179_v48, %v2182_v20 }
 0x1fc   :  { %v1718_v19 = vor.u32 %v1717_v34, %v1716_v23  ;;  %v1721_v26 = vshll.u32 %v1720_v56, 23  ;;  %v2023_v9 = vclz %v5066_v15  ;;  %v2207_v25 = vsel %vm2195_vm0, %v2185_v5, %v2188_v24 }
 0x1fd   :  { %v2201_v59 = vsel %vm2197_vm1, %v2185_v5, %v2200_v55  ;;  %v2208_v53 = vsel %vm2198_vm2, %v2194_v3, 1326507024  ;;  %v10616_v29 = vand.u32 2147483647, %v7260_v17  ;;  %v1512_v3 = vadd.f32 %v1480_v1, %v7373_v37 }
 0x1fe   :  { %v1722_v36 = vor.u32 4788187, %v1721_v26  ;;  %v1725_v35 = vcvt.s32.f32 %v1718_v19  ;;  %v5067_v42 = vadd.s32 4294967294, %v2023_v9  ;;  %v2209_v48 = vsel %vm2197_vm1, %v2191_v44, %v2208_v53 }
 0x1ff   :  { %vm7451_vm5 = vcmp.le.f32.partialorder %v10616_v29, 0.7853982  ;;  %v7458_v24 = vmul.u32.u64.low %v7387_v28, %v2206_v27  ;;  %v7459_v20 = vmul.u32.u64.high %v7387_v28, %v2206_v27, %v7458_v24  ;;  %v2210_v5 = vsel %vm2196_vm4, %v2207_v25, %v2209_v48 }
 0x200   :  { %v1723_v23 = vand.u32 2147483647, %v1722_v36  ;;  %v7466_v34 = vadd.f32 %v1548_v11, %v7045_v21  ;;  %vm5068_vm6 = vcmp.lt.s32.totalorder %v5067_v42, 0  ;;  %v2202_v56 = vsel %vm2196_vm4, %v2199_v41, %v2201_v59 }
 0x201   :  { %v7471_v44 = vmul.u32.u64.low %v7387_v28, %v2210_v5  ;;  %v7472_v12 = vmul.u32.u64.high %v7387_v28, %v2210_v5, %v7471_v44  ;;  %v1736_v55 = vadd.s32 3, %v1732_v0  ;;  %v2026_v30 = vsel %vm5068_vm6, 0, %v5067_v42 }
 0x202   :  { %v1726_v15 = vmul.f32 %v1725_v35, %v1723_v23  ;;  %v7475_v19 = vadd.f32 %v7229_v54, %v1512_v3  ;;  %v2027_v26 = vsub.s32 32, %v2026_v30  ;;  %v2031_v27 = vsub.s32 4294967266, %v2026_v30 }
 0x203   :  { %v2042_v21 = vsel %vm1957_vm3, %v2041_v33, %v7400_v6  ;;  %v2221_v37 = vadd.s32 1, %v7459_v20  ;;  %v2218_v1 = vmul.u32 %v7387_v28, %v2202_v56  ;;  %v2028_v0 = vshll.u32 %v7417_v57, %v2026_v30 }
 0x204   :  { %v1727_v10 = vxor.u32 2147483648, %v1726_v15  ;;  %v2371_v11 = vand.u32 2147483647, %v7475_v19  ;;  %v2374_v9 = vand.u32 2139095040, %v7475_v19  ;;  %v2029_v41 = vshrl.u32 %v2011_v62, %v2027_v26 }
 0x205   :  { %v2032_v25 = vadd.s32 127, %v2031_v27  ;;  %vm2220_vm7 = vc.u32 %v7472_v12, %v7458_v24  ;;  %v1542_v28 = vmul.f32 %v7196_v58, %v7392_v47  ;;  %v2044_v53 = vsel %vm7451_vm5, 0, %v2042_v21 }
 0x206   :  { %v1728_v36 = vsel %vm1645_vm14, %v1727_v10, %v1726_v15  ;;  %v2222_v6 = vsel %vm2220_vm7, %v2221_v37, %v7459_v20  ;;  %v2375_v33 = vshrl.u32 %v2374_v9, 23  ;;  %v2030_v59 = vor.u32 %v2029_v41, %v2028_v0 }
 0x207   :  { %v1731_v35 = vsel %vm7377_vm13, %v7239_v7, %v1728_v36  ;;  %v2033_v57 = vshll.u32 %v2032_v25, 23  ;;  %v2223_v62 = vadd.s32 %v2222_v6, %v2218_v1  ;;  %v2378_v42 = vand.u32 8388607, %v2371_v11 }
 0x208   :  { %5336 = vcosq.f32 %v1731_v35  ;;  %v5081_v29 = vadd.s32 4294967169, %v2375_v33  ;;  %v1506_v47 = vadd.f32 %v7409_v61, %v6954_v32  ;;  %v1737_v23 = vand.u32 3, %v1736_v55  ;;  %v7510_v32 = vpop.permute.xlu0 %1378 }
 0x209   :  { %5338 = vsinq.f32 %v1731_v35  ;;  %v2034_v48 = vor.u32 4788187, %v2033_v57  ;;  %v2224_v20 = vadd.s32 536870912, %v2223_v62  ;;  %v7502_v5 = vadd.f32 %v1542_v28, %v6957_v14 }
 0x20a   :  { %v2381_v60 = vadd.s32 1, %v5081_v29  ;;  %v2037_v56 = vcvt.s32.f32 %v2030_v59  ;;  %v2048_v44 = vadd.s32 3, %v2044_v53  ;;  %v2379_v30 = vor.u32 8388608, %v2378_v42 }
 0x20b   :  { %v2035_v3 = vand.u32 2147483647, %v2034_v48  ;;  %v7504_v15 = vshrl.u32 %v2224_v20, 30  ;;  %v7508_v37 = vadd.f32 %v7229_v54, %v1506_v47  ;;  %vm1738_vm9 = vcmp.lt.s32.totalorder %v1737_v23, 2 }
 0x20c   :  { %vm2382_vm8 = vcmp.gt.s32.totalorder %v2381_v60, 0  ;;  %vm1739_vm10 = vcmp.eq.s32.totalorder %v1737_v23, 0  ;;  %vm1735_vm11 = vweird.f32 %v7239_v7  ;;  %vm1742_vm12 = vcmp.eq.s32.totalorder %v1737_v23, 2 }
 0x20d   :  { %v2038_v26 = vmul.f32 %v2037_v56, %v2035_v3  ;;  %v2226_v27 = vshll.u32 %v7504_v15, 30  ;;  %v2383_v21 = vsel %vm2382_vm8, %v2381_v60, 0  ;;  %v7513_v55 = vand.u32 3, %v2048_v44 }
 0x20e   :  { %v2385_v14 = vand.u32 31, %v2383_v21  ;;  %vm5003_vm13 = vcmask 1031168   ;;  %v2219_v1 = vadd.s32 %v7458_v24, %v7472_v12  ;;  %v7519_v0 = vshll.u32 %v2379_v30, 8 }
 0x20f   :  { %v2039_v61 = vxor.u32 2147483648, %v2038_v26  ;;  %v7515_v10 = vsub.s32 %v2223_v62, %v2226_v27  ;;  %v7523_v41 = vmul.f32 %v7196_v58, %v7510_v32  ;;  %v2249_v6 = vsub.s32 4, %v7504_v15 }
 0x210   :  { %v2386_v9 = vsub.s32 32, %v2385_v14  ;;  %v1747_v33 = vand.u32 2147483647, %v7508_v37  ;;  %v7533_v12 = vshrl.u32 %v2383_v21, 5  ;;  %v1750_v29 = vand.u32 2139095040, %v7508_v37 }
 0x211   :  { %v2040_v25 = vsel %vm1957_vm3, %v2039_v61, %v2038_v26  ;;  %v2229_v36 = vsub.s32 0, %v7515_v10  ;;  %v2388_v48 = vshll.u32 %v10603_v50, %v2385_v14  ;;  %v2391_v22 = vshll.u32 %v10605_v63, %v2385_v14 }
 0x212   :  { %v5337_v28 = vpop.eup %5336  ;;  %v2043_v24 = vsel %vm7451_vm5, %v7260_v17, %v2040_v25  ;;  %v2389_v35 = vshrl.u32 %v10605_v63, %v2386_v9  ;;  %v2392_v59 = vshrl.u32 %v10606_v51, %v2386_v9  ;;  %v2387_v60 = vshrl.u32 %v10603_v50, %v2386_v9 }
 0x213   :  { %v5339_v57 = vpop.eup %5338  ;;  %v1743_v62 = vxor.u32 2147483648, %v5337_v28  ;;  %5340 = vcosq.f32 %v2043_v24  ;;  %v5074_v53 = vmin.u32 %v2229_v36, %v7515_v10  ;;  %v2394_v3 = vshll.u32 %v10606_v51, %v2385_v14 }
 0x214   :  { %v1740_v42 = vxor.u32 2147483648, %v5339_v57  ;;  %5342 = vsinq.f32 %v2043_v24  ;;  %v2390_v44 = vor.u32 %v2389_v35, %v2388_v48  ;;  %v2393_v30 = vor.u32 %v2392_v59, %v2391_v22 }
 0x215   :  { %v1744_v20 = vsel %vm1742_vm12, %v1743_v62, %v5339_v57  ;;  %v2231_v47 = vclz %v5074_v53  ;;  %v2395_v26 = vshrl.u32 %v10607_v52, %v2386_v9  ;;  %vm2054_vm14 = vcmp.eq.s32.totalorder %v7513_v55, 2 }
 0x216   :  { %v1741_v56 = vsel %vm1739_vm10, %v5337_v28, %v1740_v42  ;;  %v2397_v61 = vshll.u32 %v10607_v52, %v2385_v14  ;;  %v2398_v25 = vshrl.u32 %v10608_v40, %v2386_v9  ;;  %vm2051_vm15 = vcmp.eq.s32.totalorder %v7513_v55, 0 }
 0x217   :  { %v1745_v27 = vsel %vm1738_vm9, %v1741_v56, %v1744_v20  ;;  %v5075_v21 = vadd.s32 4294967294, %v2231_v47  ;;  %vm2165_vm0 = vcmp.lt.s32.totalorder %v7279_v49, 0  ;;  %v2396_v28 = vor.u32 %v2395_v26, %v2394_v3 }
 0x218   :  { %v1746_v36 = vsel %vm1735_vm11, nan, %v1745_v27  ;;  %v2400_v24 = vshll.u32 %v10608_v40, %v2385_v14  ;;  %v2401_v23 = vshrl.u32 %v10609_v16, %v2386_v9  ;;  %vm2050_vm1 = vcmp.lt.s32.totalorder %v7513_v55, 2 }
 0x219   :  { %v4971_v35 = vadd.f32 %v1746_v36, %v7232_v31  ;;  %vm5076_vm2 = vcmp.lt.s32.totalorder %v5075_v21, 0  ;;  %v2399_v59 = vor.u32 %v2398_v25, %v2397_v61  ;;  %vm2403_vm3 = vcmp.lt.s32.totalorder %v7533_v12, 1 }
 0x21a   :  { %vm2047_vm4 = vweird.f32 %v7260_v17  ;;  %v2234_v7 = vsel %vm5076_vm2, 0, %v5075_v21  ;;  %v2402_v57 = vor.u32 %v2401_v23, %v2400_v24  ;;  %vm2404_vm5 = vcmp.lt.s32.totalorder %v7533_v12, 2 }
 0x21b   :  { %vm2405_vm6 = vcmp.lt.s32.totalorder %v7533_v12, 3  ;;  %5004 = vst.msk [vmem:[#allocation2] sm:$0xff] %vm5003_vm13, %v4971_v35  ;;  %v10619_v14 = vand.u32 2147483647, %v7279_v49  ;;  %v2235_v9 = vsub.s32 32, %v2234_v7  ;;  %v2236_v62 = vshll.u32 %v7515_v10, %v2234_v7 }
 0x21c   :  { %v2239_v53 = vsub.s32 4294967266, %v2234_v7  ;;  %vm2406_vm8 = vcmp.lt.s32.totalorder %v7533_v12, 4  ;;  %v2407_v42 = vsel %vm2403_vm3, %v2387_v60, %v2390_v44  ;;  %v2411_v22 = vsel %vm2403_vm3, %v2390_v44, %v2393_v30 }
 0x21d   :  { %vm7565_vm7 = vcmp.le.f32.partialorder %v10619_v14, 0.7853982  ;;  %v2408_v48 = vsel %vm2406_vm8, %v2396_v28, 2102212464  ;;  %v2412_v20 = vsel %vm2406_vm8, %v2399_v59, 920167782  ;;  %v5341_v47 = vpop.eup %5340  ;;  %v2237_v3 = vshrl.u32 %v2219_v1, %v2235_v9 }
 0x21e   :  { %v2240_v56 = vadd.s32 127, %v2239_v53  ;;  %v2413_v26 = vsel %vm2405_vm6, %v2396_v28, %v2412_v20  ;;  %v2415_v10 = vsel %vm2403_vm3, %v2393_v30, %v2396_v28  ;;  %v5343_v27 = vpop.eup %5342  ;;  %v2055_v21 = vxor.u32 2147483648, %v5341_v47 }
 0x21f   :  { %v2409_v61 = vsel %vm2405_vm6, %v2393_v30, %v2408_v48  ;;  %v2414_v60 = vsel %vm2404_vm5, %v2411_v22, %v2413_v26  ;;  %v2416_v25 = vsel %vm2406_vm8, %v2402_v57, 1326507024  ;;  %v2052_v44 = vxor.u32 2147483648, %v5343_v27 }
 0x220   :  { %v2238_v36 = vor.u32 %v2237_v3, %v2236_v62  ;;  %v2241_v24 = vshll.u32 %v2240_v56, 23  ;;  %v2417_v1 = vsel %vm2405_vm6, %v2399_v59, %v2416_v25  ;;  %v2056_v23 = vsel %vm2054_vm14, %v2055_v21, %v5343_v27 }
 0x221   :  { %v2418_v28 = vsel %vm2404_vm5, %v2415_v10, %v2417_v1  ;;  %v7590_v35 = vmul.u32.u64.low %v7519_v0, %v2414_v60  ;;  %v7591_v7 = vmul.u32.u64.high %v7519_v0, %v2414_v60, %v7590_v35  ;;  %v2053_v30 = vsel %vm2051_vm15, %v5341_v47, %v2052_v44 }
 0x222   :  { %v2242_v57 = vor.u32 4788187, %v2241_v24  ;;  %v2250_v59 = vsel %vm2165_vm0, %v2249_v6, %v7504_v15  ;;  %v1754_v14 = vand.u32 8388607, %v1747_v33  ;;  %v2057_v9 = vsel %vm2050_vm1, %v2053_v30, %v2056_v23 }
 0x223   :  { %v7605_v62 = vmul.u32.u64.low %v7519_v0, %v2418_v28  ;;  %v7606_v53 = vmul.u32.u64.high %v7519_v0, %v2418_v28, %v7605_v62  ;;  %v1751_v48 = vshrl.u32 %v1750_v29, 23  ;;  %v2058_v22 = vsel %vm2047_vm4, nan, %v2057_v9 }
 0x224   :  { %v2243_v20 = vand.u32 2147483647, %v2242_v57  ;;  %v2245_v47 = vcvt.s32.f32 %v2238_v36  ;;  %v2410_v15 = vsel %vm2404_vm5, %v2407_v42, %v2409_v61  ;;  %v4974_v6 = vadd.f32 %v2058_v22, %v7252_v2 }
 0x225   :  { %v2252_v55 = vsel %vm7565_vm7, 0, %v2250_v59  ;;  %v2429_v3 = vadd.s32 1, %v7591_v7  ;;  %v5057_v56 = vadd.s32 4294967169, %v1751_v48  ;;  %v1482_v29 = vmul.f32 %v7193_v18, %v7510_v32 }
 0x226   :  { %v2246_v26 = vmul.f32 %v2245_v47, %v2243_v20  ;;  %v7622_v17 = vadd.f32 %v7523_v41, %v7061_v46  ;;  %5007 = vst.msk [vmem:[#allocation2 + $0x18] sm:$0xff] %vm5003_vm13, %v4974_v6  ;;  %v2426_v12 = vmul.u32 %v7519_v0, %v2410_v15  ;;  %vm2428_vm9 = vc.u32 %v7606_v53, %v7590_v35  ;;  %v1351_v41 = vpop.permute.xlu1 %1350 }
 0x227   :  { %v1757_v2 = vadd.s32 1, %v5057_v56  ;;  %v2256_v10 = vadd.s32 3, %v2252_v55  ;;  %v2430_v27 = vsel %vm2428_vm9, %v2429_v3, %v7591_v7  ;;  %v1755_v21 = vor.u32 8388608, %v1754_v14 }
 0x228   :  { %v2247_v42 = vxor.u32 2147483648, %v2246_v26  ;;  %v2431_v61 = vadd.s32 %v2430_v27, %v2426_v12  ;;  %v1514_v46 = vadd.f32 %v1482_v29, %v7058_v4  ;;  %v1475_v28 = vmul.f32 %v7193_v18, %v1351_v41 }
 0x229   :  { %vm1758_vm10 = vcmp.gt.s32.totalorder %v1757_v2, 0  ;;  %v7634_v36 = vand.u32 3, %v2256_v10  ;;  %v7636_v24 = vshll.u32 %v1755_v21, 8  ;;  %vm2255_vm15 = vweird.f32 %v7279_v49 }
 0x22a   :  { %v2248_v32 = vsel %vm2165_vm0, %v2247_v42, %v2246_v26  ;;  %v1759_v60 = vsel %vm1758_vm10, %v1757_v2, 0  ;;  %v2432_v25 = vadd.s32 536870912, %v2431_v61  ;;  %v7644_v31 = vadd.f32 %v7229_v54, %v1514_v46 }
 0x22b   :  { %v2251_v0 = vsel %vm7565_vm7, %v7279_v49, %v2248_v32  ;;  %v1761_v44 = vand.u32 31, %v1759_v60  ;;  %v1760_v7 = vshrl.u32 %v1759_v60, 5  ;;  %vm2262_vm11 = vcmp.eq.s32.totalorder %v7634_v36, 2 }
 0x22c   :  { %5344 = vcosq.f32 %v2251_v0  ;;  %v7638_v1 = vshrl.u32 %v2432_v25, 30  ;;  %vm2259_vm12 = vcmp.eq.s32.totalorder %v7634_v36, 0  ;;  %v7657_v54 = vadd.s32 %v7590_v35, %v7606_v53 }
 0x22d   :  { %5346 = vsinq.f32 %v2251_v0  ;;  %v1762_v23 = vsub.s32 32, %v1761_v44  ;;  %v1764_v4 = vshll.u32 %v10603_v50, %v1761_v44  ;;  %v1767_v30 = vshll.u32 %v10605_v63, %v1761_v44 }
 0x22e   :  { %v2434_v57 = vshll.u32 %v7638_v1, 30  ;;  %v1770_v14 = vshll.u32 %v10606_v51, %v1761_v44  ;;  %v1773_v9 = vshll.u32 %v10607_v52, %v1761_v44  ;;  %v1776_v6 = vshll.u32 %v10608_v40, %v1761_v44 }
 0x22f   :  { %v1765_v59 = vshrl.u32 %v10605_v63, %v1762_v23  ;;  %v1768_v62 = vshrl.u32 %v10606_v51, %v1762_v23  ;;  %v1771_v48 = vshrl.u32 %v10607_v52, %v1762_v23  ;;  %v1774_v22 = vshrl.u32 %v10608_v40, %v1762_v23 }
 0x230   :  { %v1777_v20 = vshrl.u32 %v10609_v16, %v1762_v23  ;;  %v7659_v47 = vsub.s32 %v2431_v61, %v2434_v57  ;;  %vm2258_vm14 = vcmp.lt.s32.totalorder %v7634_v36, 2  ;;  %v7664_v26 = vadd.f32 %v1475_v28, %v6997_v38 }
 0x231   :  { %v1766_v15 = vor.u32 %v1765_v59, %v1764_v4  ;;  %v1769_v55 = vor.u32 %v1768_v62, %v1767_v30  ;;  %v1772_v3 = vor.u32 %v1771_v48, %v1770_v14  ;;  %v1775_v56 = vor.u32 %v1774_v22, %v1773_v9 }
 0x232   :  { %v2437_v29 = vsub.s32 0, %v7659_v47  ;;  %v1778_v12 = vor.u32 %v1777_v20, %v1776_v6  ;;  %v2582_v35 = vand.u32 2139095040, %v7644_v31  ;;  %v1543_v53 = vmul.f32 %v7196_v58, %v1351_v41 }
 0x233   :  { %vm2373_vm0 = vcmp.lt.s32.totalorder %v7475_v19, 0  ;;  %v1763_v2 = vshrl.u32 %v10603_v50, %v1762_v23  ;;  %vm1779_vm1 = vcmp.lt.s32.totalorder %v1760_v7, 1  ;;  %vm1781_vm2 = vcmp.lt.s32.totalorder %v1760_v7, 3 }
 0x234   :  { %vm1782_vm3 = vcmp.lt.s32.totalorder %v1760_v7, 4  ;;  %v5082_v42 = vmin.u32 %v2437_v29, %v7659_v47  ;;  %v1787_v10 = vsel %vm1779_vm1, %v1766_v15, %v1769_v55  ;;  %vm7679_vm4 = vcmp.le.f32.partialorder %v2371_v11, 0.7853982 }
 0x235   :  { %v1784_v38 = vsel %vm1782_vm3, %v1772_v3, 2102212464  ;;  %v1788_v27 = vsel %vm1782_vm3, %v1775_v56, 920167782  ;;  %v1783_v61 = vsel %vm1779_vm1, %v1763_v2, %v1766_v15  ;;  %v1792_v46 = vsel %vm1782_vm3, %v1778_v12, 1326507024 }
 0x236   :  { %v5345_v21 = vpop.eup %5344  ;;  %v1785_v32 = vsel %vm1781_vm2, %v1769_v55, %v1784_v38  ;;  %v1789_v60 = vsel %vm1781_vm2, %v1772_v3, %v1788_v27  ;;  %v2439_v44 = vclz %v5082_v42  ;;  %vm1780_vm5 = vcmp.lt.s32.totalorder %v1760_v7, 2 }
 0x237   :  { %v5347_v41 = vpop.eup %5346  ;;  %v2263_v0 = vxor.u32 2147483648, %v5345_v21  ;;  %v1791_v23 = vsel %vm1779_vm1, %v1769_v55, %v1772_v3  ;;  %v2457_v4 = vsub.s32 4, %v7638_v1  ;;  %v1790_v30 = vsel %vm1780_vm5, %v1787_v10, %v1789_v60 }
 0x238   :  { %v2260_v28 = vxor.u32 2147483648, %v5347_v41  ;;  %v2583_v57 = vshrl.u32 %v2582_v35, 23  ;;  %v5083_v14 = vadd.s32 4294967294, %v2439_v44  ;;  %v1786_v9 = vsel %vm1780_vm5, %v1783_v61, %v1785_v32 }
 0x239   :  { %v2264_v59 = vsel %vm2262_vm11, %v2263_v0, %v5347_v41  ;;  %v1793_v62 = vsel %vm1781_vm2, %v1775_v56, %v1792_v46  ;;  %v7691_v22 = vmul.u32.u64.low %v7636_v24, %v1790_v30  ;;  %v7692_v20 = vmul.u32.u64.high %v7636_v24, %v1790_v30, %v7691_v22  ;;  %v7728_v30 = vld [vmem:[%s10274_s3] ss:$0 sm:$0xff] }
 0x23a   :  { %v2261_v11 = vsel %vm2259_vm12, %v5345_v21, %v2260_v28  ;;  %v1794_v48 = vsel %vm1780_vm5, %v1791_v23, %v1793_v62  ;;  %vm5084_vm6 = vcmp.lt.s32.totalorder %v5083_v14, 0  ;;  %v2579_v56 = vand.u32 2147483647, %v7644_v31 }
 0x23b   :  { %v2265_v15 = vsel %vm2258_vm14, %v2261_v11, %v2264_v59  ;;  %v7698_v6 = vmul.u32.u64.low %v7636_v24, %v1794_v48  ;;  %v7699_v55 = vmul.u32.u64.high %v7636_v24, %v1794_v48, %v7698_v6  ;;  %v2442_v3 = vsel %vm5084_vm6, 0, %v5083_v14 }
 0x23c   :  { %v2266_v7 = vsel %vm2255_vm15, nan, %v2265_v15  ;;  %v5089_v29 = vadd.s32 4294967169, %v2583_v57  ;;  %v2443_v35 = vsub.s32 32, %v2442_v3  ;;  %v2447_v2 = vsub.s32 4294967266, %v2442_v3 }
 0x23d   :  { %v4976_v12 = vadd.f32 %v2266_v7, %v7276_v8  ;;  %v2458_v36 = vsel %vm2373_vm0, %v2457_v4, %v7638_v1  ;;  %v1802_v42 = vmul.u32 %v7636_v24, %v1786_v9  ;;  %v1805_v38 = vadd.s32 1, %v7692_v20 }
 0x23e   :  { %v2589_v10 = vadd.s32 1, %v5089_v29  ;;  %v7711_v49 = vadd.f32 %v1543_v53, %v7000_v13  ;;  %v2444_v27 = vshll.u32 %v7659_v47, %v2442_v3  ;;  %v2445_v8 = vshrl.u32 %v7657_v54, %v2443_v35 }
 0x23f   :  { %5009 = vst.msk [vmem:[#allocation2 + $0x28] sm:$0xff] %vm5003_vm13, %v4976_v12  ;;  %v2448_v21 = vadd.s32 127, %v2447_v2  ;;  %vm1804_vm7 = vc.u32 %v7699_v55, %v7691_v22  ;;  %v2460_v1 = vsel %vm7679_vm4, 0, %v2458_v36  ;;  %v2586_v61 = vand.u32 8388607, %v2579_v56 }
 0x240   :  { %v1806_v24 = vsel %vm1804_vm7, %v1805_v38, %v7692_v20  ;;  %vm2590_vm8 = vcmp.gt.s32.totalorder %v2589_v10, 0  ;;  %v2446_v13 = vor.u32 %v2445_v8, %v2444_v27  ;;  %v2464_v41 = vadd.s32 3, %v2460_v1 }
 0x241   :  { %v2449_v53 = vshll.u32 %v2448_v21, 23  ;;  %v1807_v32 = vadd.s32 %v1806_v24, %v1802_v42  ;;  %v2591_v60 = vsel %vm2590_vm8, %v2589_v10, 0  ;;  %v2587_v0 = vor.u32 8388608, %v2586_v61 }
 0x242   :  { %v2593_v47 = vand.u32 31, %v2591_v60  ;;  %v2453_v28 = vcvt.s32.f32 %v2446_v13  ;;  %v7732_v57 = vadd.f32 %v7728_v30, %v7664_v26  ;;  %v2592_v59 = vshrl.u32 %v2591_v60, 5 }
 0x243   :  { %v2450_v46 = vor.u32 4788187, %v2449_v53  ;;  %v1808_v54 = vadd.s32 536870912, %v1807_v32  ;;  %v7749_v27 = vand.u32 3, %v2464_v41  ;;  %v2627_v21 = vshll.u32 %v2587_v0, 8 }
 0x244   :  { %v2594_v44 = vsub.s32 32, %v2593_v47  ;;  %v2602_v20 = vshll.u32 %v10606_v51, %v2593_v47  ;;  %v2596_v6 = vshll.u32 %v10603_v50, %v2593_v47  ;;  %v2599_v7 = vshll.u32 %v10605_v63, %v2593_v47 }
 0x245   :  { %v2451_v23 = vand.u32 2147483647, %v2450_v46  ;;  %v7723_v4 = vshrl.u32 %v1808_v54, 30  ;;  %v2605_v26 = vshll.u32 %v10607_v52, %v2593_v47  ;;  %v2608_v38 = vshll.u32 %v10608_v40, %v2593_v47 }
 0x246   :  { %v2597_v14 = vshrl.u32 %v10605_v63, %v2594_v44  ;;  %v2600_v9 = vshrl.u32 %v10606_v51, %v2594_v44  ;;  %v2603_v62 = vshrl.u32 %v10607_v52, %v2594_v44  ;;  %v2606_v15 = vshrl.u32 %v10608_v40, %v2594_v44 }
 0x247   :  { %v2454_v11 = vmul.f32 %v2453_v28, %v2451_v23  ;;  %v1810_v48 = vshll.u32 %v7723_v4, 30  ;;  %v2609_v3 = vshrl.u32 %v10609_v16, %v2594_v44  ;;  %vm1749_vm9 = vcmp.lt.s32.totalorder %v7508_v37, 0 }
 0x248   :  { %v2604_v35 = vor.u32 %v2603_v62, %v2602_v20  ;;  %v2598_v2 = vor.u32 %v2597_v14, %v2596_v6  ;;  %v2601_v36 = vor.u32 %v2600_v9, %v2599_v7  ;;  %v2607_v42 = vor.u32 %v2606_v15, %v2605_v26 }
 0x249   :  { %v2455_v29 = vxor.u32 2147483648, %v2454_v11  ;;  %v7744_v12 = vsub.s32 %v1807_v32, %v1810_v48  ;;  %v2610_v24 = vor.u32 %v2609_v3, %v2608_v38  ;;  %vm2614_vm10 = vcmp.lt.s32.totalorder %v2592_v59, 4 }
 0x24a   :  { %v1854_v61 = vand.u32 2139095040, %v7732_v57  ;;  %vm2611_vm11 = vcmp.lt.s32.totalorder %v2592_v59, 1  ;;  %v2616_v53 = vsel %vm2614_vm10, %v2604_v35, 2102212464  ;;  %v2595_v32 = vshrl.u32 %v10603_v50, %v2594_v44 }
 0x24b   :  { %v2456_v10 = vsel %vm2373_vm0, %v2455_v29, %v2454_v11  ;;  %v1813_v8 = vsub.s32 0, %v7744_v12  ;;  %v2619_v60 = vsel %vm2611_vm11, %v2598_v2, %v2601_v36  ;;  %v2620_v47 = vsel %vm2614_vm10, %v2607_v42, 920167782 }
 0x24c   :  { %v2459_v1 = vsel %vm7679_vm4, %v7475_v19, %v2456_v10  ;;  %vm7763_vm12 = vcmp.le.f32.partialorder %v1747_v33, 0.7853982  ;;  %vm2612_vm14 = vcmp.lt.s32.totalorder %v2592_v59, 2  ;;  %vm2613_vm15 = vcmp.lt.s32.totalorder %v2592_v59, 3 }
 0x24d   :  { %5348 = vcosq.f32 %v2459_v1  ;;  %v5058_v13 = vmin.u32 %v1813_v8, %v7744_v12  ;;  %v2623_v54 = vsel %vm2611_vm11, %v2601_v36, %v2604_v35  ;;  %v2615_v41 = vsel %vm2611_vm11, %v2595_v32, %v2598_v2 }
 0x24e   :  { %5350 = vsinq.f32 %v2459_v1  ;;  %v2617_v0 = vsel %vm2613_vm15, %v2601_v36, %v2616_v53  ;;  %v2621_v23 = vsel %vm2613_vm15, %v2604_v35, %v2620_v47  ;;  %v2624_v28 = vsel %vm2614_vm10, %v2610_v24, 1326507024 }
 0x24f   :  { %v1815_v46 = vclz %v5058_v13  ;;  %v1833_v44 = vsub.s32 4, %v7723_v4  ;;  %v2622_v9 = vsel %vm2612_vm14, %v2619_v60, %v2621_v23  ;;  %v2625_v62 = vsel %vm2613_vm15, %v2607_v42, %v2624_v28 }
 0x250   :  { %v2626_v11 = vsel %vm2612_vm14, %v2623_v54, %v2625_v62  ;;  %v7769_v48 = vmul.u32.u64.low %v2627_v21, %v2622_v9  ;;  %v7770_v33 = vmul.u32.u64.high %v2627_v21, %v2622_v9, %v7769_v48  ;;  %v1855_v20 = vshrl.u32 %v1854_v61, 23 }
 0x251   :  { %v5059_v14 = vadd.s32 4294967294, %v1815_v46  ;;  %v2618_v15 = vsel %vm2612_vm14, %v2615_v41, %v2617_v0  ;;  %v7773_v6 = vmul.u32.u64.low %v2627_v21, %v2626_v11  ;;  %v7774_v7 = vmul.u32.u64.high %v2627_v21, %v2626_v11, %v7773_v6 }
 0x252   :  { %vm2466_vm1 = vcmp.lt.s32.totalorder %v7749_v27, 2  ;;  %vm2470_vm2 = vcmp.eq.s32.totalorder %v7749_v27, 2  ;;  %v5061_v26 = vadd.s32 4294967169, %v1855_v20  ;;  %v1803_v3 = vadd.s32 %v7691_v22, %v7699_v55  ;;  %v7788_v22 = vpop.permute.xlu0 %1386 }
 0x253   :  { %vm5060_vm0 = vcmp.lt.s32.totalorder %v5059_v14, 0  ;;  %v1834_v2 = vsel %vm1749_vm9, %v1833_v44, %v7723_v4  ;;  %v2634_v36 = vmul.u32 %v2627_v21, %v2618_v15  ;;  %v2637_v42 = vadd.s32 1, %v7770_v33 }
 0x254   :  { %v1818_v59 = vsel %vm5060_vm0, 0, %v5059_v14  ;;  %v1851_v38 = vand.u32 2147483647, %v7732_v57  ;;  %v1861_v10 = vadd.s32 1, %v5061_v26  ;;  %vm2636_vm3 = vc.u32 %v7774_v7, %v7769_v48 }
 0x255   :  { %v1819_v29 = vsub.s32 32, %v1818_v59  ;;  %v1823_v35 = vsub.s32 4294967266, %v1818_v59  ;;  %v1820_v1 = vshll.u32 %v7744_v12, %v1818_v59  ;;  %v1836_v4 = vsel %vm7763_vm12, 0, %v1834_v2 }
 0x256   :  { %v2638_v21 = vsel %vm2636_vm3, %v2637_v42, %v7770_v33  ;;  %vm1862_vm4 = vcmp.gt.s32.totalorder %v1861_v10, 0  ;;  %vm2467_vm5 = vcmp.eq.s32.totalorder %v7749_v27, 0  ;;  %v1484_v54 = vmul.f32 %v7193_v18, %v7788_v22 }
 0x257   :  { %v5349_v8 = vpop.eup %5348  ;;  %v1821_v24 = vshrl.u32 %v1803_v3, %v1819_v29  ;;  %v1824_v61 = vadd.s32 127, %v1823_v35  ;;  %v2639_v47 = vadd.s32 %v2638_v21, %v2634_v36  ;;  %v1863_v46 = vsel %vm1862_vm4, %v1861_v10, 0 }
 0x258   :  { %v5351_v55 = vpop.eup %5350  ;;  %v2471_v13 = vxor.u32 2147483648, %v5349_v8  ;;  %v1840_v23 = vadd.s32 3, %v1836_v4  ;;  %vm2463_vm6 = vweird.f32 %v7475_v19  ;;  %v1858_v44 = vand.u32 8388607, %v1851_v38 }
 0x259   :  { %v2468_v53 = vxor.u32 2147483648, %v5351_v55  ;;  %v1822_v32 = vor.u32 %v1821_v24, %v1820_v1  ;;  %v1825_v60 = vshll.u32 %v1824_v61, 23  ;;  %v2640_v28 = vadd.s32 536870912, %v2639_v47 }
 0x25a   :  { %v2472_v12 = vsel %vm2470_vm2, %v2471_v13, %v5351_v55  ;;  %v1865_v9 = vand.u32 31, %v1863_v46  ;;  %vm2581_vm7 = vcmp.lt.s32.totalorder %v7644_v31, 0  ;;  %v7805_v26 = vand.u32 3, %v1840_v23 }
 0x25b   :  { %v2469_v41 = vsel %vm2467_vm5, %v5349_v8, %v2468_v53  ;;  %v1826_v0 = vor.u32 4788187, %v1825_v60  ;;  %v1829_v33 = vcvt.s32.f32 %v1822_v32  ;;  %v2641_v20 = vshrl.u32 %v2640_v28, 30 }
 0x25c   :  { %v2473_v14 = vsel %vm2466_vm1, %v2469_v41, %v2472_v12  ;;  %v1866_v6 = vsub.s32 32, %v1865_v9  ;;  %v1516_v27 = vadd.f32 %v1484_v54, %v7074_v45  ;;  %v1859_v3 = vor.u32 8388608, %v1858_v44 }
 0x25d   :  { %v2474_v62 = vsel %vm2463_vm6, nan, %v2473_v14  ;;  %v1827_v11 = vand.u32 2147483647, %v1826_v0  ;;  %v2642_v19 = vshll.u32 %v2641_v20, 30  ;;  %v7809_v29 = vshrl.u32 %v1863_v46, 5 }
 0x25e   :  { %v4978_v15 = vadd.f32 %v2474_v62, %v7466_v34  ;;  %v1869_v35 = vshrl.u32 %v10605_v63, %v1866_v6  ;;  %v1872_v2 = vshrl.u32 %v10606_v51, %v1866_v6  ;;  %v1868_v42 = vshll.u32 %v10603_v50, %v1865_v9 }
 0x25f   :  { %v1830_v59 = vmul.f32 %v1829_v33, %v1827_v11  ;;  %v7813_v34 = vsub.s32 %v2639_v47, %v2642_v19  ;;  %v1875_v10 = vshrl.u32 %v10607_v52, %v1866_v6  ;;  %v2665_v8 = vsub.s32 4, %v2641_v20 }
 0x260   :  { %5011 = vst.msk [vmem:[#allocation2 + $0x38] sm:$0xff] %vm5003_vm13, %v4978_v15  ;;  %v1871_v1 = vshll.u32 %v10605_v63, %v1865_v9  ;;  %v1874_v45 = vshll.u32 %v10606_v51, %v1865_v9  ;;  %v1877_v24 = vshll.u32 %v10607_v52, %v1865_v9  ;;  %v1870_v13 = vor.u32 %v1869_v35, %v1868_v42 }
 0x261   :  { %v1831_v36 = vxor.u32 2147483648, %v1830_v59  ;;  %v2645_v55 = vsub.s32 0, %v7813_v34  ;;  %v1878_v4 = vshrl.u32 %v10608_v40, %v1866_v6  ;;  %v1880_v32 = vshll.u32 %v10608_v40, %v1865_v9 }
 0x262   :  { %v1873_v53 = vor.u32 %v1872_v2, %v1871_v1  ;;  %v1881_v60 = vshrl.u32 %v10609_v16, %v1866_v6  ;;  %vm7831_vm8 = vcmp.le.f32.partialorder %v2579_v56, 0.7853982  ;;  %v1876_v46 = vor.u32 %v1875_v10, %v1874_v45 }
 0x263   :  { %v1832_v61 = vsel %vm1749_vm9, %v1831_v36, %v1830_v59  ;;  %v5090_v12 = vmin.u32 %v2645_v55, %v7813_v34  ;;  %v1879_v54 = vor.u32 %v1878_v4, %v1877_v24  ;;  %v1899_v25 = vshll.u32 %v1859_v3, 8 }
 0x264   :  { %v1835_v21 = vsel %vm7763_vm12, %v7508_v37, %v1832_v61  ;;  %v1882_v41 = vor.u32 %v1881_v60, %v1880_v32  ;;  %v7837_v0 = vadd.f32 %v7728_v30, %v1516_v27  ;;  %v2666_v28 = vsel %vm2581_vm7, %v2665_v8, %v2641_v20 }
 0x265   :  { %5352 = vcosq.f32 %v1835_v21  ;;  %v2647_v23 = vclz %v5090_v12  ;;  %v1867_v14 = vshrl.u32 %v10603_v50, %v1866_v6  ;;  %vm1883_vm9 = vcmp.lt.s32.totalorder %v7809_v29, 1 }
 0x266   :  { %5354 = vsinq.f32 %v1835_v21  ;;  %vm1884_vm10 = vcmp.lt.s32.totalorder %v7809_v29, 2  ;;  %vm1885_vm11 = vcmp.lt.s32.totalorder %v7809_v29, 3  ;;  %vm1886_vm12 = vcmp.lt.s32.totalorder %v7809_v29, 4 }
 0x267   :  { %v1891_v56 = vsel %vm1883_vm9, %v1870_v13, %v1873_v53  ;;  %v5091_v44 = vadd.s32 4294967294, %v2647_v23  ;;  %v1888_v9 = vsel %vm1886_vm12, %v1876_v46, 2102212464  ;;  %v1892_v62 = vsel %vm1886_vm12, %v1879_v54, 920167782 }
 0x268   :  { %v1895_v11 = vsel %vm1883_vm9, %v1873_v53, %v1876_v46  ;;  %vm1843_vm14 = vcmp.eq.s32.totalorder %v7805_v26, 0  ;;  %v1887_v33 = vsel %vm1883_vm9, %v1867_v14, %v1870_v13  ;;  %v1893_v20 = vsel %vm1885_vm11, %v1876_v46, %v1892_v62 }
 0x269   :  { %v1896_v15 = vsel %vm1886_vm12, %v1882_v41, 1326507024  ;;  %v2790_v6 = vand.u32 2139095040, %v7837_v0  ;;  %vm1842_vm15 = vcmp.lt.s32.totalorder %v7805_v26, 2  ;;  %vm5092_vm0 = vcmp.lt.s32.totalorder %v5091_v44, 0 }
 0x26a   :  { %v1889_v59 = vsel %vm1885_vm11, %v1873_v53, %v1888_v9  ;;  %v1894_v19 = vsel %vm1884_vm10, %v1891_v56, %v1893_v20  ;;  %v1897_v27 = vsel %vm1885_vm11, %v1879_v54, %v1896_v15  ;;  %vm1839_vm1 = vweird.f32 %v7508_v37 }
 0x26b   :  { %v2650_v3 = vsel %vm5092_vm0, 0, %v5091_v44  ;;  %v1898_v35 = vsel %vm1884_vm10, %v1895_v11, %v1897_v27  ;;  %v7860_v2 = vmul.u32.u64.low %v1899_v25, %v1894_v19  ;;  %v7861_v36 = vmul.u32.u64.high %v1899_v25, %v1894_v19, %v7860_v2 }
 0x26c   :  { %v2635_v42 = vadd.s32 %v7769_v48, %v7774_v7  ;;  %v2651_v10 = vsub.s32 32, %v2650_v3  ;;  %v2655_v8 = vsub.s32 4294967266, %v2650_v3  ;;  %v2787_v1 = vand.u32 2147483647, %v7837_v0 }
 0x26d   :  { %v2668_v45 = vsel %vm7831_vm8, 0, %v2666_v28  ;;  %v7869_v24 = vmul.u32.u64.low %v1899_v25, %v1898_v35  ;;  %v7870_v61 = vmul.u32.u64.high %v1899_v25, %v1898_v35, %v7869_v24  ;;  %v2791_v55 = vshrl.u32 %v2790_v6, 23  ;;  %v7877_v28 = vpop.permute.xlu1 %1358 }
 0x26e   :  { %v2652_v4 = vshll.u32 %v7813_v34, %v2650_v3  ;;  %v2653_v21 = vshrl.u32 %v2635_v42, %v2651_v10  ;;  %v2656_v53 = vadd.s32 127, %v2655_v8  ;;  %v1890_v32 = vsel %vm1884_vm10, %v1887_v33, %v1889_v59 }
 0x26f   :  { %v5353_v13 = vpop.eup %5352  ;;  %vm1846_vm2 = vcmp.eq.s32.totalorder %v7805_v26, 2  ;;  %v1909_v60 = vadd.s32 1, %v7861_v36  ;;  %v5097_v12 = vadd.s32 4294967169, %v2791_v55  ;;  %v2672_v23 = vadd.s32 3, %v2668_v45 }
 0x270   :  { %v5355_v48 = vpop.eup %5354  ;;  %v1847_v7 = vxor.u32 2147483648, %v5353_v13  ;;  %v2654_v54 = vor.u32 %v2653_v21, %v2652_v4  ;;  %v2657_v41 = vshll.u32 %v2656_v53, 23  ;;  %v1906_v34 = vmul.u32 %v1899_v25, %v1890_v32 }
 0x271   :  { %v1844_v46 = vxor.u32 2147483648, %v5355_v48  ;;  %vm1908_vm3 = vc.u32 %v7870_v61, %v7860_v2  ;;  %v2797_v29 = vadd.s32 1, %v5097_v12  ;;  %v2794_v62 = vand.u32 8388607, %v2787_v1 }
 0x272   :  { %v1848_v14 = vsel %vm1846_vm2, %v1847_v7, %v5355_v48  ;;  %v2658_v44 = vor.u32 4788187, %v2657_v41  ;;  %v1910_v9 = vsel %vm1908_vm3, %v1909_v60, %v7861_v36  ;;  %v1477_v25 = vmul.f32 %v7193_v18, %v7877_v28 }
 0x273   :  { %v1845_v56 = vsel %vm1843_vm14, %v5353_v13, %v1844_v46  ;;  %v1911_v33 = vadd.s32 %v1910_v9, %v1906_v34  ;;  %vm2798_vm4 = vcmp.gt.s32.totalorder %v2797_v29, 0  ;;  %v2661_v6 = vcvt.s32.f32 %v2654_v54 }
 0x274   :  { %v1849_v11 = vsel %vm1842_vm15, %v1845_v56, %v1848_v14  ;;  %v2659_v15 = vand.u32 2147483647, %v2658_v44  ;;  %v2799_v59 = vsel %vm2798_vm4, %v2797_v29, 0  ;;  %v7894_v26 = vand.u32 3, %v2672_v23 }
 0x275   :  { %v1850_v20 = vsel %vm1839_vm1, nan, %v1849_v11  ;;  %v1912_v27 = vadd.s32 536870912, %v1911_v33  ;;  %v2801_v3 = vand.u32 31, %v2799_v59  ;;  %v2795_v8 = vor.u32 8388608, %v2794_v62 }
 0x276   :  { %v4972_v19 = vadd.f32 %v1850_v20, %v7502_v5  ;;  %v2662_v35 = vmul.f32 %v2661_v6, %v2659_v15  ;;  %v1509_v37 = vadd.f32 %v1477_v25, %v6971_v39  ;;  %vm1853_vm5 = vcmp.lt.s32.totalorder %v7732_v57, 0 }
 0x277   :  { %v1913_v36 = vshrl.u32 %v1912_v27, 30  ;;  %v2802_v42 = vsub.s32 32, %v2801_v3  ;;  %v2804_v45 = vshll.u32 %v10603_v50, %v2801_v3  ;;  %v2807_v5 = vshll.u32 %v10605_v63, %v2801_v3 }
 0x278   :  { %5005 = vst.msk [vmem:[#allocation2 + $0x8] sm:$0xff] %vm5003_vm13, %v4972_v19  ;;  %v2663_v10 = vxor.u32 2147483648, %v2662_v35  ;;  %v2810_v13 = vshll.u32 %v10606_v51, %v2801_v3  ;;  %v2800_v7 = vshrl.u32 %v2799_v59, 5  ;;  %v2813_v60 = vshll.u32 %v10607_v52, %v2801_v3 }
 0x279   :  { %v1914_v24 = vshll.u32 %v1913_v36, 30  ;;  %v2805_v55 = vshrl.u32 %v10605_v63, %v2802_v42  ;;  %v2808_v21 = vshrl.u32 %v10606_v51, %v2802_v42  ;;  %v2811_v53 = vshrl.u32 %v10607_v52, %v2802_v42 }
 0x27a   :  { %v2664_v4 = vsel %vm2581_vm7, %v2663_v10, %v2662_v35  ;;  %v2814_v32 = vshrl.u32 %v10608_v40, %v2802_v42  ;;  %v7914_v14 = vshll.u32 %v2795_v8, 8  ;;  %vm7918_vm6 = vcmp.le.f32.partialorder %v1851_v38, 0.7853982 }
 0x27b   :  { %v2667_v39 = vsel %vm7831_vm8, %v7644_v31, %v2664_v4  ;;  %v7910_v48 = vsub.s32 %v1911_v33, %v1914_v24  ;;  %v2806_v12 = vor.u32 %v2805_v55, %v2804_v45  ;;  %v2809_v46 = vor.u32 %v2808_v21, %v2807_v5 }
 0x27c   :  { %5356 = vcosq.f32 %v2667_v39  ;;  %v2812_v54 = vor.u32 %v2811_v53, %v2810_v13  ;;  %v2815_v23 = vor.u32 %v2814_v32, %v2813_v60  ;;  %v1937_v34 = vsub.s32 4, %v1913_v36 }
 0x27d   :  { %5358 = vsinq.f32 %v2667_v39  ;;  %v1917_v41 = vsub.s32 0, %v7910_v48  ;;  %v2816_v29 = vshll.u32 %v10608_v40, %v2801_v3  ;;  %v2817_v56 = vshrl.u32 %v10609_v16, %v2802_v42 }
 0x27e   :  { %v7925_v44 = vadd.f32 %v7728_v30, %v1509_v37  ;;  %v2803_v62 = vshrl.u32 %v10603_v50, %v2802_v42  ;;  %vm2819_vm7 = vcmp.lt.s32.totalorder %v2800_v7, 1  ;;  %vm2822_vm8 = vcmp.lt.s32.totalorder %v2800_v7, 4 }
 0x27f   :  { %v5062_v9 = vmin.u32 %v1917_v41, %v7910_v48  ;;  %v2818_v11 = vor.u32 %v2817_v56, %v2816_v29  ;;  %v2824_v33 = vsel %vm2822_vm8, %v2812_v54, 2102212464  ;;  %v2827_v38 = vsel %vm2819_vm7, %v2806_v12, %v2809_v46 }
 0x280   :  { %v2828_v25 = vsel %vm2822_vm8, %v2815_v23, 920167782  ;;  %vm2675_vm9 = vcmp.eq.s32.totalorder %v7894_v26, 0  ;;  %vm2820_vm10 = vcmp.lt.s32.totalorder %v2800_v7, 2  ;;  %vm2821_vm11 = vcmp.lt.s32.totalorder %v2800_v7, 3 }
 0x281   :  { %v1919_v20 = vclz %v5062_v9  ;;  %v2823_v15 = vsel %vm2819_vm7, %v2803_v62, %v2806_v12  ;;  %vm2674_vm12 = vcmp.lt.s32.totalorder %v7894_v26, 2  ;;  %v2825_v6 = vsel %vm2821_vm11, %v2809_v46, %v2824_v33 }
 0x282   :  { %v2829_v59 = vsel %vm2821_vm11, %v2812_v54, %v2828_v25  ;;  %v2831_v19 = vsel %vm2819_vm7, %v2809_v46, %v2812_v54  ;;  %v2832_v27 = vsel %vm2822_vm8, %v2818_v11, 1326507024  ;;  %vm2671_vm14 = vweird.f32 %v7644_v31 }
 0x283   :  { %vm2678_vm15 = vcmp.eq.s32.totalorder %v7894_v26, 2  ;;  %v5063_v3 = vadd.s32 4294967294, %v1919_v20  ;;  %v2830_v35 = vsel %vm2820_vm10, %v2827_v38, %v2829_v59  ;;  %v2833_v42 = vsel %vm2821_vm11, %v2815_v23, %v2832_v27 }
 0x284   :  { %v1938_v10 = vsel %vm1853_vm5, %v1937_v34, %v1913_v36  ;;  %v2834_v8 = vsel %vm2820_vm10, %v2831_v19, %v2833_v42  ;;  %v7938_v45 = vmul.u32.u64.low %v7914_v14, %v2830_v35  ;;  %v7939_v37 = vmul.u32.u64.high %v7914_v14, %v2830_v35, %v7938_v45 }
 0x285   :  { %vm5064_vm0 = vcmp.lt.s32.totalorder %v5063_v3, 0  ;;  %v2826_v24 = vsel %vm2820_vm10, %v2823_v15, %v2825_v6  ;;  %v7944_v55 = vmul.u32.u64.low %v7914_v14, %v2834_v8  ;;  %v7945_v5 = vmul.u32.u64.high %v7914_v14, %v2834_v8, %v7944_v55  ;;  %v1367_v6 = vpop.permute.xlu1 %1366 }
 0x286   :  { %v5357_v13 = vpop.eup %5356  ;;  %v1907_v4 = vadd.s32 %v7860_v2, %v7870_v61  ;;  %v1922_v21 = vsel %vm5064_vm0, 0, %v5063_v3  ;;  %v2059_v36 = vand.u32 2147483647, %v7925_v44  ;;  %v2062_v53 = vand.u32 2139095040, %v7925_v44 }
 0x287   :  { %v5359_v32 = vpop.eup %5358  ;;  %v2679_v39 = vxor.u32 2147483648, %v5357_v13  ;;  %v1923_v60 = vsub.s32 32, %v1922_v21  ;;  %v1927_v12 = vsub.s32 4294967266, %v1922_v21  ;;  %v1940_v7 = vsel %vm7918_vm6, 0, %v1938_v10 }
 0x288   :  { %v2676_v46 = vxor.u32 2147483648, %v5359_v32  ;;  %v2842_v54 = vmul.u32 %v7914_v14, %v2826_v24  ;;  %v2845_v41 = vadd.s32 1, %v7939_v37  ;;  %v2063_v23 = vshrl.u32 %v2062_v53, 23 }
 0x289   :  { %v2680_v2 = vsel %vm2678_vm15, %v2679_v39, %v5359_v32  ;;  %v1924_v61 = vshll.u32 %v7910_v48, %v1922_v21  ;;  %v1925_v34 = vshrl.u32 %v1907_v4, %v1923_v60  ;;  %v1928_v29 = vadd.s32 127, %v1927_v12  ;;  %v7967_v48 = vpop.permute.xlu0 %1394  ;;  %v10630_v39 = vld [vmem:[#allocation11_spill] sm:$0xff] }
 0x28a   :  { %v2677_v56 = vsel %vm2675_vm9, %v5357_v13, %v2676_v46  ;;  %vm2844_vm1 = vc.u32 %v7945_v5, %v7938_v45  ;;  %v5069_v9 = vadd.s32 4294967169, %v2063_v23  ;;  %v2066_v14 = vand.u32 8388607, %v2059_v36 }
 0x28b   :  { %v2681_v62 = vsel %vm2674_vm12, %v2677_v56, %v2680_v2  ;;  %v1926_v11 = vor.u32 %v1925_v34, %v1924_v61  ;;  %v1929_v33 = vshll.u32 %v1928_v29, 23  ;;  %v2846_v38 = vsel %vm2844_vm1, %v2845_v41, %v7939_v37 }
 0x28c   :  { %v2682_v25 = vsel %vm2671_vm14, nan, %v2681_v62  ;;  %v2847_v20 = vadd.s32 %v2846_v38, %v2842_v54  ;;  %v2069_v15 = vadd.s32 1, %v5069_v9  ;;  %v1944_v27 = vadd.s32 3, %v1940_v7 }
 0x28d   :  { %v4980_v59 = vadd.f32 %v2682_v25, %v7622_v17  ;;  %v1930_v19 = vor.u32 4788187, %v1929_v33  ;;  %v2067_v35 = vor.u32 8388608, %v2066_v14  ;;  %v1486_v26 = vmul.f32 %v7193_v18, %v7967_v48 }
 0x28e   :  { %v2848_v3 = vadd.s32 536870912, %v2847_v20  ;;  %vm2070_vm2 = vcmp.gt.s32.totalorder %v2069_v15, 0  ;;  %v1933_v10 = vcvt.s32.f32 %v1926_v11  ;;  %v1547_v31 = vmul.f32 %v7196_v58, %v1367_v6 }
 0x28f   :  { %5013 = vst.msk [vmem:[#allocation2 + $0x48] sm:$0xff] %vm5003_vm13, %v4980_v59  ;;  %v1931_v42 = vand.u32 2147483647, %v1930_v19  ;;  %v2071_v8 = vsel %vm2070_vm2, %v2069_v15, 0  ;;  %v7982_v53 = vand.u32 3, %v1944_v27  ;;  %v7984_v32 = vshll.u32 %v2067_v35, 8 }
 0x290   :  { %v7976_v37 = vshrl.u32 %v2848_v3, 30  ;;  %v2073_v24 = vand.u32 31, %v2071_v8  ;;  %v7979_v17 = vadd.f32 %v1547_v31, %v6990_v43  ;;  %v1518_v60 = vadd.f32 %v1486_v26, %v10630_v39 }
 0x291   :  { %v1934_v55 = vmul.f32 %v1933_v10, %v1931_v42  ;;  %v2072_v7 = vshrl.u32 %v2071_v8, 5  ;;  %v7991_v54 = vmul.f32 %v7193_v18, %v1367_v6  ;;  %vm2789_vm3 = vcmp.lt.s32.totalorder %v7837_v0, 0 }
 0x292   :  { %v2850_v13 = vshll.u32 %v7976_v37, 30  ;;  %v2074_v4 = vsub.s32 32, %v2073_v24  ;;  %v2076_v41 = vshll.u32 %v10603_v50, %v2073_v24  ;;  %v2079_v29 = vshll.u32 %v10605_v63, %v2073_v24 }
 0x293   :  { %v1935_v21 = vxor.u32 2147483648, %v1934_v55  ;;  %v2082_v56 = vshll.u32 %v10606_v51, %v2073_v24  ;;  %v2085_v14 = vshll.u32 %v10607_v52, %v2073_v24  ;;  %v2088_v47 = vshll.u32 %v10608_v40, %v2073_v24 }
 0x294   :  { %v7987_v12 = vsub.s32 %v2847_v20, %v2850_v13  ;;  %v2077_v46 = vshrl.u32 %v10605_v63, %v2074_v4  ;;  %v2080_v23 = vshrl.u32 %v10606_v51, %v2074_v4  ;;  %v2083_v2 = vshrl.u32 %v10607_v52, %v2074_v4 }
 0x295   :  { %v1936_v43 = vsel %vm1853_vm5, %v1935_v21, %v1934_v55  ;;  %v2086_v62 = vshrl.u32 %v10608_v40, %v2074_v4  ;;  %v2089_v20 = vshrl.u32 %v10609_v16, %v2074_v4  ;;  %v8010_v15 = vadd.f32 %v7728_v30, %v1518_v60 }
 0x296   :  { %v1939_v61 = vsel %vm7918_vm6, %v7732_v57, %v1936_v43  ;;  %v2853_v34 = vsub.s32 0, %v7987_v12  ;;  %v2078_v9 = vor.u32 %v2077_v46, %v2076_v41  ;;  %v2081_v33 = vor.u32 %v2080_v23, %v2079_v29 }
 0x297   :  { %5360 = vcosq.f32 %v1939_v61  ;;  %v2084_v38 = vor.u32 %v2083_v2, %v2082_v56  ;;  %v2087_v25 = vor.u32 %v2086_v62, %v2085_v14  ;;  %v2873_v59 = vsub.s32 4, %v7976_v37 }
 0x298   :  { %5362 = vsinq.f32 %v1939_v61  ;;  %v5098_v11 = vmin.u32 %v2853_v34, %v7987_v12  ;;  %v2075_v19 = vshrl.u32 %v10603_v50, %v2074_v4  ;;  %vm2091_vm4 = vcmp.lt.s32.totalorder %v2072_v7, 1 }
 0x299   :  { %v2090_v27 = vor.u32 %v2089_v20, %v2088_v47  ;;  %vm2092_vm5 = vcmp.lt.s32.totalorder %v2072_v7, 2  ;;  %vm2093_vm6 = vcmp.lt.s32.totalorder %v2072_v7, 3  ;;  %vm2094_vm7 = vcmp.lt.s32.totalorder %v2072_v7, 4 }
 0x29a   :  { %v2855_v6 = vclz %v5098_v11  ;;  %vm1947_vm8 = vcmp.eq.s32.totalorder %v7982_v53, 0  ;;  %v2096_v35 = vsel %vm2094_vm7, %v2084_v38, 2102212464  ;;  %v2099_v26 = vsel %vm2091_vm4, %v2078_v9, %v2081_v33 }
 0x29b   :  { %v2100_v42 = vsel %vm2094_vm7, %v2087_v25, 920167782  ;;  %vm8018_vm9 = vcmp.le.f32.partialorder %v2787_v1, 0.7853982  ;;  %v2095_v8 = vsel %vm2091_vm4, %v2075_v19, %v2078_v9  ;;  %v2103_v24 = vsel %vm2091_vm4, %v2081_v33, %v2084_v38 }
 0x29c   :  { %v5099_v3 = vadd.s32 4294967294, %v2855_v6  ;;  %v2101_v31 = vsel %vm2093_vm6, %v2084_v38, %v2100_v42  ;;  %v2104_v55 = vsel %vm2094_vm7, %v2090_v27, 1326507024  ;;  %vm1943_vm10 = vweird.f32 %v7732_v57 }
 0x29d   :  { %v2097_v13 = vsel %vm2093_vm6, %v2081_v33, %v2096_v35  ;;  %v2102_v4 = vsel %vm2092_vm5, %v2099_v26, %v2101_v31  ;;  %v2105_v21 = vsel %vm2093_vm6, %v2087_v25, %v2104_v55  ;;  %vm1950_vm12 = vcmp.eq.s32.totalorder %v7982_v53, 2  ;;  %v1403_v35 = vpop.permute.xlu0 %1402 }
 0x29e   :  { %vm5100_vm11 = vcmp.lt.s32.totalorder %v5099_v3, 0  ;;  %v2106_v1 = vsel %vm2092_vm5, %v2103_v24, %v2105_v21  ;;  %v8029_v60 = vmul.u32.u64.low %v7984_v32, %v2102_v4  ;;  %v8030_v46 = vmul.u32.u64.high %v7984_v32, %v2102_v4, %v8029_v60 }
 0x29f   :  { %v2858_v39 = vsel %vm5100_vm11, 0, %v5099_v3  ;;  %v2843_v43 = vadd.s32 %v7938_v45, %v7945_v5  ;;  %v2098_v34 = vsel %vm2092_vm5, %v2095_v8, %v2097_v13  ;;  %v2998_v33 = vand.u32 2139095040, %v8010_v15 }
 0x2a0   :  { %v2859_v41 = vsub.s32 32, %v2858_v39  ;;  %v2863_v23 = vsub.s32 4294967266, %v2858_v39  ;;  %v2860_v61 = vshll.u32 %v7987_v12, %v2858_v39  ;;  %v2874_v45 = vsel %vm2789_vm3, %v2873_v59, %v7976_v37  ;;  %v10633_v12 = vld [vmem:[#allocation30_spill] sm:$0xff] }
 0x2a1   :  { %v5361_v2 = vpop.eup %5360  ;;  %v8039_v29 = vmul.u32.u64.low %v7984_v32, %v2106_v1  ;;  %v8040_v56 = vmul.u32.u64.high %v7984_v32, %v2106_v1, %v8039_v29  ;;  %v2117_v5 = vadd.s32 1, %v8030_v46  ;;  %v1511_v7 = vadd.f32 %v7991_v54, %v10633_v12 }
 0x2a2   :  { %v5363_v9 = vpop.eup %5362  ;;  %v1951_v14 = vxor.u32 2147483648, %v5361_v2  ;;  %v2861_v62 = vshrl.u32 %v2843_v43, %v2859_v41  ;;  %v2864_v11 = vadd.s32 127, %v2863_v23  ;;  %v2999_v6 = vshrl.u32 %v2998_v33, 23  ;;  %v10634_v43 = vld [vmem:[#allocation10_spill] sm:$0xff] }
 0x2a3   :  { %v1948_v38 = vxor.u32 2147483648, %v5363_v9  ;;  %vm1946_vm14 = vcmp.lt.s32.totalorder %v7982_v53, 2  ;;  %v2114_v27 = vmul.u32 %v7984_v32, %v2098_v34  ;;  %vm2116_vm15 = vc.u32 %v8040_v56, %v8029_v60 }
 0x2a4   :  { %v1952_v25 = vsel %vm1950_vm12, %v1951_v14, %v5363_v9  ;;  %v2862_v47 = vor.u32 %v2861_v62, %v2860_v61  ;;  %v2865_v20 = vshll.u32 %v2864_v11, 23  ;;  %v2876_v54 = vsel %vm8018_vm9, 0, %v2874_v45 }
 0x2a5   :  { %v1949_v19 = vsel %vm1947_vm8, %v5361_v2, %v1948_v38  ;;  %v2118_v3 = vsel %vm2116_vm15, %v2117_v5, %v8030_v46  ;;  %v2995_v53 = vand.u32 2147483647, %v8010_v15  ;;  %v5105_v8 = vadd.s32 4294967169, %v2999_v6  ;;  %v10635_v2 = vld [vmem:[#allocation7_spill] sm:$0xff] }
 0x2a6   :  { %v1953_v37 = vsel %vm1946_vm14, %v1949_v19, %v1952_v25  ;;  %v2866_v59 = vor.u32 4788187, %v2865_v20  ;;  %v2119_v42 = vadd.s32 %v2118_v3, %v2114_v27  ;;  %v2869_v24 = vcvt.s32.f32 %v2862_v47 }
 0x2a7   :  { %v1954_v26 = vsel %vm1943_vm10, nan, %v1953_v37  ;;  %v8065_v55 = vadd.f32 %v7728_v30, %v1511_v7  ;;  %v1552_v13 = vmul.f32 %v7196_v58, %v7788_v22  ;;  %v3005_v21 = vadd.s32 1, %v5105_v8 }
 0x2a8   :  { %v4973_v32 = vadd.f32 %v1954_v26, %v7711_v49  ;;  %v2867_v31 = vand.u32 2147483647, %v2866_v59  ;;  %v2120_v4 = vadd.s32 536870912, %v2119_v42  ;;  %v1556_v39 = vmul.f32 %v7196_v58, %v1403_v35 }
 0x2a9   :  { %v2880_v1 = vadd.s32 3, %v2876_v54  ;;  %v3002_v49 = vand.u32 8388607, %v2995_v53  ;;  %vm3006_vm0 = vcmp.gt.s32.totalorder %v3005_v21, 0  ;;  %v2270_v22 = vand.u32 2139095040, %v8065_v55 }
 0x2aa   :  { %5006 = vst.msk [vmem:[#allocation2 + $0x10] sm:$0xff] %vm5003_vm13, %v4973_v32  ;;  %v2870_v57 = vmul.f32 %v2869_v24, %v2867_v31  ;;  %v8071_v46 = vshrl.u32 %v2120_v4, 30  ;;  %v8076_v30 = vadd.f32 %v1556_v39, %v10634_v43  ;;  %v3007_v23 = vsel %vm3006_vm0, %v3005_v21, 0 }
 0x2ab   :  { %v8080_v61 = vadd.f32 %v1552_v13, %v10635_v2  ;;  %v3009_v29 = vand.u32 31, %v3007_v23  ;;  %v8085_v14 = vand.u32 3, %v2880_v1  ;;  %v8089_v62 = vmul.f32 %v7196_v58, %v7877_v28 }
 0x2ac   :  { %v2871_v41 = vxor.u32 2147483648, %v2870_v57  ;;  %v2122_v34 = vshll.u32 %v8071_v46, 30  ;;  %v8092_v11 = vmul.f32 %v7193_v18, %v1403_v35  ;;  %v3003_v45 = vor.u32 8388608, %v3002_v49 }
 0x2ad   :  { %v3010_v5 = vsub.s32 32, %v3009_v29  ;;  %v2115_v12 = vadd.s32 %v8029_v60, %v8040_v56  ;;  %v8101_v7 = vshrl.u32 %v3007_v23, 5  ;;  %v2271_v25 = vshrl.u32 %v2270_v22, 23 }
 0x2ae   :  { %v2872_v9 = vsel %vm2789_vm3, %v2871_v41, %v2870_v57  ;;  %v8097_v38 = vsub.s32 %v2119_v42, %v2122_v34  ;;  %v3012_v47 = vshll.u32 %v10603_v50, %v3009_v29  ;;  %v3015_v20 = vshll.u32 %v10605_v63, %v3009_v29 }
 0x2af   :  { %v2875_v33 = vsel %vm8018_vm9, %v7837_v0, %v2872_v9  ;;  %v3013_v10 = vshrl.u32 %v10605_v63, %v3010_v5  ;;  %v3016_v6 = vshrl.u32 %v10606_v51, %v3010_v5  ;;  %v3018_v19 = vshll.u32 %v10606_v51, %v3009_v29 }
 0x2b0   :  { %5364 = vcosq.f32 %v2875_v33  ;;  %v2125_v28 = vsub.s32 0, %v8097_v38  ;;  %v3019_v27 = vshrl.u32 %v10607_v52, %v3010_v5  ;;  %v3022_v56 = vshrl.u32 %v10608_v40, %v3010_v5 }
 0x2b1   :  { %5366 = vsinq.f32 %v2875_v33  ;;  %v8112_v37 = vshll.u32 %v3003_v45, 8  ;;  %v2267_v59 = vand.u32 2147483647, %v8065_v55  ;;  %vm2886_vm1 = vcmp.eq.s32.totalorder %v8085_v14, 2 }
 0x2b2   :  { %v5070_v60 = vmin.u32 %v2125_v28, %v8097_v38  ;;  %v3014_v54 = vor.u32 %v3013_v10, %v3012_v47  ;;  %v3017_v3 = vor.u32 %v3016_v6, %v3015_v20  ;;  %v3020_v35 = vor.u32 %v3019_v27, %v3018_v19 }
 0x2b3   :  { %v3021_v26 = vshll.u32 %v10607_v52, %v3009_v29  ;;  %vm2883_vm2 = vcmp.eq.s32.totalorder %v8085_v14, 0  ;;  %vm2061_vm3 = vcmp.lt.s32.totalorder %v7925_v44, 0  ;;  %v2145_v8 = vsub.s32 4, %v8071_v46 }
 0x2b4   :  { %v2127_v42 = vclz %v5070_v60  ;;  %v3011_v32 = vshrl.u32 %v10603_v50, %v3010_v5  ;;  %v5077_v31 = vadd.s32 4294967169, %v2271_v25  ;;  %vm2882_vm4 = vcmp.lt.s32.totalorder %v8085_v14, 2 }
 0x2b5   :  { %v3023_v24 = vor.u32 %v3022_v56, %v3021_v26  ;;  %v3024_v13 = vshll.u32 %v10608_v40, %v3009_v29  ;;  %v3025_v4 = vshrl.u32 %v10609_v16, %v3010_v5  ;;  %vm3027_vm5 = vcmp.lt.s32.totalorder %v8101_v7, 1 }
 0x2b6   :  { %vm2879_vm6 = vweird.f32 %v7837_v0  ;;  %v5071_v21 = vadd.s32 4294967294, %v2127_v42  ;;  %vm3028_vm7 = vcmp.lt.s32.totalorder %v8101_v7, 2  ;;  %vm3029_vm8 = vcmp.lt.s32.totalorder %v8101_v7, 3 }
 0x2b7   :  { %vm3030_vm9 = vcmp.lt.s32.totalorder %v8101_v7, 4  ;;  %v3026_v39 = vor.u32 %v3025_v4, %v3024_v13  ;;  %v3035_v1 = vsel %vm3027_vm5, %v3014_v54, %v3017_v3  ;;  %v3031_v43 = vsel %vm3027_vm5, %v3011_v32, %v3014_v54  ;;  %v10638_v7 = vld [vmem:[#allocation46_spill] sm:$0xff] }
 0x2b8   :  { %v3032_v57 = vsel %vm3030_vm9, %v3020_v35, 2102212464  ;;  %v3036_v49 = vsel %vm3030_vm9, %v3023_v24, 920167782  ;;  %vm5072_vm10 = vcmp.lt.s32.totalorder %v5071_v21, 0  ;;  %v3039_v29 = vsel %vm3027_vm5, %v3017_v3, %v3020_v35 }
 0x2b9   :  { %v3033_v41 = vsel %vm3029_vm8, %v3017_v3, %v3032_v57  ;;  %v3037_v23 = vsel %vm3029_vm8, %v3020_v35, %v3036_v49  ;;  %v2130_v2 = vsel %vm5072_vm10, 0, %v5071_v21  ;;  %v3040_v9 = vsel %vm3030_vm9, %v3026_v39, 1326507024 }
 0x2ba   :  { %v5365_v22 = vpop.eup %5364  ;;  %v3038_v34 = vsel %vm3028_vm7, %v3035_v1, %v3037_v23  ;;  %v2131_v5 = vsub.s32 32, %v2130_v2  ;;  %v2132_v25 = vshll.u32 %v8097_v38, %v2130_v2  ;;  %v2135_v28 = vsub.s32 4294967266, %v2130_v2 }
 0x2bb   :  { %v5367_v33 = vpop.eup %5366  ;;  %v2887_v45 = vxor.u32 2147483648, %v5365_v22  ;;  %v3041_v20 = vsel %vm3029_vm8, %v3023_v24, %v3040_v9  ;;  %v8145_v10 = vmul.u32.u64.low %v8112_v37, %v3038_v34  ;;  %v8146_v6 = vmul.u32.u64.high %v8112_v37, %v3038_v34, %v8145_v10 }
 0x2bc   :  { %v2884_v47 = vxor.u32 2147483648, %v5367_v33  ;;  %v2133_v27 = vshrl.u32 %v2115_v12, %v2131_v5  ;;  %v2136_v60 = vadd.s32 127, %v2135_v28  ;;  %v3042_v56 = vsel %vm3028_vm7, %v3039_v29, %v3041_v20 }
 0x2bd   :  { %v2888_v19 = vsel %vm2886_vm1, %v2887_v45, %v5367_v33  ;;  %v2146_v54 = vsel %vm2061_vm3, %v2145_v8, %v8071_v46  ;;  %v8159_v3 = vmul.u32.u64.low %v8112_v37, %v3042_v56  ;;  %v8160_v35 = vmul.u32.u64.high %v8112_v37, %v3042_v56, %v8159_v3 }
 0x2be   :  { %v2885_v38 = vsel %vm2883_vm2, %v5365_v22, %v2884_v47  ;;  %v2134_v42 = vor.u32 %v2133_v27, %v2132_v25  ;;  %v2137_v12 = vshll.u32 %v2136_v60, 23  ;;  %v3034_v32 = vsel %vm3028_vm7, %v3031_v43, %v3033_v41  ;;  %v10639_v41 = vld [vmem:[#allocation6_spill] sm:$0xff] }
 0x2bf   :  { %v2889_v26 = vsel %vm2882_vm4, %v2885_v38, %v2888_v19  ;;  %vm8170_vm11 = vcmp.le.f32.partialorder %v2059_v36, 0.7853982  ;;  %v3053_v46 = vadd.s32 1, %v8146_v6  ;;  %v2277_v8 = vadd.s32 1, %v5077_v31 }
 0x2c0   :  { %v2890_v24 = vsel %vm2879_vm6, nan, %v2889_v26  ;;  %v2138_v4 = vor.u32 4788187, %v2137_v12  ;;  %v2274_v21 = vand.u32 8388607, %v2267_v59  ;;  %v1520_v39 = vadd.f32 %v8092_v11, %v10638_v7 }
 0x2c1   :  { %v4982_v14 = vadd.f32 %v2890_v24, %v8080_v61  ;;  %v2148_v0 = vsel %vm8170_vm11, 0, %v2146_v54  ;;  %v3050_v36 = vmul.u32 %v8112_v37, %v3034_v32  ;;  %vm3052_vm12 = vc.u32 %v8160_v35, %v8145_v10  ;;  %v8194_v37 = vld [vmem:[%s10274_s3] ss:$0 sm:$0xff] }
 0x2c2   :  { %vm2278_vm14 = vcmp.gt.s32.totalorder %v2277_v8, 0  ;;  %v2139_v31 = vand.u32 2147483647, %v2138_v4  ;;  %v2141_v61 = vcvt.s32.f32 %v2134_v42  ;;  %v3054_v57 = vsel %vm3052_vm12, %v3053_v46, %v8146_v6 }
 0x2c3   :  { %5015 = vst.msk [vmem:[#allocation2 + $0x58] sm:$0xff] %vm5003_vm13, %v4982_v14  ;;  %v2279_v1 = vsel %vm2278_vm14, %v2277_v8, 0  ;;  %v3055_v49 = vadd.s32 %v3054_v57, %v3050_v36  ;;  %v8189_v11 = vadd.f32 %v8089_v62, %v10639_v41  ;;  %v2152_v22 = vadd.s32 3, %v2148_v0 }
 0x2c4   :  { %v2281_v43 = vand.u32 31, %v2279_v1  ;;  %v2142_v23 = vmul.f32 %v2141_v61, %v2139_v31  ;;  %v8197_v2 = vadd.f32 %v8194_v37, %v1520_v39  ;;  %v2275_v29 = vor.u32 8388608, %v2274_v21 }
 0x2c5   :  { %v3056_v34 = vadd.s32 536870912, %v3055_v49  ;;  %v8199_v9 = vshrl.u32 %v2279_v1, 5  ;;  %v8216_v24 = vand.u32 3, %v2152_v22  ;;  %v8220_v46 = vmul.f32 %v7196_v58, %v7967_v48 }
 0x2c6   :  { %v2282_v33 = vsub.s32 32, %v2281_v43  ;;  %v2143_v45 = vxor.u32 2147483648, %v2142_v23  ;;  %v2284_v5 = vshll.u32 %v10603_v50, %v2281_v43  ;;  %v2287_v62 = vshll.u32 %v10605_v63, %v2281_v43 }
 0x2c7   :  { %v2290_v25 = vshll.u32 %v10606_v51, %v2281_v43  ;;  %v3057_v28 = vshrl.u32 %v3056_v34, 30  ;;  %v2293_v6 = vshll.u32 %v10607_v52, %v2281_v43  ;;  %v2296_v26 = vshll.u32 %v10608_v40, %v2281_v43 }
 0x2c8   :  { %v2285_v47 = vshrl.u32 %v10605_v63, %v2282_v33  ;;  %v2288_v20 = vshrl.u32 %v10606_v51, %v2282_v33  ;;  %v2144_v19 = vsel %vm2061_vm3, %v2143_v45, %v2142_v23  ;;  %v2291_v27 = vshrl.u32 %v10607_v52, %v2282_v33 }
 0x2c9   :  { %v2294_v60 = vshrl.u32 %v10608_v40, %v2282_v33  ;;  %v2297_v56 = vshrl.u32 %v10609_v16, %v2282_v33  ;;  %v2147_v38 = vsel %vm8170_vm11, %v7925_v44, %v2144_v19  ;;  %v3058_v54 = vshll.u32 %v3057_v28, 30 }
 0x2ca   :  { %v2286_v3 = vor.u32 %v2285_v47, %v2284_v5  ;;  %5368 = vcosq.f32 %v2147_v38  ;;  %v2289_v42 = vor.u32 %v2288_v20, %v2287_v62  ;;  %v2292_v12 = vor.u32 %v2291_v27, %v2290_v25 }
 0x2cb   :  { %v2295_v32 = vor.u32 %v2294_v60, %v2293_v6  ;;  %5370 = vsinq.f32 %v2147_v38  ;;  %v8222_v8 = vsub.s32 %v3055_v49, %v3058_v54  ;;  %vm2997_vm15 = vcmp.lt.s32.totalorder %v8010_v15, 0 }
 0x2cc   :  { %v2298_v13 = vor.u32 %v2297_v56, %v2296_v26  ;;  %v8225_v14 = vshll.u32 %v2275_v29, 8  ;;  %v3206_v4 = vand.u32 2139095040, %v8197_v2  ;;  %vm8230_vm0 = vcmp.le.f32.partialorder %v2995_v53, 0.7853982 }
 0x2cd   :  { %v3061_v7 = vsub.s32 0, %v8222_v8  ;;  %v2283_v48 = vshrl.u32 %v10603_v50, %v2282_v33  ;;  %vm2299_vm1 = vcmp.lt.s32.totalorder %v8199_v9, 1  ;;  %vm2302_vm2 = vcmp.lt.s32.totalorder %v8199_v9, 4 }
 0x2ce   :  { %vm2301_vm3 = vcmp.lt.s32.totalorder %v8199_v9, 3  ;;  %v2304_v39 = vsel %vm2302_vm2, %v2292_v12, 2102212464  ;;  %v2307_v0 = vsel %vm2299_vm1, %v2286_v3, %v2289_v42  ;;  %v2308_v36 = vsel %vm2302_vm2, %v2295_v32, 920167782 }
 0x2cf   :  { %vm2155_vm4 = vcmp.eq.s32.totalorder %v8216_v24, 0  ;;  %v5106_v53 = vmin.u32 %v3061_v7, %v8222_v8  ;;  %v3081_v31 = vsub.s32 4, %v3057_v28  ;;  %vm2300_vm5 = vcmp.lt.s32.totalorder %v8199_v9, 2  ;;  %v8290_v7 = vpop.permute.xlu1 %1374 }
 0x2d0   :  { %v2309_v61 = vsel %vm2301_vm3, %v2292_v12, %v2308_v36  ;;  %vm2154_vm6 = vcmp.lt.s32.totalorder %v8216_v24, 2  ;;  %v2311_v1 = vsel %vm2299_vm1, %v2289_v42, %v2292_v12  ;;  %v2312_v49 = vsel %vm2302_vm2, %v2298_v13, 1326507024 }
 0x2d1   :  { %v2310_v57 = vsel %vm2300_vm5, %v2307_v0, %v2309_v61  ;;  %v3207_v43 = vshrl.u32 %v3206_v4, 23  ;;  %vm2151_vm7 = vweird.f32 %v7925_v44  ;;  %v3063_v41 = vclz %v5106_v53 }
 0x2d2   :  { %v2303_v23 = vsel %vm2299_vm1, %v2283_v48, %v2286_v3  ;;  %v2305_v22 = vsel %vm2301_vm3, %v2289_v42, %v2304_v39  ;;  %v3203_v34 = vand.u32 2147483647, %v8197_v2  ;;  %vm2158_vm8 = vcmp.eq.s32.totalorder %v8216_v24, 2 }
 0x2d3   :  { %v2313_v29 = vsel %vm2301_vm3, %v2295_v32, %v2312_v49  ;;  %v8261_v33 = vmul.u32.u64.low %v8225_v14, %v2310_v57  ;;  %v8262_v45 = vmul.u32.u64.high %v8225_v14, %v2310_v57, %v8261_v33  ;;  %v5107_v5 = vadd.s32 4294967294, %v3063_v41  ;;  %v10642_v41 = vld [vmem:[#allocation45_spill] sm:$0xff] }
 0x2d4   :  { %v3082_v62 = vsel %vm2997_vm15, %v3081_v31, %v3057_v28  ;;  %v2314_v25 = vsel %vm2300_vm5, %v2311_v1, %v2313_v29  ;;  %v5113_v47 = vadd.s32 4294967169, %v3207_v43  ;;  %v5369_v20 = vpop.eup %5368  ;;  %v3051_v6 = vadd.s32 %v8145_v10, %v8160_v35 }
 0x2d5   :  { %v2306_v19 = vsel %vm2300_vm5, %v2303_v23, %v2305_v22  ;;  %v8274_v27 = vmul.u32.u64.low %v8225_v14, %v2314_v25  ;;  %v8275_v60 = vmul.u32.u64.high %v8225_v14, %v2314_v25, %v8274_v27  ;;  %v5371_v56 = vpop.eup %5370  ;;  %v2159_v38 = vxor.u32 2147483648, %v5369_v20 }
 0x2d6   :  { %vm5108_vm9 = vcmp.lt.s32.totalorder %v5107_v5, 0  ;;  %v3210_v28 = vand.u32 8388607, %v3203_v34  ;;  %v3213_v54 = vadd.s32 1, %v5113_v47  ;;  %v2156_v3 = vxor.u32 2147483648, %v5371_v56  ;;  %v10643_v47 = vld [vmem:[#allocation31_spill] sm:$0xff] }
 0x2d7   :  { %v3066_v26 = vsel %vm5108_vm9, 0, %v5107_v5  ;;  %v3084_v42 = vsel %vm8230_vm0, 0, %v3082_v62  ;;  %v2325_v10 = vadd.s32 1, %v8262_v45  ;;  %v2160_v35 = vsel %vm2158_vm8, %v2159_v38, %v5371_v56 }
 0x2d8   :  { %v3067_v9 = vsub.s32 32, %v3066_v26  ;;  %v3071_v12 = vsub.s32 4294967266, %v3066_v26  ;;  %v2322_v32 = vmul.u32 %v8225_v14, %v2306_v19  ;;  %v2157_v13 = vsel %vm2155_vm4, %v5369_v20, %v2156_v3 }
 0x2d9   :  { %v3068_v4 = vshll.u32 %v8222_v8, %v3066_v26  ;;  %vm2324_vm10 = vc.u32 %v8275_v60, %v8261_v33  ;;  %vm3214_vm11 = vcmp.gt.s32.totalorder %v3213_v54, 0  ;;  %v2161_v48 = vsel %vm2154_vm6, %v2157_v13, %v2160_v35 }
 0x2da   :  { %v3069_v39 = vshrl.u32 %v3051_v6, %v3067_v9  ;;  %v3072_v0 = vadd.s32 127, %v3071_v12  ;;  %v2326_v36 = vsel %vm2324_vm10, %v2325_v10, %v8262_v45  ;;  %v2162_v14 = vsel %vm2151_vm7, nan, %v2161_v48 }
 0x2db   :  { %v3088_v53 = vadd.s32 3, %v3084_v42  ;;  %v2327_v31 = vadd.s32 %v2326_v36, %v2322_v32  ;;  %v3215_v61 = vsel %vm3214_vm11, %v3213_v54, 0  ;;  %v4975_v8 = vadd.f32 %v2162_v14, %v8189_v11 }
 0x2dc   :  { %v3070_v57 = vor.u32 %v3069_v39, %v3068_v4  ;;  %v3073_v1 = vshll.u32 %v3072_v0, 23  ;;  %v1481_v49 = vmul.f32 %v7193_v18, %v8290_v7  ;;  %v3217_v24 = vand.u32 31, %v3215_v61 }
 0x2dd   :  { %v2328_v43 = vadd.s32 536870912, %v2327_v31  ;;  %5008 = vst.msk [vmem:[#allocation2 + $0x20] sm:$0xff] %vm5003_vm13, %v4975_v8  ;;  %v8303_v23 = vadd.f32 %v8220_v46, %v10642_v41  ;;  %v8305_v22 = vand.u32 3, %v3088_v53  ;;  %v3211_v45 = vor.u32 8388608, %v3210_v28 }
 0x2de   :  { %v3074_v44 = vor.u32 4788187, %v3073_v1  ;;  %v3218_v5 = vsub.s32 32, %v3217_v24  ;;  %v3077_v62 = vcvt.s32.f32 %v3070_v57  ;;  %v3216_v25 = vshrl.u32 %v3215_v61, 5 }
 0x2df   :  { %v2329_v29 = vshrl.u32 %v2328_v43, 30  ;;  %v1513_v20 = vadd.f32 %v1481_v49, %v10643_v47  ;;  %v3220_v19 = vshll.u32 %v10603_v50, %v3217_v24  ;;  %v3223_v56 = vshll.u32 %v10605_v63, %v3217_v24 }
 0x2e0   :  { %v3075_v11 = vand.u32 2147483647, %v3074_v44  ;;  %v3221_v27 = vshrl.u32 %v10605_v63, %v3218_v5  ;;  %v3224_v38 = vshrl.u32 %v10606_v51, %v3218_v5  ;;  %v3227_v54 = vshrl.u32 %v10607_v52, %v3218_v5 }
 0x2e1   :  { %v2330_v6 = vshll.u32 %v2329_v29, 30  ;;  %v3230_v28 = vshrl.u32 %v10608_v40, %v3218_v5  ;;  %v3226_v26 = vshll.u32 %v10606_v51, %v3217_v24  ;;  %v3229_v42 = vshll.u32 %v10607_v52, %v3217_v24 }
 0x2e2   :  { %v3078_v46 = vmul.f32 %v3077_v62, %v3075_v11  ;;  %v3233_v10 = vshrl.u32 %v10609_v16, %v3218_v5  ;;  %v3222_v9 = vor.u32 %v3221_v27, %v3220_v19  ;;  %v3225_v12 = vor.u32 %v3224_v38, %v3223_v56 }
 0x2e3   :  { %v8314_v3 = vsub.s32 %v2327_v31, %v2330_v6  ;;  %v8319_v32 = vshll.u32 %v3211_v45, 8  ;;  %vm2269_vm12 = vcmp.lt.s32.totalorder %v8065_v55, 0  ;;  %v3228_v4 = vor.u32 %v3227_v54, %v3226_v26 }
 0x2e4   :  { %v3079_v35 = vxor.u32 2147483648, %v3078_v46  ;;  %v3231_v48 = vor.u32 %v3230_v28, %v3229_v42  ;;  %v3232_v39 = vshll.u32 %v10608_v40, %v3217_v24  ;;  %v2323_v36 = vadd.s32 %v8261_v33, %v8275_v60 }
 0x2e5   :  { %v2333_v13 = vsub.s32 0, %v8314_v3  ;;  %vm3235_vm14 = vcmp.lt.s32.totalorder %v3216_v25, 1  ;;  %v8329_v14 = vadd.f32 %v8194_v37, %v1513_v20  ;;  %vm3238_vm1 = vcmp.lt.s32.totalorder %v3216_v25, 4 }
 0x2e6   :  { %v3080_v0 = vsel %vm2997_vm15, %v3079_v35, %v3078_v46  ;;  %v3234_v61 = vor.u32 %v3233_v10, %v3232_v39  ;;  %v3219_v8 = vshrl.u32 %v10603_v50, %v3218_v5  ;;  %v3243_v57 = vsel %vm3235_vm14, %v3222_v9, %v3225_v12 }
 0x2e7   :  { %v3083_v53 = vsel %vm8230_vm0, %v8010_v15, %v3080_v0  ;;  %v5078_v31 = vmin.u32 %v2333_v13, %v8314_v3  ;;  %v3244_v1 = vsel %vm3238_vm1, %v3231_v48, 920167782  ;;  %vm3237_vm15 = vcmp.lt.s32.totalorder %v3216_v25, 3 }
 0x2e8   :  { %5372 = vcosq.f32 %v3083_v53  ;;  %v3240_v60 = vsel %vm3238_vm1, %v3228_v4, 2102212464  ;;  %v2353_v49 = vsub.s32 4, %v2329_v29  ;;  %vm3236_vm2 = vcmp.lt.s32.totalorder %v3216_v25, 2 }
 0x2e9   :  { %5374 = vsinq.f32 %v3083_v53  ;;  %v2335_v33 = vclz %v5078_v31  ;;  %v3245_v21 = vsel %vm3237_vm15, %v3228_v4, %v3244_v1  ;;  %v3247_v43 = vsel %vm3235_vm14, %v3225_v12, %v3228_v4 }
 0x2ea   :  { %v3239_v41 = vsel %vm3235_vm14, %v3219_v8, %v3222_v9  ;;  %v3246_v44 = vsel %vm3236_vm2, %v3243_v57, %v3245_v21  ;;  %v3248_v45 = vsel %vm3238_vm1, %v3234_v61, 1326507024  ;;  %v3241_v5 = vsel %vm3237_vm15, %v3225_v12, %v3240_v60 }
 0x2eb   :  { %v5079_v24 = vadd.s32 4294967294, %v2335_v33  ;;  %v3249_v11 = vsel %vm3237_vm15, %v3231_v48, %v3248_v45  ;;  %v8344_v62 = vmul.u32.u64.low %v8319_v32, %v3246_v44  ;;  %v8345_v47 = vmul.u32.u64.high %v8319_v32, %v3246_v44, %v8344_v62  ;;  %v8376_v33 = vpop.permute.xlu0 %1410 }
 0x2ec   :  { %v3250_v20 = vsel %vm3236_vm2, %v3247_v43, %v3249_v11  ;;  %v2475_v6 = vand.u32 2147483647, %v8329_v14  ;;  %v2478_v19 = vand.u32 2139095040, %v8329_v14  ;;  %v2354_v56 = vsel %vm2269_vm12, %v2353_v49, %v2329_v29 }
 0x2ed   :  { %vm5080_vm0 = vcmp.lt.s32.totalorder %v5079_v24, 0  ;;  %v8353_v46 = vmul.u32.u64.low %v8319_v32, %v3250_v20  ;;  %v8354_v38 = vmul.u32.u64.high %v8319_v32, %v3250_v20, %v8353_v46  ;;  %v3242_v26 = vsel %vm3236_vm2, %v3239_v41, %v3241_v5 }
 0x2ee   :  { %v2338_v27 = vsel %vm5080_vm0, 0, %v5079_v24  ;;  %v2479_v42 = vshrl.u32 %v2478_v19, 23  ;;  %vm3087_vm3 = vweird.f32 %v8010_v15  ;;  %vm3090_vm4 = vcmp.lt.s32.totalorder %v8305_v22, 2 }
 0x2ef   :  { %v2339_v54 = vsub.s32 32, %v2338_v27  ;;  %v2343_v28 = vsub.s32 4294967266, %v2338_v27  ;;  %vm8361_vm5 = vcmp.le.f32.partialorder %v2267_v59, 0.7853982  ;;  %v3261_v29 = vadd.s32 1, %v8345_v47 }
 0x2f0   :  { %v2340_v35 = vshll.u32 %v8314_v3, %v2338_v27  ;;  %v5085_v13 = vadd.s32 4294967169, %v2479_v42  ;;  %v2356_v4 = vsel %vm8361_vm5, 0, %v2354_v56  ;;  %v3258_v48 = vmul.u32 %v8319_v32, %v3242_v26 }
 0x2f1   :  { %v2341_v9 = vshrl.u32 %v2323_v36, %v2339_v54  ;;  %v2344_v12 = vadd.s32 127, %v2343_v28  ;;  %vm3260_vm6 = vc.u32 %v8354_v38, %v8344_v62  ;;  %v2482_v59 = vand.u32 8388607, %v2475_v6 }
 0x2f2   :  { %v5373_v25 = vpop.eup %5372  ;;  %v3262_v3 = vsel %vm3260_vm6, %v3261_v29, %v8345_v47  ;;  %vm3094_vm7 = vcmp.eq.s32.totalorder %v8305_v22, 2  ;;  %v2485_v8 = vadd.s32 1, %v5085_v13  ;;  %vm3091_vm8 = vcmp.eq.s32.totalorder %v8305_v22, 0 }
 0x2f3   :  { %v5375_v39 = vpop.eup %5374  ;;  %v3095_v0 = vxor.u32 2147483648, %v5373_v25  ;;  %v2342_v53 = vor.u32 %v2341_v9, %v2340_v35  ;;  %v2345_v31 = vshll.u32 %v2344_v12, 23  ;;  %v3263_v61 = vadd.s32 %v3262_v3, %v3258_v48 }
 0x2f4   :  { %v3092_v36 = vxor.u32 2147483648, %v5375_v39  ;;  %v2360_v1 = vadd.s32 3, %v2356_v4  ;;  %v2483_v21 = vor.u32 8388608, %v2482_v59  ;;  %vm2486_vm9 = vcmp.gt.s32.totalorder %v2485_v8, 0 }
 0x2f5   :  { %v3096_v57 = vsel %vm3094_vm7, %v3095_v0, %v5375_v39  ;;  %v2346_v32 = vor.u32 4788187, %v2345_v31  ;;  %v3264_v49 = vadd.s32 536870912, %v3263_v61  ;;  %v2349_v41 = vcvt.s32.f32 %v2342_v53 }
 0x2f6   :  { %v3093_v60 = vsel %vm3091_vm8, %v5373_v25, %v3092_v36  ;;  %v2487_v44 = vsel %vm2486_vm9, %v2485_v8, 0  ;;  %v1490_v47 = vmul.f32 %v7193_v18, %v8376_v33  ;;  %v8389_v46 = vand.u32 3, %v2360_v1 }
 0x2f7   :  { %v3097_v43 = vsel %vm3090_vm4, %v3093_v60, %v3096_v57  ;;  %v2347_v24 = vand.u32 2147483647, %v2346_v32  ;;  %v8382_v5 = vshrl.u32 %v3264_v49, 30  ;;  %v2489_v11 = vand.u32 31, %v2487_v44 }
 0x2f8   :  { %v3098_v45 = vsel %vm3087_vm3, nan, %v3097_v43  ;;  %v8392_v15 = vadd.s32 %v8344_v62, %v8354_v38  ;;  %v8394_v54 = vshll.u32 %v2483_v21, 8  ;;  %v2488_v26 = vshrl.u32 %v2487_v44, 5 }
 0x2f9   :  { %v4984_v20 = vadd.f32 %v3098_v45, %v8303_v23  ;;  %v2350_v19 = vmul.f32 %v2349_v41, %v2347_v24  ;;  %v3266_v27 = vshll.u32 %v8382_v5, 30  ;;  %v2490_v56 = vsub.s32 32, %v2489_v11  ;;  %v10646_v23 = vld [vmem:[#allocation58_spill] sm:$0xff] }
 0x2fa   :  { %v1522_v29 = vadd.f32 %v1490_v47, %v10646_v23  ;;  %v2492_v9 = vshll.u32 %v10603_v50, %v2489_v11  ;;  %v2495_v25 = vshll.u32 %v10605_v63, %v2489_v11  ;;  %v2498_v4 = vshll.u32 %v10606_v51, %v2489_v11 }
 0x2fb   :  { %5017 = vst.msk [vmem:[#allocation2 + $0x68] sm:$0xff] %vm5003_vm13, %v4984_v20  ;;  %v2351_v22 = vxor.u32 2147483648, %v2350_v19  ;;  %v8396_v28 = vsub.s32 %v3263_v61, %v3266_v27  ;;  %v2493_v42 = vshrl.u32 %v10605_v63, %v2490_v56  ;;  %v2496_v12 = vshrl.u32 %v10606_v51, %v2490_v56 }
 0x2fc   :  { %v2499_v13 = vshrl.u32 %v10607_v52, %v2490_v56  ;;  %vm3205_vm10 = vcmp.lt.s32.totalorder %v8197_v2, 0  ;;  %v2501_v59 = vshll.u32 %v10607_v52, %v2489_v11  ;;  %v2502_v39 = vshrl.u32 %v10608_v40, %v2490_v56 }
 0x2fd   :  { %v2352_v35 = vsel %vm2269_vm12, %v2351_v22, %v2350_v19  ;;  %v3269_v38 = vsub.s32 0, %v8396_v28  ;;  %v2494_v48 = vor.u32 %v2493_v42, %v2492_v9  ;;  %v2497_v53 = vor.u32 %v2496_v12, %v2495_v25  ;;  %v8445_v9 = vpop.permute.xlu1 %1382 }
 0x2fe   :  { %v2355_v62 = vsel %vm8361_vm5, %v8065_v55, %v2352_v35  ;;  %v2500_v10 = vor.u32 %v2499_v13, %v2498_v4  ;;  %v2503_v31 = vor.u32 %v2502_v39, %v2501_v59  ;;  %v2504_v3 = vshll.u32 %v10608_v40, %v2489_v11 }
 0x2ff   :  { %5376 = vcosq.f32 %v2355_v62  ;;  %v5114_v0 = vmin.u32 %v3269_v38, %v8396_v28  ;;  %v2505_v36 = vshrl.u32 %v10609_v16, %v2490_v56  ;;  %v8418_v61 = vadd.f32 %v8194_v37, %v1522_v29 }
 0x300   :  { %5378 = vsinq.f32 %v2355_v62  ;;  %v3289_v57 = vsub.s32 4, %v8382_v5  ;;  %v2491_v32 = vshrl.u32 %v10603_v50, %v2490_v56  ;;  %vm2507_vm11 = vcmp.lt.s32.totalorder %v2488_v26, 1 }
 0x301   :  { %v3271_v8 = vclz %v5114_v0  ;;  %vm2366_vm12 = vcmp.eq.s32.totalorder %v8389_v46, 2  ;;  %vm8425_vm14 = vcmp.le.f32.partialorder %v3203_v34, 0.7853982  ;;  %v2506_v60 = vor.u32 %v2505_v36, %v2504_v3 }
 0x302   :  { %vm2508_vm1 = vcmp.lt.s32.totalorder %v2488_v26, 2  ;;  %vm2509_vm15 = vcmp.lt.s32.totalorder %v2488_v26, 3  ;;  %vm2510_vm2 = vcmp.lt.s32.totalorder %v2488_v26, 4  ;;  %vm2363_vm0 = vcmp.eq.s32.totalorder %v8389_v46, 0 }
 0x303   :  { %v5115_v49 = vadd.s32 4294967294, %v3271_v8  ;;  %v2512_v21 = vsel %vm2510_vm2, %v2500_v10, 2102212464  ;;  %v2515_v43 = vsel %vm2507_vm11, %v2494_v48, %v2497_v53  ;;  %v2516_v24 = vsel %vm2510_vm2, %v2503_v31, 920167782 }
 0x304   :  { %vm2362_vm3 = vcmp.lt.s32.totalorder %v8389_v46, 2  ;;  %v2511_v41 = vsel %vm2507_vm11, %v2491_v32, %v2494_v48  ;;  %v2517_v44 = vsel %vm2509_vm15, %v2500_v10, %v2516_v24  ;;  %v2519_v45 = vsel %vm2507_vm11, %v2497_v53, %v2500_v10 }
 0x305   :  { %v2520_v34 = vsel %vm2510_vm2, %v2506_v60, 1326507024  ;;  %vm2359_vm4 = vweird.f32 %v8065_v55  ;;  %vm5116_vm5 = vcmp.lt.s32.totalorder %v5115_v49, 0  ;;  %v2513_v11 = vsel %vm2509_vm15, %v2497_v53, %v2512_v21 }
 0x306   :  { %v2518_v47 = vsel %vm2508_vm1, %v2515_v43, %v2517_v44  ;;  %v2521_v20 = vsel %vm2509_vm15, %v2503_v31, %v2520_v34  ;;  %v3274_v19 = vsel %vm5116_vm5, 0, %v5115_v49  ;;  %v3290_v29 = vsel %vm3205_vm10, %v3289_v57, %v8382_v5 }
 0x307   :  { %v2522_v27 = vsel %vm2508_vm1, %v2519_v45, %v2521_v20  ;;  %v8438_v56 = vmul.u32.u64.low %v8394_v54, %v2518_v47  ;;  %v8439_v22 = vmul.u32.u64.high %v8394_v54, %v2518_v47, %v8438_v56  ;;  %v3275_v42 = vsub.s32 32, %v3274_v19 }
 0x308   :  { %v3279_v23 = vsub.s32 4294967266, %v3274_v19  ;;  %v3411_v35 = vand.u32 2147483647, %v8418_v61  ;;  %v2514_v13 = vsel %vm2508_vm1, %v2511_v41, %v2513_v11  ;;  %v3414_v25 = vand.u32 2139095040, %v8418_v61 }
 0x309   :  { %v5377_v12 = vpop.eup %5376  ;;  %v8449_v62 = vmul.u32.u64.low %v8394_v54, %v2522_v27  ;;  %v8450_v38 = vmul.u32.u64.high %v8394_v54, %v2522_v27, %v8449_v62  ;;  %v3276_v59 = vshll.u32 %v8396_v28, %v3274_v19  ;;  %v3277_v39 = vshrl.u32 %v8392_v15, %v3275_v42  ;;  %v10649_v19 = vld [vmem:[#allocation42_spill] sm:$0xff]  ;;  %v8478_v42 = vpop.permute.xlu0 %1418 }
 0x30a   :  { %v5379_v4 = vpop.eup %5378  ;;  %v2367_v48 = vxor.u32 2147483648, %v5377_v12  ;;  %v3280_v5 = vadd.s32 127, %v3279_v23  ;;  %v2533_v53 = vadd.s32 1, %v8439_v22  ;;  %v3415_v10 = vshrl.u32 %v3414_v25, 23 }
 0x30b   :  { %v2364_v0 = vxor.u32 2147483648, %v5379_v4  ;;  %v1483_v26 = vmul.f32 %v7193_v18, %v8445_v9  ;;  %v3278_v3 = vor.u32 %v3277_v39, %v3276_v59  ;;  %v3292_v8 = vsel %vm8425_vm14, 0, %v3290_v29 }
 0x30c   :  { %v2368_v31 = vsel %vm2366_vm12, %v2367_v48, %v5379_v4  ;;  %v3281_v36 = vshll.u32 %v3280_v5, 23  ;;  %v2530_v15 = vmul.u32 %v8394_v54, %v2514_v13  ;;  %vm2532_vm6 = vc.u32 %v8450_v38, %v8438_v56 }
 0x30d   :  { %v2365_v28 = vsel %vm2363_vm0, %v5377_v12, %v2364_v0  ;;  %v5121_v57 = vadd.s32 4294967169, %v3415_v10  ;;  %v2534_v49 = vsel %vm2532_vm6, %v2533_v53, %v8439_v22  ;;  %v3418_v21 = vand.u32 8388607, %v3411_v35 }
 0x30e   :  { %v2369_v32 = vsel %vm2362_vm3, %v2365_v28, %v2368_v31  ;;  %v3282_v60 = vor.u32 4788187, %v3281_v36  ;;  %v2535_v24 = vadd.s32 %v2534_v49, %v2530_v15  ;;  %v3285_v45 = vcvt.s32.f32 %v3278_v3 }
 0x30f   :  { %v2370_v43 = vsel %vm2359_vm4, nan, %v2369_v32  ;;  %v3421_v41 = vadd.s32 1, %v5121_v57  ;;  %v3296_v34 = vadd.s32 3, %v3292_v8  ;;  %v3419_v47 = vor.u32 8388608, %v3418_v21 }
 0x310   :  { %v4977_v44 = vadd.f32 %v2370_v43, %v7979_v17  ;;  %v3283_v54 = vand.u32 2147483647, %v3282_v60  ;;  %v2536_v11 = vadd.s32 536870912, %v2535_v24  ;;  %v1515_v27 = vadd.f32 %v1483_v26, %v10649_v19 }
 0x311   :  { %vm3422_vm7 = vcmp.gt.s32.totalorder %v3421_v41, 0  ;;  %v8482_v17 = vmul.f32 %v7196_v58, %v8290_v7  ;;  %v8484_v29 = vand.u32 3, %v3296_v34  ;;  %v8487_v12 = vadd.s32 %v8438_v56, %v8450_v38 }
 0x312   :  { %5010 = vst.msk [vmem:[#allocation2 + $0x30] sm:$0xff] %vm5003_vm13, %v4977_v44  ;;  %v3286_v46 = vmul.f32 %v3285_v45, %v3283_v54  ;;  %v3423_v20 = vsel %vm3422_vm7, %v3421_v41, 0  ;;  %v8476_v22 = vshrl.u32 %v2536_v11, 30  ;;  %v8492_v4 = vshll.u32 %v3419_v47, 8 }
 0x313   :  { %v3425_v55 = vand.u32 31, %v3423_v20  ;;  %v8495_v48 = vadd.f32 %v8194_v37, %v1515_v27  ;;  %v8499_v7 = vmul.f32 %v7193_v18, %v8478_v42  ;;  %v3424_v59 = vshrl.u32 %v3423_v20, 5 }
 0x314   :  { %v3287_v23 = vxor.u32 2147483648, %v3286_v46  ;;  %v2538_v13 = vshll.u32 %v8476_v22, 30  ;;  %vm3302_vm8 = vcmp.eq.s32.totalorder %v8484_v29, 2  ;;  %v2561_v60 = vsub.s32 4, %v8476_v22 }
 0x315   :  { %v3426_v62 = vsub.s32 32, %v3425_v55  ;;  %v3428_v39 = vshll.u32 %v10603_v50, %v3425_v55  ;;  %v3431_v0 = vshll.u32 %v10605_v63, %v3425_v55  ;;  %v3434_v26 = vshll.u32 %v10606_v51, %v3425_v55 }
 0x316   :  { %v3288_v25 = vsel %vm3205_vm10, %v3287_v23, %v3286_v46  ;;  %v8504_v38 = vsub.s32 %v2535_v24, %v2538_v13  ;;  %v3437_v36 = vshll.u32 %v10607_v52, %v3425_v55  ;;  %v2683_v32 = vand.u32 2147483647, %v8495_v48 }
 0x317   :  { %v3291_v56 = vsel %vm8425_vm14, %v8197_v2, %v3288_v25  ;;  %v3429_v5 = vshrl.u32 %v10605_v63, %v3426_v62  ;;  %v3432_v53 = vshrl.u32 %v10606_v51, %v3426_v62  ;;  %v3435_v1 = vshrl.u32 %v10607_v52, %v3426_v62 }
 0x318   :  { %5380 = vcosq.f32 %v3291_v56  ;;  %v2541_v10 = vsub.s32 0, %v8504_v38  ;;  %v3438_v8 = vshrl.u32 %v10608_v40, %v3426_v62  ;;  %v3441_v57 = vshrl.u32 %v10609_v16, %v3426_v62 }
 0x319   :  { %5382 = vsinq.f32 %v3291_v56  ;;  %v3430_v31 = vor.u32 %v3429_v5, %v3428_v39  ;;  %v3433_v3 = vor.u32 %v3432_v53, %v3431_v0  ;;  %v3436_v15 = vor.u32 %v3435_v1, %v3434_v26 }
 0x31a   :  { %v5086_v28 = vmin.u32 %v2541_v10, %v8504_v38  ;;  %v3439_v49 = vor.u32 %v3438_v8, %v3437_v36  ;;  %v3440_v21 = vshll.u32 %v10608_v40, %v3425_v55  ;;  %v2686_v43 = vand.u32 2139095040, %v8495_v48 }
 0x31b   :  { %vm3299_vm9 = vcmp.eq.s32.totalorder %v8484_v29, 0  ;;  %vm2477_vm10 = vcmp.lt.s32.totalorder %v8329_v14, 0  ;;  %v3427_v41 = vshrl.u32 %v10603_v50, %v3426_v62  ;;  %vm3443_vm11 = vcmp.lt.s32.totalorder %v3424_v59, 1 }
 0x31c   :  { %v2543_v24 = vclz %v5086_v28  ;;  %vm3444_vm12 = vcmp.lt.s32.totalorder %v3424_v59, 2  ;;  %vm3298_vm14 = vcmp.lt.s32.totalorder %v8484_v29, 2  ;;  %v3442_v44 = vor.u32 %v3441_v57, %v3440_v21 }
 0x31d   :  { %vm3445_vm1 = vcmp.lt.s32.totalorder %v3424_v59, 3  ;;  %vm3446_vm15 = vcmp.lt.s32.totalorder %v3424_v59, 4  ;;  %v3451_v54 = vsel %vm3443_vm11, %v3430_v31, %v3433_v3  ;;  %vm3295_vm2 = vweird.f32 %v8197_v2 }
 0x31e   :  { %v5087_v45 = vadd.s32 4294967294, %v2543_v24  ;;  %v3448_v34 = vsel %vm3446_vm15, %v3436_v15, 2102212464  ;;  %v3452_v11 = vsel %vm3446_vm15, %v3439_v49, 920167782  ;;  %v3455_v46 = vsel %vm3443_vm11, %v3433_v3, %v3436_v15 }
 0x31f   :  { %v3447_v47 = vsel %vm3443_vm11, %v3427_v41, %v3430_v31  ;;  %v3449_v20 = vsel %vm3445_vm1, %v3433_v3, %v3448_v34  ;;  %v3453_v19 = vsel %vm3445_vm1, %v3436_v15, %v3452_v11  ;;  %v3456_v27 = vsel %vm3446_vm15, %v3442_v44, 1326507024  ;;  %v10652_v11 = vld [vmem:[#allocation63_spill] sm:$0xff] }
 0x320   :  { %vm5088_vm0 = vcmp.lt.s32.totalorder %v5087_v45, 0  ;;  %v3454_v55 = vsel %vm3444_vm12, %v3451_v54, %v3453_v19  ;;  %v3457_v23 = vsel %vm3445_vm1, %v3439_v49, %v3456_v27  ;;  %v2687_v13 = vshrl.u32 %v2686_v43, 23 }
 0x321   :  { %v2546_v25 = vsel %vm5088_vm0, 0, %v5087_v45  ;;  %v3458_v56 = vsel %vm3444_vm12, %v3455_v46, %v3457_v23  ;;  %v8530_v39 = vmul.u32.u64.low %v8492_v4, %v3454_v55  ;;  %v8531_v5 = vmul.u32.u64.high %v8492_v4, %v3454_v55, %v8530_v39  ;;  %v10654_v23 = vld [vmem:[#allocation8_spill] sm:$0xff] }
 0x322   :  { %v5381_v62 = vpop.eup %5380  ;;  %v2547_v10 = vsub.s32 32, %v2546_v25  ;;  %v2551_v26 = vsub.s32 4294967266, %v2546_v25  ;;  %v3450_v1 = vsel %vm3444_vm12, %v3447_v47, %v3449_v20  ;;  %v2548_v3 = vshll.u32 %v8504_v38, %v2546_v25 }
 0x323   :  { %v5383_v0 = vpop.eup %5382  ;;  %v3303_v53 = vxor.u32 2147483648, %v5381_v62  ;;  %v8537_v36 = vmul.u32.u64.low %v8492_v4, %v3458_v56  ;;  %v8538_v8 = vmul.u32.u64.high %v8492_v4, %v3458_v56, %v8537_v36  ;;  %v5093_v49 = vadd.s32 4294967169, %v2687_v13 }
 0x324   :  { %v3300_v31 = vxor.u32 2147483648, %v5383_v0  ;;  %v2549_v15 = vshrl.u32 %v8487_v12, %v2547_v10  ;;  %v2552_v57 = vadd.s32 127, %v2551_v26  ;;  %v2562_v59 = vsel %vm2477_vm10, %v2561_v60, %v8476_v22 }
 0x325   :  { %v3304_v28 = vsel %vm3302_vm8, %v3303_v53, %v5383_v0  ;;  %v3469_v38 = vadd.s32 1, %v8531_v5  ;;  %v1560_v43 = vmul.f32 %v7196_v58, %v8478_v42  ;;  %v2693_v12 = vadd.s32 1, %v5093_v49 }
 0x326   :  { %v3301_v21 = vsel %vm3299_vm9, %v5381_v62, %v3300_v31  ;;  %v2550_v41 = vor.u32 %v2549_v15, %v2548_v3  ;;  %v2553_v44 = vshll.u32 %v2552_v57, 23  ;;  %vm8557_vm3 = vcmp.le.f32.partialorder %v2475_v6, 0.7853982 }
 0x327   :  { %v3305_v24 = vsel %vm3298_vm14, %v3301_v21, %v3304_v28  ;;  %v3466_v22 = vmul.u32 %v8492_v4, %v3450_v1  ;;  %vm3468_vm4 = vc.u32 %v8538_v8, %v8530_v39  ;;  %v2690_v2 = vand.u32 8388607, %v2683_v32 }
 0x328   :  { %v3306_v54 = vsel %vm3295_vm2, nan, %v3305_v24  ;;  %v2554_v29 = vor.u32 4788187, %v2553_v44  ;;  %v3470_v60 = vsel %vm3468_vm4, %v3469_v38, %v8531_v5  ;;  %v2564_v34 = vsel %vm8557_vm3, 0, %v2562_v59 }
 0x329   :  { %v4986_v42 = vadd.f32 %v3306_v54, %v8076_v30  ;;  %v3471_v6 = vadd.s32 %v3470_v60, %v3466_v22  ;;  %vm2694_vm5 = vcmp.gt.s32.totalorder %v2693_v12, 0  ;;  %v8571_v46 = vadd.f32 %v1560_v43, %v10652_v11  ;;  %v10653_v30 = vld [vmem:[#allocation62_spill] sm:$0xff] }
 0x32a   :  { %v2555_v4 = vand.u32 2147483647, %v2554_v29  ;;  %v2557_v47 = vcvt.s32.f32 %v2550_v41  ;;  %v2695_v20 = vsel %vm2694_vm5, %v2693_v12, 0  ;;  %v1524_v19 = vadd.f32 %v8499_v7, %v10653_v30  ;;  %v1391_v30 = vpop.permute.xlu1 %1390 }
 0x32b   :  { %5019 = vst.msk [vmem:[#allocation2 + $0x78] sm:$0xff] %vm5003_vm13, %v4986_v42  ;;  %v3472_v27 = vadd.s32 536870912, %v3471_v6  ;;  %v2697_v55 = vand.u32 31, %v2695_v20  ;;  %v8578_v13 = vadd.f32 %v8482_v17, %v10654_v23  ;;  %v2568_v25 = vadd.s32 3, %v2564_v34 }
 0x32c   :  { %v2558_v62 = vmul.f32 %v2557_v47, %v2555_v4  ;;  %v8582_v56 = vmul.f32 %v7196_v58, %v8376_v33  ;;  %v2691_v10 = vor.u32 8388608, %v2690_v2  ;;  %v8586_v26 = vshrl.u32 %v2695_v20, 5 }
 0x32d   :  { %v8584_v5 = vshrl.u32 %v3472_v27, 30  ;;  %v2698_v0 = vsub.s32 32, %v2697_v55  ;;  %v8589_v7 = vadd.f32 %v8194_v37, %v1524_v19  ;;  %v2700_v17 = vshll.u32 %v10603_v50, %v2697_v55 }
 0x32e   :  { %v2559_v53 = vxor.u32 2147483648, %v2558_v62  ;;  %v2703_v3 = vshll.u32 %v10605_v63, %v2697_v55  ;;  %v2706_v49 = vshll.u32 %v10606_v51, %v2697_v55  ;;  %v2709_v21 = vshll.u32 %v10607_v52, %v2697_v55 }
 0x32f   :  { %v3474_v1 = vshll.u32 %v8584_v5, 30  ;;  %v2701_v31 = vshrl.u32 %v10605_v63, %v2698_v0  ;;  %v2704_v36 = vshrl.u32 %v10606_v51, %v2698_v0  ;;  %v2707_v28 = vshrl.u32 %v10607_v52, %v2698_v0 }
 0x330   :  { %v2560_v33 = vsel %vm2477_vm10, %v2559_v53, %v2558_v62  ;;  %v2710_v15 = vshrl.u32 %v10608_v40, %v2698_v0  ;;  %v8607_v59 = vand.u32 3, %v2568_v25  ;;  %v3467_v12 = vadd.s32 %v8530_v39, %v8538_v8 }
 0x331   :  { %v2563_v37 = vsel %vm8557_vm3, %v8329_v14, %v2560_v33  ;;  %v8603_v57 = vsub.s32 %v3471_v6, %v3474_v1  ;;  %v2702_v38 = vor.u32 %v2701_v31, %v2700_v17  ;;  %v2705_v43 = vor.u32 %v2704_v36, %v2703_v3 }
 0x332   :  { %5384 = vcosq.f32 %v2563_v37  ;;  %v2708_v41 = vor.u32 %v2707_v28, %v2706_v49  ;;  %v2711_v44 = vor.u32 %v2710_v15, %v2709_v21  ;;  %v2712_v54 = vshll.u32 %v10608_v40, %v2697_v55 }
 0x333   :  { %5386 = vsinq.f32 %v2563_v37  ;;  %v3477_v24 = vsub.s32 0, %v8603_v57  ;;  %v2713_v45 = vshrl.u32 %v10609_v16, %v2698_v0  ;;  %v8614_v22 = vshll.u32 %v2691_v10, 8 }
 0x334   :  { %vm3413_vm6 = vcmp.lt.s32.totalorder %v8418_v61, 0  ;;  %vm2715_vm7 = vcmp.lt.s32.totalorder %v8586_v26, 1  ;;  %vm2718_vm8 = vcmp.lt.s32.totalorder %v8586_v26, 4  ;;  %v3622_v29 = vand.u32 2139095040, %v8589_v7 }
 0x335   :  { %v5122_v42 = vmin.u32 %v3477_v24, %v8603_v57  ;;  %vm2574_vm9 = vcmp.eq.s32.totalorder %v8607_v59, 2  ;;  %v3497_v39 = vsub.s32 4, %v8584_v5  ;;  %v2714_v8 = vor.u32 %v2713_v45, %v2712_v54 }
 0x336   :  { %v2723_v60 = vsel %vm2715_vm7, %v2702_v38, %v2705_v43  ;;  %v2724_v2 = vsel %vm2718_vm8, %v2711_v44, 920167782  ;;  %vm2571_vm10 = vcmp.eq.s32.totalorder %v8607_v59, 0  ;;  %v2699_v6 = vshrl.u32 %v10603_v50, %v2698_v0 }
 0x337   :  { %v3479_v34 = vclz %v5122_v42  ;;  %vm2717_vm11 = vcmp.lt.s32.totalorder %v8586_v26, 3  ;;  %v2720_v11 = vsel %vm2718_vm8, %v2708_v41, 2102212464  ;;  %vm2570_vm12 = vcmp.lt.s32.totalorder %v8607_v59, 2 }
 0x338   :  { %vm2716_vm14 = vcmp.lt.s32.totalorder %v8586_v26, 2  ;;  %v2725_v4 = vsel %vm2717_vm11, %v2708_v41, %v2724_v2  ;;  %v2727_v47 = vsel %vm2715_vm7, %v2705_v43, %v2708_v41  ;;  %v2728_v20 = vsel %vm2718_vm8, %v2714_v8, 1326507024 }
 0x339   :  { %vm2567_vm1 = vweird.f32 %v8329_v14  ;;  %v5123_v19 = vadd.s32 4294967294, %v3479_v34  ;;  %v2719_v27 = vsel %vm2715_vm7, %v2699_v6, %v2702_v38  ;;  %v2726_v55 = vsel %vm2716_vm14, %v2723_v60, %v2725_v4  ;;  %v10657_v6 = vld [vmem:[#allocation44_spill] sm:$0xff] }
 0x33a   :  { %v2729_v23 = vsel %vm2717_vm11, %v2711_v44, %v2728_v20  ;;  %v2721_v62 = vsel %vm2717_vm11, %v2705_v43, %v2720_v11  ;;  %v8646_v0 = vmul.u32.u64.low %v8614_v22, %v2726_v55  ;;  %v8647_v53 = vmul.u32.u64.high %v8614_v22, %v2726_v55, %v8646_v0  ;;  %v10658_v55 = vld [vmem:[#allocation59_spill] sm:$0xff] }
 0x33b   :  { %v2730_v25 = vsel %vm2716_vm14, %v2727_v47, %v2729_v23  ;;  %vm8652_vm15 = vcmp.le.f32.partialorder %v3411_v35, 0.7853982  ;;  %vm5124_vm2 = vcmp.lt.s32.totalorder %v5123_v19, 0  ;;  %v1485_v31 = vmul.f32 %v7193_v18, %v1391_v30 }
 0x33c   :  { %v8657_v1 = vmul.u32.u64.low %v8614_v22, %v2730_v25  ;;  %v8658_v17 = vmul.u32.u64.high %v8614_v22, %v2730_v25, %v8657_v1  ;;  %v5385_v3 = vpop.eup %5384  ;;  %v3482_v33 = vsel %vm5124_vm2, 0, %v5123_v19  ;;  %v3619_v36 = vand.u32 2147483647, %v8589_v7 }
 0x33d   :  { %v3623_v28 = vshrl.u32 %v3622_v29, 23  ;;  %v1553_v15 = vmul.f32 %v7196_v58, %v1391_v30  ;;  %v5387_v37 = vpop.eup %5386  ;;  %v2575_v49 = vxor.u32 2147483648, %v5385_v3  ;;  %v3483_v35 = vsub.s32 32, %v3482_v33 }
 0x33e   :  { %v3487_v21 = vsub.s32 4294967266, %v3482_v33  ;;  %v2722_v38 = vsel %vm2716_vm14, %v2719_v27, %v2721_v62  ;;  %v2572_v43 = vxor.u32 2147483648, %v5387_v37  ;;  %v3498_v24 = vsel %vm3413_vm6, %v3497_v39, %v8584_v5 }
 0x33f   :  { %v2741_v41 = vadd.s32 1, %v8647_v53  ;;  %v5129_v44 = vadd.s32 4294967169, %v3623_v28  ;;  %v2576_v54 = vsel %vm2574_vm9, %v2575_v49, %v5387_v37  ;;  %v3484_v45 = vshll.u32 %v8603_v57, %v3482_v33 }
 0x340   :  { %v3485_v42 = vshrl.u32 %v3467_v12, %v3483_v35  ;;  %v3488_v29 = vadd.s32 127, %v3487_v21  ;;  %v2573_v8 = vsel %vm2571_vm10, %v5385_v3, %v2572_v43  ;;  %v2738_v26 = vmul.u32 %v8614_v22, %v2722_v38  ;;  %v10659_v3 = vld [vmem:[#allocation19_spill] sm:$0xff] }
 0x341   :  { %vm2740_vm0 = vc.u32 %v8658_v17, %v8646_v0  ;;  %v3629_v60 = vadd.s32 1, %v5129_v44  ;;  %v2577_v5 = vsel %vm2570_vm12, %v2573_v8, %v2576_v54  ;;  %v8683_v11 = vadd.f32 %v1553_v15, %v10657_v6  ;;  %v8731_v6 = vld [vmem:[%s10274_s3] ss:$0 sm:$0xff] }
 0x342   :  { %v3486_v39 = vor.u32 %v3485_v42, %v3484_v45  ;;  %v3489_v2 = vshll.u32 %v3488_v29, 23  ;;  %v2742_v34 = vsel %vm2740_vm0, %v2741_v41, %v8647_v53  ;;  %v2578_v57 = vsel %vm2567_vm1, nan, %v2577_v5  ;;  %v1427_v5 = vpop.permute.xlu0 %1426 }
 0x343   :  { %v2743_v12 = vadd.s32 %v2742_v34, %v2738_v26  ;;  %vm3630_vm3 = vcmp.gt.s32.totalorder %v3629_v60, 0  ;;  %v4979_v22 = vadd.f32 %v2578_v57, %v8578_v13  ;;  %v3626_v47 = vand.u32 8388607, %v3619_v36 }
 0x344   :  { %v3490_v4 = vor.u32 4788187, %v3489_v2  ;;  %v3631_v59 = vsel %vm3630_vm3, %v3629_v60, 0  ;;  %v3500_v20 = vsel %vm8652_vm15, 0, %v3498_v24  ;;  %v3493_v27 = vcvt.s32.f32 %v3486_v39 }
 0x345   :  { %v2744_v30 = vadd.s32 536870912, %v2743_v12  ;;  %v3633_v19 = vand.u32 31, %v3631_v59  ;;  %5012 = vst.msk [vmem:[#allocation2 + $0x40] sm:$0xff] %vm5003_vm13, %v4979_v22  ;;  %v8693_v23 = vadd.f32 %v8582_v56, %v10658_v55  ;;  %v3504_v53 = vadd.s32 3, %v3500_v20 }
 0x346   :  { %v3491_v14 = vand.u32 2147483647, %v3490_v4  ;;  %v3627_v1 = vor.u32 8388608, %v3626_v47  ;;  %v1517_v33 = vadd.f32 %v1485_v31, %v10659_v3  ;;  %v8696_v15 = vshrl.u32 %v3631_v59, 5 }
 0x347   :  { %v2745_v62 = vshrl.u32 %v2744_v30, 30  ;;  %v3634_v13 = vsub.s32 32, %v3633_v19  ;;  %v3636_v37 = vshll.u32 %v10603_v50, %v3633_v19  ;;  %vm2685_vm4 = vcmp.lt.s32.totalorder %v8495_v48, 0 }
 0x348   :  { %v3494_v25 = vmul.f32 %v3493_v27, %v3491_v14  ;;  %v3639_v31 = vshll.u32 %v10605_v63, %v3633_v19  ;;  %v3642_v24 = vshll.u32 %v10606_v51, %v3633_v19  ;;  %v3645_v45 = vshll.u32 %v10607_v52, %v3633_v19 }
 0x349   :  { %v2746_v28 = vshll.u32 %v2745_v62, 30  ;;  %v3637_v49 = vshrl.u32 %v10605_v63, %v3634_v13  ;;  %v3640_v21 = vshrl.u32 %v10606_v51, %v3634_v13  ;;  %v3643_v56 = vshrl.u32 %v10607_v52, %v3634_v13 }
 0x34a   :  { %v3495_v35 = vxor.u32 2147483648, %v3494_v25  ;;  %v3646_v38 = vshrl.u32 %v10608_v40, %v3634_v13  ;;  %v3649_v41 = vshrl.u32 %v10609_v16, %v3634_v13  ;;  %v3648_v42 = vshll.u32 %v10608_v40, %v3633_v19 }
 0x34b   :  { %v8704_v43 = vsub.s32 %v2743_v12, %v2746_v28  ;;  %v3638_v54 = vor.u32 %v3637_v49, %v3636_v37  ;;  %v3641_v26 = vor.u32 %v3640_v21, %v3639_v31  ;;  %v3644_v60 = vor.u32 %v3643_v56, %v3642_v24 }
 0x34c   :  { %v3496_v44 = vsel %vm3413_vm6, %v3495_v35, %v3494_v25  ;;  %v8717_v39 = vand.u32 3, %v3504_v53  ;;  %vm8721_vm5 = vcmp.le.f32.partialorder %v2683_v32, 0.7853982  ;;  %v3647_v34 = vor.u32 %v3646_v38, %v3645_v45 }
 0x34d   :  { %v3499_v29 = vsel %vm8652_vm15, %v8418_v61, %v3496_v44  ;;  %v2749_v8 = vsub.s32 0, %v8704_v43  ;;  %v3650_v57 = vor.u32 %v3649_v41, %v3648_v42  ;;  %v8726_v12 = vshll.u32 %v3627_v1, 8 }
 0x34e   :  { %5388 = vcosq.f32 %v3499_v29  ;;  %v8734_v22 = vadd.f32 %v8731_v6, %v1517_v33  ;;  %v2769_v4 = vsub.s32 4, %v2745_v62  ;;  %vm3651_vm6 = vcmp.lt.s32.totalorder %v8696_v15, 1 }
 0x34f   :  { %5390 = vsinq.f32 %v3499_v29  ;;  %v5094_v10 = vmin.u32 %v2749_v8, %v8704_v43  ;;  %vm3653_vm7 = vcmp.lt.s32.totalorder %v8696_v15, 3  ;;  %v1562_v32 = vmul.f32 %v7196_v58, %v1427_v5 }
 0x350   :  { %vm3654_vm8 = vcmp.lt.s32.totalorder %v8696_v15, 4  ;;  %v3659_v59 = vsel %vm3651_vm6, %v3638_v54, %v3641_v26  ;;  %v3663_v20 = vsel %vm3651_vm6, %v3641_v26, %v3644_v60  ;;  %vm3510_vm9 = vcmp.eq.s32.totalorder %v8717_v39, 2 }
 0x351   :  { %v2751_v47 = vclz %v5094_v10  ;;  %v3635_v30 = vshrl.u32 %v10603_v50, %v3634_v13  ;;  %v3656_v19 = vsel %vm3654_vm8, %v3644_v60, 2102212464  ;;  %v3660_v14 = vsel %vm3654_vm8, %v3647_v34, 920167782 }
 0x352   :  { %v3664_v27 = vsel %vm3654_vm8, %v3650_v57, 1326507024  ;;  %vm3507_vm10 = vcmp.eq.s32.totalorder %v8717_v39, 0  ;;  %vm3652_vm11 = vcmp.lt.s32.totalorder %v8696_v15, 2  ;;  %v3661_v25 = vsel %vm3653_vm7, %v3644_v60, %v3660_v14 }
 0x353   :  { %v5095_v55 = vadd.s32 4294967294, %v2751_v47  ;;  %v3665_v53 = vsel %vm3653_vm7, %v3647_v34, %v3664_v27  ;;  %vm3506_vm12 = vcmp.lt.s32.totalorder %v8717_v39, 2  ;;  %v2770_v1 = vsel %vm2685_vm4, %v2769_v4, %v2745_v62 }
 0x354   :  { %v3655_v13 = vsel %vm3651_vm6, %v3635_v30, %v3638_v54  ;;  %v3662_v3 = vsel %vm3652_vm11, %v3659_v59, %v3661_v25  ;;  %v3666_v33 = vsel %vm3652_vm11, %v3663_v20, %v3665_v53  ;;  %v3657_v28 = vsel %vm3653_vm7, %v3641_v26, %v3656_v19  ;;  %v10663_v30 = vld [vmem:[#allocation20_spill] sm:$0xff] }
 0x355   :  { %vm5096_vm14 = vcmp.lt.s32.totalorder %v5095_v55, 0  ;;  %v8764_v37 = vmul.u32.u64.low %v8726_v12, %v3666_v33  ;;  %v8765_v49 = vmul.u32.u64.high %v8726_v12, %v3666_v33, %v8764_v37  ;;  %v2739_v62 = vadd.s32 %v8646_v0, %v8658_v17  ;;  %v10662_v17 = vld [vmem:[#allocation35_spill] sm:$0xff] }
 0x356   :  { %v2754_v35 = vsel %vm5096_vm14, 0, %v5095_v55  ;;  %v8770_v21 = vmul.u32.u64.low %v8726_v12, %v3662_v3  ;;  %v8771_v56 = vmul.u32.u64.high %v8726_v12, %v3662_v3, %v8770_v21  ;;  %v2772_v24 = vsel %vm8721_vm5, 0, %v2770_v1  ;;  %v8799_v37 = vpop.permute.xlu1 %1398 }
 0x357   :  { %v2755_v38 = vsub.s32 32, %v2754_v35  ;;  %v2759_v31 = vsub.s32 4294967266, %v2754_v35  ;;  %v1494_v41 = vmul.f32 %v7193_v18, %v1427_v5  ;;  %v3658_v54 = vsel %vm3652_vm11, %v3655_v13, %v3657_v28 }
 0x358   :  { %v5389_v44 = vpop.eup %5388  ;;  %v2891_v45 = vand.u32 2147483647, %v8734_v22  ;;  %v2894_v0 = vand.u32 2139095040, %v8734_v22  ;;  %v8781_v42 = vadd.f32 %v1562_v32, %v10662_v17  ;;  %v2756_v26 = vshll.u32 %v8704_v43, %v2754_v35 }
 0x359   :  { %v5391_v29 = vpop.eup %5390  ;;  %v3511_v8 = vxor.u32 2147483648, %v5389_v44  ;;  %v2757_v60 = vshrl.u32 %v2739_v62, %v2755_v38  ;;  %v2760_v34 = vadd.s32 127, %v2759_v31  ;;  %vm3676_vm1 = vc.u32 %v8765_v49, %v8770_v21 }
 0x35a   :  { %v3508_v57 = vxor.u32 2147483648, %v5391_v29  ;;  %v3677_v5 = vadd.s32 1, %v8771_v56  ;;  %v2895_v15 = vshrl.u32 %v2894_v0, 23  ;;  %v3674_v32 = vmul.u32 %v8726_v12, %v3658_v54 }
 0x35b   :  { %v3512_v10 = vsel %vm3510_vm9, %v3511_v8, %v5391_v29  ;;  %v2758_v4 = vor.u32 %v2757_v60, %v2756_v26  ;;  %v2761_v47 = vshll.u32 %v2760_v34, 23  ;;  %v1526_v19 = vadd.f32 %v1494_v41, %v10663_v30 }
 0x35c   :  { %v3509_v59 = vsel %vm3507_vm10, %v5389_v44, %v3508_v57  ;;  %v3678_v43 = vsel %vm3676_vm1, %v3677_v5, %v8771_v56  ;;  %v5101_v20 = vadd.s32 4294967169, %v2895_v15  ;;  %vm3503_vm15 = vweird.f32 %v8418_v61  ;;  %v10664_v56 = vld [vmem:[#allocation18_spill] sm:$0xff] }
 0x35d   :  { %v3513_v14 = vsel %vm3506_vm12, %v3509_v59, %v3512_v10  ;;  %v2762_v27 = vor.u32 4788187, %v2761_v47  ;;  %v3679_v55 = vadd.s32 %v3678_v43, %v3674_v32  ;;  %v1551_v53 = vmul.f32 %v7196_v58, %v8445_v9 }
 0x35e   :  { %v3514_v25 = vsel %vm3503_vm15, nan, %v3513_v14  ;;  %v2776_v12 = vadd.s32 3, %v2772_v24  ;;  %v2901_v1 = vadd.s32 1, %v5101_v20  ;;  %v2765_v33 = vcvt.s32.f32 %v2758_v4 }
 0x35f   :  { %v4988_v13 = vadd.f32 %v3514_v25, %v8693_v23  ;;  %v2763_v3 = vand.u32 2147483647, %v2762_v27  ;;  %v3680_v28 = vadd.s32 536870912, %v3679_v55  ;;  %v2898_v61 = vand.u32 8388607, %v2891_v45 }
 0x360   :  { %vm2902_vm2 = vcmp.gt.s32.totalorder %v2901_v1, 0  ;;  %v8804_v39 = vadd.f32 %v8731_v6, %v1526_v19  ;;  %v8808_v38 = vadd.f32 %v1551_v53, %v10664_v56  ;;  %vm3621_vm0 = vcmp.lt.s32.totalorder %v8589_v7, 0 }
 0x361   :  { %5021 = vst.msk [vmem:[#allocation2 + $0x88] sm:$0xff] %vm5003_vm13, %v4988_v13  ;;  %v2766_v62 = vmul.f32 %v2765_v33, %v2763_v3  ;;  %v3681_v9 = vshrl.u32 %v3680_v28, 30  ;;  %v2903_v35 = vsel %vm2902_vm2, %v2901_v1, 0  ;;  %v8813_v31 = vmul.f32 %v7193_v18, %v8799_v37 }
 0x362   :  { %v2905_v23 = vand.u32 31, %v2903_v35  ;;  %v8815_v41 = vand.u32 3, %v2776_v12  ;;  %vm8819_vm3 = vcmp.le.f32.partialorder %v3619_v36, 0.7853982  ;;  %v8824_v54 = vadd.s32 %v8770_v21, %v8765_v49 }
 0x363   :  { %v2767_v24 = vxor.u32 2147483648, %v2766_v62  ;;  %v3682_v0 = vshll.u32 %v3681_v9, 30  ;;  %v2899_v17 = vor.u32 8388608, %v2898_v61  ;;  %v3827_v8 = vand.u32 2147483647, %v8804_v39 }
 0x364   :  { %v2906_v29 = vsub.s32 32, %v2905_v23  ;;  %v3830_v26 = vand.u32 2139095040, %v8804_v39  ;;  %v3705_v57 = vsub.s32 4, %v3681_v9  ;;  %v8832_v36 = vshrl.u32 %v2903_v35, 5 }
 0x365   :  { %v2768_v60 = vsel %vm2685_vm4, %v2767_v24, %v2766_v62  ;;  %v8830_v34 = vsub.s32 %v3679_v55, %v3682_v0  ;;  %v2908_v21 = vshll.u32 %v10603_v50, %v2905_v23  ;;  %v2911_v15 = vshll.u32 %v10605_v63, %v2905_v23 }
 0x366   :  { %v2771_v49 = vsel %vm8721_vm5, %v8495_v48, %v2768_v60  ;;  %v2909_v5 = vshrl.u32 %v10605_v63, %v2906_v29  ;;  %v2912_v4 = vshrl.u32 %v10606_v51, %v2906_v29  ;;  %v2914_v47 = vshll.u32 %v10606_v51, %v2905_v23 }
 0x367   :  { %5392 = vcosq.f32 %v2771_v49  ;;  %v3685_v10 = vsub.s32 0, %v8830_v34  ;;  %v2915_v32 = vshrl.u32 %v10607_v52, %v2906_v29  ;;  %v2917_v59 = vshll.u32 %v10607_v52, %v2905_v23 }
 0x368   :  { %5394 = vsinq.f32 %v2771_v49  ;;  %v2918_v2 = vshrl.u32 %v10608_v40, %v2906_v29  ;;  %v3706_v20 = vsel %vm3621_vm0, %v3705_v57, %v3681_v9  ;;  %v2910_v30 = vor.u32 %v2909_v5, %v2908_v21 }
 0x369   :  { %v5130_v43 = vmin.u32 %v3685_v10, %v8830_v34  ;;  %v2913_v19 = vor.u32 %v2912_v4, %v2911_v15  ;;  %v2916_v14 = vor.u32 %v2915_v32, %v2914_v47  ;;  %v2920_v55 = vshll.u32 %v10608_v40, %v2905_v23 }
 0x36a   :  { %v2919_v27 = vor.u32 %v2918_v2, %v2917_v59  ;;  %v2921_v25 = vshrl.u32 %v10609_v16, %v2906_v29  ;;  %vm2782_vm4 = vcmp.eq.s32.totalorder %v8815_v41, 2  ;;  %v8852_v12 = vshll.u32 %v2899_v17, 8 }
 0x36b   :  { %v3687_v53 = vclz %v5130_v43  ;;  %v3831_v1 = vshrl.u32 %v3830_v26, 23  ;;  %v8856_v13 = vand.u32 8388607, %v3827_v8  ;;  %vm2779_vm5 = vcmp.eq.s32.totalorder %v8815_v41, 0 }
 0x36c   :  { %v3708_v3 = vsel %vm8819_vm3, 0, %v3706_v20  ;;  %v2907_v33 = vshrl.u32 %v10603_v50, %v2906_v29  ;;  %v2922_v28 = vor.u32 %v2921_v25, %v2920_v55  ;;  %vm2926_vm6 = vcmp.lt.s32.totalorder %v8832_v36, 4 }
 0x36d   :  { %vm2778_vm7 = vcmp.lt.s32.totalorder %v8815_v41, 2  ;;  %v5131_v61 = vadd.s32 4294967294, %v3687_v53  ;;  %vm2923_vm8 = vcmp.lt.s32.totalorder %v8832_v36, 1  ;;  %vm2925_vm9 = vcmp.lt.s32.totalorder %v8832_v36, 3 }
 0x36e   :  { %v2928_v62 = vsel %vm2926_vm6, %v2916_v14, 2102212464  ;;  %v2931_v9 = vsel %vm2923_vm8, %v2910_v30, %v2913_v19  ;;  %v2932_v35 = vsel %vm2926_vm6, %v2919_v27, 920167782  ;;  %v2935_v56 = vsel %vm2923_vm8, %v2913_v19, %v2916_v14 }
 0x36f   :  { %v2936_v23 = vsel %vm2926_vm6, %v2922_v28, 1326507024  ;;  %vm5132_vm10 = vcmp.lt.s32.totalorder %v5131_v61, 0  ;;  %vm2924_vm11 = vcmp.lt.s32.totalorder %v8832_v36, 2  ;;  %v2933_v24 = vsel %vm2925_vm9, %v2916_v14, %v2932_v35 }
 0x370   :  { %v2937_v0 = vsel %vm2925_vm9, %v2919_v27, %v2936_v23  ;;  %v3690_v17 = vsel %vm5132_vm10, 0, %v5131_v61  ;;  %v2927_v29 = vsel %vm2923_vm8, %v2907_v33, %v2910_v30  ;;  %v2929_v26 = vsel %vm2925_vm9, %v2913_v19, %v2928_v62 }
 0x371   :  { %v2938_v60 = vsel %vm2924_vm11, %v2935_v56, %v2937_v0  ;;  %v5393_v57 = vpop.eup %5392  ;;  %v3691_v49 = vsub.s32 32, %v3690_v17  ;;  %v3695_v21 = vsub.s32 4294967266, %v3690_v17  ;;  %v2934_v5 = vsel %vm2924_vm11, %v2931_v9, %v2933_v24 }
 0x372   :  { %v5137_v15 = vadd.s32 4294967169, %v3831_v1  ;;  %v5395_v10 = vpop.eup %5394  ;;  %v2783_v4 = vxor.u32 2147483648, %v5393_v57  ;;  %v3692_v47 = vshll.u32 %v8830_v34, %v3690_v17  ;;  %v3712_v14 = vadd.s32 3, %v3708_v3 }
 0x373   :  { %v8873_v32 = vmul.u32.u64.low %v8852_v12, %v2938_v60  ;;  %v8874_v59 = vmul.u32.u64.high %v8852_v12, %v2938_v60, %v8873_v32  ;;  %v2780_v2 = vxor.u32 2147483648, %v5395_v10  ;;  %v3693_v43 = vshrl.u32 %v8824_v54, %v3691_v49 }
 0x374   :  { %v3696_v20 = vadd.s32 127, %v3695_v21  ;;  %v3837_v30 = vadd.s32 1, %v5137_v15  ;;  %v2784_v19 = vsel %vm2782_vm4, %v2783_v4, %v5395_v10  ;;  %vm2775_vm14 = vweird.f32 %v8495_v48  ;;  %v10667_v48 = vld [vmem:[#allocation5_spill] sm:$0xff] }
 0x375   :  { %v8880_v27 = vmul.u32.u64.low %v8852_v12, %v2934_v5  ;;  %v8881_v55 = vmul.u32.u64.high %v8852_v12, %v2934_v5, %v8880_v27  ;;  %v2781_v34 = vsel %vm2779_vm5, %v5393_v57, %v2780_v2  ;;  %v3694_v25 = vor.u32 %v3693_v43, %v3692_v47 }
 0x376   :  { %v3697_v53 = vshll.u32 %v3696_v20, 23  ;;  %vm3838_vm12 = vcmp.gt.s32.totalorder %v3837_v30, 0  ;;  %v2785_v54 = vsel %vm2778_vm7, %v2781_v34, %v2784_v19  ;;  %v2930_v1 = vsel %vm2924_vm11, %v2927_v29, %v2929_v26 }
 0x377   :  { %v3839_v3 = vsel %vm3838_vm12, %v3837_v30, 0  ;;  %v2786_v33 = vsel %vm2775_vm14, nan, %v2785_v54  ;;  %vm2948_vm1 = vc.u32 %v8874_v59, %v8880_v27  ;;  %v3835_v61 = vor.u32 8388608, %v8856_v13 }
 0x378   :  { %v3698_v28 = vor.u32 4788187, %v3697_v53  ;;  %v4981_v62 = vadd.f32 %v2786_v33, %v8808_v38  ;;  %v2949_v9 = vadd.s32 1, %v8881_v55  ;;  %v3841_v35 = vand.u32 31, %v3839_v3 }
 0x379   :  { %v1519_v41 = vadd.f32 %v8813_v31, %v10667_v48  ;;  %v3701_v23 = vcvt.s32.f32 %v3694_v25  ;;  %v8898_v36 = vand.u32 3, %v3712_v14  ;;  %v2946_v24 = vmul.u32 %v8852_v12, %v2930_v1 }
 0x37a   :  { %v3699_v56 = vand.u32 2147483647, %v3698_v28  ;;  %5014 = vst.msk [vmem:[#allocation2 + $0x50] sm:$0xff] %vm5003_vm13, %v4981_v62  ;;  %v2950_v0 = vsel %vm2948_vm1, %v2949_v9, %v8881_v55  ;;  %v3840_v17 = vshrl.u32 %v3839_v3, 5  ;;  %v3842_v13 = vsub.s32 32, %v3841_v35 }
 0x37b   :  { %v3844_v38 = vshll.u32 %v10603_v50, %v3841_v35  ;;  %v2951_v26 = vadd.s32 %v2950_v0, %v2946_v24  ;;  %v3847_v60 = vshll.u32 %v10605_v63, %v3841_v35  ;;  %v3850_v31 = vshll.u32 %v10606_v51, %v3841_v35 }
 0x37c   :  { %v3702_v29 = vmul.f32 %v3701_v23, %v3699_v56  ;;  %v3845_v57 = vshrl.u32 %v10605_v63, %v3842_v13  ;;  %v3848_v49 = vshrl.u32 %v10606_v51, %v3842_v13  ;;  %v3851_v12 = vshrl.u32 %v10607_v52, %v3842_v13 }
 0x37d   :  { %v3853_v21 = vshll.u32 %v10607_v52, %v3841_v35  ;;  %v2952_v15 = vadd.s32 536870912, %v2951_v26  ;;  %v3854_v10 = vshrl.u32 %v10608_v40, %v3842_v13  ;;  %v3856_v4 = vshll.u32 %v10608_v40, %v3841_v35 }
 0x37e   :  { %v3703_v5 = vxor.u32 2147483648, %v3702_v29  ;;  %v3846_v47 = vor.u32 %v3845_v57, %v3844_v38  ;;  %v3849_v32 = vor.u32 %v3848_v49, %v3847_v60  ;;  %v3852_v2 = vor.u32 %v3851_v12, %v3850_v31 }
 0x37f   :  { %v3857_v43 = vshrl.u32 %v10609_v16, %v3842_v13  ;;  %v2953_v30 = vshrl.u32 %v2952_v15, 30  ;;  %v3855_v19 = vor.u32 %v3854_v10, %v3853_v21  ;;  %vm3859_vm15 = vcmp.lt.s32.totalorder %v3840_v17, 1 }
 0x380   :  { %v3704_v20 = vsel %vm3621_vm0, %v3703_v5, %v3702_v29  ;;  %vm3860_vm2 = vcmp.lt.s32.totalorder %v3840_v17, 2  ;;  %vm3861_vm4 = vcmp.lt.s32.totalorder %v3840_v17, 3  ;;  %v3843_v25 = vshrl.u32 %v10603_v50, %v3842_v13 }
 0x381   :  { %v3707_v14 = vsel %vm8819_vm3, %v8589_v7, %v3704_v20  ;;  %v3858_v55 = vor.u32 %v3857_v43, %v3856_v4  ;;  %v2954_v34 = vshll.u32 %v2953_v30, 30  ;;  %vm3862_vm5 = vcmp.lt.s32.totalorder %v3840_v17, 4 }
 0x382   :  { %5396 = vcosq.f32 %v3707_v14  ;;  %v3864_v53 = vsel %vm3862_vm5, %v3852_v2, 2102212464  ;;  %v3867_v54 = vsel %vm3859_vm15, %v3846_v47, %v3849_v32  ;;  %v3868_v1 = vsel %vm3862_vm5, %v3855_v19, 920167782 }
 0x383   :  { %5398 = vsinq.f32 %v3707_v14  ;;  %v8920_v3 = vsub.s32 %v2951_v26, %v2954_v34  ;;  %v2977_v33 = vsub.s32 4, %v2953_v30  ;;  %v3869_v28 = vsel %vm3861_vm4, %v3852_v2, %v3868_v1 }
 0x384   :  { %v3871_v44 = vsel %vm3859_vm15, %v3849_v32, %v3852_v2  ;;  %v3863_v62 = vsel %vm3859_vm15, %v3843_v25, %v3846_v47  ;;  %v3870_v9 = vsel %vm3860_vm2, %v3867_v54, %v3869_v28  ;;  %v3872_v35 = vsel %vm3862_vm5, %v3858_v55, 1326507024 }
 0x385   :  { %v3875_v48 = vshll.u32 %v3835_v61, 8  ;;  %v2957_v56 = vsub.s32 0, %v8920_v3  ;;  %v3865_v23 = vsel %vm3861_vm4, %v3849_v32, %v3864_v53  ;;  %v3873_v24 = vsel %vm3861_vm4, %v3855_v19, %v3872_v35 }
 0x386   :  { %v8930_v0 = vadd.f32 %v8731_v6, %v1519_v41  ;;  %vm2893_vm0 = vcmp.lt.s32.totalorder %v8734_v22, 0  ;;  %v3874_v13 = vsel %vm3860_vm2, %v3871_v44, %v3873_v24  ;;  %vm3711_vm3 = vweird.f32 %v8589_v7 }
 0x387   :  { %v8934_v38 = vmul.u32.u64.low %v3875_v48, %v3870_v9  ;;  %v8935_v29 = vmul.u32.u64.high %v3875_v48, %v3870_v9, %v8934_v38  ;;  %v5102_v26 = vmin.u32 %v2957_v56, %v8920_v3  ;;  %v2978_v61 = vsel %vm2893_vm0, %v2977_v33, %v2953_v30  ;;  %v8963_v30 = vpop.permute.xlu0 %1434 }
 0x388   :  { %v8940_v60 = vmul.u32.u64.low %v3875_v48, %v3874_v13  ;;  %v8941_v31 = vmul.u32.u64.high %v3875_v48, %v3874_v13, %v8940_v60  ;;  %v3866_v41 = vsel %vm3860_vm2, %v3863_v62, %v3865_v23  ;;  %v3102_v57 = vand.u32 2139095040, %v8930_v0 }
 0x389   :  { %vm3714_vm6 = vcmp.lt.s32.totalorder %v8898_v36, 2  ;;  %vm3715_vm7 = vcmp.eq.s32.totalorder %v8898_v36, 0  ;;  %vm8950_vm8 = vcmp.le.f32.partialorder %v2891_v45, 0.7853982  ;;  %v2959_v12 = vclz %v5102_v26 }
 0x38a   :  { %v2980_v21 = vsel %vm8950_vm8, 0, %v2978_v61  ;;  %v3885_v5 = vadd.s32 1, %v8935_v29  ;;  %v3099_v17 = vand.u32 2147483647, %v8930_v0  ;;  %v3103_v15 = vshrl.u32 %v3102_v57, 23 }
 0x38b   :  { %vm3718_vm9 = vcmp.eq.s32.totalorder %v8898_v36, 2  ;;  %v5103_v4 = vadd.s32 4294967294, %v2959_v12  ;;  %v3882_v47 = vmul.u32 %v3875_v48, %v3866_v41  ;;  %vm3884_vm10 = vc.u32 %v8941_v31, %v8934_v38 }
 0x38c   :  { %v5397_v10 = vpop.eup %5396  ;;  %v2947_v2 = vadd.s32 %v8880_v27, %v8874_v59  ;;  %v3886_v43 = vsel %vm3884_vm10, %v3885_v5, %v8935_v29  ;;  %v5109_v20 = vadd.s32 4294967169, %v3103_v15  ;;  %v2984_v14 = vadd.s32 3, %v2980_v21  ;;  %v10670_v21 = vld [vmem:[#allocation21_spill] sm:$0xff] }
 0x38d   :  { %v5399_v45 = vpop.eup %5398  ;;  %v3719_v32 = vxor.u32 2147483648, %v5397_v10  ;;  %vm5104_vm11 = vcmp.lt.s32.totalorder %v5103_v4, 0  ;;  %v3887_v55 = vadd.s32 %v3886_v43, %v3882_v47  ;;  %v3106_v53 = vand.u32 8388607, %v3099_v17 }
 0x38e   :  { %v3716_v19 = vxor.u32 2147483648, %v5399_v45  ;;  %v2962_v25 = vsel %vm5104_vm11, 0, %v5103_v4  ;;  %v3109_v54 = vadd.s32 1, %v5109_v20  ;;  %v1496_v27 = vmul.f32 %v7193_v18, %v8963_v30 }
 0x38f   :  { %v3720_v34 = vsel %vm3718_vm9, %v3719_v32, %v5399_v45  ;;  %v2963_v33 = vsub.s32 32, %v2962_v25  ;;  %v2967_v59 = vsub.s32 4294967266, %v2962_v25  ;;  %v2964_v44 = vshll.u32 %v8920_v3, %v2962_v25 }
 0x390   :  { %v3717_v1 = vsel %vm3715_vm7, %v5397_v10, %v3716_v19  ;;  %v3888_v62 = vadd.s32 536870912, %v3887_v55  ;;  %vm3110_vm12 = vcmp.gt.s32.totalorder %v3109_v54, 0  ;;  %v3107_v13 = vor.u32 8388608, %v3106_v53 }
 0x391   :  { %v3721_v28 = vsel %vm3714_vm6, %v3717_v1, %v3720_v34  ;;  %v2965_v35 = vshrl.u32 %v2947_v2, %v2963_v33  ;;  %v2968_v48 = vadd.s32 127, %v2967_v59  ;;  %v3111_v56 = vsel %vm3110_vm12, %v3109_v54, 0 }
 0x392   :  { %v3722_v9 = vsel %vm3711_vm3, nan, %v3721_v28  ;;  %v8977_v24 = vshrl.u32 %v3888_v62, 30  ;;  %v3113_v29 = vand.u32 31, %v3111_v56  ;;  %v8981_v41 = vand.u32 3, %v2984_v14 }
 0x393   :  { %v4990_v23 = vadd.f32 %v3722_v9, %v8571_v46  ;;  %v2966_v26 = vor.u32 %v2965_v35, %v2964_v44  ;;  %v2969_v61 = vshll.u32 %v2968_v48, 23  ;;  %v3883_v7 = vadd.s32 %v8934_v38, %v8941_v31 }
 0x394   :  { %v3890_v36 = vshll.u32 %v8977_v24, 30  ;;  %v3114_v3 = vsub.s32 32, %v3113_v29  ;;  %v8987_v12 = vshll.u32 %v3107_v13, 8  ;;  %v1528_v5 = vadd.f32 %v1496_v27, %v10670_v21 }
 0x395   :  { %5023 = vst.msk [vmem:[#allocation2 + $0x98] sm:$0xff] %vm5003_vm13, %v4990_v23  ;;  %v2970_v60 = vor.u32 4788187, %v2969_v61  ;;  %v2973_v10 = vcvt.s32.f32 %v2966_v26  ;;  %v3112_v32 = vshrl.u32 %v3111_v56, 5  ;;  %v3116_v2 = vshll.u32 %v10603_v50, %v3113_v29 }
 0x396   :  { %v8984_v57 = vsub.s32 %v3887_v55, %v3890_v36  ;;  %v3117_v46 = vshrl.u32 %v10605_v63, %v3114_v3  ;;  %v3120_v4 = vshrl.u32 %v10606_v51, %v3114_v3  ;;  %v3123_v47 = vshrl.u32 %v10607_v52, %v3114_v3 }
 0x397   :  { %v2971_v15 = vand.u32 2147483647, %v2970_v60  ;;  %v3119_v38 = vshll.u32 %v10605_v63, %v3113_v29  ;;  %v3122_v43 = vshll.u32 %v10606_v51, %v3113_v29  ;;  %v3125_v20 = vshll.u32 %v10607_v52, %v3113_v29 }
 0x398   :  { %v3893_v45 = vsub.s32 0, %v8984_v57  ;;  %v3126_v19 = vshrl.u32 %v10608_v40, %v3114_v3  ;;  %v3118_v55 = vor.u32 %v3117_v46, %v3116_v2  ;;  %v3129_v25 = vshrl.u32 %v10609_v16, %v3114_v3 }
 0x399   :  { %v2974_v31 = vmul.f32 %v2973_v10, %v2971_v15  ;;  %v3121_v34 = vor.u32 %v3120_v4, %v3119_v38  ;;  %v3124_v54 = vor.u32 %v3123_v47, %v3122_v43  ;;  %v3128_v33 = vshll.u32 %v10608_v40, %v3113_v29 }
 0x39a   :  { %v5138_v14 = vmin.u32 %v3893_v45, %v8984_v57  ;;  %v3127_v1 = vor.u32 %v3126_v19, %v3125_v20  ;;  %v3913_v27 = vsub.s32 4, %v8977_v24  ;;  %v3115_v28 = vshrl.u32 %v10603_v50, %v3114_v3  ;;  %v9031_v19 = vpop.permute.xlu1 %1406 }
 0x39b   :  { %v2975_v53 = vxor.u32 2147483648, %v2974_v31  ;;  %v9004_v44 = vadd.f32 %v8731_v6, %v1528_v5  ;;  %v3130_v9 = vor.u32 %v3129_v25, %v3128_v33  ;;  %vm3131_vm14 = vcmp.lt.s32.totalorder %v3112_v32, 1 }
 0x39c   :  { %v3895_v59 = vclz %v5138_v14  ;;  %vm3132_vm1 = vcmp.lt.s32.totalorder %v3112_v32, 2  ;;  %vm3133_vm15 = vcmp.lt.s32.totalorder %v3112_v32, 3  ;;  %vm3134_vm2 = vcmp.lt.s32.totalorder %v3112_v32, 4 }
 0x39d   :  { %v2976_v62 = vsel %vm2893_vm0, %v2975_v53, %v2974_v31  ;;  %v3136_v56 = vsel %vm3134_vm2, %v3124_v54, 2102212464  ;;  %v3139_v23 = vsel %vm3131_vm14, %v3118_v55, %v3121_v34  ;;  %v3140_v13 = vsel %vm3134_vm2, %v3127_v1, 920167782 }
 0x39e   :  { %v2979_v35 = vsel %vm8950_vm8, %v8734_v22, %v2976_v62  ;;  %v5139_v48 = vadd.s32 4294967294, %v3895_v59  ;;  %v3135_v29 = vsel %vm3131_vm14, %v3115_v28, %v3118_v55  ;;  %v3141_v26 = vsel %vm3133_vm15, %v3124_v54, %v3140_v13 }
 0x39f   :  { %5400 = vcosq.f32 %v2979_v35  ;;  %v3142_v36 = vsel %vm3132_vm1, %v3139_v23, %v3141_v26  ;;  %v3143_v49 = vsel %vm3131_vm14, %v3121_v34, %v3124_v54  ;;  %v3144_v3 = vsel %vm3134_vm2, %v3130_v9, 1326507024 }
 0x3a0   :  { %5402 = vsinq.f32 %v2979_v35  ;;  %vm5140_vm4 = vcmp.lt.s32.totalorder %v5139_v48, 0  ;;  %v3137_v21 = vsel %vm3133_vm15, %v3121_v34, %v3136_v56  ;;  %v3145_v5 = vsel %vm3133_vm15, %v3127_v1, %v3144_v3 }
 0x3a1   :  { %v3898_v61 = vsel %vm5140_vm4, 0, %v5139_v48  ;;  %v3146_v10 = vsel %vm3132_vm1, %v3143_v49, %v3145_v5  ;;  %v9021_v4 = vmul.u32.u64.low %v8987_v12, %v3142_v36  ;;  %v9022_v47 = vmul.u32.u64.high %v8987_v12, %v3142_v36, %v9021_v4  ;;  %v10673_v36 = vld [vmem:[#allocation49_spill] sm:$0xff] }
 0x3a2   :  { %v3899_v60 = vsub.s32 32, %v3898_v61  ;;  %v3903_v46 = vsub.s32 4294967266, %v3898_v61  ;;  %v3900_v15 = vshll.u32 %v8984_v57, %v3898_v61  ;;  %vm3829_vm5 = vcmp.lt.s32.totalorder %v8804_v39, 0 }
 0x3a3   :  { %v9025_v38 = vmul.u32.u64.low %v8987_v12, %v3146_v10  ;;  %v9026_v31 = vmul.u32.u64.high %v8987_v12, %v3146_v10, %v9025_v38  ;;  %v3138_v43 = vsel %vm3132_vm1, %v3135_v29, %v3137_v21  ;;  %v4038_v20 = vand.u32 2139095040, %v9004_v44 }
 0x3a4   :  { %v3901_v45 = vshrl.u32 %v3883_v7, %v3899_v60  ;;  %v3904_v2 = vadd.s32 127, %v3903_v46  ;;  %vm2983_vm0 = vweird.f32 %v8734_v22  ;;  %v3914_v7 = vsel %vm3829_vm5, %v3913_v27, %v8977_v24 }
 0x3a5   :  { %vm2986_vm3 = vcmp.lt.s32.totalorder %v8981_v41, 2  ;;  %vm9040_vm6 = vcmp.le.f32.partialorder %v3827_v8, 0.7853982  ;;  %v3157_v32 = vadd.s32 1, %v9022_v47  ;;  %v4039_v34 = vshrl.u32 %v4038_v20, 23 }
 0x3a6   :  { %v3902_v57 = vor.u32 %v3901_v45, %v3900_v15  ;;  %v3905_v14 = vshll.u32 %v3904_v2, 23  ;;  %v3154_v53 = vmul.u32 %v8987_v12, %v3138_v43  ;;  %vm3156_vm7 = vc.u32 %v9026_v31, %v9021_v4 }
 0x3a7   :  { %v1489_v54 = vmul.f32 %v7193_v18, %v9031_v19  ;;  %v3916_v1 = vsel %vm9040_vm6, 0, %v3914_v7  ;;  %v3158_v8 = vsel %vm3156_vm7, %v3157_v32, %v9022_v47  ;;  %v4035_v33 = vand.u32 2147483647, %v9004_v44 }
 0x3a8   :  { %v3906_v25 = vor.u32 4788187, %v3905_v14  ;;  %v5145_v59 = vadd.s32 4294967169, %v4039_v34  ;;  %v3909_v9 = vcvt.s32.f32 %v3902_v57  ;;  %v3159_v35 = vadd.s32 %v3158_v8, %v3154_v53 }
 0x3a9   :  { %v5401_v24 = vpop.eup %5400  ;;  %vm2987_vm8 = vcmp.eq.s32.totalorder %v8981_v41, 0  ;;  %vm2990_vm9 = vcmp.eq.s32.totalorder %v8981_v41, 2  ;;  %v3920_v13 = vadd.s32 3, %v3916_v1  ;;  %v4042_v61 = vand.u32 8388607, %v4035_v33 }
 0x3aa   :  { %v5403_v27 = vpop.eup %5402  ;;  %v2991_v28 = vxor.u32 2147483648, %v5401_v24  ;;  %v3907_v62 = vand.u32 2147483647, %v3906_v25  ;;  %v4045_v48 = vadd.s32 1, %v5145_v59  ;;  %v3160_v29 = vadd.s32 536870912, %v3159_v35 }
 0x3ab   :  { %v2988_v12 = vxor.u32 2147483648, %v5403_v27  ;;  %v1521_v49 = vadd.f32 %v1489_v54, %v10673_v36  ;;  %v9064_v15 = vmul.f32 %v7196_v58, %v8799_v37  ;;  %vm3101_vm11 = vcmp.lt.s32.totalorder %v8930_v0, 0 }
 0x3ac   :  { %v2992_v56 = vsel %vm2990_vm9, %v2991_v28, %v5403_v27  ;;  %v3910_v23 = vmul.f32 %v3909_v9, %v3907_v62  ;;  %vm4046_vm10 = vcmp.gt.s32.totalorder %v4045_v48, 0  ;;  %v3161_v46 = vshrl.u32 %v3160_v29, 30 }
 0x3ad   :  { %v2989_v26 = vsel %vm2987_vm8, %v5401_v24, %v2988_v12  ;;  %v4047_v21 = vsel %vm4046_vm10, %v4045_v48, 0  ;;  %v9073_v38 = vand.u32 3, %v3920_v13  ;;  %v9076_v22 = vadd.s32 %v9021_v4, %v9026_v31 }
 0x3ae   :  { %v2993_v3 = vsel %vm2986_vm3, %v2989_v26, %v2992_v56  ;;  %v3911_v60 = vxor.u32 2147483648, %v3910_v23  ;;  %v4049_v10 = vand.u32 31, %v4047_v21  ;;  %v3162_v41 = vshll.u32 %v3161_v46, 30 }
 0x3af   :  { %v2994_v5 = vsel %vm2983_vm0, nan, %v2993_v3  ;;  %v4043_v43 = vor.u32 8388608, %v4042_v61  ;;  %v9082_v20 = vadd.f32 %v8731_v6, %v1521_v49  ;;  %v3185_v57 = vsub.s32 4, %v3161_v46 }
 0x3b0   :  { %v4983_v47 = vadd.f32 %v2994_v5, %v8683_v11  ;;  %v3912_v45 = vsel %vm3829_vm5, %v3911_v60, %v3910_v23  ;;  %v4050_v37 = vsub.s32 32, %v4049_v10  ;;  %v9079_v11 = vsub.s32 %v3159_v35, %v3162_v41 }
 0x3b1   :  { %v3915_v2 = vsel %vm9040_vm6, %v8804_v39, %v3912_v45  ;;  %v4052_v14 = vshll.u32 %v10603_v50, %v4049_v10  ;;  %v4058_v31 = vshll.u32 %v10606_v51, %v4049_v10  ;;  %v9090_v34 = vshrl.u32 %v4047_v21, 5 }
 0x3b2   :  { %5016 = vst.msk [vmem:[#allocation2 + $0x60] sm:$0xff] %vm5003_vm13, %v4983_v47  ;;  %5404 = vcosq.f32 %v3915_v2  ;;  %v4053_v7 = vshrl.u32 %v10605_v63, %v4050_v37  ;;  %v3165_v55 = vsub.s32 0, %v9079_v11  ;;  %v4056_v4 = vshrl.u32 %v10606_v51, %v4050_v37 }
 0x3b3   :  { %5406 = vsinq.f32 %v3915_v2  ;;  %v4059_v32 = vshrl.u32 %v10607_v52, %v4050_v37  ;;  %v4055_v25 = vshll.u32 %v10605_v63, %v4049_v10  ;;  %v4061_v6 = vshll.u32 %v10607_v52, %v4049_v10 }
 0x3b4   :  { %v4062_v53 = vshrl.u32 %v10608_v40, %v4050_v37  ;;  %vm3926_vm12 = vcmp.eq.s32.totalorder %v9073_v38, 2  ;;  %v5110_v54 = vmin.u32 %v3165_v55, %v9079_v11  ;;  %v4054_v24 = vor.u32 %v4053_v7, %v4052_v14 }
 0x3b5   :  { %v4060_v1 = vor.u32 %v4059_v32, %v4058_v31  ;;  %v9097_v8 = vshll.u32 %v4043_v43, 8  ;;  %vm3923_vm14 = vcmp.eq.s32.totalorder %v9073_v38, 0  ;;  %v4057_v59 = vor.u32 %v4056_v4, %v4055_v25 }
 0x3b6   :  { %v4063_v27 = vor.u32 %v4062_v53, %v4061_v6  ;;  %v4064_v28 = vshll.u32 %v10608_v40, %v4049_v10  ;;  %v4065_v62 = vshrl.u32 %v10609_v16, %v4050_v37  ;;  %vm3922_vm1 = vcmp.lt.s32.totalorder %v9073_v38, 2  ;;  %v9129_v53 = vpop.permute.xlu0 %1442 }
 0x3b7   :  { %v3167_v9 = vclz %v5110_v54  ;;  %v9105_v35 = vsel %vm3101_vm11, %v3185_v57, %v3161_v46  ;;  %v3307_v12 = vand.u32 2147483647, %v9082_v20  ;;  %v3310_v48 = vand.u32 2139095040, %v9082_v20 }
 0x3b8   :  { %vm3919_vm15 = vweird.f32 %v8804_v39  ;;  %v4051_v56 = vshrl.u32 %v10603_v50, %v4050_v37  ;;  %v4066_v23 = vor.u32 %v4065_v62, %v4064_v28  ;;  %vm4067_vm2 = vcmp.lt.s32.totalorder %v9090_v34, 1 }
 0x3b9   :  { %vm4070_vm4 = vcmp.lt.s32.totalorder %v9090_v34, 4  ;;  %v5111_v13 = vadd.s32 4294967294, %v3167_v9  ;;  %vm4069_vm5 = vcmp.lt.s32.totalorder %v9090_v34, 3  ;;  %v4075_v61 = vsel %vm4067_vm2, %v4054_v24, %v4057_v59 }
 0x3ba   :  { %v4072_v29 = vsel %vm4070_vm4, %v4060_v1, 2102212464  ;;  %v4076_v26 = vsel %vm4070_vm4, %v4063_v27, 920167782  ;;  %v4079_v49 = vsel %vm4067_vm2, %v4057_v59, %v4060_v1  ;;  %v4080_v3 = vsel %vm4070_vm4, %v4066_v23, 1326507024 }
 0x3bb   :  { %v4077_v36 = vsel %vm4069_vm5, %v4060_v1, %v4076_v26  ;;  %vm5112_vm0 = vcmp.lt.s32.totalorder %v5111_v13, 0  ;;  %vm4068_vm3 = vcmp.lt.s32.totalorder %v9090_v34, 2  ;;  %v4071_v46 = vsel %vm4067_vm2, %v4051_v56, %v4054_v24  ;;  %v10676_v26 = vld [vmem:[#allocation39_spill] sm:$0xff] }
 0x3bc   :  { %v5405_v60 = vpop.eup %5404  ;;  %v4081_v21 = vsel %vm4069_vm5, %v4063_v27, %v4080_v3  ;;  %v3170_v47 = vsel %vm5112_vm0, 0, %v5111_v13  ;;  %v4073_v45 = vsel %vm4069_vm5, %v4057_v59, %v4072_v29  ;;  %v4078_v57 = vsel %vm4068_vm3, %v4075_v61, %v4077_v36 }
 0x3bd   :  { %v5407_v5 = vpop.eup %5406  ;;  %v3927_v10 = vxor.u32 2147483648, %v5405_v60  ;;  %v4082_v41 = vsel %vm4068_vm3, %v4079_v49, %v4081_v21  ;;  %v3171_v37 = vsub.s32 32, %v3170_v47  ;;  %v3175_v43 = vsub.s32 4294967266, %v3170_v47  ;;  %v10677_v21 = vld [vmem:[#allocation37_spill] sm:$0xff] }
 0x3be   :  { %v3924_v2 = vxor.u32 2147483648, %v5407_v5  ;;  %v9122_v7 = vmul.u32.u64.low %v9097_v8, %v4082_v41  ;;  %v9123_v55 = vmul.u32.u64.high %v9097_v8, %v4082_v41, %v9122_v7  ;;  %v3311_v4 = vshrl.u32 %v3310_v48, 23 }
 0x3bf   :  { %v3928_v14 = vsel %vm3926_vm12, %v3927_v10, %v5407_v5  ;;  %v3172_v32 = vshll.u32 %v9079_v11, %v3170_v47  ;;  %v3173_v25 = vshrl.u32 %v9076_v22, %v3171_v37  ;;  %v3176_v6 = vadd.s32 127, %v3175_v43  ;;  %v9197_v11 = vld [vmem:[%s10274_s3] ss:$0 sm:$0xff] }
 0x3c0   :  { %v3925_v31 = vsel %vm3923_vm14, %v5405_v60, %v3924_v2  ;;  %v9134_v24 = vmul.u32.u64.low %v9097_v8, %v4078_v57  ;;  %v9135_v1 = vmul.u32.u64.high %v9097_v8, %v4078_v57, %v9134_v24  ;;  %v5117_v59 = vadd.s32 4294967169, %v3311_v4 }
 0x3c1   :  { %v3929_v54 = vsel %vm3922_vm1, %v3925_v31, %v3928_v14  ;;  %vm9142_vm6 = vcmp.le.f32.partialorder %v3099_v17, 0.7853982  ;;  %v3174_v22 = vor.u32 %v3173_v25, %v3172_v32  ;;  %v3177_v28 = vshll.u32 %v3176_v6, 23  ;;  %v1415_v6 = vpop.permute.xlu1 %1414 }
 0x3c2   :  { %v3930_v27 = vsel %vm3919_vm15, nan, %v3929_v54  ;;  %v4074_v62 = vsel %vm4068_vm3, %v4071_v46, %v4073_v45  ;;  %v3317_v9 = vadd.s32 1, %v5117_v59  ;;  %v1498_v48 = vmul.f32 %v7193_v18, %v9129_v53 }
 0x3c3   :  { %v4992_v38 = vadd.f32 %v3930_v27, %v8781_v42  ;;  %v3178_v56 = vor.u32 4788187, %v3177_v28  ;;  %v3188_v39 = vsel %vm9142_vm6, 0, %v9105_v35  ;;  %vm4092_vm7 = vc.u32 %v9123_v55, %v9134_v24 }
 0x3c4   :  { %v3314_v17 = vand.u32 8388607, %v3307_v12  ;;  %v4093_v42 = vadd.s32 1, %v9135_v1  ;;  %vm3318_vm8 = vcmp.gt.s32.totalorder %v3317_v9, 0  ;;  %v3181_v23 = vcvt.s32.f32 %v3174_v22 }
 0x3c5   :  { %5025 = vst.msk [vmem:[#allocation2 + $0xa8] sm:$0xff] %vm5003_vm13, %v4992_v38  ;;  %v3179_v34 = vand.u32 2147483647, %v3178_v56  ;;  %v4090_v13 = vmul.u32 %v9097_v8, %v4074_v62  ;;  %v3319_v29 = vsel %vm3318_vm8, %v3317_v9, 0  ;;  %v9163_v61 = vadd.f32 %v9064_v15, %v10676_v26 }
 0x3c6   :  { %v3192_v35 = vadd.s32 3, %v3188_v39  ;;  %v4094_v36 = vsel %vm4092_vm7, %v4093_v42, %v9135_v1  ;;  %v3321_v49 = vand.u32 31, %v3319_v29  ;;  %v3315_v46 = vor.u32 8388608, %v3314_v17 }
 0x3c7   :  { %v3182_v3 = vmul.f32 %v3181_v23, %v3179_v34  ;;  %v4095_v60 = vadd.s32 %v4094_v36, %v4090_v13  ;;  %v1530_v5 = vadd.f32 %v1498_v48, %v10677_v21  ;;  %v9167_v10 = vshrl.u32 %v3319_v29, 5 }
 0x3c8   :  { %v3322_v47 = vsub.s32 32, %v3321_v49  ;;  %v3324_v45 = vshll.u32 %v10603_v50, %v3321_v49  ;;  %v3327_v8 = vshll.u32 %v10605_v63, %v3321_v49  ;;  %v3330_v15 = vshll.u32 %v10606_v51, %v3321_v49 }
 0x3c9   :  { %v3183_v41 = vxor.u32 2147483648, %v3182_v3  ;;  %v4096_v2 = vadd.s32 536870912, %v4095_v60  ;;  %v3333_v37 = vshll.u32 %v10607_v52, %v3321_v49  ;;  %v3336_v7 = vshll.u32 %v10608_v40, %v3321_v49 }
 0x3ca   :  { %v3325_v43 = vshrl.u32 %v10605_v63, %v3322_v47  ;;  %v3328_v57 = vshrl.u32 %v10606_v51, %v3322_v47  ;;  %v3331_v14 = vshrl.u32 %v10607_v52, %v3322_v47  ;;  %v3334_v32 = vshrl.u32 %v10608_v40, %v3322_v47 }
 0x3cb   :  { %v3184_v4 = vsel %vm3101_vm11, %v3183_v41, %v3182_v3  ;;  %v4097_v31 = vshrl.u32 %v4096_v2, 30  ;;  %v3337_v25 = vshrl.u32 %v10609_v16, %v3322_v47  ;;  %v9184_v22 = vand.u32 3, %v3192_v35 }
 0x3cc   :  { %v3187_v54 = vsel %vm9142_vm6, %v8930_v0, %v3184_v4  ;;  %v3326_v1 = vor.u32 %v3325_v43, %v3324_v45  ;;  %v3329_v59 = vor.u32 %v3328_v57, %v3327_v8  ;;  %v3332_v27 = vor.u32 %v3331_v14, %v3330_v15 }
 0x3cd   :  { %5408 = vcosq.f32 %v3187_v54  ;;  %vm4037_vm9 = vcmp.lt.s32.totalorder %v9004_v44, 0  ;;  %v4098_v28 = vshll.u32 %v4097_v31, 30  ;;  %v3335_v38 = vor.u32 %v3334_v32, %v3333_v37  ;;  %v10680_v32 = vld [vmem:[#allocation43_spill] sm:$0xff] }
 0x3ce   :  { %5410 = vsinq.f32 %v3187_v54  ;;  %v3338_v62 = vor.u32 %v3337_v25, %v3336_v7  ;;  %v9187_v9 = vshll.u32 %v3315_v46, 8  ;;  %v1559_v48 = vmul.f32 %v7196_v58, %v1415_v6 }
 0x3cf   :  { %v9190_v56 = vsub.s32 %v4095_v60, %v4098_v28  ;;  %vm3339_vm10 = vcmp.lt.s32.totalorder %v9167_v10, 1  ;;  %vm3342_vm11 = vcmp.lt.s32.totalorder %v9167_v10, 4  ;;  %v9200_v39 = vadd.f32 %v9197_v11, %v1530_v5 }
 0x3d0   :  { %vm9204_vm12 = vcmp.le.f32.partialorder %v4035_v33, 0.7853982  ;;  %v4121_v42 = vsub.s32 4, %v4097_v31  ;;  %v3323_v34 = vshrl.u32 %v10603_v50, %v3322_v47  ;;  %v3344_v23 = vsel %vm3342_vm11, %v3332_v27, 2102212464 }
 0x3d1   :  { %v3347_v13 = vsel %vm3339_vm10, %v3326_v1, %v3329_v59  ;;  %v4101_v29 = vsub.s32 0, %v9190_v56  ;;  %vm3340_vm14 = vcmp.lt.s32.totalorder %v9167_v10, 2  ;;  %vm3341_vm1 = vcmp.lt.s32.totalorder %v9167_v10, 3 }
 0x3d2   :  { %v3348_v26 = vsel %vm3342_vm11, %v3335_v38, 920167782  ;;  %v3343_v35 = vsel %vm3339_vm10, %v3323_v34, %v3326_v1  ;;  %v3351_v49 = vsel %vm3339_vm10, %v3329_v59, %v3332_v27  ;;  %v3352_v3 = vsel %vm3342_vm11, %v3338_v62, 1326507024  ;;  %v10681_v1 = vld [vmem:[#allocation9_spill] sm:$0xff] }
 0x3d3   :  { %v3349_v36 = vsel %vm3341_vm1, %v3332_v27, %v3348_v26  ;;  %v5146_v33 = vmin.u32 %v4101_v29, %v9190_v56  ;;  %v3345_v60 = vsel %vm3341_vm1, %v3329_v59, %v3344_v23  ;;  %v3353_v21 = vsel %vm3341_vm1, %v3335_v38, %v3352_v3 }
 0x3d4   :  { %v3350_v46 = vsel %vm3340_vm14, %v3347_v13, %v3349_v36  ;;  %vm3191_vm15 = vweird.f32 %v8930_v0  ;;  %v3354_v5 = vsel %vm3340_vm14, %v3351_v49, %v3353_v21  ;;  %v1491_v8 = vmul.f32 %v7193_v18, %v1415_v6 }
 0x3d5   :  { %v9219_v47 = vmul.u32.u64.low %v9187_v9, %v3350_v46  ;;  %v9220_v45 = vmul.u32.u64.high %v9187_v9, %v3350_v46, %v9219_v47  ;;  %vm3194_vm2 = vcmp.lt.s32.totalorder %v9184_v22, 2  ;;  %vm3195_vm4 = vcmp.eq.s32.totalorder %v9184_v22, 0 }
 0x3d6   :  { %vm3198_vm5 = vcmp.eq.s32.totalorder %v9184_v22, 2  ;;  %v4103_v41 = vclz %v5146_v33  ;;  %v4122_v2 = vsel %vm4037_vm9, %v4121_v42, %v4097_v31  ;;  %v3346_v15 = vsel %vm3340_vm14, %v3343_v35, %v3345_v60 }
 0x3d7   :  { %v9232_v37 = vmul.u32.u64.low %v9187_v9, %v3354_v5  ;;  %v9233_v43 = vmul.u32.u64.high %v9187_v9, %v3354_v5, %v9232_v37  ;;  %v5409_v57 = vpop.eup %5408  ;;  %v4243_v7 = vand.u32 2147483647, %v9200_v39  ;;  %v4246_v4 = vand.u32 2139095040, %v9200_v39 }
 0x3d8   :  { %v5147_v14 = vadd.s32 4294967294, %v4103_v41  ;;  %v9238_v25 = vadd.f32 %v1559_v48, %v10680_v32  ;;  %v5411_v6 = vpop.eup %5410  ;;  %v3199_v54 = vxor.u32 2147483648, %v5409_v57  ;;  %v4091_v31 = vadd.s32 %v9134_v24, %v9123_v55 }
 0x3d9   :  { %v3365_v10 = vadd.s32 1, %v9220_v45  ;;  %v1523_v59 = vadd.f32 %v1491_v8, %v10681_v1  ;;  %v3196_v27 = vxor.u32 2147483648, %v5411_v6  ;;  %v4124_v28 = vsel %vm9204_vm12, 0, %v4122_v2 }
 0x3da   :  { %vm5148_vm0 = vcmp.lt.s32.totalorder %v5147_v14, 0  ;;  %v4247_v38 = vshrl.u32 %v4246_v4, 23  ;;  %v3200_v62 = vsel %vm3198_vm5, %v3199_v54, %v5411_v6  ;;  %v3362_v42 = vmul.u32 %v9187_v9, %v3346_v15  ;;  %v10682_v15 = vld [vmem:[#allocation51_spill] sm:$0xff] }
 0x3db   :  { %v4106_v48 = vsel %vm5148_vm0, 0, %v5147_v14  ;;  %vm3364_vm3 = vc.u32 %v9233_v43, %v9219_v47  ;;  %v3197_v55 = vsel %vm3195_vm4, %v5409_v57, %v3196_v27  ;;  %v4250_v23 = vand.u32 8388607, %v4243_v7 }
 0x3dc   :  { %v4107_v24 = vsub.s32 32, %v4106_v48  ;;  %v4111_v34 = vsub.s32 4294967266, %v4106_v48  ;;  %v3201_v13 = vsel %vm3194_vm2, %v3197_v55, %v3200_v62  ;;  %v4108_v29 = vshll.u32 %v9190_v56, %v4106_v48 }
 0x3dd   :  { %v3366_v26 = vsel %vm3364_vm3, %v3365_v10, %v9220_v45  ;;  %v5153_v35 = vadd.s32 4294967169, %v4247_v38  ;;  %v3202_v9 = vsel %vm3191_vm15, nan, %v3201_v13  ;;  %v1564_v60 = vmul.f32 %v7196_v58, %v8963_v30 }
 0x3de   :  { %v4109_v36 = vshrl.u32 %v4091_v31, %v4107_v24  ;;  %v4112_v49 = vadd.s32 127, %v4111_v34  ;;  %v3367_v3 = vadd.s32 %v3366_v26, %v3362_v42  ;;  %v4985_v33 = vadd.f32 %v3202_v9, %v9163_v61 }
 0x3df   :  { %v4253_v46 = vadd.s32 1, %v5153_v35  ;;  %v4128_v5 = vadd.s32 3, %v4124_v28  ;;  %v4251_v56 = vor.u32 8388608, %v4250_v23  ;;  %v9266_v2 = vadd.f32 %v9197_v11, %v1523_v59 }
 0x3e0   :  { %v4110_v21 = vor.u32 %v4109_v36, %v4108_v29  ;;  %v4113_v22 = vshll.u32 %v4112_v49, 23  ;;  %v3368_v8 = vadd.s32 536870912, %v3367_v3  ;;  %5018 = vst.msk [vmem:[#allocation2 + $0x70] sm:$0xff] %vm5003_vm13, %v4985_v33  ;;  %v9269_v61 = vadd.f32 %v1564_v60, %v10682_v15 }
 0x3e1   :  { %vm4254_vm6 = vcmp.gt.s32.totalorder %v4253_v46, 0  ;;  %vm3309_vm7 = vcmp.lt.s32.totalorder %v9082_v20, 0  ;;  %v9272_v14 = vand.u32 3, %v4128_v5  ;;  %vm9276_vm8 = vcmp.le.f32.partialorder %v3307_v12, 0.7853982 }
 0x3e2   :  { %v4114_v45 = vor.u32 4788187, %v4113_v22  ;;  %v3369_v0 = vshrl.u32 %v3368_v8, 30  ;;  %v4255_v41 = vsel %vm4254_vm6, %v4253_v46, 0  ;;  %v4117_v57 = vcvt.s32.f32 %v4110_v21 }
 0x3e3   :  { %v4257_v30 = vand.u32 31, %v4255_v41  ;;  %v3363_v6 = vadd.s32 %v9219_v47, %v9233_v43  ;;  %v9282_v10 = vshll.u32 %v4251_v56, 8  ;;  %v4256_v27 = vshrl.u32 %v4255_v41, 5 }
 0x3e4   :  { %v4115_v37 = vand.u32 2147483647, %v4114_v45  ;;  %v3370_v32 = vshll.u32 %v3369_v0, 30  ;;  %v3393_v54 = vsub.s32 4, %v3369_v0  ;;  %v3518_v28 = vand.u32 2139095040, %v9266_v2 }
 0x3e5   :  { %v4258_v31 = vsub.s32 32, %v4257_v30  ;;  %v4260_v38 = vshll.u32 %v10603_v50, %v4257_v30  ;;  %v4263_v62 = vshll.u32 %v10605_v63, %v4257_v30  ;;  %v4266_v43 = vshll.u32 %v10606_v51, %v4257_v30 }
 0x3e6   :  { %v4118_v1 = vmul.f32 %v4117_v57, %v4115_v37  ;;  %v9284_v59 = vsub.s32 %v3367_v3, %v3370_v32  ;;  %v3394_v24 = vsel %vm3309_vm7, %v3393_v54, %v3369_v0  ;;  %v4269_v23 = vshll.u32 %v10607_v52, %v4257_v30 }
 0x3e7   :  { %v4261_v12 = vshrl.u32 %v10605_v63, %v4258_v31  ;;  %v4264_v48 = vshrl.u32 %v10606_v51, %v4258_v31  ;;  %v4267_v55 = vshrl.u32 %v10607_v52, %v4258_v31  ;;  %v4270_v13 = vshrl.u32 %v10608_v40, %v4258_v31 }
 0x3e8   :  { %v4119_v42 = vxor.u32 2147483648, %v4118_v1  ;;  %v3373_v47 = vsub.s32 0, %v9284_v59  ;;  %v4272_v9 = vshll.u32 %v10608_v40, %v4257_v30  ;;  %v4273_v33 = vshrl.u32 %v10609_v16, %v4258_v31 }
 0x3e9   :  { %v4262_v34 = vor.u32 %v4261_v12, %v4260_v38  ;;  %v4265_v35 = vor.u32 %v4264_v48, %v4263_v62  ;;  %v4268_v49 = vor.u32 %v4267_v55, %v4266_v43  ;;  %v4271_v3 = vor.u32 %v4270_v13, %v4269_v23 }
 0x3ea   :  { %v4120_v29 = vsel %vm4037_vm9, %v4119_v42, %v4118_v1  ;;  %v5118_v26 = vmin.u32 %v3373_v47, %v9284_v59  ;;  %v3515_v46 = vand.u32 2147483647, %v9266_v2  ;;  %v3519_v21 = vshrl.u32 %v3518_v28, 23 }
 0x3eb   :  { %v4123_v36 = vsel %vm9204_vm12, %v9004_v44, %v4120_v29  ;;  %v3396_v22 = vsel %vm9276_vm8, 0, %v3394_v24  ;;  %v4259_v5 = vshrl.u32 %v10603_v50, %v4258_v31  ;;  %v4274_v8 = vor.u32 %v4273_v33, %v4272_v9 }
 0x3ec   :  { %5412 = vcosq.f32 %v4123_v36  ;;  %v3375_v60 = vclz %v5118_v26  ;;  %vm4275_vm9 = vcmp.lt.s32.totalorder %v4256_v27, 1  ;;  %vm4277_vm10 = vcmp.lt.s32.totalorder %v4256_v27, 3 }
 0x3ed   :  { %5414 = vsinq.f32 %v4123_v36  ;;  %vm4278_vm11 = vcmp.lt.s32.totalorder %v4256_v27, 4  ;;  %v4283_v45 = vsel %vm4275_vm9, %v4262_v34, %v4265_v35  ;;  %v4287_v41 = vsel %vm4275_vm9, %v4265_v35, %v4268_v49 }
 0x3ee   :  { %v5119_v56 = vadd.s32 4294967294, %v3375_v60  ;;  %v4280_v17 = vsel %vm4278_vm11, %v4268_v49, 2102212464  ;;  %v4284_v0 = vsel %vm4278_vm11, %v4271_v3, 920167782  ;;  %vm4276_vm14 = vcmp.lt.s32.totalorder %v4256_v27, 2 }
 0x3ef   :  { %v4285_v15 = vsel %vm4277_vm10, %v4268_v49, %v4284_v0  ;;  %v4288_v30 = vsel %vm4278_vm11, %v4274_v8, 1326507024  ;;  %v4279_v57 = vsel %vm4275_vm9, %v4259_v5, %v4262_v34  ;;  %v4281_v28 = vsel %vm4277_vm10, %v4265_v35, %v4280_v17  ;;  %v9341_v17 = vpop.permute.xlu0 %1450  ;;  %v10685_v0 = vld [vmem:[#allocation40_spill] sm:$0xff] }
 0x3f0   :  { %vm5120_vm12 = vcmp.lt.s32.totalorder %v5119_v56, 0  ;;  %v4286_v32 = vsel %vm4276_vm14, %v4283_v45, %v4285_v15  ;;  %v4289_v54 = vsel %vm4277_vm10, %v4271_v3, %v4288_v30  ;;  %vm4127_vm1 = vweird.f32 %v9004_v44 }
 0x3f1   :  { %v3378_v37 = vsel %vm5120_vm12, 0, %v5119_v56  ;;  %v4290_v38 = vsel %vm4276_vm14, %v4287_v41, %v4289_v54  ;;  %v9321_v48 = vmul.u32.u64.low %v9282_v10, %v4286_v32  ;;  %v9322_v42 = vmul.u32.u64.high %v9282_v10, %v4286_v32, %v9321_v48 }
 0x3f2   :  { %v3379_v31 = vsub.s32 32, %v3378_v37  ;;  %v3383_v1 = vsub.s32 4294967266, %v3378_v37  ;;  %v9317_v12 = vmul.u32.u64.low %v9282_v10, %v4290_v38  ;;  %v9318_v62 = vmul.u32.u64.high %v9282_v10, %v4290_v38, %v9317_v12 }
 0x3f3   :  { %v3380_v47 = vshll.u32 %v9284_v59, %v3378_v37  ;;  %v5125_v24 = vadd.s32 4294967169, %v3519_v21  ;;  %vm4130_vm15 = vcmp.lt.s32.totalorder %v9272_v14, 2  ;;  %vm4134_vm2 = vcmp.eq.s32.totalorder %v9272_v14, 2 }
 0x3f4   :  { %v3381_v43 = vshrl.u32 %v3363_v6, %v3379_v31  ;;  %v3384_v55 = vadd.s32 127, %v3383_v1  ;;  %v1557_v34 = vmul.f32 %v7196_v58, %v9031_v19  ;;  %v4282_v23 = vsel %vm4276_vm14, %v4279_v57, %v4281_v28 }
 0x3f5   :  { %v3522_v35 = vand.u32 8388607, %v3515_v46  ;;  %v3525_v9 = vadd.s32 1, %v5125_v24  ;;  %v3400_v36 = vadd.s32 3, %v3396_v22  ;;  %vm4300_vm4 = vc.u32 %v9318_v62, %v9321_v48 }
 0x3f6   :  { %v5413_v13 = vpop.eup %5412  ;;  %v3382_v29 = vor.u32 %v3381_v43, %v3380_v47  ;;  %v3385_v26 = vshll.u32 %v3384_v55, 23  ;;  %v4301_v49 = vadd.s32 1, %v9322_v42  ;;  %v4298_v19 = vmul.u32 %v9282_v10, %v4282_v23 }
 0x3f7   :  { %v5415_v59 = vpop.eup %5414  ;;  %v4135_v6 = vxor.u32 2147483648, %v5413_v13  ;;  %vm3526_vm5 = vcmp.gt.s32.totalorder %v3525_v9, 0  ;;  %vm4131_vm0 = vcmp.eq.s32.totalorder %v9272_v14, 0  ;;  %v9346_v10 = vadd.f32 %v1557_v34, %v10685_v0 }
 0x3f8   :  { %v4132_v3 = vxor.u32 2147483648, %v5415_v59  ;;  %v3386_v33 = vor.u32 4788187, %v3385_v26  ;;  %v4302_v60 = vsel %vm4300_vm4, %v4301_v49, %v9322_v42  ;;  %v3527_v21 = vsel %vm3526_vm5, %v3525_v9, 0 }
 0x3f9   :  { %v4136_v27 = vsel %vm4134_vm2, %v4135_v6, %v5415_v59  ;;  %v3389_v8 = vcvt.s32.f32 %v3382_v29  ;;  %v4303_v56 = vadd.s32 %v4302_v60, %v4298_v19  ;;  %v3523_v41 = vor.u32 8388608, %v3522_v35 }
 0x3fa   :  { %v4133_v5 = vsel %vm4131_vm0, %v5413_v13, %v4132_v3  ;;  %v3387_v22 = vand.u32 2147483647, %v3386_v33  ;;  %v3529_v15 = vand.u32 31, %v3527_v21  ;;  %v9350_v57 = vand.u32 3, %v3400_v36 }
 0x3fb   :  { %v4137_v45 = vsel %vm4130_vm15, %v4133_v5, %v4136_v27  ;;  %v4304_v32 = vadd.s32 536870912, %v4303_v56  ;;  %v3528_v31 = vshrl.u32 %v3527_v21, 5  ;;  %v1500_v14 = vmul.f32 %v7193_v18, %v9341_v17  ;;  %v10688_v27 = vld [vmem:[#allocation23_spill] sm:$0xff] }
 0x3fc   :  { %v4138_v30 = vsel %vm4127_vm1, nan, %v4137_v45  ;;  %v3390_v37 = vmul.f32 %v3389_v8, %v3387_v22  ;;  %v3530_v1 = vsub.s32 32, %v3529_v15  ;;  %v3532_v12 = vshll.u32 %v10603_v50, %v3529_v15 }
 0x3fd   :  { %v4994_v54 = vadd.f32 %v4138_v30, %v9269_v61  ;;  %v4305_v38 = vshrl.u32 %v4304_v32, 30  ;;  %v3535_v42 = vshll.u32 %v10605_v63, %v3529_v15  ;;  %v3538_v43 = vshll.u32 %v10606_v51, %v3529_v15 }
 0x3fe   :  { %v3391_v28 = vxor.u32 2147483648, %v3390_v37  ;;  %v3533_v44 = vshrl.u32 %v10605_v63, %v3530_v1  ;;  %v3536_v47 = vshrl.u32 %v10606_v51, %v3530_v1  ;;  %v3539_v61 = vshrl.u32 %v10607_v52, %v3530_v1 }
 0x3ff   :  { %5027 = vst.msk [vmem:[#allocation2 + $0xb8] sm:$0xff] %vm5003_vm13, %v4994_v54  ;;  %vm4245_vm3 = vcmp.lt.s32.totalorder %v9200_v39, 0  ;;  %v4306_v24 = vshll.u32 %v4305_v38, 30  ;;  %v3541_v34 = vshll.u32 %v10607_v52, %v3529_v15  ;;  %v3542_v23 = vshrl.u32 %v10608_v40, %v3530_v1 }
 0x400   :  { %v3392_v55 = vsel %vm3309_vm7, %v3391_v28, %v3390_v37  ;;  %v3534_v29 = vor.u32 %v3533_v44, %v3532_v12  ;;  %v3537_v26 = vor.u32 %v3536_v47, %v3535_v42  ;;  %v9370_v35 = vshll.u32 %v3523_v41, 8 }
 0x401   :  { %v3395_v13 = vsel %vm9276_vm8, %v9082_v20, %v3392_v55  ;;  %v9372_v9 = vsub.s32 %v4303_v56, %v4306_v24  ;;  %v3540_v59 = vor.u32 %v3539_v61, %v3538_v43  ;;  %v3543_v6 = vor.u32 %v3542_v23, %v3541_v34 }
 0x402   :  { %5416 = vcosq.f32 %v3395_v13  ;;  %vm9376_vm6 = vcmp.le.f32.partialorder %v4243_v7, 0.7853982  ;;  %v3531_v49 = vshrl.u32 %v10603_v50, %v3530_v1  ;;  %v3544_v4 = vshll.u32 %v10608_v40, %v3529_v15  ;;  %v1423_v7 = vpop.permute.xlu1 %1422 }
 0x403   :  { %5418 = vsinq.f32 %v3395_v13  ;;  %v3545_v3 = vshrl.u32 %v10609_v16, %v3530_v1  ;;  %v4309_v33 = vsub.s32 0, %v9372_v9  ;;  %v4329_v19 = vsub.s32 4, %v4305_v38 }
 0x404   :  { %vm3547_vm7 = vcmp.lt.s32.totalorder %v3528_v31, 1  ;;  %v1532_v60 = vadd.f32 %v1500_v14, %v10688_v27  ;;  %vm3549_vm8 = vcmp.lt.s32.totalorder %v3528_v31, 3  ;;  %vm3550_vm9 = vcmp.lt.s32.totalorder %v3528_v31, 4 }
 0x405   :  { %v3546_v21 = vor.u32 %v3545_v3, %v3544_v4  ;;  %v3551_v5 = vsel %vm3547_vm7, %v3531_v49, %v3534_v29  ;;  %v5154_v22 = vmin.u32 %v4309_v33, %v9372_v9  ;;  %v3552_v8 = vsel %vm3550_vm9, %v3540_v59, 2102212464  ;;  %v10689_v33 = vld [vmem:[#allocation41_spill] sm:$0xff] }
 0x406   :  { %v3555_v56 = vsel %vm3547_vm7, %v3534_v29, %v3537_v26  ;;  %v3556_v45 = vsel %vm3550_vm9, %v3543_v6, 920167782  ;;  %vm3403_vm10 = vcmp.eq.s32.totalorder %v9350_v57, 0  ;;  %v3553_v0 = vsel %vm3549_vm8, %v3537_v26, %v3552_v8 }
 0x407   :  { %v3557_v41 = vsel %vm3549_vm8, %v3540_v59, %v3556_v45  ;;  %v3559_v15 = vsel %vm3547_vm7, %v3537_v26, %v3540_v59  ;;  %v3560_v30 = vsel %vm3550_vm9, %v3546_v21, 1326507024  ;;  %vm3402_vm11 = vcmp.lt.s32.totalorder %v9350_v57, 2 }
 0x408   :  { %v4311_v37 = vclz %v5154_v22  ;;  %vm3548_vm12 = vcmp.lt.s32.totalorder %v3528_v31, 2  ;;  %v9391_v32 = vadd.f32 %v9197_v11, %v1532_v60  ;;  %v1493_v54 = vmul.f32 %v7193_v18, %v1423_v7 }
 0x409   :  { %vm3399_vm14 = vweird.f32 %v9082_v20  ;;  %v4330_v1 = vsel %vm4245_vm3, %v4329_v19, %v4305_v38  ;;  %v3554_v14 = vsel %vm3548_vm12, %v3551_v5, %v3553_v0  ;;  %v3558_v28 = vsel %vm3548_vm12, %v3555_v56, %v3557_v41 }
 0x40a   :  { %v3561_v12 = vsel %vm3549_vm8, %v3543_v6, %v3560_v30  ;;  %v5155_v42 = vadd.s32 4294967294, %v4311_v37  ;;  %v9399_v47 = vmul.u32.u64.low %v9370_v35, %v3558_v28  ;;  %v9400_v43 = vmul.u32.u64.high %v9370_v35, %v3558_v28, %v9399_v47  ;;  %v9441_v28 = vpop.permute.xlu0 %1458 }
 0x40b   :  { %v3562_v44 = vsel %vm3548_vm12, %v3559_v15, %v3561_v12  ;;  %vm3406_vm1 = vcmp.eq.s32.totalorder %v9350_v57, 2  ;;  %v1561_v24 = vmul.f32 %v7196_v58, %v1423_v7  ;;  %v4299_v31 = vadd.s32 %v9321_v48, %v9318_v62 }
 0x40c   :  { %v9405_v61 = vmul.u32.u64.low %v9370_v35, %v3562_v44  ;;  %v9406_v55 = vmul.u32.u64.high %v9370_v35, %v3562_v44, %v9405_v61  ;;  %v5417_v38 = vpop.eup %5416  ;;  %vm5156_vm15 = vcmp.lt.s32.totalorder %v5155_v42, 0  ;;  %v4332_v34 = vsel %vm9376_vm6, 0, %v4330_v1 }
 0x40d   :  { %v4454_v23 = vand.u32 2139095040, %v9391_v32  ;;  %v5419_v13 = vpop.eup %5418  ;;  %v3407_v29 = vxor.u32 2147483648, %v5417_v38  ;;  %v4314_v26 = vsel %vm5156_vm15, 0, %v5155_v42  ;;  %v3570_v59 = vmul.u32 %v9370_v35, %v3554_v14 }
 0x40e   :  { %v4451_v6 = vand.u32 2147483647, %v9391_v32  ;;  %v3404_v49 = vxor.u32 2147483648, %v5419_v13  ;;  %v4315_v4 = vsub.s32 32, %v4314_v26  ;;  %v4319_v3 = vsub.s32 4294967266, %v4314_v26 }
 0x40f   :  { %v1525_v19 = vadd.f32 %v1493_v54, %v10689_v33  ;;  %v3408_v62 = vsel %vm3406_vm1, %v3407_v29, %v5419_v13  ;;  %v4316_v48 = vshll.u32 %v9372_v9, %v4314_v26  ;;  %vm3572_vm2 = vc.u32 %v9406_v55, %v9399_v47  ;;  %v10690_v9 = vld [vmem:[#allocation12_spill] sm:$0xff] }
 0x410   :  { %v3573_v27 = vadd.s32 1, %v9400_v43  ;;  %v3405_v35 = vsel %vm3403_vm10, %v5417_v38, %v3404_v49  ;;  %v4317_v60 = vshrl.u32 %v4299_v31, %v4315_v4  ;;  %v4320_v21 = vadd.s32 127, %v4319_v3 }
 0x411   :  { %v4455_v5 = vshrl.u32 %v4454_v23, 23  ;;  %v3409_v7 = vsel %vm3402_vm11, %v3405_v35, %v3408_v62  ;;  %v4458_v8 = vand.u32 8388607, %v4451_v6  ;;  %v9431_v56 = vadd.f32 %v1561_v24, %v10690_v9  ;;  %v10691_v24 = vld [vmem:[#allocation38_spill] sm:$0xff] }
 0x412   :  { %v3574_v22 = vsel %vm3572_vm2, %v3573_v27, %v9400_v43  ;;  %v3410_v45 = vsel %vm3399_vm14, nan, %v3409_v7  ;;  %v4318_v0 = vor.u32 %v4317_v60, %v4316_v48  ;;  %v4321_v41 = vshll.u32 %v4320_v21, 23 }
 0x413   :  { %v3575_v15 = vadd.s32 %v3574_v22, %v3570_v59  ;;  %v4987_v30 = vadd.f32 %v3410_v45, %v9346_v10  ;;  %v1566_v57 = vmul.f32 %v7196_v58, %v9129_v53  ;;  %v5161_v37 = vadd.s32 4294967169, %v4455_v5 }
 0x414   :  { %v9439_v54 = vadd.f32 %v9197_v11, %v1525_v19  ;;  %v4322_v1 = vor.u32 4788187, %v4321_v41  ;;  %v4336_v20 = vadd.s32 3, %v4332_v34  ;;  %v4325_v43 = vcvt.s32.f32 %v4318_v0 }
 0x415   :  { %v3576_v14 = vadd.s32 536870912, %v3575_v15  ;;  %5020 = vst.msk [vmem:[#allocation2 + $0x80] sm:$0xff] %vm5003_vm13, %v4987_v30  ;;  %v4461_v12 = vadd.s32 1, %v5161_v37  ;;  %v4459_v61 = vor.u32 8388608, %v4458_v8  ;;  %v9446_v53 = vadd.f32 %v1566_v57, %v10691_v24 }
 0x416   :  { %v3726_v42 = vand.u32 2139095040, %v9439_v54  ;;  %v4323_v44 = vand.u32 2147483647, %v4322_v1  ;;  %v3723_v38 = vand.u32 2147483647, %v9439_v54  ;;  %v1502_v31 = vmul.f32 %v7193_v18, %v9441_v28 }
 0x417   :  { %v3577_v10 = vshrl.u32 %v3576_v14, 30  ;;  %vm4462_vm4 = vcmp.gt.s32.totalorder %v4461_v12, 0  ;;  %v9451_v26 = vand.u32 3, %v4336_v20  ;;  %vm9455_vm5 = vcmp.le.f32.partialorder %v3515_v46, 0.7853982  ;;  %v10694_v46 = vld [vmem:[#allocation15_spill] sm:$0xff] }
 0x418   :  { %v4326_v23 = vmul.f32 %v4325_v43, %v4323_v44  ;;  %v4463_v29 = vsel %vm4462_vm4, %v4461_v12, 0  ;;  %v3727_v34 = vshrl.u32 %v3726_v42, 23  ;;  %vm3517_vm0 = vcmp.lt.s32.totalorder %v9266_v2, 0 }
 0x419   :  { %v3578_v13 = vshll.u32 %v3577_v10, 30  ;;  %v4465_v49 = vand.u32 31, %v4463_v29  ;;  %v3571_v3 = vadd.s32 %v9399_v47, %v9406_v55  ;;  %v9464_v19 = vshll.u32 %v4459_v61, 8 }
 0x41a   :  { %v4327_v4 = vxor.u32 2147483648, %v4326_v23  ;;  %v3601_v62 = vsub.s32 4, %v3577_v10  ;;  %v9468_v27 = vand.u32 8388607, %v3723_v38  ;;  %v9471_v35 = vadd.f32 %v1502_v31, %v10694_v46 }
 0x41b   :  { %v9462_v33 = vsub.s32 %v3575_v15, %v3578_v13  ;;  %v4466_v48 = vsub.s32 32, %v4465_v49  ;;  %v4464_v5 = vshrl.u32 %v4463_v29, 5  ;;  %v5133_v47 = vadd.s32 4294967169, %v3727_v34 }
 0x41c   :  { %v4328_v60 = vsel %vm4245_vm3, %v4327_v4, %v4326_v23  ;;  %v4468_v7 = vshll.u32 %v10603_v50, %v4465_v49  ;;  %v4471_v45 = vshll.u32 %v10605_v63, %v4465_v49  ;;  %v3602_v41 = vsel %vm3517_vm0, %v3601_v62, %v3577_v10 }
 0x41d   :  { %v3581_v21 = vsub.s32 0, %v9462_v33  ;;  %v4331_v55 = vsel %vm9376_vm6, %v9200_v39, %v4328_v60  ;;  %v4469_v22 = vshrl.u32 %v10605_v63, %v4466_v48  ;;  %v4472_v8 = vshrl.u32 %v10606_v51, %v4466_v48 }
 0x41e   :  { %5420 = vcosq.f32 %v4331_v55  ;;  %v4475_v0 = vshrl.u32 %v10607_v52, %v4466_v48  ;;  %v4474_v36 = vshll.u32 %v10606_v51, %v4465_v49  ;;  %v4467_v57 = vshrl.u32 %v10603_v50, %v4466_v48 }
 0x41f   :  { %v5126_v9 = vmin.u32 %v3581_v21, %v9462_v33  ;;  %5422 = vsinq.f32 %v4331_v55  ;;  %v4470_v15 = vor.u32 %v4469_v22, %v4468_v7  ;;  %v4473_v37 = vor.u32 %v4472_v8, %v4471_v45 }
 0x420   :  { %v4477_v1 = vshll.u32 %v10607_v52, %v4465_v49  ;;  %v4476_v14 = vor.u32 %v4475_v0, %v4474_v36  ;;  %v4478_v20 = vshrl.u32 %v10608_v40, %v4466_v48  ;;  %v4480_v12 = vshll.u32 %v10608_v40, %v4465_v49 }
 0x421   :  { %v3583_v30 = vclz %v5126_v9  ;;  %v4481_v42 = vshrl.u32 %v10609_v16, %v4466_v48  ;;  %vm4342_vm3 = vcmp.eq.s32.totalorder %v9451_v26, 2  ;;  %v3604_v43 = vsel %vm9455_vm5, 0, %v3602_v41 }
 0x422   :  { %vm4483_vm6 = vcmp.lt.s32.totalorder %v4464_v5, 1  ;;  %vm4485_vm7 = vcmp.lt.s32.totalorder %v4464_v5, 3  ;;  %vm4339_vm8 = vcmp.eq.s32.totalorder %v9451_v26, 0  ;;  %v4479_v10 = vor.u32 %v4478_v20, %v4477_v1 }
 0x423   :  { %v5127_v44 = vadd.s32 4294967294, %v3583_v30  ;;  %v4482_v61 = vor.u32 %v4481_v42, %v4480_v12  ;;  %vm4486_vm9 = vcmp.lt.s32.totalorder %v4464_v5, 4  ;;  %v4487_v24 = vsel %vm4483_vm6, %v4467_v57, %v4470_v15 }
 0x424   :  { %vm4338_vm10 = vcmp.lt.s32.totalorder %v9451_v26, 2  ;;  %v4488_v31 = vsel %vm4486_vm9, %v4476_v14, 2102212464  ;;  %v4491_v23 = vsel %vm4483_vm6, %v4470_v15, %v4473_v37  ;;  %v4495_v13 = vsel %vm4483_vm6, %v4473_v37, %v4476_v14 }
 0x425   :  { %vm5128_vm11 = vcmp.lt.s32.totalorder %v5127_v44, 0  ;;  %vm4335_vm12 = vweird.f32 %v9200_v39  ;;  %v4489_v34 = vsel %vm4485_vm7, %v4473_v37, %v4488_v31  ;;  %v4492_v49 = vsel %vm4486_vm9, %v4479_v10, 920167782 }
 0x426   :  { %v3586_v29 = vsel %vm5128_vm11, 0, %v5127_v44  ;;  %v4496_v4 = vsel %vm4486_vm9, %v4482_v61, 1326507024  ;;  %vm4484_vm14 = vcmp.lt.s32.totalorder %v4464_v5, 2  ;;  %v4493_v21 = vsel %vm4485_vm7, %v4476_v14, %v4492_v49 }
 0x427   :  { %v3587_v62 = vsub.s32 32, %v3586_v29  ;;  %v3588_v48 = vshll.u32 %v9462_v33, %v3586_v29  ;;  %v3591_v46 = vsub.s32 4294967266, %v3586_v29  ;;  %v4490_v60 = vsel %vm4484_vm14, %v4487_v24, %v4489_v34 }
 0x428   :  { %v4497_v55 = vsel %vm4485_vm7, %v4479_v10, %v4496_v4  ;;  %v3733_v7 = vadd.s32 1, %v5133_v47  ;;  %v5421_v22 = vpop.eup %5420  ;;  %v4494_v45 = vsel %vm4484_vm14, %v4491_v23, %v4493_v21  ;;  %v3731_v14 = vor.u32 8388608, %v9468_v27 }
 0x429   :  { %v3589_v8 = vshrl.u32 %v3571_v3, %v3587_v62  ;;  %v3592_v9 = vadd.s32 127, %v3591_v46  ;;  %v4498_v0 = vsel %vm4484_vm14, %v4495_v13, %v4497_v55  ;;  %v5423_v41 = vpop.eup %5422  ;;  %v4343_v15 = vxor.u32 2147483648, %v5421_v22 }
 0x42a   :  { %v9504_v36 = vmul.u32.u64.low %v9464_v19, %v4498_v0  ;;  %v9505_v30 = vmul.u32.u64.high %v9464_v19, %v4498_v0, %v9504_v36  ;;  %vm3734_vm1 = vcmp.gt.s32.totalorder %v3733_v7, 0  ;;  %v4340_v33 = vxor.u32 2147483648, %v5423_v41 }
 0x42b   :  { %v3590_v57 = vor.u32 %v3589_v8, %v3588_v48  ;;  %v3593_v37 = vshll.u32 %v3592_v9, 23  ;;  %v3735_v1 = vsel %vm3734_vm1, %v3733_v7, 0  ;;  %v4344_v5 = vsel %vm4342_vm3, %v4343_v15, %v5423_v41 }
 0x42c   :  { %v9510_v47 = vmul.u32.u64.low %v9464_v19, %v4494_v45  ;;  %v9511_v3 = vmul.u32.u64.high %v9464_v19, %v4494_v45, %v9510_v47  ;;  %v4341_v20 = vsel %vm4339_vm8, %v5421_v22, %v4340_v33  ;;  %v3608_v42 = vadd.s32 3, %v3604_v43 }
 0x42d   :  { %v3594_v12 = vor.u32 4788187, %v3593_v37  ;;  %v3737_v44 = vand.u32 31, %v3735_v1  ;;  %v4345_v10 = vsel %vm4338_vm10, %v4341_v20, %v4344_v5  ;;  %v3597_v61 = vcvt.s32.f32 %v3590_v57 }
 0x42e   :  { %v4506_v24 = vmul.u32 %v9464_v19, %v4490_v60  ;;  %v9520_v31 = vshrl.u32 %v3735_v1, 5  ;;  %v4346_v23 = vsel %vm4335_vm12, nan, %v4345_v10  ;;  %vm4508_vm15 = vc.u32 %v9505_v30, %v9510_v47 }
 0x42f   :  { %v3595_v13 = vand.u32 2147483647, %v3594_v12  ;;  %v3738_v27 = vsub.s32 32, %v3737_v44  ;;  %v4996_v29 = vadd.f32 %v4346_v23, %v9446_v53  ;;  %v4509_v43 = vadd.s32 1, %v9511_v3 }
 0x430   :  { %v3740_v26 = vshll.u32 %v10603_v50, %v3737_v44  ;;  %v3743_v34 = vshll.u32 %v10605_v63, %v3737_v44  ;;  %v3746_v39 = vshll.u32 %v10606_v51, %v3737_v44  ;;  %v3749_v53 = vshll.u32 %v10607_v52, %v3737_v44 }
 0x431   :  { %v3598_v49 = vmul.f32 %v3597_v61, %v3595_v13  ;;  %v3741_v19 = vshrl.u32 %v10605_v63, %v3738_v27  ;;  %v3744_v4 = vshrl.u32 %v10606_v51, %v3738_v27  ;;  %5029 = vst.msk [vmem:[#allocation2 + $0xc8] sm:$0xff] %vm5003_vm13, %v4996_v29  ;;  %v4510_v62 = vsel %vm4508_vm15, %v4509_v43, %v9511_v3  ;;  %v10695_v61 = vld [vmem:[#allocation57_spill] sm:$0xff] }
 0x432   :  { %v3747_v48 = vshrl.u32 %v10607_v52, %v3738_v27  ;;  %v3750_v46 = vshrl.u32 %v10608_v40, %v3738_v27  ;;  %v4511_v21 = vadd.s32 %v4510_v62, %v4506_v24  ;;  %v3752_v8 = vshll.u32 %v10608_v40, %v3737_v44 }
 0x433   :  { %v3599_v60 = vxor.u32 2147483648, %v3598_v49  ;;  %v3742_v55 = vor.u32 %v3741_v19, %v3740_v26  ;;  %v3745_v7 = vor.u32 %v3744_v4, %v3743_v34  ;;  %v3753_v9 = vshrl.u32 %v10609_v16, %v3738_v27 }
 0x434   :  { %v3751_v22 = vor.u32 %v3750_v46, %v3749_v53  ;;  %v1570_v45 = vmul.f32 %v7196_v58, %v9441_v28  ;;  %v9544_v41 = vand.u32 3, %v3608_v42  ;;  %v4512_v15 = vadd.s32 536870912, %v4511_v21 }
 0x435   :  { %v3600_v0 = vsel %vm3517_vm0, %v3599_v60, %v3598_v49  ;;  %v3748_v36 = vor.u32 %v3747_v48, %v3746_v39  ;;  %v3739_v57 = vshrl.u32 %v10603_v50, %v3738_v27  ;;  %v3754_v37 = vor.u32 %v3753_v9, %v3752_v8 }
 0x436   :  { %v3603_v33 = vsel %vm9455_vm5, %v9266_v2, %v3600_v0  ;;  %vm3755_vm2 = vcmp.lt.s32.totalorder %v9520_v31, 1  ;;  %v4513_v1 = vshrl.u32 %v4512_v15, 30  ;;  %vm3758_vm4 = vcmp.lt.s32.totalorder %v9520_v31, 4 }
 0x437   :  { %5424 = vcosq.f32 %v3603_v33  ;;  %v3763_v28 = vsel %vm3755_vm2, %v3742_v55, %v3745_v7  ;;  %vm3756_vm0 = vcmp.lt.s32.totalorder %v9520_v31, 2  ;;  %vm3757_vm3 = vcmp.lt.s32.totalorder %v9520_v31, 3 }
 0x438   :  { %5426 = vsinq.f32 %v3603_v33  ;;  %v3764_v5 = vsel %vm3758_vm4, %v3751_v22, 920167782  ;;  %v4514_v59 = vshll.u32 %v4513_v1, 30  ;;  %v3760_v3 = vsel %vm3758_vm4, %v3748_v36, 2102212464 }
 0x439   :  { %v3765_v20 = vsel %vm3757_vm3, %v3748_v36, %v3764_v5  ;;  %v3767_v12 = vsel %vm3755_vm2, %v3745_v7, %v3748_v36  ;;  %v3768_v44 = vsel %vm3758_vm4, %v3754_v37, 1326507024  ;;  %v3771_v10 = vshll.u32 %v3731_v14, 8 }
 0x43a   :  { %v3766_v42 = vsel %vm3756_vm0, %v3763_v28, %v3765_v20  ;;  %v9561_v24 = vadd.f32 %v1570_v45, %v10695_v61  ;;  %v4515_v23 = vsub.s32 %v4511_v21, %v4514_v59  ;;  %v3759_v13 = vsel %vm3755_vm2, %v3739_v57, %v3742_v55  ;;  %v9597_v57 = vpop.permute.xlu1 %1430 }
 0x43b   :  { %v3769_v27 = vsel %vm3757_vm3, %v3751_v22, %v3768_v44  ;;  %v9567_v29 = vadd.f32 %v9197_v11, %v9471_v35  ;;  %v3761_v43 = vsel %vm3757_vm3, %v3745_v7, %v3760_v3  ;;  %v4537_v19 = vsub.s32 4, %v4513_v1 }
 0x43c   :  { %v3770_v26 = vsel %vm3756_vm0, %v3767_v12, %v3769_v27  ;;  %v9571_v34 = vmul.u32.u64.low %v3771_v10, %v3766_v42  ;;  %v9572_v49 = vmul.u32.u64.high %v3771_v10, %v3766_v42, %v9571_v34  ;;  %v4517_v14 = vsub.s32 0, %v4515_v23 }
 0x43d   :  { %v9574_v4 = vmul.u32.u64.low %v3771_v10, %v3770_v26  ;;  %v9575_v39 = vmul.u32.u64.high %v3771_v10, %v3770_v26, %v9574_v4  ;;  %v4662_v62 = vand.u32 2139095040, %v9567_v29  ;;  %vm3607_vm5 = vweird.f32 %v9266_v2 }
 0x43e   :  { %v5162_v48 = vmin.u32 %v4517_v14, %v4515_v23  ;;  %v3762_v11 = vsel %vm3756_vm0, %v3759_v13, %v3761_v43  ;;  %vm9583_vm6 = vcmp.le.f32.partialorder %v4451_v6, 0.7853982  ;;  %vm4453_vm7 = vcmp.lt.s32.totalorder %v9391_v32, 0 }
 0x43f   :  { %v3781_v53 = vadd.s32 1, %v9572_v49  ;;  %v4663_v46 = vshrl.u32 %v4662_v62, 23  ;;  %vm3610_vm8 = vcmp.lt.s32.totalorder %v9544_v41, 2  ;;  %vm3611_vm9 = vcmp.eq.s32.totalorder %v9544_v41, 0 }
 0x440   :  { %v4519_v21 = vclz %v5162_v48  ;;  %v4538_v31 = vsel %vm4453_vm7, %v4537_v19, %v4513_v1  ;;  %v3778_v6 = vmul.u32 %v3771_v10, %v3762_v11  ;;  %vm3780_vm10 = vc.u32 %v9575_v39, %v9571_v34 }
 0x441   :  { %v5425_v60 = vpop.eup %5424  ;;  %v5169_v22 = vadd.s32 4294967169, %v4663_v46  ;;  %vm3614_vm11 = vcmp.eq.s32.totalorder %v9544_v41, 2  ;;  %v3782_v45 = vsel %vm3780_vm10, %v3781_v53, %v9572_v49  ;;  %v4659_v36 = vand.u32 2147483647, %v9567_v29  ;;  %v10698_v53 = vld [vmem:[#allocation48_spill] sm:$0xff] }
 0x442   :  { %v5427_v55 = vpop.eup %5426  ;;  %v3615_v7 = vxor.u32 2147483648, %v5425_v60  ;;  %v5163_v9 = vadd.s32 4294967294, %v4519_v21  ;;  %v3783_v15 = vadd.s32 %v3782_v45, %v3778_v6  ;;  %v4507_v1 = vadd.s32 %v9510_v47, %v9505_v30 }
 0x443   :  { %v3612_v8 = vxor.u32 2147483648, %v5427_v55  ;;  %v4669_v33 = vadd.s32 1, %v5169_v22  ;;  %v4540_v28 = vsel %vm9583_vm6, 0, %v4538_v31  ;;  %v1495_v44 = vmul.f32 %v7193_v18, %v9597_v57 }
 0x444   :  { %v3616_v0 = vsel %vm3614_vm11, %v3615_v7, %v5427_v55  ;;  %vm5164_vm12 = vcmp.lt.s32.totalorder %v5163_v9, 0  ;;  %v3784_v3 = vadd.s32 536870912, %v3783_v15  ;;  %v4666_v10 = vand.u32 8388607, %v4659_v36 }
 0x445   :  { %v3613_v37 = vsel %vm3611_vm9, %v5425_v60, %v3612_v8  ;;  %v4522_v59 = vsel %vm5164_vm12, 0, %v5163_v9  ;;  %vm4670_vm14 = vcmp.gt.s32.totalorder %v4669_v33, 0  ;;  %v9622_v19 = vadd.s32 3, %v4540_v28 }
 0x446   :  { %v3617_v5 = vsel %vm3610_vm8, %v3613_v37, %v3616_v0  ;;  %v4523_v12 = vsub.s32 32, %v4522_v59  ;;  %v4527_v42 = vsub.s32 4294967266, %v4522_v59  ;;  %v9612_v47 = vshrl.u32 %v3784_v3, 30 }
 0x447   :  { %v3618_v20 = vsel %vm3607_vm5, nan, %v3617_v5  ;;  %v4671_v41 = vsel %vm4670_vm14, %v4669_v33, 0  ;;  %v4524_v61 = vshll.u32 %v4515_v23, %v4522_v59  ;;  %v3779_v4 = vadd.s32 %v9571_v34, %v9575_v39 }
 0x448   :  { %v4989_v30 = vadd.f32 %v3618_v20, %v9238_v25  ;;  %v4525_v13 = vshrl.u32 %v4507_v1, %v4523_v12  ;;  %v4528_v27 = vadd.s32 127, %v4527_v42  ;;  %v4673_v43 = vand.u32 31, %v4671_v41 }
 0x449   :  { %v3786_v2 = vshll.u32 %v9612_v47, 30  ;;  %v9620_v25 = vmul.f32 %v7196_v58, %v9341_v17  ;;  %v4667_v48 = vor.u32 8388608, %v4666_v10  ;;  %v4672_v11 = vshrl.u32 %v4671_v41, 5 }
 0x44a   :  { %5022 = vst.msk [vmem:[#allocation2 + $0x90] sm:$0xff] %vm5003_vm13, %v4989_v30  ;;  %v4526_v26 = vor.u32 %v4525_v13, %v4524_v61  ;;  %v4529_v49 = vshll.u32 %v4528_v27, 23  ;;  %v4674_v14 = vsub.s32 32, %v4673_v43  ;;  %v1527_v46 = vadd.f32 %v1495_v44, %v10698_v53  ;;  %v9661_v53 = vld [vmem:[%s10274_s3] ss:$0 sm:$0xff] }
 0x44b   :  { %v9625_v62 = vsub.s32 %v3783_v15, %v3786_v2  ;;  %v4682_v17 = vshll.u32 %v10606_v51, %v4673_v43  ;;  %v4676_v22 = vshll.u32 %v10603_v50, %v4673_v43  ;;  %v4679_v8 = vshll.u32 %v10605_v63, %v4673_v43 }
 0x44c   :  { %v4530_v23 = vor.u32 4788187, %v4529_v49  ;;  %v4677_v21 = vshrl.u32 %v10605_v63, %v4674_v14  ;;  %v4680_v31 = vshrl.u32 %v10606_v51, %v4674_v14  ;;  %v4533_v7 = vcvt.s32.f32 %v4526_v26 }
 0x44d   :  { %v3789_v60 = vsub.s32 0, %v9625_v62  ;;  %v4683_v6 = vshrl.u32 %v10607_v52, %v4674_v14  ;;  %v4686_v34 = vshrl.u32 %v10608_v40, %v4674_v14  ;;  %v4685_v9 = vshll.u32 %v10607_v52, %v4673_v43 }
 0x44e   :  { %v4531_v55 = vand.u32 2147483647, %v4530_v23  ;;  %v3809_v0 = vsub.s32 4, %v9612_v47  ;;  %v9639_v33 = vshll.u32 %v4667_v48, 8  ;;  %v4678_v1 = vor.u32 %v4677_v21, %v4676_v22  ;;  %v1467_v22 = vpop.permute.xlu0 %1466 }
 0x44f   :  { %v5134_v39 = vmin.u32 %v3789_v60, %v9625_v62  ;;  %v4684_v15 = vor.u32 %v4683_v6, %v4682_v17  ;;  %v4681_v28 = vor.u32 %v4680_v31, %v4679_v8  ;;  %v4687_v5 = vor.u32 %v4686_v34, %v4685_v9 }
 0x450   :  { %v4534_v45 = vmul.f32 %v4533_v7, %v4531_v55  ;;  %v4675_v3 = vshrl.u32 %v10603_v50, %v4674_v14  ;;  %v4688_v20 = vshll.u32 %v10608_v40, %v4673_v43  ;;  %v4689_v12 = vshrl.u32 %v10609_v16, %v4674_v14 }
 0x451   :  { %v3791_v37 = vclz %v5134_v39  ;;  %vm4691_vm1 = vcmp.lt.s32.totalorder %v4672_v11, 1  ;;  %vm4692_vm15 = vcmp.lt.s32.totalorder %v4672_v11, 2  ;;  %vm4694_vm2 = vcmp.lt.s32.totalorder %v4672_v11, 4 }
 0x452   :  { %v4535_v59 = vxor.u32 2147483648, %v4534_v45  ;;  %v4690_v30 = vor.u32 %v4689_v12, %v4688_v20  ;;  %vm4693_vm4 = vcmp.lt.s32.totalorder %v4672_v11, 3  ;;  %v4696_v10 = vsel %vm4694_vm2, %v4684_v15, 2102212464 }
 0x453   :  { %v5135_v42 = vadd.s32 4294967294, %v3791_v37  ;;  %v4699_v61 = vsel %vm4691_vm1, %v4678_v1, %v4681_v28  ;;  %v4700_v13 = vsel %vm4694_vm2, %v4687_v5, 920167782  ;;  %v4695_v43 = vsel %vm4691_vm1, %v4675_v3, %v4678_v1 }
 0x454   :  { %v4536_v44 = vsel %vm4453_vm7, %v4535_v59, %v4534_v45  ;;  %v4701_v2 = vsel %vm4693_vm4, %v4684_v15, %v4700_v13  ;;  %v4697_v14 = vsel %vm4693_vm4, %v4681_v28, %v4696_v10  ;;  %v4703_v35 = vsel %vm4691_vm1, %v4681_v28, %v4684_v15 }
 0x455   :  { %v4539_v41 = vsel %vm9583_vm6, %v9391_v32, %v4536_v44  ;;  %vm5136_vm0 = vcmp.lt.s32.totalorder %v5135_v42, 0  ;;  %v4702_v23 = vsel %vm4692_vm15, %v4699_v61, %v4701_v2  ;;  %v4704_v48 = vsel %vm4694_vm2, %v4690_v30, 1326507024 }
 0x456   :  { %5428 = vcosq.f32 %v4539_v41  ;;  %v3794_v27 = vsel %vm5136_vm0, 0, %v5135_v42  ;;  %v9664_v60 = vadd.f32 %v9661_v53, %v1527_v46  ;;  %v4705_v55 = vsel %vm4693_vm4, %v4687_v5, %v4704_v48  ;;  %v10703_v48 = vld [vmem:[#allocation32_spill] sm:$0xff] }
 0x457   :  { %5430 = vsinq.f32 %v4539_v41  ;;  %v3795_v26 = vsub.s32 32, %v3794_v27  ;;  %v3799_v49 = vsub.s32 4294967266, %v3794_v27  ;;  %v3796_v21 = vshll.u32 %v9625_v62, %v3794_v27 }
 0x458   :  { %v4698_v7 = vsel %vm4692_vm15, %v4695_v43, %v4697_v14  ;;  %v4706_v6 = vsel %vm4692_vm15, %v4703_v35, %v4705_v55  ;;  %v9671_v34 = vmul.u32.u64.low %v9639_v33, %v4702_v23  ;;  %v9672_v39 = vmul.u32.u64.high %v9639_v33, %v4702_v23, %v9671_v34 }
 0x459   :  { %v3797_v31 = vshrl.u32 %v3779_v4, %v3795_v26  ;;  %v3800_v17 = vadd.s32 127, %v3799_v49  ;;  %v9676_v46 = vmul.u32.u64.low %v9639_v33, %v4706_v6  ;;  %v9677_v45 = vmul.u32.u64.high %v9639_v33, %v4706_v6, %v9676_v46  ;;  %v10699_v4 = vld [vmem:[#allocation24_spill] sm:$0xff] }
 0x45a   :  { %v1600_v62 = vadd.f32 %v9620_v25, %v10699_v4  ;;  %vm9683_vm3 = vcmp.le.f32.partialorder %v3723_v38, 0.7853982  ;;  %vm3725_vm5 = vcmp.lt.s32.totalorder %v9439_v54, 0  ;;  %v3934_v15 = vand.u32 2139095040, %v9664_v60 }
 0x45b   :  { %v3798_v8 = vor.u32 %v3797_v31, %v3796_v21  ;;  %v3801_v9 = vshll.u32 %v3800_v17, 23  ;;  %vm4543_vm6 = vweird.f32 %v9391_v32  ;;  %v4545_v37 = vand.u32 3, %v9622_v19  ;;  %v10702_v19 = vld [vmem:[#allocation22_spill] sm:$0xff] }
 0x45c   :  { %v3810_v28 = vsel %vm3725_vm5, %v3809_v0, %v9612_v47  ;;  %v1572_v25 = vmul.f32 %v7196_v58, %v1467_v22  ;;  %v4714_v38 = vmul.u32 %v9639_v33, %v4698_v7  ;;  %v4717_v5 = vadd.s32 1, %v9672_v39 }
 0x45d   :  { %v3802_v1 = vor.u32 4788187, %v3801_v9  ;;  %v3935_v59 = vshrl.u32 %v3934_v15, 23  ;;  %v1504_v3 = vmul.f32 %v7193_v18, %v1467_v22  ;;  %v3805_v12 = vcvt.s32.f32 %v3798_v8 }
 0x45e   :  { %vm4716_vm7 = vc.u32 %v9677_v45, %v9671_v34  ;;  %v9701_v42 = vadd.f32 %v1572_v25, %v10702_v19  ;;  %v3812_v47 = vsel %vm9683_vm3, 0, %v3810_v28  ;;  %v3931_v33 = vand.u32 2147483647, %v9664_v60 }
 0x45f   :  { %v3803_v20 = vand.u32 2147483647, %v3802_v1  ;;  %v4718_v0 = vsel %vm4716_vm7, %v4717_v5, %v9672_v39  ;;  %v5141_v30 = vadd.s32 4294967169, %v3935_v59  ;;  %vm4546_vm8 = vcmp.lt.s32.totalorder %v4545_v37, 2 }
 0x460   :  { %v5429_v44 = vpop.eup %5428  ;;  %v4719_v13 = vadd.s32 %v4718_v0, %v4714_v38  ;;  %vm4547_vm9 = vcmp.eq.s32.totalorder %v4545_v37, 0  ;;  %vm4550_vm10 = vcmp.eq.s32.totalorder %v4545_v37, 2  ;;  %v3816_v49 = vadd.s32 3, %v3812_v47 }
 0x461   :  { %v5431_v10 = vpop.eup %5430  ;;  %v4551_v41 = vxor.u32 2147483648, %v5429_v44  ;;  %v3806_v61 = vmul.f32 %v3805_v12, %v3803_v20  ;;  %v3941_v43 = vadd.s32 1, %v5141_v30  ;;  %v3938_v35 = vand.u32 8388607, %v3931_v33 }
 0x462   :  { %v4548_v27 = vxor.u32 2147483648, %v5431_v10  ;;  %v4720_v14 = vadd.s32 536870912, %v4719_v13  ;;  %v1536_v21 = vadd.f32 %v1504_v3, %v10703_v48  ;;  %v9720_v9 = vand.u32 3, %v3816_v49 }
 0x463   :  { %v4552_v2 = vsel %vm4550_vm10, %v4551_v41, %v5431_v10  ;;  %v3807_v26 = vxor.u32 2147483648, %v3806_v61  ;;  %vm3942_vm11 = vcmp.gt.s32.totalorder %v3941_v43, 0  ;;  %v3939_v4 = vor.u32 8388608, %v3938_v35 }
 0x464   :  { %v4549_v23 = vsel %vm4547_vm9, %v5429_v44, %v4548_v27  ;;  %v9713_v55 = vshrl.u32 %v4720_v14, 30  ;;  %v3943_v7 = vsel %vm3942_vm11, %v3941_v43, 0  ;;  %v9730_v11 = vadd.f32 %v9661_v53, %v1536_v21 }
 0x465   :  { %v4553_v31 = vsel %vm4546_vm8, %v4549_v23, %v4552_v2  ;;  %v3808_v17 = vsel %vm3725_vm5, %v3807_v26, %v3806_v61  ;;  %v3945_v22 = vand.u32 31, %v3943_v7  ;;  %v9726_v32 = vshrl.u32 %v3943_v7, 5 }
 0x466   :  { %v4554_v6 = vsel %vm4543_vm6, nan, %v4553_v31  ;;  %v3811_v39 = vsel %vm9683_vm3, %v9439_v54, %v3808_v17  ;;  %v4722_v46 = vshll.u32 %v9713_v55, 30  ;;  %vm3822_vm12 = vcmp.eq.s32.totalorder %v9720_v9, 2 }
 0x467   :  { %v4998_v8 = vadd.f32 %v4554_v6, %v1600_v62  ;;  %5432 = vcosq.f32 %v3811_v39  ;;  %v3946_v15 = vsub.s32 32, %v3945_v22  ;;  %v3948_v1 = vshll.u32 %v10603_v50, %v3945_v22 }
 0x468   :  { %5434 = vsinq.f32 %v3811_v39  ;;  %v9724_v37 = vsub.s32 %v4719_v13, %v4722_v46  ;;  %v3951_v28 = vshll.u32 %v10605_v63, %v3945_v22  ;;  %v3954_v38 = vshll.u32 %v10606_v51, %v3945_v22 }
 0x469   :  { %5031 = vst.msk [vmem:[#allocation2 + $0xd8] sm:$0xff] %vm5003_vm13, %v4998_v8  ;;  %v3949_v62 = vshrl.u32 %v10605_v63, %v3946_v15  ;;  %v3952_v25 = vshrl.u32 %v10606_v51, %v3946_v15  ;;  %v3955_v59 = vshrl.u32 %v10607_v52, %v3946_v15  ;;  %v3957_v3 = vshll.u32 %v10607_v52, %v3945_v22 }
 0x46a   :  { %v4725_v5 = vsub.s32 0, %v9724_v37  ;;  %v3958_v20 = vshrl.u32 %v10608_v40, %v3946_v15  ;;  %vm3819_vm14 = vcmp.eq.s32.totalorder %v9720_v9, 0  ;;  %v3960_v44 = vshll.u32 %v10608_v40, %v3945_v22 }
 0x46b   :  { %v3950_v12 = vor.u32 %v3949_v62, %v3948_v1  ;;  %v3953_v19 = vor.u32 %v3952_v25, %v3951_v28  ;;  %v3961_v47 = vshrl.u32 %v10609_v16, %v3946_v15  ;;  %vm3818_vm1 = vcmp.lt.s32.totalorder %v9720_v9, 2 }
 0x46c   :  { %v4715_v0 = vadd.s32 %v9671_v34, %v9677_v45  ;;  %v5170_v30 = vmin.u32 %v4725_v5, %v9724_v37  ;;  %v3956_v10 = vor.u32 %v3955_v59, %v3954_v38  ;;  %v3959_v41 = vor.u32 %v3958_v20, %v3957_v3 }
 0x46d   :  { %vm3815_vm15 = vweird.f32 %v9439_v54  ;;  %v3962_v61 = vor.u32 %v3961_v47, %v3960_v44  ;;  %v9749_v13 = vshll.u32 %v3939_v4, 8  ;;  %v4867_v27 = vand.u32 2147483647, %v9730_v11 }
 0x46e   :  { %v4870_v43 = vand.u32 2139095040, %v9730_v11  ;;  %vm4661_vm2 = vcmp.lt.s32.totalorder %v9567_v29, 0  ;;  %v4727_v2 = vclz %v5170_v30  ;;  %v4745_v26 = vsub.s32 4, %v9713_v55  ;;  %v9784_v30 = vpop.permute.xlu1 %1438 }
 0x46f   :  { %v3947_v34 = vshrl.u32 %v10603_v50, %v3946_v15  ;;  %vm3963_vm4 = vcmp.lt.s32.totalorder %v9726_v32, 1  ;;  %vm3964_vm0 = vcmp.lt.s32.totalorder %v9726_v32, 2  ;;  %vm3965_vm3 = vcmp.lt.s32.totalorder %v9726_v32, 3 }
 0x470   :  { %vm3966_vm5 = vcmp.lt.s32.totalorder %v9726_v32, 4  ;;  %v3971_v45 = vsel %vm3963_vm4, %v3950_v12, %v3953_v19  ;;  %v5171_v14 = vadd.s32 4294967294, %v4727_v2  ;;  %v3975_v7 = vsel %vm3963_vm4, %v3953_v19, %v3956_v10 }
 0x471   :  { %v5433_v49 = vpop.eup %5432  ;;  %v3967_v23 = vsel %vm3963_vm4, %v3947_v34, %v3950_v12  ;;  %v3968_v35 = vsel %vm3966_vm5, %v3956_v10, 2102212464  ;;  %v3972_v48 = vsel %vm3966_vm5, %v3959_v41, 920167782  ;;  %v3976_v6 = vsel %vm3966_vm5, %v3962_v61, 1326507024 }
 0x472   :  { %v5435_v21 = vpop.eup %5434  ;;  %v3823_v31 = vxor.u32 2147483648, %v5433_v49  ;;  %v3973_v17 = vsel %vm3965_vm3, %v3956_v10, %v3972_v48  ;;  %vm5172_vm6 = vcmp.lt.s32.totalorder %v5171_v14, 0  ;;  %v4871_v8 = vshrl.u32 %v4870_v43, 23 }
 0x473   :  { %v3820_v39 = vxor.u32 2147483648, %v5435_v21  ;;  %v3974_v22 = vsel %vm3964_vm0, %v3971_v45, %v3973_v17  ;;  %v4730_v4 = vsel %vm5172_vm6, 0, %v5171_v14  ;;  %v3969_v15 = vsel %vm3965_vm3, %v3953_v19, %v3968_v35 }
 0x474   :  { %v3824_v46 = vsel %vm3822_vm12, %v3823_v31, %v5435_v21  ;;  %v3977_v1 = vsel %vm3965_vm3, %v3959_v41, %v3976_v6  ;;  %v4731_v28 = vsub.s32 32, %v4730_v4  ;;  %v4732_v25 = vshll.u32 %v9724_v37, %v4730_v4  ;;  %v10706_v31 = vld [vmem:[#allocation60_spill] sm:$0xff] }
 0x475   :  { %v3821_v62 = vsel %vm3819_vm14, %v5433_v49, %v3820_v39  ;;  %v4735_v38 = vsub.s32 4294967266, %v4730_v4  ;;  %v3978_v59 = vsel %vm3964_vm0, %v3975_v7, %v3977_v1  ;;  %v5177_v47 = vadd.s32 4294967169, %v4871_v8 }
 0x476   :  { %v3825_v5 = vsel %vm3818_vm1, %v3821_v62, %v3824_v46  ;;  %v9778_v3 = vmul.u32.u64.low %v9749_v13, %v3974_v22  ;;  %v9779_v20 = vmul.u32.u64.high %v9749_v13, %v3974_v22, %v9778_v3  ;;  %v4733_v19 = vshrl.u32 %v4715_v0, %v4731_v28 }
 0x477   :  { %v3826_v12 = vsel %vm3815_vm15, nan, %v3825_v5  ;;  %v4736_v44 = vadd.s32 127, %v4735_v38  ;;  %v4746_v9 = vsel %vm4661_vm2, %v4745_v26, %v9713_v55  ;;  %v3970_v54 = vsel %vm3964_vm0, %v3967_v23, %v3969_v15 }
 0x478   :  { %v4991_v37 = vadd.f32 %v3826_v12, %v9431_v56  ;;  %v9791_v10 = vmul.u32.u64.low %v9749_v13, %v3978_v59  ;;  %v9792_v41 = vmul.u32.u64.high %v9749_v13, %v3978_v59, %v9791_v10  ;;  %v4734_v61 = vor.u32 %v4733_v19, %v4732_v25 }
 0x479   :  { %v4737_v43 = vshll.u32 %v4736_v44, 23  ;;  %v4877_v0 = vadd.s32 1, %v5177_v47  ;;  %vm9799_vm7 = vcmp.le.f32.partialorder %v4659_v36, 0.7853982  ;;  %v3989_v55 = vadd.s32 1, %v9779_v20 }
 0x47a   :  { %5024 = vst.msk [vmem:[#allocation2 + $0xa0] sm:$0xff] %vm5003_vm13, %v4991_v37  ;;  %v1497_v2 = vmul.f32 %v7193_v18, %v9784_v30  ;;  %v4748_v34 = vsel %vm9799_vm7, 0, %v4746_v9  ;;  %v4874_v32 = vand.u32 8388607, %v4867_v27  ;;  %v3986_v45 = vmul.u32 %v9749_v13, %v3970_v54 }
 0x47b   :  { %v4738_v26 = vor.u32 4788187, %v4737_v43  ;;  %vm4878_vm8 = vcmp.gt.s32.totalorder %v4877_v0, 0  ;;  %vm3988_vm9 = vc.u32 %v9792_v41, %v9778_v3  ;;  %v4741_v14 = vcvt.s32.f32 %v4734_v61 }
 0x47c   :  { %v4879_v36 = vsel %vm4878_vm8, %v4877_v0, 0  ;;  %v3990_v23 = vsel %vm3988_vm9, %v3989_v55, %v9779_v20  ;;  %v4752_v48 = vadd.s32 3, %v4748_v34  ;;  %v1529_v17 = vadd.f32 %v1497_v2, %v10706_v31 }
 0x47d   :  { %v4739_v49 = vand.u32 2147483647, %v4738_v26  ;;  %v4881_v35 = vand.u32 31, %v4879_v36  ;;  %v3991_v21 = vadd.s32 %v3990_v23, %v3986_v45  ;;  %v4875_v6 = vor.u32 8388608, %v4874_v32 }
 0x47e   :  { %v9815_v39 = vshrl.u32 %v4879_v36, 5  ;;  %v9836_v9 = vadd.f32 %v9661_v53, %v1529_v17  ;;  %v9840_v54 = vmul.f32 %v7196_v58, %v9597_v57  ;;  %v4753_v56 = vand.u32 3, %v4752_v48 }
 0x47f   :  { %v4742_v7 = vmul.f32 %v4741_v14, %v4739_v49  ;;  %v4882_v22 = vsub.s32 32, %v4881_v35  ;;  %v3992_v8 = vadd.s32 536870912, %v3991_v21  ;;  %v4884_v13 = vshll.u32 %v10603_v50, %v4881_v35 }
 0x480   :  { %v4887_v46 = vshll.u32 %v10605_v63, %v4881_v35  ;;  %v4890_v4 = vshll.u32 %v10606_v51, %v4881_v35  ;;  %v4893_v28 = vshll.u32 %v10607_v52, %v4881_v35  ;;  %v4896_v44 = vshll.u32 %v10608_v40, %v4881_v35 }
 0x481   :  { %v4743_v15 = vxor.u32 2147483648, %v4742_v7  ;;  %v4885_v1 = vshrl.u32 %v10605_v63, %v4882_v22  ;;  %v4888_v62 = vshrl.u32 %v10606_v51, %v4882_v22  ;;  %v9823_v25 = vshrl.u32 %v3992_v8, 30 }
 0x482   :  { %v4891_v38 = vshrl.u32 %v10607_v52, %v4882_v22  ;;  %v4894_v5 = vshrl.u32 %v10608_v40, %v4882_v22  ;;  %v4897_v59 = vshrl.u32 %v10609_v16, %v4882_v22  ;;  %vm4899_vm10 = vcmp.lt.s32.totalorder %v9815_v39, 1 }
 0x483   :  { %v4744_v20 = vsel %vm4661_vm2, %v4743_v15, %v4742_v7  ;;  %v4886_v12 = vor.u32 %v4885_v1, %v4884_v13  ;;  %v4889_v19 = vor.u32 %v4888_v62, %v4887_v46  ;;  %v3994_v37 = vshll.u32 %v9823_v25, 30 }
 0x484   :  { %v4747_v47 = vsel %vm9799_vm7, %v9567_v29, %v4744_v20  ;;  %v4892_v10 = vor.u32 %v4891_v38, %v4890_v4  ;;  %v4895_v61 = vor.u32 %v4894_v5, %v4893_v28  ;;  %v4898_v43 = vor.u32 %v4897_v59, %v4896_v44 }
 0x485   :  { %5436 = vcosq.f32 %v4747_v47  ;;  %v9842_v0 = vsub.s32 %v3991_v21, %v3994_v37  ;;  %vm4902_vm11 = vcmp.lt.s32.totalorder %v9815_v39, 4  ;;  %v4907_v55 = vsel %vm4899_vm10, %v4886_v12, %v4889_v19 }
 0x486   :  { %5438 = vsinq.f32 %v4747_v47  ;;  %v4915_v2 = vshll.u32 %v4875_v6, 8  ;;  %vm4901_vm12 = vcmp.lt.s32.totalorder %v9815_v39, 3  ;;  %v4908_v34 = vsel %vm4902_vm11, %v4895_v61, 920167782 }
 0x487   :  { %v3997_v26 = vsub.s32 0, %v9842_v0  ;;  %v4142_v32 = vand.u32 2139095040, %v9836_v9  ;;  %vm4900_vm14 = vcmp.lt.s32.totalorder %v9815_v39, 2  ;;  %v4904_v57 = vsel %vm4902_vm11, %v4892_v10, 2102212464 }
 0x488   :  { %v4909_v45 = vsel %vm4901_vm12, %v4892_v10, %v4908_v34  ;;  %v4912_v36 = vsel %vm4902_vm11, %v4898_v43, 1326507024  ;;  %v4883_v14 = vshrl.u32 %v10603_v50, %v4882_v22  ;;  %v4911_v35 = vsel %vm4899_vm10, %v4889_v19, %v4892_v10  ;;  %v9872_v22 = vpop.permute.xlu1 %1446 }
 0x489   :  { %v5142_v49 = vmin.u32 %v3997_v26, %v9842_v0  ;;  %v4910_v23 = vsel %vm4900_vm14, %v4907_v55, %v4909_v45  ;;  %vm3933_vm1 = vcmp.lt.s32.totalorder %v9664_v60, 0  ;;  %v4913_v48 = vsel %vm4901_vm12, %v4895_v61, %v4912_v36 }
 0x48a   :  { %v9863_v21 = vmul.u32.u64.low %v4915_v2, %v4910_v23  ;;  %v9864_v31 = vmul.u32.u64.high %v4915_v2, %v4910_v23, %v9863_v21  ;;  %vm4751_vm15 = vweird.f32 %v9567_v29  ;;  %vm4754_vm2 = vcmp.lt.s32.totalorder %v4753_v56, 2 }
 0x48b   :  { %v3999_v17 = vclz %v5142_v49  ;;  %v4903_v7 = vsel %vm4899_vm10, %v4883_v14, %v4886_v12  ;;  %v4905_v6 = vsel %vm4901_vm12, %v4889_v19, %v4904_v57  ;;  %vm4755_vm4 = vcmp.eq.s32.totalorder %v4753_v56, 0 }
 0x48c   :  { %vm9876_vm0 = vcmp.le.f32.partialorder %v3931_v33, 0.7853982  ;;  %v4017_v13 = vsub.s32 4, %v9823_v25  ;;  %v4914_v46 = vsel %vm4900_vm14, %v4911_v35, %v4913_v48  ;;  %v4143_v4 = vshrl.u32 %v4142_v32, 23 }
 0x48d   :  { %vm4758_vm3 = vcmp.eq.s32.totalorder %v4753_v56, 2  ;;  %v5143_v15 = vadd.s32 4294967294, %v3999_v17  ;;  %v9883_v1 = vmul.u32.u64.low %v4915_v2, %v4914_v46  ;;  %v9884_v62 = vmul.u32.u64.high %v4915_v2, %v4914_v46, %v9883_v1 }
 0x48e   :  { %v3987_v38 = vadd.s32 %v9778_v3, %v9792_v41  ;;  %v4906_v33 = vsel %vm4900_vm14, %v4903_v7, %v4905_v6  ;;  %v5149_v5 = vadd.s32 4294967169, %v4143_v4  ;;  %v1499_v59 = vmul.f32 %v7193_v18, %v9872_v22  ;;  %v10710_v1 = vld [vmem:[#allocation36_spill] sm:$0xff] }
 0x48f   :  { %v5437_v28 = vpop.eup %5436  ;;  %vm5144_vm5 = vcmp.lt.s32.totalorder %v5143_v15, 0  ;;  %v4925_v19 = vadd.s32 1, %v9864_v31  ;;  %v4139_v44 = vand.u32 2147483647, %v9836_v9  ;;  %v4018_v3 = vsel %vm3933_vm1, %v4017_v13, %v9823_v25 }
 0x490   :  { %v5439_v20 = vpop.eup %5438  ;;  %v4759_v12 = vxor.u32 2147483648, %v5437_v28  ;;  %v4002_v37 = vsel %vm5144_vm5, 0, %v5143_v15  ;;  %v4149_v41 = vadd.s32 1, %v5149_v5  ;;  %v4922_v43 = vmul.u32 %v4915_v2, %v4906_v33 }
 0x491   :  { %v4756_v47 = vxor.u32 2147483648, %v5439_v20  ;;  %v4003_v10 = vsub.s32 32, %v4002_v37  ;;  %v4007_v61 = vsub.s32 4294967266, %v4002_v37  ;;  %v4004_v26 = vshll.u32 %v9842_v0, %v4002_v37 }
 0x492   :  { %v4760_v39 = vsel %vm4758_vm3, %v4759_v12, %v5439_v20  ;;  %vm4924_vm6 = vc.u32 %v9884_v62, %v9863_v21  ;;  %vm4150_vm7 = vcmp.gt.s32.totalorder %v4149_v41, 0  ;;  %v4146_v2 = vand.u32 8388607, %v4139_v44 }
 0x493   :  { %v4757_v55 = vsel %vm4755_vm4, %v5437_v28, %v4756_v47  ;;  %v4005_v32 = vshrl.u32 %v3987_v38, %v4003_v10  ;;  %v4008_v57 = vadd.s32 127, %v4007_v61  ;;  %v4926_v25 = vsel %vm4924_vm6, %v4925_v19, %v9864_v31  ;;  %v10709_v31 = vld [vmem:[#allocation53_spill] sm:$0xff] }
 0x494   :  { %v4761_v34 = vsel %vm4754_vm2, %v4757_v55, %v4760_v39  ;;  %v4927_v36 = vadd.s32 %v4926_v25, %v4922_v43  ;;  %v4151_v49 = vsel %vm4150_vm7, %v4149_v41, 0  ;;  %v4020_v56 = vsel %vm9876_vm0, 0, %v4018_v3 }
 0x495   :  { %v4762_v45 = vsel %vm4751_vm15, nan, %v4761_v34  ;;  %v4006_v14 = vor.u32 %v4005_v32, %v4004_v26  ;;  %v4009_v23 = vshll.u32 %v4008_v57, 23  ;;  %v4153_v48 = vand.u32 31, %v4151_v49 }
 0x496   :  { %v5000_v0 = vadd.f32 %v4762_v45, %v9561_v24  ;;  %v4928_v35 = vadd.s32 536870912, %v4927_v36  ;;  %v9914_v29 = vadd.f32 %v9840_v54, %v10709_v31  ;;  %v4024_v7 = vadd.s32 3, %v4020_v56 }
 0x497   :  { %v4010_v17 = vor.u32 4788187, %v4009_v23  ;;  %v4147_v13 = vor.u32 8388608, %v4146_v2  ;;  %v4154_v46 = vsub.s32 32, %v4153_v48  ;;  %v4013_v4 = vcvt.s32.f32 %v4006_v14 }
 0x498   :  { %5033 = vst.msk [vmem:[#allocation2 + $0xe8] sm:$0xff] %vm5003_vm13, %v5000_v0  ;;  %v9916_v6 = vshrl.u32 %v4928_v35, 30  ;;  %v9918_v15 = vshrl.u32 %v4151_v49, 5  ;;  %v1531_v28 = vadd.f32 %v1499_v59, %v10710_v1  ;;  %v4156_v33 = vshll.u32 %v10603_v50, %v4153_v48 }
 0x499   :  { %v4011_v24 = vand.u32 2147483647, %v4010_v17  ;;  %v4157_v5 = vshrl.u32 %v10605_v63, %v4154_v46  ;;  %v4159_v54 = vshll.u32 %v10605_v63, %v4153_v48  ;;  %v4160_v12 = vshrl.u32 %v10606_v51, %v4154_v46 }
 0x49a   :  { %v4930_v38 = vshll.u32 %v9916_v6, 30  ;;  %v4163_v19 = vshrl.u32 %v10607_v52, %v4154_v46  ;;  %v4166_v47 = vshrl.u32 %v10608_v40, %v4154_v46  ;;  %v4162_v3 = vshll.u32 %v10606_v51, %v4153_v48 }
 0x49b   :  { %v4014_v20 = vmul.f32 %v4013_v4, %v4011_v24  ;;  %v4165_v59 = vshll.u32 %v10607_v52, %v4153_v48  ;;  %v4169_v41 = vshrl.u32 %v10609_v16, %v4154_v46  ;;  %v9933_v10 = vand.u32 3, %v4024_v7 }
 0x49c   :  { %v9928_v37 = vsub.s32 %v4927_v36, %v4930_v38  ;;  %v4158_v61 = vor.u32 %v4157_v5, %v4156_v33  ;;  %v4161_v43 = vor.u32 %v4160_v12, %v4159_v54  ;;  %vm4869_vm8 = vcmp.lt.s32.totalorder %v9730_v11, 0  ;;  %v9982_v54 = vpop.permute.xlu1 %1454 }
 0x49d   :  { %v4015_v39 = vxor.u32 2147483648, %v4014_v20  ;;  %v4164_v26 = vor.u32 %v4163_v19, %v4162_v3  ;;  %v4167_v34 = vor.u32 %v4166_v47, %v4165_v59  ;;  %v4168_v32 = vshll.u32 %v10608_v40, %v4153_v48 }
 0x49e   :  { %v4933_v55 = vsub.s32 0, %v9928_v37  ;;  %vm4171_vm9 = vcmp.lt.s32.totalorder %v9918_v15, 1  ;;  %v4187_v25 = vshll.u32 %v4147_v13, 8  ;;  %v9942_v45 = vadd.f32 %v9661_v53, %v1531_v28 }
 0x49f   :  { %v4016_v57 = vsel %vm3933_vm1, %v4015_v39, %v4014_v20  ;;  %v4170_v49 = vor.u32 %v4169_v41, %v4168_v32  ;;  %vm4174_vm10 = vcmp.lt.s32.totalorder %v9918_v15, 4  ;;  %v4155_v0 = vshrl.u32 %v10603_v50, %v4154_v46 }
 0x4a0   :  { %v4019_v36 = vsel %vm9876_vm0, %v9664_v60, %v4016_v57  ;;  %v5178_v2 = vmin.u32 %v4933_v55, %v9928_v37  ;;  %v4179_v14 = vsel %vm4171_vm9, %v4158_v61, %v4161_v43  ;;  %v4180_v23 = vsel %vm4174_vm10, %v4167_v34, 920167782 }
 0x4a1   :  { %5440 = vcosq.f32 %v4019_v36  ;;  %vm9956_vm11 = vcmp.le.f32.partialorder %v4867_v27, 0.7853982  ;;  %vm4173_vm12 = vcmp.lt.s32.totalorder %v9918_v15, 3  ;;  %v4176_v35 = vsel %vm4174_vm10, %v4164_v26, 2102212464 }
 0x4a2   :  { %5442 = vsinq.f32 %v4019_v36  ;;  %v4935_v56 = vclz %v5178_v2  ;;  %v4953_v48 = vsub.s32 4, %v9916_v6  ;;  %vm4172_vm14 = vcmp.lt.s32.totalorder %v9918_v15, 2 }
 0x4a3   :  { %v4181_v31 = vsel %vm4173_vm12, %v4164_v26, %v4180_v23  ;;  %v4183_v17 = vsel %vm4171_vm9, %v4161_v43, %v4164_v26  ;;  %v4175_v27 = vsel %vm4171_vm9, %v4155_v0, %v4158_v61  ;;  %v4184_v46 = vsel %vm4174_vm10, %v4170_v49, 1326507024 }
 0x4a4   :  { %v5179_v7 = vadd.s32 4294967294, %v4935_v56  ;;  %v4182_v13 = vsel %vm4172_vm14, %v4179_v14, %v4181_v31  ;;  %v4177_v24 = vsel %vm4173_vm12, %v4161_v43, %v4176_v35  ;;  %v4185_v4 = vsel %vm4173_vm12, %v4167_v34, %v4184_v46 }
 0x4a5   :  { %v9973_v1 = vmul.u32.u64.low %v4187_v25, %v4182_v13  ;;  %v9974_v28 = vmul.u32.u64.high %v4187_v25, %v4182_v13, %v9973_v1  ;;  %v4923_v38 = vadd.s32 %v9863_v21, %v9884_v62  ;;  %v4186_v33 = vsel %vm4172_vm14, %v4183_v17, %v4185_v4 }
 0x4a6   :  { %vm5180_vm1 = vcmp.lt.s32.totalorder %v5179_v7, 0  ;;  %v4350_v5 = vand.u32 2139095040, %v9942_v45  ;;  %v4954_v12 = vsel %vm4869_vm8, %v4953_v48, %v9916_v6  ;;  %vm4023_vm15 = vweird.f32 %v9664_v60 }
 0x4a7   :  { %v4938_v20 = vsel %vm5180_vm1, 0, %v5179_v7  ;;  %v9987_v19 = vmul.u32.u64.low %v4187_v25, %v4186_v33  ;;  %v9988_v47 = vmul.u32.u64.high %v4187_v25, %v4186_v33, %v9987_v19  ;;  %v4178_v62 = vsel %vm4172_vm14, %v4175_v27, %v4177_v24 }
 0x4a8   :  { %v4939_v3 = vsub.s32 32, %v4938_v20  ;;  %v4943_v21 = vsub.s32 4294967266, %v4938_v20  ;;  %v4351_v59 = vshrl.u32 %v4350_v5, 23  ;;  %vm4026_vm2 = vcmp.lt.s32.totalorder %v9933_v10, 2 }
 0x4a9   :  { %v4197_v41 = vadd.s32 1, %v9974_v28  ;;  %v4347_v39 = vand.u32 2147483647, %v9942_v45  ;;  %v1501_v6 = vmul.f32 %v7193_v18, %v9982_v54  ;;  %v4940_v61 = vshll.u32 %v9928_v37, %v4938_v20 }
 0x4aa   :  { %v4941_v43 = vshrl.u32 %v4923_v38, %v4939_v3  ;;  %v4944_v55 = vadd.s32 127, %v4943_v21  ;;  %v5157_v26 = vadd.s32 4294967169, %v4351_v59  ;;  %vm4030_vm4 = vcmp.eq.s32.totalorder %v9933_v10, 2 }
 0x4ab   :  { %v5441_v34 = vpop.eup %5440  ;;  %v4956_v15 = vsel %vm9956_vm11, 0, %v4954_v12  ;;  %v4194_v32 = vmul.u32 %v4187_v25, %v4178_v62  ;;  %vm4196_vm0 = vc.u32 %v9988_v47, %v9973_v1  ;;  %v4354_v23 = vand.u32 8388607, %v4347_v39  ;;  %v10713_v25 = vld [vmem:[#allocation16_spill] sm:$0xff] }
 0x4ac   :  { %v5443_v57 = vpop.eup %5442  ;;  %v4031_v36 = vxor.u32 2147483648, %v5441_v34  ;;  %v4942_v2 = vor.u32 %v4941_v43, %v4940_v61  ;;  %v4945_v49 = vshll.u32 %v4944_v55, 23  ;;  %v4198_v0 = vsel %vm4196_vm0, %v4197_v41, %v9974_v28 }
 0x4ad   :  { %v4028_v37 = vxor.u32 2147483648, %v5443_v57  ;;  %v4199_v14 = vadd.s32 %v4198_v0, %v4194_v32  ;;  %v4357_v56 = vadd.s32 1, %v5157_v26  ;;  %vm4027_vm3 = vcmp.eq.s32.totalorder %v9933_v10, 0 }
 0x4ae   :  { %v4032_v35 = vsel %vm4030_vm4, %v4031_v36, %v5443_v57  ;;  %v4946_v48 = vor.u32 4788187, %v4945_v49  ;;  %v1533_v31 = vadd.f32 %v1501_v6, %v10713_v25  ;;  %v4960_v7 = vadd.s32 3, %v4956_v15 }
 0x4af   :  { %v4029_v17 = vsel %vm4027_vm3, %v5441_v34, %v4028_v37  ;;  %v4200_v27 = vadd.s32 536870912, %v4199_v14  ;;  %vm4358_vm5 = vcmp.gt.s32.totalorder %v4357_v56, 0  ;;  %v4949_v24 = vcvt.s32.f32 %v4942_v2 }
 0x4b0   :  { %v4033_v13 = vsel %vm4026_vm2, %v4029_v17, %v4032_v35  ;;  %v4947_v46 = vand.u32 2147483647, %v4946_v48  ;;  %v4359_v4 = vsel %vm4358_vm5, %v4357_v56, 0  ;;  %v4355_v33 = vor.u32 8388608, %v4354_v23 }
 0x4b1   :  { %v4034_v28 = vsel %vm4023_vm15, nan, %v4033_v13  ;;  %v10013_v38 = vshrl.u32 %v4200_v27, 30  ;;  %v4361_v5 = vand.u32 31, %v4359_v4  ;;  %v10018_v21 = vand.u32 3, %v4960_v7 }
 0x4b2   :  { %v4993_v20 = vadd.f32 %v4034_v28, %v9914_v29  ;;  %v4950_v12 = vmul.f32 %v4949_v24, %v4947_v46  ;;  %v10021_v62 = vadd.f32 %v9661_v53, %v1533_v31  ;;  %v4360_v59 = vshrl.u32 %v4359_v4, 5 }
 0x4b3   :  { %v4202_v19 = vshll.u32 %v10013_v38, 30  ;;  %v4362_v3 = vsub.s32 32, %v4361_v5  ;;  %v10026_v6 = vshll.u32 %v4355_v33, 8  ;;  %v4364_v61 = vshll.u32 %v10603_v50, %v4361_v5 }
 0x4b4   :  { %5026 = vst.msk [vmem:[#allocation2 + $0xb0] sm:$0xff] %vm5003_vm13, %v4993_v20  ;;  %v4951_v10 = vxor.u32 2147483648, %v4950_v12  ;;  %v4367_v34 = vshll.u32 %v10605_v63, %v4361_v5  ;;  %v4370_v15 = vshll.u32 %v10606_v51, %v4361_v5  ;;  %v4373_v57 = vshll.u32 %v10607_v52, %v4361_v5 }
 0x4b5   :  { %v10023_v60 = vsub.s32 %v4199_v14, %v4202_v19  ;;  %v4365_v41 = vshrl.u32 %v10605_v63, %v4362_v3  ;;  %v4368_v43 = vshrl.u32 %v10606_v51, %v4362_v3  ;;  %v4371_v55 = vshrl.u32 %v10607_v52, %v4362_v3 }
 0x4b6   :  { %v4952_v29 = vsel %vm4869_vm8, %v4951_v10, %v4950_v12  ;;  %v4374_v36 = vshrl.u32 %v10608_v40, %v4362_v3  ;;  %v4376_v8 = vshll.u32 %v10608_v40, %v4361_v5  ;;  %v4377_v14 = vshrl.u32 %v10609_v16, %v4362_v3 }
 0x4b7   :  { %v4955_v53 = vsel %vm9956_vm11, %v9730_v11, %v4952_v29  ;;  %v4205_v26 = vsub.s32 0, %v10023_v60  ;;  %v4366_v32 = vor.u32 %v4365_v41, %v4364_v61  ;;  %v4369_v49 = vor.u32 %v4368_v43, %v4367_v34 }
 0x4b8   :  { %5444 = vcosq.f32 %v4955_v53  ;;  %v4372_v0 = vor.u32 %v4371_v55, %v4370_v15  ;;  %v4375_v37 = vor.u32 %v4374_v36, %v4373_v57  ;;  %v4558_v23 = vand.u32 2139095040, %v10021_v62 }
 0x4b9   :  { %5446 = vsinq.f32 %v4955_v53  ;;  %v5150_v2 = vmin.u32 %v4205_v26, %v10023_v60  ;;  %vm4141_vm6 = vcmp.lt.s32.totalorder %v9836_v9, 0  ;;  %v4225_v35 = vsub.s32 4, %v10013_v38 }
 0x4ba   :  { %v4363_v48 = vshrl.u32 %v10603_v50, %v4362_v3  ;;  %vm4379_vm7 = vcmp.lt.s32.totalorder %v4360_v59, 1  ;;  %vm4966_vm8 = vcmp.eq.s32.totalorder %v10018_v21, 2  ;;  %v4378_v25 = vor.u32 %v4377_v14, %v4376_v8 }
 0x4bb   :  { %v4207_v56 = vclz %v5150_v2  ;;  %vm4380_vm9 = vcmp.lt.s32.totalorder %v4360_v59, 2  ;;  %vm4381_vm10 = vcmp.lt.s32.totalorder %v4360_v59, 3  ;;  %vm4382_vm11 = vcmp.lt.s32.totalorder %v4360_v59, 4 }
 0x4bc   :  { %vm4963_vm12 = vcmp.eq.s32.totalorder %v10018_v21, 0  ;;  %v4384_v17 = vsel %vm4382_vm11, %v4372_v0, 2102212464  ;;  %v4387_v7 = vsel %vm4379_vm7, %v4366_v32, %v4369_v49  ;;  %v4388_v27 = vsel %vm4382_vm11, %v4375_v37, 920167782 }
 0x4bd   :  { %v5151_v31 = vadd.s32 4294967294, %v4207_v56  ;;  %vm4962_vm14 = vcmp.lt.s32.totalorder %v10018_v21, 2  ;;  %vm10053_vm1 = vcmp.le.f32.partialorder %v4139_v44, 0.7853982  ;;  %v4383_v46 = vsel %vm4379_vm7, %v4363_v48, %v4366_v32  ;;  %v1463_v56 = vpop.permute.xlu1 %1462 }
 0x4be   :  { %v4389_v24 = vsel %vm4381_vm10, %v4372_v0, %v4388_v27  ;;  %v4391_v4 = vsel %vm4379_vm7, %v4369_v49, %v4372_v0  ;;  %v4392_v28 = vsel %vm4382_vm11, %v4378_v25, 1326507024  ;;  %vm4959_vm15 = vweird.f32 %v9730_v11 }
 0x4bf   :  { %vm5152_vm2 = vcmp.lt.s32.totalorder %v5151_v31, 0  ;;  %v4385_v33 = vsel %vm4381_vm10, %v4369_v49, %v4384_v17  ;;  %v4390_v5 = vsel %vm4380_vm9, %v4387_v7, %v4389_v24  ;;  %v4393_v20 = vsel %vm4381_vm10, %v4375_v37, %v4392_v28 }
 0x4c0   :  { %v4210_v12 = vsel %vm5152_vm2, 0, %v5151_v31  ;;  %v4394_v44 = vsel %vm4380_vm9, %v4391_v4, %v4393_v20  ;;  %v10064_v19 = vmul.u32.u64.low %v10026_v6, %v4390_v5  ;;  %v10065_v3 = vmul.u32.u64.high %v10026_v6, %v4390_v5, %v10064_v19  ;;  %v10716_v5 = vld [vmem:[#allocation47_spill] sm:$0xff] }
 0x4c1   :  { %v4195_v10 = vadd.s32 %v9973_v1, %v9988_v47  ;;  %v4211_v41 = vsub.s32 32, %v4210_v12  ;;  %v4215_v29 = vsub.s32 4294967266, %v4210_v12  ;;  %v4555_v61 = vand.u32 2147483647, %v10021_v62 }
 0x4c2   :  { %v5445_v43 = vpop.eup %5444  ;;  %v4386_v55 = vsel %vm4380_vm9, %v4383_v46, %v4385_v33  ;;  %v10073_v53 = vmul.u32.u64.low %v10026_v6, %v4394_v44  ;;  %v10074_v26 = vmul.u32.u64.high %v10026_v6, %v4394_v44, %v10073_v53  ;;  %v4559_v34 = vshrl.u32 %v4558_v23, 23 }
 0x4c3   :  { %v5447_v15 = vpop.eup %5446  ;;  %v4967_v32 = vxor.u32 2147483648, %v5445_v43  ;;  %v4212_v57 = vshll.u32 %v10023_v60, %v4210_v12  ;;  %v4213_v36 = vshrl.u32 %v4195_v10, %v4211_v41  ;;  %v4216_v2 = vadd.s32 127, %v4215_v29 }
 0x4c4   :  { %v4964_v49 = vxor.u32 2147483648, %v5447_v15  ;;  %v4226_v1 = vsel %vm4141_vm6, %v4225_v35, %v10013_v38  ;;  %v4405_v47 = vadd.s32 1, %v10065_v3  ;;  %v5165_v59 = vadd.s32 4294967169, %v4559_v34 }
 0x4c5   :  { %v4968_v0 = vsel %vm4966_vm8, %v4967_v32, %v5447_v15  ;;  %v4214_v37 = vor.u32 %v4213_v36, %v4212_v57  ;;  %v4217_v8 = vshll.u32 %v4216_v2, 23  ;;  %v4562_v14 = vand.u32 8388607, %v4555_v61 }
 0x4c6   :  { %v4965_v60 = vsel %vm4963_vm12, %v5445_v43, %v4964_v49  ;;  %v4402_v23 = vmul.u32 %v10026_v6, %v4386_v55  ;;  %vm4404_vm4 = vc.u32 %v10074_v26, %v10064_v19  ;;  %v4565_v38 = vadd.s32 1, %v5165_v59  ;;  %v10717_v59 = vld [vmem:[#allocation27_spill] sm:$0xff] }
 0x4c7   :  { %v4969_v35 = vsel %vm4962_vm14, %v4965_v60, %v4968_v0  ;;  %v4218_v48 = vor.u32 4788187, %v4217_v8  ;;  %v4228_v25 = vsel %vm10053_vm1, 0, %v4226_v1  ;;  %v4406_v31 = vsel %vm4404_vm4, %v4405_v47, %v10065_v3  ;;  %v10718_v60 = vld [vmem:[#allocation61_spill] sm:$0xff] }
 0x4c8   :  { %v4970_v17 = vsel %vm4959_vm15, nan, %v4969_v35  ;;  %v4221_v7 = vcvt.s32.f32 %v4214_v37  ;;  %v4407_v27 = vadd.s32 %v4406_v31, %v4402_v23  ;;  %vm4566_vm0 = vcmp.gt.s32.totalorder %v4565_v38, 0 }
 0x4c9   :  { %v5002_v6 = vadd.f32 %v4970_v17, %v9701_v42  ;;  %v4219_v46 = vand.u32 2147483647, %v4218_v48  ;;  %v4567_v24 = vsel %vm4566_vm0, %v4565_v38, 0  ;;  %v1571_v4 = vmul.f32 %v7196_v58, %v1463_v56 }
 0x4ca   :  { %v4408_v21 = vadd.s32 536870912, %v4407_v27  ;;  %v4569_v28 = vand.u32 31, %v4567_v24  ;;  %v1565_v11 = vmul.f32 %v7196_v58, %v9784_v30  ;;  %v4232_v12 = vadd.s32 3, %v4228_v25 }
 0x4cb   :  { %5035 = vst.msk [vmem:[#allocation2 + $0xf8] sm:$0xff] %vm5003_vm13, %v5002_v6  ;;  %v4222_v33 = vmul.f32 %v4221_v7, %v4219_v46  ;;  %v10101_v20 = vadd.f32 %v1571_v4, %v10716_v5  ;;  %v4563_v10 = vor.u32 8388608, %v4562_v14  ;;  %v10107_v41 = vshrl.u32 %v4567_v24, 5  ;;  %v5503_v7 = vld [vmem:[%s10274_s3] ss:$0 sm:$0xff]  ;;  %s5540_s3 = smov [#allocation2]  }
 0x4cc   :  { %v10105_v44 = vshrl.u32 %v4408_v21, 30  ;;  %v4570_v3 = vsub.s32 32, %v4569_v28  ;;  %v1503_v29 = vmul.f32 %v7193_v18, %v1463_v56  ;;  %v4572_v55 = vshll.u32 %v10603_v50, %v4569_v28  ;;  %s5041_s6 = sshll.u32 %s5540_s3, 4  ;;  %s5042_s6 = int_to_ptr.vmem [resolvable:$true] %s5041_s6 }
 0x4cd   :  { %v4223_v42 = vxor.u32 2147483648, %v4222_v33  ;;  %v4575_v34 = vshll.u32 %v10605_v63, %v4569_v28  ;;  %v4578_v2 = vshll.u32 %v10606_v51, %v4569_v28  ;;  %v4581_v49 = vshll.u32 %v10607_v52, %v4569_v28  ;;  %s5504_s7 = scalar_lea.vmem %s5042_s6, 4096  ;;  %p5509_p1 = scmp.lt.s32.totalorder %s5042_s6, %s5042_s6 }
 0x4ce   :  { %v4410_v43 = vshll.u32 %v10105_v44, 30  ;;  %v4573_v53 = vshrl.u32 %v10605_v63, %v4570_v3  ;;  %v4576_v15 = vshrl.u32 %v10606_v51, %v4570_v3  ;;  %v4579_v32 = vshrl.u32 %v10607_v52, %v4570_v3  ;;  %p5505_p0 = scmp.ne.s32.totalorder %s5042_s6, %s5504_s7  ;;  %p5510_p2 = scmp.lt.s32.totalorder %s5504_s7, %s5504_s7 }
 0x4cf   :  { %v4224_v30 = vsel %vm4141_vm6, %v4223_v42, %v4222_v33  ;;  %v4582_v57 = vshrl.u32 %v10608_v40, %v4570_v3  ;;  %v1535_v0 = vadd.f32 %v1503_v29, %v10717_v59  ;;  %v10129_v23 = vadd.f32 %v1565_v11, %v10718_v60 }
 0x4d0   :  { %v4227_v18 = vsel %vm10053_vm1, %v9836_v9, %v4224_v30  ;;  %v10122_v36 = vsub.s32 %v4407_v27, %v4410_v43  ;;  %v4574_v1 = vor.u32 %v4573_v53, %v4572_v55  ;;  %v4577_v47 = vor.u32 %v4576_v15, %v4575_v34  ;;  %p5511_p3 = por %p5510_p2, %p5509_p1 }
 0x4d1   :  { %5448 = vcosq.f32 %v4227_v18  ;;  %v4580_v8 = vor.u32 %v4579_v32, %v4578_v2  ;;  %v4583_v14 = vor.u32 %v4582_v57, %v4581_v49  ;;  %v4233_v13 = vand.u32 3, %v4232_v12 }
 0x4d2   :  { %5450 = vsinq.f32 %v4227_v18  ;;  %v4413_v37 = vsub.s32 0, %v10122_v36  ;;  %v4584_v38 = vshll.u32 %v10608_v40, %v4569_v28  ;;  %v4585_v56 = vshrl.u32 %v10609_v16, %v4570_v3  ;;  %p5512_p4 = pnand %p5511_p3, %p5505_p0 }
 0x4d3   :  { %vm4587_vm3 = vcmp.lt.s32.totalorder %v10107_v41, 1  ;;  %vm4590_vm5 = vcmp.lt.s32.totalorder %v10107_v41, 4  ;;  %v4603_v48 = vshll.u32 %v4563_v10, 8  ;;  %v10141_v27 = vadd.f32 %v5503_v7, %v1535_v0 }
 0x4d4   :  { %v5158_v35 = vmin.u32 %v4413_v37, %v10122_v36  ;;  %v4586_v25 = vor.u32 %v4585_v56, %v4584_v38  ;;  %v4595_v31 = vsel %vm4587_vm3, %v4574_v1, %v4577_v47  ;;  %v4596_v17 = vsel %vm4590_vm5, %v4583_v14, 920167782 }
 0x4d5   :  { %v4571_v46 = vshrl.u32 %v10603_v50, %v4570_v3  ;;  %vm4589_vm6 = vcmp.lt.s32.totalorder %v10107_v41, 3  ;;  %v4592_v24 = vsel %vm4590_vm5, %v4580_v8, 2102212464  ;;  %vm4234_vm7 = vcmp.lt.s32.totalorder %v4233_v13, 2 }
 0x4d6   :  { %v4415_v6 = vclz %v5158_v35  ;;  %vm4588_vm8 = vcmp.lt.s32.totalorder %v10107_v41, 2  ;;  %v4597_v4 = vsel %vm4589_vm6, %v4580_v8, %v4596_v17  ;;  %v4599_v21 = vsel %vm4587_vm3, %v4577_v47, %v4580_v8 }
 0x4d7   :  { %v4600_v28 = vsel %vm4590_vm5, %v4586_v25, 1326507024  ;;  %vm4231_vm9 = vweird.f32 %v9836_v9  ;;  %v4591_v5 = vsel %vm4587_vm3, %v4571_v46, %v4574_v1  ;;  %v4598_v11 = vsel %vm4588_vm8, %v4595_v31, %v4597_v4 }
 0x4d8   :  { %v5159_v33 = vadd.s32 4294967294, %v4415_v6  ;;  %v4601_v12 = vsel %vm4589_vm6, %v4583_v14, %v4600_v28  ;;  %vm4349_vm10 = vcmp.lt.s32.totalorder %v9942_v45, 0  ;;  %v4593_v3 = vsel %vm4589_vm6, %v4577_v47, %v4592_v24 }
 0x4d9   :  { %v4602_v42 = vsel %vm4588_vm8, %v4599_v21, %v4601_v12  ;;  %v10156_v10 = vmul.u32.u64.low %v4603_v48, %v4598_v11  ;;  %v10157_v29 = vmul.u32.u64.high %v4603_v48, %v4598_v11, %v10156_v10  ;;  %vm4235_vm11 = vcmp.eq.s32.totalorder %v4233_v13, 0 }
 0x4da   :  { %vm5160_vm12 = vcmp.lt.s32.totalorder %v5159_v33, 0  ;;  %v10160_v43 = vmul.u32.u64.low %v4603_v48, %v4602_v42  ;;  %v10161_v55 = vmul.u32.u64.high %v4603_v48, %v4602_v42, %v10160_v43  ;;  %vm4238_vm14 = vcmp.eq.s32.totalorder %v4233_v13, 2 }
 0x4db   :  { %v5449_v53 = vpop.eup %5448  ;;  %v4403_v34 = vadd.s32 %v10064_v19, %v10074_v26  ;;  %v4418_v30 = vsel %vm5160_vm12, 0, %v5159_v33  ;;  %v4766_v15 = vand.u32 2139095040, %v10141_v27  ;;  %v4594_v49 = vsel %vm4588_vm8, %v4591_v5, %v4593_v3 }
 0x4dc   :  { %v5451_v32 = vpop.eup %5450  ;;  %v4239_v57 = vxor.u32 2147483648, %v5449_v53  ;;  %v4419_v18 = vsub.s32 32, %v4418_v30  ;;  %v4423_v2 = vsub.s32 4294967266, %v4418_v30  ;;  %v4433_v47 = vsub.s32 4, %v10105_v44 }
 0x4dd   :  { %v4236_v1 = vxor.u32 2147483648, %v5451_v32  ;;  %v4613_v59 = vadd.s32 1, %v10157_v29  ;;  %v4767_v0 = vshrl.u32 %v4766_v15, 23  ;;  %v4420_v8 = vshll.u32 %v10122_v36, %v4418_v30 }
 0x4de   :  { %v4240_v37 = vsel %vm4238_vm14, %v4239_v57, %v5451_v32  ;;  %v4421_v19 = vshrl.u32 %v4403_v34, %v4419_v18  ;;  %v4424_v26 = vadd.s32 127, %v4423_v2  ;;  %v4610_v60 = vmul.u32 %v4603_v48, %v4594_v49 }
 0x4df   :  { %v4237_v14 = vsel %vm4235_vm11, %v5449_v53, %v4236_v1  ;;  %vm4612_vm1 = vc.u32 %v10161_v55, %v10156_v10  ;;  %v5173_v38 = vadd.s32 4294967169, %v4767_v0  ;;  %v4763_v36 = vand.u32 2147483647, %v10141_v27 }
 0x4e0   :  { %v4241_v41 = vsel %vm4234_vm7, %v4237_v14, %v4240_v37  ;;  %v4422_v56 = vor.u32 %v4421_v19, %v4420_v8  ;;  %v4425_v35 = vshll.u32 %v4424_v26, 23  ;;  %v4614_v25 = vsel %vm4612_vm1, %v4613_v59, %v10157_v29 }
 0x4e1   :  { %v4242_v31 = vsel %vm4231_vm9, nan, %v4241_v41  ;;  %v4615_v17 = vadd.s32 %v4614_v25, %v4610_v60  ;;  %v4773_v7 = vadd.s32 1, %v5173_v38  ;;  %v4434_v46 = vsel %vm4349_vm10, %v4433_v47, %v10105_v44 }
 0x4e2   :  { %v4995_v6 = vadd.f32 %v4242_v31, %v10129_v23  ;;  %v4426_v48 = vor.u32 4788187, %v4425_v35  ;;  %vm10186_vm2 = vcmp.le.f32.partialorder %v4347_v39, 0.7853982  ;;  %v4429_v4 = vcvt.s32.f32 %v4422_v56 }
 0x4e3   :  { %v4616_v13 = vadd.s32 536870912, %v4615_v17  ;;  %vm4774_vm15 = vcmp.gt.s32.totalorder %v4773_v7, 0  ;;  %v4436_v23 = vsel %vm10186_vm2, 0, %v4434_v46  ;;  %v4770_v44 = vand.u32 8388607, %v4763_v36 }
 0x4e4   :  { %5028 = vst.msk [vmem:[#allocation2 + $0xc0] sm:$0xff] %vm5003_vm13, %v4995_v6  ;;  %v4427_v24 = vand.u32 2147483647, %v4426_v48  ;;  %v4775_v21 = vsel %vm4774_vm15, %v4773_v7, 0  ;;  %v1567_v39 = vmul.f32 %v7196_v58, %v9872_v22  ;;  %v4440_v42 = vadd.s32 3, %v4436_v23 }
 0x4e5   :  { %v10192_v28 = vshrl.u32 %v4616_v13, 30  ;;  %v4777_v33 = vand.u32 31, %v4775_v21  ;;  %v4771_v43 = vor.u32 8388608, %v4770_v44  ;;  %v4776_v53 = vshrl.u32 %v4775_v21, 5 }
 0x4e6   :  { %v4430_v5 = vmul.f32 %v4429_v4, %v4427_v24  ;;  %v4441_v19 = vand.u32 3, %v4440_v42  ;;  %v4611_v24 = vadd.s32 %v10156_v10, %v10161_v55  ;;  %vm4439_vm11 = vweird.f32 %v9942_v45 }
 0x4e7   :  { %v4618_v11 = vshll.u32 %v10192_v28, 30  ;;  %v4778_v12 = vsub.s32 32, %v4777_v33  ;;  %v4780_v15 = vshll.u32 %v10603_v50, %v4777_v33  ;;  %v4783_v2 = vshll.u32 %v10605_v63, %v4777_v33 }
 0x4e8   :  { %v4431_v3 = vxor.u32 2147483648, %v4430_v5  ;;  %v4786_v49 = vshll.u32 %v10606_v51, %v4777_v33  ;;  %v4789_v47 = vshll.u32 %v10607_v52, %v4777_v33  ;;  %v4792_v14 = vshll.u32 %v10608_v40, %v4777_v33 }
 0x4e9   :  { %v10199_v29 = vsub.s32 %v4615_v17, %v4618_v11  ;;  %v4781_v34 = vshrl.u32 %v10605_v63, %v4778_v12  ;;  %v4784_v32 = vshrl.u32 %v10606_v51, %v4778_v12  ;;  %v4787_v57 = vshrl.u32 %v10607_v52, %v4778_v12 }
 0x4ea   :  { %v4432_v30 = vsel %vm4349_vm10, %v4431_v3, %v4430_v5  ;;  %v4790_v59 = vshrl.u32 %v10608_v40, %v4778_v12  ;;  %v4793_v60 = vshrl.u32 %v10609_v16, %v4778_v12  ;;  %v4779_v51 = vshrl.u32 %v10603_v50, %v4778_v12 }
 0x4eb   :  { %v4435_v22 = vsel %vm10186_vm2, %v9942_v45, %v4432_v30  ;;  %v4621_v18 = vsub.s32 0, %v10199_v29  ;;  %v4782_v1 = vor.u32 %v4781_v34, %v4780_v15  ;;  %v4785_v37 = vor.u32 %v4784_v32, %v4783_v2  ;;  %v10721_v34 = vld [vmem:[#allocation34_spill] sm:$0xff] }
 0x4ec   :  { %5452 = vcosq.f32 %v4435_v22  ;;  %v4788_v8 = vor.u32 %v4787_v57, %v4786_v49  ;;  %v4791_v26 = vor.u32 %v4790_v59, %v4789_v47  ;;  %vm4795_vm4 = vcmp.lt.s32.totalorder %v4776_v53, 1 }
 0x4ed   :  { %5454 = vsinq.f32 %v4435_v22  ;;  %v5166_v0 = vmin.u32 %v4621_v18, %v10199_v29  ;;  %v4811_v38 = vshll.u32 %v4771_v43, 8  ;;  %v4794_v41 = vor.u32 %v4793_v60, %v4792_v14 }
 0x4ee   :  { %vm4796_vm0 = vcmp.lt.s32.totalorder %v4776_v53, 2  ;;  %vm4797_vm3 = vcmp.lt.s32.totalorder %v4776_v53, 3  ;;  %vm4798_vm5 = vcmp.lt.s32.totalorder %v4776_v53, 4  ;;  %v4803_v35 = vsel %vm4795_vm4, %v4782_v1, %v4785_v37 }
 0x4ef   :  { %v4623_v63 = vclz %v5166_v0  ;;  %v4800_v56 = vsel %vm4798_vm5, %v4788_v8, 2102212464  ;;  %v4804_v25 = vsel %vm4798_vm5, %v4791_v26, 920167782  ;;  %v4799_v31 = vsel %vm4795_vm4, %v4779_v51, %v4782_v1 }
 0x4f0   :  { %v4805_v17 = vsel %vm4797_vm3, %v4788_v8, %v4804_v25  ;;  %v4807_v7 = vsel %vm4795_vm4, %v4785_v37, %v4788_v8  ;;  %v4808_v6 = vsel %vm4798_vm5, %v4794_v41, 1326507024  ;;  %v4801_v40 = vsel %vm4797_vm3, %v4785_v37, %v4800_v56 }
 0x4f1   :  { %v5167_v52 = vadd.s32 4294967294, %v4623_v63  ;;  %v4806_v16 = vsel %vm4796_vm0, %v4803_v35, %v4805_v17  ;;  %v4809_v48 = vsel %vm4797_vm3, %v4791_v26, %v4808_v6  ;;  %v4802_v44 = vsel %vm4796_vm0, %v4799_v31, %v4801_v40 }
 0x4f2   :  { %v4810_v46 = vsel %vm4796_vm0, %v4807_v7, %v4809_v48  ;;  %v10221_v13 = vmul.u32.u64.low %v4811_v38, %v4806_v16  ;;  %v10222_v9 = vmul.u32.u64.high %v4811_v38, %v4806_v16, %v10221_v13  ;;  %v1599_v30 = vadd.f32 %v1567_v39, %v10721_v34 }
 0x4f3   :  { %vm5168_vm6 = vcmp.lt.s32.totalorder %v5167_v52, 0  ;;  %v10228_v33 = vmul.u32.u64.low %v4811_v38, %v4810_v46  ;;  %v10229_v5 = vmul.u32.u64.high %v4811_v38, %v4810_v46, %v10228_v33  ;;  %vm4446_vm7 = vcmp.eq.s32.totalorder %v4441_v19, 2 }
 0x4f4   :  { %v4626_v50 = vsel %vm5168_vm6, 0, %v5167_v52  ;;  %v4821_v10 = vadd.s32 1, %v10222_v9  ;;  %vm4443_vm8 = vcmp.eq.s32.totalorder %v4441_v19, 0  ;;  %vm4442_vm9 = vcmp.lt.s32.totalorder %v4441_v19, 2 }
 0x4f5   :  { %v4627_v4 = vsub.s32 32, %v4626_v50  ;;  %v4631_v21 = vsub.s32 4294967266, %v4626_v50  ;;  %v4628_v3 = vshll.u32 %v10199_v29, %v4626_v50  ;;  %v4818_v22 = vmul.u32 %v4811_v38, %v4802_v44 }
 0x4f6   :  { %v5453_v23 = vpop.eup %5452  ;;  %vm4820_vm10 = vc.u32 %v10229_v5, %v10221_v13  ;;  %v4641_v8 = vsub.s32 4, %v10192_v28  ;;  %vm4557_vm12 = vcmp.lt.s32.totalorder %v10021_v62, 0  ;;  %vm4556_vm14 = vcmp.le.f32.partialorder %v4555_v61, 0.7853982 }
 0x4f7   :  { %v5455_v11 = vpop.eup %5454  ;;  %v4447_v12 = vxor.u32 2147483648, %v5453_v23  ;;  %v4629_v42 = vshrl.u32 %v4611_v24, %v4627_v4  ;;  %v4632_v43 = vadd.s32 127, %v4631_v21  ;;  %v4822_v39 = vsel %vm4820_vm10, %v4821_v10, %v10222_v9  ;;  %v10722_v21 = vld [vmem:[#allocation17_spill] sm:$0xff] }
 0x4f8   :  { %v4444_v15 = vxor.u32 2147483648, %v5455_v11  ;;  %v4823_v49 = vadd.s32 %v4822_v39, %v4818_v22  ;;  %v4642_v60 = vsel %vm4557_vm12, %v4641_v8, %v10192_v28  ;;  %v1569_v61 = vmul.f32 %v7196_v58, %v9982_v54 }
 0x4f9   :  { %v4448_v55 = vsel %vm4446_vm7, %v4447_v12, %v5455_v11  ;;  %v4630_v32 = vor.u32 %v4629_v42, %v4628_v3  ;;  %v4633_v53 = vshll.u32 %v4632_v43, 23  ;;  %v4644_v38 = vsel %vm4556_vm14, 0, %v4642_v60 }
 0x4fa   :  { %v4445_v57 = vsel %vm4443_vm8, %v5453_v23, %v4444_v15  ;;  %v4824_v0 = vadd.s32 536870912, %v4823_v49  ;;  %v4648_v56 = vadd.s32 3, %v4644_v38  ;;  %v4819_v40 = vadd.s32 %v10221_v13, %v10229_v5 }
 0x4fb   :  { %v4449_v29 = vsel %vm4442_vm9, %v4445_v57, %v4448_v55  ;;  %v4634_v18 = vor.u32 4788187, %v4633_v53  ;;  %v4637_v59 = vcvt.s32.f32 %v4630_v32  ;;  %v1601_v23 = vadd.f32 %v1569_v61, %v10722_v21 }
 0x4fc   :  { %v4450_v2 = vsel %vm4439_vm11, nan, %v4449_v29  ;;  %v4825_v19 = vshrl.u32 %v4824_v0, 30  ;;  %v4649_v31 = vand.u32 3, %v4648_v56  ;;  %vm4647_vm0 = vweird.f32 %v10021_v62 }
 0x4fd   :  { %v4997_v1 = vadd.f32 %v4450_v2, %v1599_v30  ;;  %v4635_v47 = vand.u32 2147483647, %v4634_v18  ;;  %vm4765_vm3 = vcmp.lt.s32.totalorder %v10141_v27, 0  ;;  %vm4764_vm5 = vcmp.le.f32.partialorder %v4763_v36, 0.7853982 }
 0x4fe   :  { %v4826_v45 = vshll.u32 %v4825_v19, 30  ;;  %vm4651_vm15 = vcmp.eq.s32.totalorder %v4649_v31, 0  ;;  %vm4654_vm2 = vcmp.eq.s32.totalorder %v4649_v31, 2  ;;  %vm4650_vm4 = vcmp.lt.s32.totalorder %v4649_v31, 2 }
 0x4ff   :  { %5030 = vst.msk [vmem:[#allocation2 + $0xd0] sm:$0xff] %vm5003_vm13, %v4997_v1  ;;  %v4638_v37 = vmul.f32 %v4637_v59, %v4635_v47  ;;  %v4849_v43 = vsub.s32 4, %v4825_v19  ;;  %vm4855_vm9 = vweird.f32 %v10141_v27 }
 0x500   :  { %v4827_v51 = vsub.s32 %v4823_v49, %v4826_v45 }
 0x501   :  { %v4639_v26 = vxor.u32 2147483648, %v4638_v37 }
 0x502   :  { %v4829_v41 = vsub.s32 0, %v4827_v51 }
 0x503   :  { %v4640_v14 = vsel %vm4557_vm12, %v4639_v26, %v4638_v37 }
 0x504   :  { %v4643_v63 = vsel %vm4556_vm14, %v10021_v62, %v4640_v14  ;;  %v5174_v52 = vmin.u32 %v4829_v41, %v4827_v51  ;;  %v4850_v62 = vsel %vm4765_vm3, %v4849_v43, %v4825_v19 }
 0x505   :  { %5456 = vcosq.f32 %v4643_v63  ;;  %v4852_v10 = vsel %vm4764_vm5, 0, %v4850_v62 }
 0x506   :  { %5458 = vsinq.f32 %v4643_v63  ;;  %v4831_v35 = vclz %v5174_v52  ;;  %v4856_v55 = vadd.s32 3, %v4852_v10 }
 0x508   :  { %v5175_v25 = vadd.s32 4294967294, %v4831_v35  ;;  %v4857_v32 = vand.u32 3, %v4856_v55 }
 0x50a   :  { %vm5176_vm1 = vcmp.lt.s32.totalorder %v5175_v25, 0  ;;  %vm4862_vm6 = vcmp.eq.s32.totalorder %v4857_v32, 2  ;;  %vm4859_vm7 = vcmp.eq.s32.totalorder %v4857_v32, 0  ;;  %vm4858_vm8 = vcmp.lt.s32.totalorder %v4857_v32, 2 }
 0x50b   :  { %v4834_v7 = vsel %vm5176_vm1, 0, %v5175_v25 }
 0x50c   :  { %v4835_v16 = vsub.s32 32, %v4834_v7  ;;  %v4839_v48 = vsub.s32 4294967266, %v4834_v7  ;;  %v4836_v9 = vshll.u32 %v4827_v51, %v4834_v7 }
 0x50e   :  { %v4837_v24 = vshrl.u32 %v4819_v40, %v4835_v16  ;;  %v4840_v4 = vadd.s32 127, %v4839_v48 }
 0x50f   :  { %v5457_v17 = vpop.eup %5456 }
 0x510   :  { %v5459_v6 = vpop.eup %5458  ;;  %v4655_v28 = vxor.u32 2147483648, %v5457_v17  ;;  %v4838_v54 = vor.u32 %v4837_v24, %v4836_v9  ;;  %v4841_v33 = vshll.u32 %v4840_v4, 23 }
 0x511   :  { %v4652_v50 = vxor.u32 2147483648, %v5459_v6 }
 0x512   :  { %v4656_v46 = vsel %vm4654_vm2, %v4655_v28, %v5459_v6  ;;  %v4842_v5 = vor.u32 4788187, %v4841_v33  ;;  %v4845_v3 = vcvt.s32.f32 %v4838_v54 }
 0x513   :  { %v4653_v44 = vsel %vm4651_vm15, %v5457_v17, %v4652_v50 }
 0x514   :  { %v4657_v58 = vsel %vm4650_vm4, %v4653_v44, %v4656_v46  ;;  %v4843_v12 = vand.u32 2147483647, %v4842_v5 }
 0x515   :  { %v4658_v11 = vsel %vm4647_vm0, nan, %v4657_v58 }
 0x516   :  { %v4999_v13 = vadd.f32 %v4658_v11, %v1601_v23  ;;  %v4846_v42 = vmul.f32 %v4845_v3, %v4843_v12 }
 0x518   :  { %5032 = vst.msk [vmem:[#allocation2 + $0xe0] sm:$0xff] %vm5003_vm13, %v4999_v13  ;;  %v4847_v34 = vxor.u32 2147483648, %v4846_v42 }
 0x51a   :  { %v4848_v30 = vsel %vm4765_vm3, %v4847_v34, %v4846_v42 }
 0x51b   :  { %v4851_v15 = vsel %vm4764_vm5, %v10141_v27, %v4848_v30 }
 0x51c   :  { %5460 = vcosq.f32 %v4851_v15 }
 0x51d   :  { %5462 = vsinq.f32 %v4851_v15 }
 0x526   :  { %v5461_v53 = vpop.eup %5460 }
 0x527   :  { %v5463_v57 = vpop.eup %5462  ;;  %v4863_v22 = vxor.u32 2147483648, %v5461_v53 }
 0x528   :  { %v4860_v29 = vxor.u32 2147483648, %v5463_v57 }
 0x529   :  { %v4864_v18 = vsel %vm4862_vm6, %v4863_v22, %v5463_v57 }
 0x52a   :  { %v4861_v39 = vsel %vm4859_vm7, %v5461_v53, %v4860_v29 }
 0x52b   :  { %v4865_v36 = vsel %vm4858_vm8, %v4861_v39, %v4864_v18 }
 0x52c   :  { %v4866_v2 = vsel %vm4855_vm9, nan, %v4865_v36 }
 0x52d   :  { %v5001_v49 = vadd.f32 %v4866_v2, %v10101_v20 }
 0x52f   :  { %5034 = vst.msk [vmem:[#allocation2 + $0xf0] sm:$0xff] %vm5003_vm13, %v5001_v49 }
 0x530   :  { %5515 = shalt.err (!%p5512_p4)
}
 0x531   :  { %s5516_s10 = scalar_lea.hbm %s10275_s4, 4096 }
 0x532   :  { %p5517_p5 = scmp.ne.s32.totalorder %s10275_s4, %s5516_s10  ;;  %p5520_p6 = scmp.lt.u32.totalorder %s5516_s10, %s10275_s4 }
 0x534   :  { %p5522_p7 = pnand %p5520_p6, %p5517_p5 }
 0x536   :  { %5525 = shalt.err (!%p5522_p7)
}
 0x537   :  { %s5541_s15 = smov 128   ;;  %s5542_s16 = smov 8  }
 0x538   :  { %5047 = dma.vmem_to_hbm [thread:$0]  %s5042_s6, 4096, %s10275_s4, [#allocation3], %s5541_s15, %s5541_s15, %s5542_s16  }
 0x539   :  { %5526 = dma.done.wait [#allocation3], 4096  }
 0x53a   :  { %5527 = vsyncadd [#allocation3], 4294963200 }
 0x53b   :  { %5051 = vsyncpa [#allocation3], 1 }

</bundles_post_ra>
